<compile_context>
chip_gen: v6e
topology: v6e:2x2x1
jax: 0.10.0
libtpu: 0.0.40
codegen_flags: <defaults>
</compile_context>

<pallas_src>
import functools

import jax
import jax.numpy as jnp
from jax.experimental import pallas as pl
from jax.experimental.pallas import tpu as pltpu

VMEM_LIMIT = 48 * 1024 * 1024   # safe on v5e/v6e (128 MiB) and v7x (64 MiB)


def _round_up(x, m):
    return -(-x // m) * m


def _choose_tm(m_rows):
    """Row tile: sublane-aligned (x is bf16 -> multiples of 16), >=2 grid steps
    whenever possible so the parallel M axis can shard across both v7x cores."""
    tm = min(128, _round_up((m_rows + 1) // 2, 16))
    return max(16, tm)


# ----------------------------------------------------------------------------
# Pallas kernels: tiled matmul with fused bias + activation / residual / gate
# ----------------------------------------------------------------------------
def _mm_plain_kernel(x_ref, w_ref, b_ref, o_ref):
    acc = jnp.dot(x_ref[...], w_ref[...], preferred_element_type=jnp.float32)
    o_ref[...] = (acc + b_ref[...]).astype(o_ref.dtype)


def _mm_prelu_kernel(x_ref, w_ref, b_ref, a_ref, o_ref):
    acc = jnp.dot(x_ref[...], w_ref[...], preferred_element_type=jnp.float32)
    acc = acc + b_ref[...]
    o_ref[...] = jnp.where(acc > 0, acc, acc * a_ref[...]).astype(o_ref.dtype)


def _mm_add_kernel(x_ref, w_ref, b_ref, r_ref, o_ref):
    # out = x @ w + b + residual   (ResBlock_new epilogue, fused)
    acc = jnp.dot(x_ref[...], w_ref[...], preferred_element_type=jnp.float32)
    o_ref[...] = (acc + b_ref[...] + r_ref[...]).astype(o_ref.dtype)


def _mm_gate_kernel(x_ref, w_ref, b_ref, xin_ref, t_ref, o_ref):
    # out = xin + trunk * sigmoid(x @ w + b)   (Non_local_Attention epilogue)
    acc = jnp.dot(x_ref[...], w_ref[...], preferred_element_type=jnp.float32)
    att = jax.nn.sigmoid(acc + b_ref[...])
    o_ref[...] = (xin_ref[...] + t_ref[...] * att).astype(o_ref.dtype)


def _ca_kernel(x_ref, w1_ref, b1_ref, w2_ref, b2_ref, res_ref, o_ref, *, batch):
    # channel_attention_layer + RCAB residual, whole batch in one grid step.
    x = x_ref[...]                                    # (B, HW, C) f32
    m = jnp.mean(x, axis=1)                           # adaptive avg pool -> (B, C)
    if batch < 8:                                     # pad sublanes for the MXU
        m = jnp.concatenate(
            [m, jnp.zeros((8 - batch, m.shape[1]), m.dtype)], axis=0)
    h = jnp.dot(m, w1_ref[...], preferred_element_type=jnp.float32) + b1_ref[...]
    h = jnp.maximum(h, 0.0)                           # ReLU
    s = jnp.dot(h, w2_ref[...], preferred_element_type=jnp.float32) + b2_ref[...]
    s = jax.nn.sigmoid(s)
    scale = s[:batch][:, None, :]                     # (B, 1, C)
    o_ref[...] = (x * scale + res_ref[...]).astype(o_ref.dtype)


# ----------------------------------------------------------------------------
# Pallas wrappers
# ----------------------------------------------------------------------------
def matmul_fused(xm, w, b, *, alpha=None, residual=None, gate=None):
    """(M, K) @ (K, N) + b with a fused epilogue, tiled over M.

    alpha    -> PReLU with per-channel slope
    residual -> add a (M, N) tensor (res-block skip)
    gate     -> (xin, trunk): out = xin + trunk * sigmoid(acc)
    Exactly one of {alpha, residual, gate} (or none) may be given.
    """
    M, K = xm.shape
    N = w.shape[1]
    TM = _choose_tm(M)
    Mp = _round_up(M, TM)
    pad = Mp - M

    def pad_rows(z):
        return jnp.pad(z, ((0, pad), (0, 0))) if pad else z

    x_b = pad_rows(xm.astype(jnp.bfloat16))
    w_b = w.astype(jnp.bfloat16)
    ops = [x_b, w_b, b.reshape(1, N).astype(jnp.float32)]
    in_specs = [
        pl.BlockSpec((TM, K), lambda i: (i, 0)),
        pl.BlockSpec((K, N), lambda i: (0, 0)),
        pl.BlockSpec((1, N), lambda i: (0, 0)),
    ]

    if alpha is not None:
        kernel = _mm_prelu_kernel
        ops.append(alpha.reshape(1, N).astype(jnp.float32))
        in_specs.append(pl.BlockSpec((1, N), lambda i: (0, 0)))
    elif residual is not None:
        kernel = _mm_add_kernel
        ops.append(pad_rows(residual.astype(jnp.float32)))
        in_specs.append(pl.BlockSpec((TM, N), lambda i: (i, 0)))
    elif gate is not None:
        kernel = _mm_gate_kernel
        xin, trunk = gate
        ops += [pad_rows(xin.astype(jnp.float32)),
                pad_rows(trunk.astype(jnp.float32))]
        in_specs += [pl.BlockSpec((TM, N), lambda i: (i, 0)),
                     pl.BlockSpec((TM, N), lambda i: (i, 0))]
    else:
        kernel = _mm_plain_kernel

    out = pl.pallas_call(
        kernel,
        out_shape=jax.ShapeDtypeStruct((Mp, N), jnp.float32),
        grid=(Mp // TM,),
        in_specs=in_specs,
        out_specs=pl.BlockSpec((TM, N), lambda i: (i, 0)),
        compiler_params=pltpu.CompilerParams(
            dimension_semantics=("parallel",),
            vmem_limit_bytes=VMEM_LIMIT),
    )(*ops)
    return out[:M] if pad else out


def channel_attention_residual(r, x, w1, b1, w2, b2):
    """RCAB epilogue: r * sigmoid(FC(relu(FC(avgpool(r))))) + x, fused."""
    B, H, W, C = r.shape
    red = w1.shape[1]
    r3 = r.reshape(B, H * W, C)
    x3 = x.reshape(B, H * W, C)
    o = pl.pallas_call(
        functools.partial(_ca_kernel, batch=B),
        out_shape=jax.ShapeDtypeStruct((B, H * W, C), jnp.float32),
        grid=(1,),
        in_specs=[
            pl.BlockSpec((B, H * W, C), lambda i: (0, 0, 0)),
            pl.BlockSpec((C, red), lambda i: (0, 0)),
            pl.BlockSpec((1, red), lambda i: (0, 0)),
            pl.BlockSpec((red, C), lambda i: (0, 0)),
            pl.BlockSpec((1, C), lambda i: (0, 0)),
            pl.BlockSpec((B, H * W, C), lambda i: (0, 0, 0)),
        ],
        out_specs=pl.BlockSpec((B, H * W, C), lambda i: (0, 0, 0)),
        compiler_params=pltpu.CompilerParams(
            dimension_semantics=("arbitrary",),
            vmem_limit_bytes=VMEM_LIMIT),
    )(r3, w1, b1.reshape(1, red), w2, b2.reshape(1, C), x3)
    return o.reshape(B, H, W, C)


# ----------------------------------------------------------------------------
# Conv glue (im2col in JAX, matmul + epilogue in Pallas)
# ----------------------------------------------------------------------------
def conv2d(x, w, b, *, stride=1, pad=((0, 0), (0, 0)), mode="constant",
           alpha=None, residual=None, gate=None):
    """x: (B,H,W,Cin) NHWC; w: (kh,kw,Cin,Cout); supports stride + pad modes."""
    kh, kw, cin, cout = w.shape
    xp = jnp.pad(x, ((0, 0), pad[0], pad[1], (0, 0)), mode=mode)
    B, Hp, Wp, _ = xp.shape
    Ho = (Hp - kh) // stride + 1
    Wo = (Wp - kw) // stride + 1
    cols = [xp[:, dy:dy + (Ho - 1) * stride + 1:stride,
               dx:dx + (Wo - 1) * stride + 1:stride, :]
            for dy in range(kh) for dx in range(kw)]
    xm = jnp.concatenate(cols, axis=-1).reshape(B * Ho * Wo, kh * kw * cin)
    flat = lambda z: None if z is None else z.reshape(B * Ho * Wo, -1)
    y = matmul_fused(xm, w.reshape(kh * kw * cin, cout), b,
                     alpha=alpha, residual=flat(residual),
                     gate=None if gate is None else tuple(flat(g) for g in gate))
    return y.reshape(B, Ho, Wo, cout)


def conv1x1(x, w, b, *, alpha=None, residual=None, gate=None):
    B, H, W, C = x.shape
    flat = lambda z: None if z is None else z.reshape(B * H * W, -1)
    y = matmul_fused(x.reshape(B * H * W, C), w, b,
                     alpha=alpha, residual=flat(residual),
                     gate=None if gate is None else tuple(flat(g) for g in gate))
    return y.reshape(B, H, W, -1)


# ----------------------------------------------------------------------------
# Module forward passes
# ----------------------------------------------------------------------------
def res_block_new(x, p):
    y = conv1x1(x, p["w1"], p["b1"], alpha=p["a1"])                       # 192->96, PReLU
    y = conv2d(y, p["w2"], p["b2"], pad=((1, 1), (1, 1)), mode="edge",    # 3x3 replicate pad
               alpha=p["a2"])
    return conv1x1(y, p["w3"], p["b3"], residual=x)                       # 96->192, +x fused


def rcab(x, p):
    r = conv2d(x, p["w1"], p["b1"], pad=((1, 1), (1, 1)), mode="constant",
               alpha=p["a1"])
    r = conv2d(r, p["w2"], p["b2"], pad=((1, 1), (1, 1)), mode="constant")
    return channel_attention_residual(r, x, p["ca_w1"], p["ca_b1"],
                                      p["ca_w2"], p["ca_b2"])


def non_local_attention(x, p):
    a = res_block_new(x, p["att1"])
    a = res_block_new(a, p["att2"])
    a = res_block_new(a, p["att3"])
    t = res_block_new(x, p["trunk1"])
    t = res_block_new(t, p["trunk2"])
    t = res_block_new(t, p["trunk3"])
    # x + trunk * sigmoid(conv1(a))  -- gate fused into the 1x1 conv epilogue
    return conv1x1(a, p["conv1_w"], p["conv1_b"], gate=(x, t))


@jax.jit
def hyper_encoder_forward(x_nchw, params):
    x = jnp.transpose(x_nchw, (0, 2, 3, 1)).astype(jnp.float32)   # NCHW -> NHWC
    # _hyper_encoder: Conv2d(nic, 192, 5, 2, 2) -> 2x EncResUnit ->
    #                 Conv2d(192, 192, 5, 2, 2) -> 2x EncResUnit
    y = conv2d(x, params["enc1_w"], params["enc1_b"],
               stride=2, pad=((2, 2), (2, 2)))
    # TODO(synk): EncResUnit(192,192,1) is not defined in the source module;
    # the four shape-preserving EncResUnit stages are treated as identity.
    y = conv2d(y, params["enc2_w"], params["enc2_b"],
               stride=2, pad=((2, 2), (2, 2)))
    out1 = rcab(y, params["rcab"])
    out2 = non_local_attention(out1, params["nla"])
    return jnp.transpose(out2, (0, 3, 1, 2))                      # NHWC -> NCHW


# ----------------------------------------------------------------------------
# Deterministic parameter init (matches the PyTorch module's shapes)
# ----------------------------------------------------------------------------
def init_params(key, in_channels=192):
    keys = iter(jax.random.split(key, 128))

    def w(shape):
        fan_in = 1
        for s in shape[:-1]:
            fan_in *= s
        return jax.random.normal(next(keys), shape, jnp.float32) / jnp.sqrt(
            jnp.float32(fan_in))

    def bias(n):
        return 0.01 * jax.random.normal(next(keys), (n,), jnp.float32)

    def prelu(n):
        return jnp.full((n,), 0.25, jnp.float32)   # PyTorch PReLU default slope

    def resblock():
        return dict(w1=w((192, 96)), b1=bias(96), a1=prelu(96),
                    w2=w((3, 3, 96, 96)), b2=bias(96), a2=prelu(96),
                    w3=w((96, 192)), b3=bias(192))

    return dict(
        enc1_w=w((5, 5, in_channels, 192)), enc1_b=bias(192),
        enc2_w=w((5, 5, 192, 192)), enc2_b=bias(192),
        rcab=dict(w1=w((3, 3, 192, 192)), b1=bias(192), a1=prelu(192),
                  w2=w((3, 3, 192, 192)), b2=bias(192),
                  ca_w1=w((192, 12)), ca_b1=bias(12),
                  ca_w2=w((12, 192)), ca_b2=bias(192)),
        nla=dict(att1=resblock(), att2=resblock(), att3=resblock(),
                 trunk1=resblock(), trunk2=resblock(), trunk3=resblock(),
                 conv1_w=w((192, 192)), conv1_b=bias(192)),
    )


if __name__ == "__main__":
    B, C, H, W = 2, 192, 16, 16       # latent/out channels fixed to 192 by the module
    x = jax.random.normal(jax.random.PRNGKey(0), (B, C, H, W), jnp.float32)
    params = init_params(jax.random.PRNGKey(42), in_channels=C)

    out = hyper_encoder_forward(x, params)
    out = jax.block_until_ready(out)

    assert out.shape == (B, 192, H // 4, W // 4), out.shape
    assert bool(jnp.all(jnp.isfinite(out)))
    print("KERNEL_OK")
</pallas_src>

<mosaic_0001>
module attributes {stable_mosaic.version = 11 : i64} {
  func.func @_mm_plain_kernel(%arg0: i32, %arg1: memref<64x4800xbf16, #tpu.memory_space<vmem>>, %arg2: memref<4800x192xbf16, #tpu.memory_space<vmem>>, %arg3: memref<1x192xf32, #tpu.memory_space<vmem>>, %arg4: memref<64x192xf32, #tpu.memory_space<vmem>>) attributes {dimension_semantics = [#tpu.dimension_semantics<parallel>], iteration_bounds = array<i64: 2>, scalar_prefetch = 0 : i64, scratch_operands = 0 : i64, tpu.core_type = #tpu.core_type<tc>, window_params = [{transform_indices = @transform_0, window_bounds = array<i64: 64, 4800>}, {pipeline_mode = #tpu.pipeline_mode<synchronous>, transform_indices = @transform_1, window_bounds = array<i64: 4800, 192>}, {pipeline_mode = #tpu.pipeline_mode<synchronous>, transform_indices = @transform_2, window_bounds = array<i64: 1, 192>}, {transform_indices = @transform_3, window_bounds = array<i64: 64, 192>}]} {
    %c0 = arith.constant 0 : index
    %c0_0 = arith.constant 0 : index
    %0 = vector.load %arg1[%c0, %c0_0] : memref<64x4800xbf16, #tpu.memory_space<vmem>>, vector<64x4800xbf16>
    %c0_1 = arith.constant 0 : index
    %c0_2 = arith.constant 0 : index
    %1 = vector.load %arg2[%c0_1, %c0_2] : memref<4800x192xbf16, #tpu.memory_space<vmem>>, vector<4800x192xbf16>
    %cst = arith.constant dense<0.000000e+00> : vector<64x192xf32>
    %2 = tpu.matmul %0, %1, %cst {dimension_numbers = #tpu.dot_dimension_numbers<[1], [0], [0], [1], [0, 0, 1, 1], [], []>} : vector<64x4800xbf16>, vector<4800x192xbf16>, vector<64x192xf32> -> vector<64x192xf32>
    %c0_3 = arith.constant 0 : index
    %c0_4 = arith.constant 0 : index
    %3 = vector.load %arg3[%c0_3, %c0_4] : memref<1x192xf32, #tpu.memory_space<vmem>>, vector<1x192xf32>
    %4 = vector.broadcast %3 : vector<1x192xf32> to vector<64x192xf32>
    %5 = arith.addf %2, %4 : vector<64x192xf32>
    %c0_5 = arith.constant 0 : index
    %c0_6 = arith.constant 0 : index
    %6 = vector.load %arg4[%c0_5, %c0_6] : memref<64x192xf32, #tpu.memory_space<vmem>>, vector<64x192xf32>
    tpu.vector_store %arg4[%c0_5, %c0_6], %5 {strides = array<i32>} : memref<64x192xf32, #tpu.memory_space<vmem>>, vector<64x192xf32>,
    return
  }
  func.func @transform_0(%arg0: i32) -> (i32, i32) {
    %c0_i32 = arith.constant 0 : i32
    %c0_i32_0 = arith.constant 0 : i32
    return %arg0, %c0_i32 : i32, i32
  }
  func.func @transform_1(%arg0: i32) -> (i32, i32) {
    %c0_i32 = arith.constant 0 : i32
    %c0_i32_0 = arith.constant 0 : i32
    %c0_i32_1 = arith.constant 0 : i32
    return %c0_i32, %c0_i32_0 : i32, i32
  }
  func.func @transform_2(%arg0: i32) -> (i32, i32) {
    %c0_i32 = arith.constant 0 : i32
    %c0_i32_0 = arith.constant 0 : i32
    %c0_i32_1 = arith.constant 0 : i32
    return %c0_i32, %c0_i32_0 : i32, i32
  }
  func.func @transform_3(%arg0: i32) -> (i32, i32) {
    %c0_i32 = arith.constant 0 : i32
    %c0_i32_0 = arith.constant 0 : i32
    return %arg0, %c0_i32 : i32, i32
  }
}

module attributes {stable_mosaic.version = 11 : i64} {
  func.func @_mm_plain_kernel(%arg0: i32, %arg1: memref<16x4800xbf16, #tpu.memory_space<vmem>>, %arg2: memref<4800x192xbf16, #tpu.memory_space<vmem>>, %arg3: memref<1x192xf32, #tpu.memory_space<vmem>>, %arg4: memref<16x192xf32, #tpu.memory_space<vmem>>) attributes {dimension_semantics = [#tpu.dimension_semantics<parallel>], iteration_bounds = array<i64: 2>, scalar_prefetch = 0 : i64, scratch_operands = 0 : i64, tpu.core_type = #tpu.core_type<tc>, window_params = [{transform_indices = @transform_0, window_bounds = array<i64: 16, 4800>}, {pipeline_mode = #tpu.pipeline_mode<synchronous>, transform_indices = @transform_1, window_bounds = array<i64: 4800, 192>}, {pipeline_mode = #tpu.pipeline_mode<synchronous>, transform_indices = @transform_2, window_bounds = array<i64: 1, 192>}, {transform_indices = @transform_3, window_bounds = array<i64: 16, 192>}]} {
    %c0 = arith.constant 0 : index
    %c0_0 = arith.constant 0 : index
    %0 = vector.load %arg1[%c0, %c0_0] : memref<16x4800xbf16, #tpu.memory_space<vmem>>, vector<16x4800xbf16>
    %c0_1 = arith.constant 0 : index
    %c0_2 = arith.constant 0 : index
    %1 = vector.load %arg2[%c0_1, %c0_2] : memref<4800x192xbf16, #tpu.memory_space<vmem>>, vector<4800x192xbf16>
    %cst = arith.constant dense<0.000000e+00> : vector<16x192xf32>
    %2 = tpu.matmul %0, %1, %cst {dimension_numbers = #tpu.dot_dimension_numbers<[1], [0], [0], [1], [0, 0, 1, 1], [], []>} : vector<16x4800xbf16>, vector<4800x192xbf16>, vector<16x192xf32> -> vector<16x192xf32>
    %c0_3 = arith.constant 0 : index
    %c0_4 = arith.constant 0 : index
    %3 = vector.load %arg3[%c0_3, %c0_4] : memref<1x192xf32, #tpu.memory_space<vmem>>, vector<1x192xf32>
    %4 = vector.broadcast %3 : vector<1x192xf32> to vector<16x192xf32>
    %5 = arith.addf %2, %4 : vector<16x192xf32>
    %c0_5 = arith.constant 0 : index
    %c0_6 = arith.constant 0 : index
    %6 = vector.load %arg4[%c0_5, %c0_6] : memref<16x192xf32, #tpu.memory_space<vmem>>, vector<16x192xf32>
    tpu.vector_store %arg4[%c0_5, %c0_6], %5 {strides = array<i32>} : memref<16x192xf32, #tpu.memory_space<vmem>>, vector<16x192xf32>,
    return
  }
  func.func @transform_0(%arg0: i32) -> (i32, i32) {
    %c0_i32 = arith.constant 0 : i32
    %c0_i32_0 = arith.constant 0 : i32
    return %arg0, %c0_i32 : i32, i32
  }
  func.func @transform_1(%arg0: i32) -> (i32, i32) {
    %c0_i32 = arith.constant 0 : i32
    %c0_i32_0 = arith.constant 0 : i32
    %c0_i32_1 = arith.constant 0 : i32
    return %c0_i32, %c0_i32_0 : i32, i32
  }
  func.func @transform_2(%arg0: i32) -> (i32, i32) {
    %c0_i32 = arith.constant 0 : i32
    %c0_i32_0 = arith.constant 0 : i32
    %c0_i32_1 = arith.constant 0 : i32
    return %c0_i32, %c0_i32_0 : i32, i32
  }
  func.func @transform_3(%arg0: i32) -> (i32, i32) {
    %c0_i32 = arith.constant 0 : i32
    %c0_i32_0 = arith.constant 0 : i32
    return %arg0, %c0_i32 : i32, i32
  }
}

module attributes {stable_mosaic.version = 11 : i64} {
  func.func @_mm_plain_kernel(%arg0: i32, %arg1: memref<16x1728xbf16, #tpu.memory_space<vmem>>, %arg2: memref<1728x192xbf16, #tpu.memory_space<vmem>>, %arg3: memref<1x192xf32, #tpu.memory_space<vmem>>, %arg4: memref<16x192xf32, #tpu.memory_space<vmem>>) attributes {dimension_semantics = [#tpu.dimension_semantics<parallel>], iteration_bounds = array<i64: 2>, scalar_prefetch = 0 : i64, scratch_operands = 0 : i64, tpu.core_type = #tpu.core_type<tc>, window_params = [{transform_indices = @transform_0, window_bounds = array<i64: 16, 1728>}, {pipeline_mode = #tpu.pipeline_mode<synchronous>, transform_indices = @transform_1, window_bounds = array<i64: 1728, 192>}, {pipeline_mode = #tpu.pipeline_mode<synchronous>, transform_indices = @transform_2, window_bounds = array<i64: 1, 192>}, {transform_indices = @transform_3, window_bounds = array<i64: 16, 192>}]} {
    %c0 = arith.constant 0 : index
    %c0_0 = arith.constant 0 : index
    %0 = vector.load %arg1[%c0, %c0_0] : memref<16x1728xbf16, #tpu.memory_space<vmem>>, vector<16x1728xbf16>
    %c0_1 = arith.constant 0 : index
    %c0_2 = arith.constant 0 : index
    %1 = vector.load %arg2[%c0_1, %c0_2] : memref<1728x192xbf16, #tpu.memory_space<vmem>>, vector<1728x192xbf16>
    %cst = arith.constant dense<0.000000e+00> : vector<16x192xf32>
    %2 = tpu.matmul %0, %1, %cst {dimension_numbers = #tpu.dot_dimension_numbers<[1], [0], [0], [1], [0, 0, 1, 1], [], []>} : vector<16x1728xbf16>, vector<1728x192xbf16>, vector<16x192xf32> -> vector<16x192xf32>
    %c0_3 = arith.constant 0 : index
    %c0_4 = arith.constant 0 : index
    %3 = vector.load %arg3[%c0_3, %c0_4] : memref<1x192xf32, #tpu.memory_space<vmem>>, vector<1x192xf32>
    %4 = vector.broadcast %3 : vector<1x192xf32> to vector<16x192xf32>
    %5 = arith.addf %2, %4 : vector<16x192xf32>
    %c0_5 = arith.constant 0 : index
    %c0_6 = arith.constant 0 : index
    %6 = vector.load %arg4[%c0_5, %c0_6] : memref<16x192xf32, #tpu.memory_space<vmem>>, vector<16x192xf32>
    tpu.vector_store %arg4[%c0_5, %c0_6], %5 {strides = array<i32>} : memref<16x192xf32, #tpu.memory_space<vmem>>, vector<16x192xf32>,
    return
  }
  func.func @transform_0(%arg0: i32) -> (i32, i32) {
    %c0_i32 = arith.constant 0 : i32
    %c0_i32_0 = arith.constant 0 : i32
    return %arg0, %c0_i32 : i32, i32
  }
  func.func @transform_1(%arg0: i32) -> (i32, i32) {
    %c0_i32 = arith.constant 0 : i32
    %c0_i32_0 = arith.constant 0 : i32
    %c0_i32_1 = arith.constant 0 : i32
    return %c0_i32, %c0_i32_0 : i32, i32
  }
  func.func @transform_2(%arg0: i32) -> (i32, i32) {
    %c0_i32 = arith.constant 0 : i32
    %c0_i32_0 = arith.constant 0 : i32
    %c0_i32_1 = arith.constant 0 : i32
    return %c0_i32, %c0_i32_0 : i32, i32
  }
  func.func @transform_3(%arg0: i32) -> (i32, i32) {
    %c0_i32 = arith.constant 0 : i32
    %c0_i32_0 = arith.constant 0 : i32
    return %arg0, %c0_i32 : i32, i32
  }
}

module attributes {stable_mosaic.version = 11 : i64} {
  func.func @_mm_prelu_kernel(%arg0: i32, %arg1: memref<16x1728xbf16, #tpu.memory_space<vmem>>, %arg2: memref<1728x192xbf16, #tpu.memory_space<vmem>>, %arg3: memref<1x192xf32, #tpu.memory_space<vmem>>, %arg4: memref<1x192xf32, #tpu.memory_space<vmem>>, %arg5: memref<16x192xf32, #tpu.memory_space<vmem>>) attributes {dimension_semantics = [#tpu.dimension_semantics<parallel>], iteration_bounds = array<i64: 2>, scalar_prefetch = 0 : i64, scratch_operands = 0 : i64, tpu.core_type = #tpu.core_type<tc>, window_params = [{transform_indices = @transform_0, window_bounds = array<i64: 16, 1728>}, {pipeline_mode = #tpu.pipeline_mode<synchronous>, transform_indices = @transform_1, window_bounds = array<i64: 1728, 192>}, {pipeline_mode = #tpu.pipeline_mode<synchronous>, transform_indices = @transform_2, window_bounds = array<i64: 1, 192>}, {pipeline_mode = #tpu.pipeline_mode<synchronous>, transform_indices = @transform_3, window_bounds = array<i64: 1, 192>}, {transform_indices = @transform_4, window_bounds = array<i64: 16, 192>}]} {
    %c0 = arith.constant 0 : index
    %c0_0 = arith.constant 0 : index
    %0 = vector.load %arg1[%c0, %c0_0] : memref<16x1728xbf16, #tpu.memory_space<vmem>>, vector<16x1728xbf16>
    %c0_1 = arith.constant 0 : index
    %c0_2 = arith.constant 0 : index
    %1 = vector.load %arg2[%c0_1, %c0_2] : memref<1728x192xbf16, #tpu.memory_space<vmem>>, vector<1728x192xbf16>
    %cst = arith.constant dense<0.000000e+00> : vector<16x192xf32>
    %2 = tpu.matmul %0, %1, %cst {dimension_numbers = #tpu.dot_dimension_numbers<[1], [0], [0], [1], [0, 0, 1, 1], [], []>} : vector<16x1728xbf16>, vector<1728x192xbf16>, vector<16x192xf32> -> vector<16x192xf32>
    %c0_3 = arith.constant 0 : index
    %c0_4 = arith.constant 0 : index
    %3 = vector.load %arg3[%c0_3, %c0_4] : memref<1x192xf32, #tpu.memory_space<vmem>>, vector<1x192xf32>
    %4 = vector.broadcast %3 : vector<1x192xf32> to vector<16x192xf32>
    %5 = arith.addf %2, %4 : vector<16x192xf32>
    %cst_5 = arith.constant 0.000000e+00 : f32
    %6 = vector.broadcast %cst_5 : f32 to vector<16x192xf32>
    %7 = arith.cmpf ogt, %5, %6 : vector<16x192xf32>
    %c0_6 = arith.constant 0 : index
    %c0_7 = arith.constant 0 : index
    %8 = vector.load %arg4[%c0_6, %c0_7] : memref<1x192xf32, #tpu.memory_space<vmem>>, vector<1x192xf32>
    %9 = vector.broadcast %8 : vector<1x192xf32> to vector<16x192xf32>
    %10 = arith.mulf %5, %9 : vector<16x192xf32>
    %11 = arith.select %7, %5, %10 : vector<16x192xi1>, vector<16x192xf32>
    %c0_8 = arith.constant 0 : index
    %c0_9 = arith.constant 0 : index
    %12 = vector.load %arg5[%c0_8, %c0_9] : memref<16x192xf32, #tpu.memory_space<vmem>>, vector<16x192xf32>
    tpu.vector_store %arg5[%c0_8, %c0_9], %11 {strides = array<i32>} : memref<16x192xf32, #tpu.memory_space<vmem>>, vector<16x192xf32>,
    return
  }
  func.func @transform_0(%arg0: i32) -> (i32, i32) {
    %c0_i32 = arith.constant 0 : i32
    %c0_i32_0 = arith.constant 0 : i32
    return %arg0, %c0_i32 : i32, i32
  }
  func.func @transform_1(%arg0: i32) -> (i32, i32) {
    %c0_i32 = arith.constant 0 : i32
    %c0_i32_0 = arith.constant 0 : i32
    %c0_i32_1 = arith.constant 0 : i32
    return %c0_i32, %c0_i32_0 : i32, i32
  }
  func.func @transform_2(%arg0: i32) -> (i32, i32) {
    %c0_i32 = arith.constant 0 : i32
    %c0_i32_0 = arith.constant 0 : i32
    %c0_i32_1 = arith.constant 0 : i32
    return %c0_i32, %c0_i32_0 : i32, i32
  }
  func.func @transform_3(%arg0: i32) -> (i32, i32) {
    %c0_i32 = arith.constant 0 : i32
    %c0_i32_0 = arith.constant 0 : i32
    %c0_i32_1 = arith.constant 0 : i32
    return %c0_i32, %c0_i32_0 : i32, i32
  }
  func.func @transform_4(%arg0: i32) -> (i32, i32) {
    %c0_i32 = arith.constant 0 : i32
    %c0_i32_0 = arith.constant 0 : i32
    return %arg0, %c0_i32 : i32, i32
  }
}

module attributes {stable_mosaic.version = 11 : i64} {
  func.func @_ca_kernel(%arg0: i32, %arg1: memref<2x16x192xf32, #tpu.memory_space<vmem>>, %arg2: memref<192x12xf32, #tpu.memory_space<vmem>>, %arg3: memref<1x12xf32, #tpu.memory_space<vmem>>, %arg4: memref<12x192xf32, #tpu.memory_space<vmem>>, %arg5: memref<1x192xf32, #tpu.memory_space<vmem>>, %arg6: memref<2x16x192xf32, #tpu.memory_space<vmem>>, %arg7: memref<2x16x192xf32, #tpu.memory_space<vmem>>) attributes {dimension_semantics = [#tpu.dimension_semantics<arbitrary>], iteration_bounds = array<i64: 1>, scalar_prefetch = 0 : i64, scratch_operands = 0 : i64, tpu.core_type = #tpu.core_type<tc>, window_params = [{pipeline_mode = #tpu.pipeline_mode<synchronous>, transform_indices = @transform_0, window_bounds = array<i64: 2, 16, 192>}, {pipeline_mode = #tpu.pipeline_mode<synchronous>, transform_indices = @transform_1, window_bounds = array<i64: 192, 12>}, {pipeline_mode = #tpu.pipeline_mode<synchronous>, transform_indices = @transform_2, window_bounds = array<i64: 1, 12>}, {pipeline_mode = #tpu.pipeline_mode<synchronous>, transform_indices = @transform_3, window_bounds = array<i64: 12, 192>}, {pipeline_mode = #tpu.pipeline_mode<synchronous>, transform_indices = @transform_4, window_bounds = array<i64: 1, 192>}, {pipeline_mode = #tpu.pipeline_mode<synchronous>, transform_indices = @transform_5, window_bounds = array<i64: 2, 16, 192>}, {pipeline_mode = #tpu.pipeline_mode<synchronous>, transform_indices = @transform_6, window_bounds = array<i64: 2, 16, 192>}]} {
    %c0 = arith.constant 0 : index
    %c0_0 = arith.constant 0 : index
    %c0_1 = arith.constant 0 : index
    %0 = vector.load %arg1[%c0, %c0_0, %c0_1] : memref<2x16x192xf32, #tpu.memory_space<vmem>>, vector<2x16x192xf32>
    %cst = arith.constant dense<0.000000e+00> : vector<2x192xf32>
    %1 = vector.multi_reduction <add>, %0, %cst [1] : vector<2x16x192xf32> to vector<2x192xf32>
    %cst_2 = arith.constant 1.600000e+01 : f32
    %2 = vector.broadcast %cst_2 : f32 to vector<2x192xf32>
    %3 = arith.divf %1, %2 : vector<2x192xf32>
    %cst_3 = arith.constant 0.000000e+00 : f32
    %4 = vector.broadcast %cst_3 : f32 to vector<6x192xf32>
    %5 = tpu.concatenate %3, %4 in 0 : vector<2x192xf32>, vector<6x192xf32> -> vector<8x192xf32>
    %c0_4 = arith.constant 0 : index
    %c0_5 = arith.constant 0 : index
    %6 = vector.load %arg2[%c0_4, %c0_5] : memref<192x12xf32, #tpu.memory_space<vmem>>, vector<192x12xf32>
    %cst_6 = arith.constant dense<0.000000e+00> : vector<8x12xf32>
    %7 = tpu.matmul %5, %6, %cst_6 {dimension_numbers = #tpu.dot_dimension_numbers<[1], [0], [0], [1], [0, 0, 1, 1], [], []>} : vector<8x192xf32>, vector<192x12xf32>, vector<8x12xf32> -> vector<8x12xf32>
    %c0_7 = arith.constant 0 : index
    %c0_8 = arith.constant 0 : index
    %8 = vector.load %arg3[%c0_7, %c0_8] : memref<1x12xf32, #tpu.memory_space<vmem>>, vector<1x12xf32>
    %9 = vector.broadcast %8 : vector<1x12xf32> to vector<8x12xf32>
    %10 = arith.addf %7, %9 : vector<8x12xf32>
    %cst_9 = arith.constant 0.000000e+00 : f32
    %11 = vector.broadcast %cst_9 : f32 to vector<8x12xf32>
    %12 = arith.maximumf %10, %11 : vector<8x12xf32>
    %c0_10 = arith.constant 0 : index
    %c0_11 = arith.constant 0 : index
    %13 = vector.load %arg4[%c0_10, %c0_11] : memref<12x192xf32, #tpu.memory_space<vmem>>, vector<12x192xf32>
    %cst_12 = arith.constant dense<0.000000e+00> : vector<8x192xf32>
    %14 = tpu.matmul %12, %13, %cst_12 {dimension_numbers = #tpu.dot_dimension_numbers<[1], [0], [0], [1], [0, 0, 1, 1], [], []>} : vector<8x12xf32>, vector<12x192xf32>, vector<8x192xf32> -> vector<8x192xf32>
    %c0_13 = arith.constant 0 : index
    %c0_14 = arith.constant 0 : index
    %15 = vector.load %arg5[%c0_13, %c0_14] : memref<1x192xf32, #tpu.memory_space<vmem>>, vector<1x192xf32>
    %16 = vector.broadcast %15 : vector<1x192xf32> to vector<8x192xf32>
    %17 = arith.addf %14, %16 : vector<8x192xf32>
    %18 = arith.negf %17 : vector<8x192xf32>
    %19 = math.exp %18 : vector<8x192xf32>
    %cst_15 = arith.constant 1.000000e+00 : f32
    %20 = vector.broadcast %cst_15 : f32 to vector<8x192xf32>
    %21 = arith.addf %20, %19 : vector<8x192xf32>
    %22 = arith.divf %20, %21 : vector<8x192xf32>
    %23 = vector.extract_strided_slice %22 {offsets = [0, 0], sizes = [2, 192], strides = [1, 1]} : vector<8x192xf32> to vector<2x192xf32>
    %24 = vector.shape_cast %23 : vector<2x192xf32> to vector<2x1x192xf32>
    %25 = vector.broadcast %24 : vector<2x1x192xf32> to vector<2x16x192xf32>
    %26 = arith.mulf %0, %25 : vector<2x16x192xf32>
    %c0_16 = arith.constant 0 : index
    %c0_17 = arith.constant 0 : index
    %c0_18 = arith.constant 0 : index
    %27 = vector.load %arg6[%c0_16, %c0_17, %c0_18] : memref<2x16x192xf32, #tpu.memory_space<vmem>>, vector<2x16x192xf32>
    %28 = arith.addf %26, %27 : vector<2x16x192xf32>
    %c0_19 = arith.constant 0 : index
    %c0_20 = arith.constant 0 : index
    %c0_21 = arith.constant 0 : index
    %29 = vector.load %arg7[%c0_19, %c0_20, %c0_21] : memref<2x16x192xf32, #tpu.memory_space<vmem>>, vector<2x16x192xf32>
    tpu.vector_store %arg7[%c0_19, %c0_20, %c0_21], %28 {strides = array<i32>} : memref<2x16x192xf32, #tpu.memory_space<vmem>>, vector<2x16x192xf32>,
    return
  }
  func.func @transform_0(%arg0: i32) -> (i32, i32, i32) {
    %c0_i32 = arith.constant 0 : i32
    %c0_i32_0 = arith.constant 0 : i32
    %c0_i32_1 = arith.constant 0 : i32
    %c0_i32_2 = arith.constant 0 : i32
    return %c0_i32, %c0_i32_0, %c0_i32_1 : i32, i32, i32
  }
  func.func @transform_1(%arg0: i32) -> (i32, i32) {
    %c0_i32 = arith.constant 0 : i32
    %c0_i32_0 = arith.constant 0 : i32
    %c0_i32_1 = arith.constant 0 : i32
    return %c0_i32, %c0_i32_0 : i32, i32
  }
  func.func @transform_2(%arg0: i32) -> (i32, i32) {
    %c0_i32 = arith.constant 0 : i32
    %c0_i32_0 = arith.constant 0 : i32
    %c0_i32_1 = arith.constant 0 : i32
    return %c0_i32, %c0_i32_0 : i32, i32
  }
  func.func @transform_3(%arg0: i32) -> (i32, i32) {
    %c0_i32 = arith.constant 0 : i32
    %c0_i32_0 = arith.constant 0 : i32
    %c0_i32_1 = arith.constant 0 : i32
    return %c0_i32, %c0_i32_0 : i32, i32
  }
  func.func @transform_4(%arg0: i32) -> (i32, i32) {
    %c0_i32 = arith.constant 0 : i32
    %c0_i32_0 = arith.constant 0 : i32
    %c0_i32_1 = arith.constant 0 : i32
    return %c0_i32, %c0_i32_0 : i32, i32
  }
  func.func @transform_5(%arg0: i32) -> (i32, i32, i32) {
    %c0_i32 = arith.constant 0 : i32
    %c0_i32_0 = arith.constant 0 : i32
    %c0_i32_1 = arith.constant 0 : i32
    %c0_i32_2 = arith.constant 0 : i32
    return %c0_i32, %c0_i32_0, %c0_i32_1 : i32, i32, i32
  }
  func.func @transform_6(%arg0: i32) -> (i32, i32, i32) {
    %c0_i32 = arith.constant 0 : i32
    %c0_i32_0 = arith.constant 0 : i32
    %c0_i32_1 = arith.constant 0 : i32
    %c0_i32_2 = arith.constant 0 : i32
    return %c0_i32, %c0_i32_0, %c0_i32_1 : i32, i32, i32
  }
}

module attributes {stable_mosaic.version = 11 : i64} {
  func.func @_mm_prelu_kernel(%arg0: i32, %arg1: memref<16x192xbf16, #tpu.memory_space<vmem>>, %arg2: memref<192x96xbf16, #tpu.memory_space<vmem>>, %arg3: memref<1x96xf32, #tpu.memory_space<vmem>>, %arg4: memref<1x96xf32, #tpu.memory_space<vmem>>, %arg5: memref<16x96xf32, #tpu.memory_space<vmem>>) attributes {dimension_semantics = [#tpu.dimension_semantics<parallel>], iteration_bounds = array<i64: 2>, scalar_prefetch = 0 : i64, scratch_operands = 0 : i64, tpu.core_type = #tpu.core_type<tc>, window_params = [{transform_indices = @transform_0, window_bounds = array<i64: 16, 192>}, {pipeline_mode = #tpu.pipeline_mode<synchronous>, transform_indices = @transform_1, window_bounds = array<i64: 192, 96>}, {pipeline_mode = #tpu.pipeline_mode<synchronous>, transform_indices = @transform_2, window_bounds = array<i64: 1, 96>}, {pipeline_mode = #tpu.pipeline_mode<synchronous>, transform_indices = @transform_3, window_bounds = array<i64: 1, 96>}, {transform_indices = @transform_4, window_bounds = array<i64: 16, 96>}]} {
    %c0 = arith.constant 0 : index
    %c0_0 = arith.constant 0 : index
    %0 = vector.load %arg1[%c0, %c0_0] : memref<16x192xbf16, #tpu.memory_space<vmem>>, vector<16x192xbf16>
    %c0_1 = arith.constant 0 : index
    %c0_2 = arith.constant 0 : index
    %1 = vector.load %arg2[%c0_1, %c0_2] : memref<192x96xbf16, #tpu.memory_space<vmem>>, vector<192x96xbf16>
    %cst = arith.constant dense<0.000000e+00> : vector<16x96xf32>
    %2 = tpu.matmul %0, %1, %cst {dimension_numbers = #tpu.dot_dimension_numbers<[1], [0], [0], [1], [0, 0, 1, 1], [], []>} : vector<16x192xbf16>, vector<192x96xbf16>, vector<16x96xf32> -> vector<16x96xf32>
    %c0_3 = arith.constant 0 : index
    %c0_4 = arith.constant 0 : index
    %3 = vector.load %arg3[%c0_3, %c0_4] : memref<1x96xf32, #tpu.memory_space<vmem>>, vector<1x96xf32>
    %4 = vector.broadcast %3 : vector<1x96xf32> to vector<16x96xf32>
    %5 = arith.addf %2, %4 : vector<16x96xf32>
    %cst_5 = arith.constant 0.000000e+00 : f32
    %6 = vector.broadcast %cst_5 : f32 to vector<16x96xf32>
    %7 = arith.cmpf ogt, %5, %6 : vector<16x96xf32>
    %c0_6 = arith.constant 0 : index
    %c0_7 = arith.constant 0 : index
    %8 = vector.load %arg4[%c0_6, %c0_7] : memref<1x96xf32, #tpu.memory_space<vmem>>, vector<1x96xf32>
    %9 = vector.broadcast %8 : vector<1x96xf32> to vector<16x96xf32>
    %10 = arith.mulf %5, %9 : vector<16x96xf32>
    %11 = arith.select %7, %5, %10 : vector<16x96xi1>, vector<16x96xf32>
    %c0_8 = arith.constant 0 : index
    %c0_9 = arith.constant 0 : index
    %12 = vector.load %arg5[%c0_8, %c0_9] : memref<16x96xf32, #tpu.memory_space<vmem>>, vector<16x96xf32>
    tpu.vector_store %arg5[%c0_8, %c0_9], %11 {strides = array<i32>} : memref<16x96xf32, #tpu.memory_space<vmem>>, vector<16x96xf32>,
    return
  }
  func.func @transform_0(%arg0: i32) -> (i32, i32) {
    %c0_i32 = arith.constant 0 : i32
    %c0_i32_0 = arith.constant 0 : i32
    return %arg0, %c0_i32 : i32, i32
  }
  func.func @transform_1(%arg0: i32) -> (i32, i32) {
    %c0_i32 = arith.constant 0 : i32
    %c0_i32_0 = arith.constant 0 : i32
    %c0_i32_1 = arith.constant 0 : i32
    return %c0_i32, %c0_i32_0 : i32, i32
  }
  func.func @transform_2(%arg0: i32) -> (i32, i32) {
    %c0_i32 = arith.constant 0 : i32
    %c0_i32_0 = arith.constant 0 : i32
    %c0_i32_1 = arith.constant 0 : i32
    return %c0_i32, %c0_i32_0 : i32, i32
  }
  func.func @transform_3(%arg0: i32) -> (i32, i32) {
    %c0_i32 = arith.constant 0 : i32
    %c0_i32_0 = arith.constant 0 : i32
    %c0_i32_1 = arith.constant 0 : i32
    return %c0_i32, %c0_i32_0 : i32, i32
  }
  func.func @transform_4(%arg0: i32) -> (i32, i32) {
    %c0_i32 = arith.constant 0 : i32
    %c0_i32_0 = arith.constant 0 : i32
    return %arg0, %c0_i32 : i32, i32
  }
}

module attributes {stable_mosaic.version = 11 : i64} {
  func.func @_mm_prelu_kernel(%arg0: i32, %arg1: memref<16x864xbf16, #tpu.memory_space<vmem>>, %arg2: memref<864x96xbf16, #tpu.memory_space<vmem>>, %arg3: memref<1x96xf32, #tpu.memory_space<vmem>>, %arg4: memref<1x96xf32, #tpu.memory_space<vmem>>, %arg5: memref<16x96xf32, #tpu.memory_space<vmem>>) attributes {dimension_semantics = [#tpu.dimension_semantics<parallel>], iteration_bounds = array<i64: 2>, scalar_prefetch = 0 : i64, scratch_operands = 0 : i64, tpu.core_type = #tpu.core_type<tc>, window_params = [{transform_indices = @transform_0, window_bounds = array<i64: 16, 864>}, {pipeline_mode = #tpu.pipeline_mode<synchronous>, transform_indices = @transform_1, window_bounds = array<i64: 864, 96>}, {pipeline_mode = #tpu.pipeline_mode<synchronous>, transform_indices = @transform_2, window_bounds = array<i64: 1, 96>}, {pipeline_mode = #tpu.pipeline_mode<synchronous>, transform_indices = @transform_3, window_bounds = array<i64: 1, 96>}, {transform_indices = @transform_4, window_bounds = array<i64: 16, 96>}]} {
    %c0 = arith.constant 0 : index
    %c0_0 = arith.constant 0 : index
    %0 = vector.load %arg1[%c0, %c0_0] : memref<16x864xbf16, #tpu.memory_space<vmem>>, vector<16x864xbf16>
    %c0_1 = arith.constant 0 : index
    %c0_2 = arith.constant 0 : index
    %1 = vector.load %arg2[%c0_1, %c0_2] : memref<864x96xbf16, #tpu.memory_space<vmem>>, vector<864x96xbf16>
    %cst = arith.constant dense<0.000000e+00> : vector<16x96xf32>
    %2 = tpu.matmul %0, %1, %cst {dimension_numbers = #tpu.dot_dimension_numbers<[1], [0], [0], [1], [0, 0, 1, 1], [], []>} : vector<16x864xbf16>, vector<864x96xbf16>, vector<16x96xf32> -> vector<16x96xf32>
    %c0_3 = arith.constant 0 : index
    %c0_4 = arith.constant 0 : index
    %3 = vector.load %arg3[%c0_3, %c0_4] : memref<1x96xf32, #tpu.memory_space<vmem>>, vector<1x96xf32>
    %4 = vector.broadcast %3 : vector<1x96xf32> to vector<16x96xf32>
    %5 = arith.addf %2, %4 : vector<16x96xf32>
    %cst_5 = arith.constant 0.000000e+00 : f32
    %6 = vector.broadcast %cst_5 : f32 to vector<16x96xf32>
    %7 = arith.cmpf ogt, %5, %6 : vector<16x96xf32>
    %c0_6 = arith.constant 0 : index
    %c0_7 = arith.constant 0 : index
    %8 = vector.load %arg4[%c0_6, %c0_7] : memref<1x96xf32, #tpu.memory_space<vmem>>, vector<1x96xf32>
    %9 = vector.broadcast %8 : vector<1x96xf32> to vector<16x96xf32>
    %10 = arith.mulf %5, %9 : vector<16x96xf32>
    %11 = arith.select %7, %5, %10 : vector<16x96xi1>, vector<16x96xf32>
    %c0_8 = arith.constant 0 : index
    %c0_9 = arith.constant 0 : index
    %12 = vector.load %arg5[%c0_8, %c0_9] : memref<16x96xf32, #tpu.memory_space<vmem>>, vector<16x96xf32>
    tpu.vector_store %arg5[%c0_8, %c0_9], %11 {strides = array<i32>} : memref<16x96xf32, #tpu.memory_space<vmem>>, vector<16x96xf32>,
    return
  }
  func.func @transform_0(%arg0: i32) -> (i32, i32) {
    %c0_i32 = arith.constant 0 : i32
    %c0_i32_0 = arith.constant 0 : i32
    return %arg0, %c0_i32 : i32, i32
  }
  func.func @transform_1(%arg0: i32) -> (i32, i32) {
    %c0_i32 = arith.constant 0 : i32
    %c0_i32_0 = arith.constant 0 : i32
    %c0_i32_1 = arith.constant 0 : i32
    return %c0_i32, %c0_i32_0 : i32, i32
  }
  func.func @transform_2(%arg0: i32) -> (i32, i32) {
    %c0_i32 = arith.constant 0 : i32
    %c0_i32_0 = arith.constant 0 : i32
    %c0_i32_1 = arith.constant 0 : i32
    return %c0_i32, %c0_i32_0 : i32, i32
  }
  func.func @transform_3(%arg0: i32) -> (i32, i32) {
    %c0_i32 = arith.constant 0 : i32
    %c0_i32_0 = arith.constant 0 : i32
    %c0_i32_1 = arith.constant 0 : i32
    return %c0_i32, %c0_i32_0 : i32, i32
  }
  func.func @transform_4(%arg0: i32) -> (i32, i32) {
    %c0_i32 = arith.constant 0 : i32
    %c0_i32_0 = arith.constant 0 : i32
    return %arg0, %c0_i32 : i32, i32
  }
}

module attributes {stable_mosaic.version = 11 : i64} {
  func.func @_mm_add_kernel(%arg0: i32, %arg1: memref<16x96xbf16, #tpu.memory_space<vmem>>, %arg2: memref<96x192xbf16, #tpu.memory_space<vmem>>, %arg3: memref<1x192xf32, #tpu.memory_space<vmem>>, %arg4: memref<16x192xf32, #tpu.memory_space<vmem>>, %arg5: memref<16x192xf32, #tpu.memory_space<vmem>>) attributes {dimension_semantics = [#tpu.dimension_semantics<parallel>], iteration_bounds = array<i64: 2>, scalar_prefetch = 0 : i64, scratch_operands = 0 : i64, tpu.core_type = #tpu.core_type<tc>, window_params = [{transform_indices = @transform_0, window_bounds = array<i64: 16, 96>}, {pipeline_mode = #tpu.pipeline_mode<synchronous>, transform_indices = @transform_1, window_bounds = array<i64: 96, 192>}, {pipeline_mode = #tpu.pipeline_mode<synchronous>, transform_indices = @transform_2, window_bounds = array<i64: 1, 192>}, {transform_indices = @transform_3, window_bounds = array<i64: 16, 192>}, {transform_indices = @transform_4, window_bounds = array<i64: 16, 192>}]} {
    %c0 = arith.constant 0 : index
    %c0_0 = arith.constant 0 : index
    %0 = vector.load %arg1[%c0, %c0_0] : memref<16x96xbf16, #tpu.memory_space<vmem>>, vector<16x96xbf16>
    %c0_1 = arith.constant 0 : index
    %c0_2 = arith.constant 0 : index
    %1 = vector.load %arg2[%c0_1, %c0_2] : memref<96x192xbf16, #tpu.memory_space<vmem>>, vector<96x192xbf16>
    %cst = arith.constant dense<0.000000e+00> : vector<16x192xf32>
    %2 = tpu.matmul %0, %1, %cst {dimension_numbers = #tpu.dot_dimension_numbers<[1], [0], [0], [1], [0, 0, 1, 1], [], []>} : vector<16x96xbf16>, vector<96x192xbf16>, vector<16x192xf32> -> vector<16x192xf32>
    %c0_3 = arith.constant 0 : index
    %c0_4 = arith.constant 0 : index
    %3 = vector.load %arg3[%c0_3, %c0_4] : memref<1x192xf32, #tpu.memory_space<vmem>>, vector<1x192xf32>
    %4 = vector.broadcast %3 : vector<1x192xf32> to vector<16x192xf32>
    %5 = arith.addf %2, %4 : vector<16x192xf32>
    %c0_5 = arith.constant 0 : index
    %c0_6 = arith.constant 0 : index
    %6 = vector.load %arg4[%c0_5, %c0_6] : memref<16x192xf32, #tpu.memory_space<vmem>>, vector<16x192xf32>
    %7 = arith.addf %5, %6 : vector<16x192xf32>
    %c0_7 = arith.constant 0 : index
    %c0_8 = arith.constant 0 : index
    %8 = vector.load %arg5[%c0_7, %c0_8] : memref<16x192xf32, #tpu.memory_space<vmem>>, vector<16x192xf32>
    tpu.vector_store %arg5[%c0_7, %c0_8], %7 {strides = array<i32>} : memref<16x192xf32, #tpu.memory_space<vmem>>, vector<16x192xf32>,
    return
  }
  func.func @transform_0(%arg0: i32) -> (i32, i32) {
    %c0_i32 = arith.constant 0 : i32
    %c0_i32_0 = arith.constant 0 : i32
    return %arg0, %c0_i32 : i32, i32
  }
  func.func @transform_1(%arg0: i32) -> (i32, i32) {
    %c0_i32 = arith.constant 0 : i32
    %c0_i32_0 = arith.constant 0 : i32
    %c0_i32_1 = arith.constant 0 : i32
    return %c0_i32, %c0_i32_0 : i32, i32
  }
  func.func @transform_2(%arg0: i32) -> (i32, i32) {
    %c0_i32 = arith.constant 0 : i32
    %c0_i32_0 = arith.constant 0 : i32
    %c0_i32_1 = arith.constant 0 : i32
    return %c0_i32, %c0_i32_0 : i32, i32
  }
  func.func @transform_3(%arg0: i32) -> (i32, i32) {
    %c0_i32 = arith.constant 0 : i32
    %c0_i32_0 = arith.constant 0 : i32
    return %arg0, %c0_i32 : i32, i32
  }
  func.func @transform_4(%arg0: i32) -> (i32, i32) {
    %c0_i32 = arith.constant 0 : i32
    %c0_i32_0 = arith.constant 0 : i32
    return %arg0, %c0_i32 : i32, i32
  }
}

module attributes {stable_mosaic.version = 11 : i64} {
  func.func @_mm_gate_kernel(%arg0: i32, %arg1: memref<16x192xbf16, #tpu.memory_space<vmem>>, %arg2: memref<192x192xbf16, #tpu.memory_space<vmem>>, %arg3: memref<1x192xf32, #tpu.memory_space<vmem>>, %arg4: memref<16x192xf32, #tpu.memory_space<vmem>>, %arg5: memref<16x192xf32, #tpu.memory_space<vmem>>, %arg6: memref<16x192xf32, #tpu.memory_space<vmem>>) attributes {dimension_semantics = [#tpu.dimension_semantics<parallel>], iteration_bounds = array<i64: 2>, scalar_prefetch = 0 : i64, scratch_operands = 0 : i64, tpu.core_type = #tpu.core_type<tc>, window_params = [{transform_indices = @transform_0, window_bounds = array<i64: 16, 192>}, {pipeline_mode = #tpu.pipeline_mode<synchronous>, transform_indices = @transform_1, window_bounds = array<i64: 192, 192>}, {pipeline_mode = #tpu.pipeline_mode<synchronous>, transform_indices = @transform_2, window_bounds = array<i64: 1, 192>}, {transform_indices = @transform_3, window_bounds = array<i64: 16, 192>}, {transform_indices = @transform_4, window_bounds = array<i64: 16, 192>}, {transform_indices = @transform_5, window_bounds = array<i64: 16, 192>}]} {
    %c0 = arith.constant 0 : index
    %c0_0 = arith.constant 0 : index
    %0 = vector.load %arg1[%c0, %c0_0] : memref<16x192xbf16, #tpu.memory_space<vmem>>, vector<16x192xbf16>
    %c0_1 = arith.constant 0 : index
    %c0_2 = arith.constant 0 : index
    %1 = vector.load %arg2[%c0_1, %c0_2] : memref<192x192xbf16, #tpu.memory_space<vmem>>, vector<192x192xbf16>
    %cst = arith.constant dense<0.000000e+00> : vector<16x192xf32>
    %2 = tpu.matmul %0, %1, %cst {dimension_numbers = #tpu.dot_dimension_numbers<[1], [0], [0], [1], [0, 0, 1, 1], [], []>} : vector<16x192xbf16>, vector<192x192xbf16>, vector<16x192xf32> -> vector<16x192xf32>
    %c0_3 = arith.constant 0 : index
    %c0_4 = arith.constant 0 : index
    %3 = vector.load %arg3[%c0_3, %c0_4] : memref<1x192xf32, #tpu.memory_space<vmem>>, vector<1x192xf32>
    %4 = vector.broadcast %3 : vector<1x192xf32> to vector<16x192xf32>
    %5 = arith.addf %2, %4 : vector<16x192xf32>
    %6 = arith.negf %5 : vector<16x192xf32>
    %7 = math.exp %6 : vector<16x192xf32>
    %cst_5 = arith.constant 1.000000e+00 : f32
    %8 = vector.broadcast %cst_5 : f32 to vector<16x192xf32>
    %9 = arith.addf %8, %7 : vector<16x192xf32>
    %10 = arith.divf %8, %9 : vector<16x192xf32>
    %c0_6 = arith.constant 0 : index
    %c0_7 = arith.constant 0 : index
    %11 = vector.load %arg4[%c0_6, %c0_7] : memref<16x192xf32, #tpu.memory_space<vmem>>, vector<16x192xf32>
    %c0_8 = arith.constant 0 : index
    %c0_9 = arith.constant 0 : index
    %12 = vector.load %arg5[%c0_8, %c0_9] : memref<16x192xf32, #tpu.memory_space<vmem>>, vector<16x192xf32>
    %13 = arith.mulf %12, %10 : vector<16x192xf32>
    %14 = arith.addf %11, %13 : vector<16x192xf32>
    %c0_10 = arith.constant 0 : index
    %c0_11 = arith.constant 0 : index
    %15 = vector.load %arg6[%c0_10, %c0_11] : memref<16x192xf32, #tpu.memory_space<vmem>>, vector<16x192xf32>
    tpu.vector_store %arg6[%c0_10, %c0_11], %14 {strides = array<i32>} : memref<16x192xf32, #tpu.memory_space<vmem>>, vector<16x192xf32>,
    return
  }
  func.func @transform_0(%arg0: i32) -> (i32, i32) {
    %c0_i32 = arith.constant 0 : i32
    %c0_i32_0 = arith.constant 0 : i32
    return %arg0, %c0_i32 : i32, i32
  }
  func.func @transform_1(%arg0: i32) -> (i32, i32) {
    %c0_i32 = arith.constant 0 : i32
    %c0_i32_0 = arith.constant 0 : i32
    %c0_i32_1 = arith.constant 0 : i32
    return %c0_i32, %c0_i32_0 : i32, i32
  }
  func.func @transform_2(%arg0: i32) -> (i32, i32) {
    %c0_i32 = arith.constant 0 : i32
    %c0_i32_0 = arith.constant 0 : i32
    %c0_i32_1 = arith.constant 0 : i32
    return %c0_i32, %c0_i32_0 : i32, i32
  }
  func.func @transform_3(%arg0: i32) -> (i32, i32) {
    %c0_i32 = arith.constant 0 : i32
    %c0_i32_0 = arith.constant 0 : i32
    return %arg0, %c0_i32 : i32, i32
  }
  func.func @transform_4(%arg0: i32) -> (i32, i32) {
    %c0_i32 = arith.constant 0 : i32
    %c0_i32_0 = arith.constant 0 : i32
    return %arg0, %c0_i32 : i32, i32
  }
  func.func @transform_5(%arg0: i32) -> (i32, i32) {
    %c0_i32 = arith.constant 0 : i32
    %c0_i32_0 = arith.constant 0 : i32
    return %arg0, %c0_i32 : i32, i32
  }
}

</mosaic_0001>

<bundles_post_ra>
// kernel: hyper_encoder_forward.24
= control target key start
LH: loop header
LB: loop body
LE: loop exit
PB: predicated region body
PF: predicated region fallthrough
CT: control target
= control target key end

     0   :  { %s8132_s12 = smov 0   ;;  %s10639_s0 = inlined_call_operand.vmem [shape: bf16[128,4800], index: 0, kind: input, shape index: {}]   ;;  %s10640_s1 = inlined_call_operand.vmem [shape: bf16[4800,192], index: 1, kind: input, shape index: {}]   ;;  %s10641_s2 = inlined_call_operand.vmem [shape: f32[1,192], index: 2, kind: input, shape index: {}]   ;;  %s10642_s3 = inlined_call_operand.vmem [shape: f32[128,192], index: 3, kind: output, shape index: {}]  }
   0x1 LB: > { %s6174_s13 = sadd.s32 4294967295, %s8110_s12   ;;  %p6178_p0 = scmp.ge.s32.totalorder %s8110_s12, 1  ;;  %s8110_s12 = sphi %s8132_s12, %s13_s12  }
   0x2   : > { %p139_p1 = scmp.lt.s32.totalorder %s8110_s12, 3 }
   0x4   : > { %p140_p2 = pnand %p6178_p0, %p139_p1 }
   0x6   : > { %143 = sbr.rel (%p140_p2) target bundleno = 847 (0x34f), region = 32 }
   0xb   : > { %v6976_v0 = vld [vmem:[%s10640_s1 + $0x74] ss:$8 sps:$4 sm:$0xff]   ;;  %v6980_v2 = vld [vmem:[%s10640_s1 + $0x70] ss:$8 sps:$4 sm:$0xff]   ;;  %v6982_v4 = vld [vmem:[%s10640_s1 + $0x64] ss:$8 sps:$4 sm:$0xff]  }
   0xc   : > { %v6978_v1 = vld [vmem:[%s10640_s1 + $0x174] ss:$8 sps:$4 sm:$0xff]   ;;  %4713 = vmatprep.subr.bf16.mxu0 %v6976_v0  ;;  %v6981_v3 = vld [vmem:[%s10640_s1 + $0x170] ss:$8 sps:$4 sm:$0xff]   ;;  %v6984_v5 = vld [vmem:[%s10640_s1 + $0x164] ss:$8 sps:$4 sm:$0xff]  }
   0xd   : > { %4786 = vmatprep.subr.bf16.mxu1 %v6978_v1  ;;  %4714 = vmatpush1.bf16.msra.mxu0 %v6980_v2  ;;  %v6986_v6 = vld [vmem:[%s10640_s1 + $0x60] ss:$8 sps:$4 sm:$0xff]   ;;  %v6988_v8 = vld [vmem:[%s10640_s1 + $0x54] ss:$8 sps:$4 sm:$0xff]   ;;  %v6992_v10 = vld [vmem:[%s10640_s1 + $0x50] ss:$8 sps:$4 sm:$0xff]  }
   0xe   : > { %4787 = vmatpush1.bf16.msra.mxu1 %v6981_v3  ;;  %4715 = vmatprep.subr.bf16.mxu0 %v6982_v4  ;;  %v6987_v7 = vld [vmem:[%s10640_s1 + $0x160] ss:$8 sps:$4 sm:$0xff]   ;;  %v6990_v9 = vld [vmem:[%s10640_s1 + $0x154] ss:$8 sps:$4 sm:$0xff]   ;;  %v6993_v11 = vld [vmem:[%s10640_s1 + $0x150] ss:$8 sps:$4 sm:$0xff]  }
   0xf   : > { %4788 = vmatprep.subr.bf16.mxu1 %v6984_v5  ;;  %v6994_v12 = vld [vmem:[%s10640_s1 + $0x44] ss:$8 sps:$4 sm:$0xff]   ;;  %v6998_v14 = vld [vmem:[%s10640_s1 + $0x40] ss:$8 sps:$4 sm:$0xff]   ;;  %v7000_v16 = vld [vmem:[%s10640_s1 + $0x34] ss:$8 sps:$4 sm:$0xff]  }
  0x10   : > { %v6996_v13 = vld [vmem:[%s10640_s1 + $0x144] ss:$8 sps:$4 sm:$0xff]   ;;  %v6999_v15 = vld [vmem:[%s10640_s1 + $0x140] ss:$8 sps:$4 sm:$0xff]   ;;  %v7002_v17 = vld [vmem:[%s10640_s1 + $0x134] ss:$8 sps:$4 sm:$0xff]  }
  0x11   : > { %4716 = vmatpush1.bf16.msra.mxu0 %v6986_v6  ;;  %v7004_v18 = vld [vmem:[%s10640_s1 + $0x30] ss:$8 sps:$4 sm:$0xff]   ;;  %v7006_v20 = vld [vmem:[%s10640_s1 + $0x24] ss:$8 sps:$4 sm:$0xff]   ;;  %v7010_v22 = vld [vmem:[%s10640_s1 + $0x20] ss:$8 sps:$4 sm:$0xff]  }
  0x12   : > { %4789 = vmatpush1.bf16.msra.mxu1 %v6987_v7  ;;  %4717 = vmatprep.subr.bf16.mxu0 %v6988_v8  ;;  %v7005_v19 = vld [vmem:[%s10640_s1 + $0x130] ss:$8 sps:$4 sm:$0xff]   ;;  %v7008_v21 = vld [vmem:[%s10640_s1 + $0x124] ss:$8 sps:$4 sm:$0xff]   ;;  %v7011_v23 = vld [vmem:[%s10640_s1 + $0x120] ss:$8 sps:$4 sm:$0xff]  }
  0x13   : > { %4790 = vmatprep.subr.bf16.mxu1 %v6990_v9  ;;  %v7012_v24 = vld [vmem:[%s10640_s1 + $0x14] ss:$8 sps:$4 sm:$0xff]   ;;  %v7016_v26 = vld [vmem:[%s10640_s1 + $0x10] ss:$8 sps:$4 sm:$0xff]   ;;  %v7018_v28 = vld [vmem:[%s10640_s1 + $0x4] ss:$8 sps:$4 sm:$0xff]  }
  0x14   : > { %v7014_v25 = vld [vmem:[%s10640_s1 + $0x114] ss:$8 sps:$4 sm:$0xff]   ;;  %v7017_v27 = vld [vmem:[%s10640_s1 + $0x110] ss:$8 sps:$4 sm:$0xff]   ;;  %v7020_v29 = vld [vmem:[%s10640_s1 + $0x104] ss:$8 sps:$4 sm:$0xff]  }
  0x15   : > { %4718 = vmatpush1.bf16.msra.mxu0 %v6992_v10  ;;  %s6179_s24 = sshll.u32 %s6174_s13, 3  ;;  %v7022_v30 = vld [vmem:[%s10640_s1] ss:$8 sps:$4 sm:$0xff]   ;;  %v7024_v32 = vld [vmem:[%s10640_s1 + $0xf4] ss:$8 sps:$4 sm:$0xff]   ;;  %vm4700_vm0 = vcmask 523264  }
  0x16   : > { %4791 = vmatpush1.bf16.msra.mxu1 %v6993_v11  ;;  %4719 = vmatprep.subr.bf16.mxu0 %v6994_v12  ;;  %v7023_v31 = vld [vmem:[%s10640_s1 + $0x100] ss:$8 sps:$4 sm:$0xff]   ;;  %p166_p3 = scmp.lt.s32.totalorder %s6179_s24, 15  ;;  %v7026_v33 = vld [vmem:[%s10640_s1 + $0x1f4] ss:$8 sps:$4 sm:$0xff]  }
  0x17   : > { %4792 = vmatprep.subr.bf16.mxu1 %v6996_v13  ;;  %v7028_v34 = vld [vmem:[%s10640_s1 + $0xf0] ss:$8 sps:$4 sm:$0xff]   ;;  %v7030_v36 = vld [vmem:[%s10640_s1 + $0xe4] ss:$8 sps:$4 sm:$0xff]   ;;  %v7034_v38 = vld [vmem:[%s10640_s1 + $0xe0] ss:$8 sps:$4 sm:$0xff]  }
  0x18   : > { %v7029_v35 = vld [vmem:[%s10640_s1 + $0x1f0] ss:$8 sps:$4 sm:$0xff]   ;;  %s10686_s24 = smov (!%p166_p3, %s6179_s24), 15  ;;  %v7032_v37 = vld [vmem:[%s10640_s1 + $0x1e4] ss:$8 sps:$4 sm:$0xff]  }
  0x19   : > { %4720 = vmatpush1.bf16.msra.mxu0 %v6998_v14  ;;  %v7035_v39 = vld [vmem:[%s10640_s1 + $0x1e0] ss:$8 sps:$4 sm:$0xff]   ;;  %v7036_v40 = vld [vmem:[%s10640_s1 + $0xd4] ss:$8 sps:$4 sm:$0xff]   ;;  %s6967_s21 = smul.u32 152, %s10686_s24 }
  0x1a   : > { %4793 = vmatpush1.bf16.msra.mxu1 %v6999_v15  ;;  %4721 = vmatprep.subr.bf16.mxu0 %v7000_v16  ;;  %v7038_v41 = vld [vmem:[%s10640_s1 + $0x1d4] ss:$8 sps:$4 sm:$0xff]   ;;  %v7040_v42 = vld [vmem:[%s10640_s1 + $0xd0] ss:$8 sps:$4 sm:$0xff]   ;;  %v7042_v44 = vld [vmem:[%s10640_s1 + $0xc4] ss:$8 sps:$4 sm:$0xff]  }
  0x1b   : > { %4794 = vmatprep.subr.bf16.mxu1 %v7002_v17  ;;  %v7041_v43 = vld [vmem:[%s10640_s1 + $0x1d0] ss:$8 sps:$4 sm:$0xff]   ;;  %s8283_s13 = scalar_lea.vmem %s10639_s0, %s6967_s21  ;;  %v7044_v45 = vld [vmem:[%s10640_s1 + $0x1c4] ss:$8 sps:$4 sm:$0xff]   ;;  %v7046_v46 = vld [vmem:[%s10640_s1 + $0xc0] ss:$8 sps:$4 sm:$0xff]  }
  0x1c   : > { %v7047_v47 = vld [vmem:[%s10640_s1 + $0x1c0] ss:$8 sps:$4 sm:$0xff]   ;;  %v7048_v48 = vld [vmem:[%s10640_s1 + $0xb4] ss:$8 sps:$4 sm:$0xff]   ;;  %v7077_v51 = vld [vmem:[%s8283_s13 + $0xc] ss:$152 sps:$4 sm:$0xff]  }
  0x1d   : > { %4722 = vmatpush1.bf16.msra.mxu0 %v7004_v18  ;;  %v7074_v49 = vld [vmem:[%s8283_s13 + $0x4] ss:$152 sps:$4 sm:$0xff]   ;;  %v7052_v52 = vld [vmem:[%s10640_s1 + $0xb0] ss:$8 sps:$4 sm:$0xff]   ;;  %4818 = vmatprep.mubr.bf16.mxu1 %v7077_v51  ;;  %v7058_v56 = vld [vmem:[%s10640_s1 + $0xa0] ss:$8 sps:$4 sm:$0xff]  }
  0x1e   : > { %4795 = vmatpush1.bf16.msra.mxu1 %v7005_v19  ;;  %4723 = vmatprep.subr.bf16.mxu0 %v7006_v20  ;;  %v7050_v50 = vld [vmem:[%s10640_s1 + $0x1b4] ss:$8 sps:$4 sm:$0xff]   ;;  %v7053_v53 = vld [vmem:[%s10640_s1 + $0x1b0] ss:$8 sps:$4 sm:$0xff]   ;;  %v7054_v54 = vld [vmem:[%s10640_s1 + $0xa4] ss:$8 sps:$4 sm:$0xff]  }
  0x1f   : > { %4796 = vmatprep.subr.bf16.mxu1 %v7008_v21  ;;  %4745 = vmatprep.mubr.bf16.mxu0 %v7074_v49  ;;  %v7056_v55 = vld [vmem:[%s10640_s1 + $0x1a4] ss:$8 sps:$4 sm:$0xff]   ;;  %v7059_v57 = vld [vmem:[%s10640_s1 + $0x1a0] ss:$8 sps:$4 sm:$0xff]   ;;  %v7060_v58 = vld [vmem:[%s10640_s1 + $0x94] ss:$8 sps:$4 sm:$0xff]  }
  0x20   : > { %v7062_v59 = vld [vmem:[%s10640_s1 + $0x194] ss:$8 sps:$4 sm:$0xff]   ;;  %v7064_v60 = vld [vmem:[%s10640_s1 + $0x90] ss:$8 sps:$4 sm:$0xff]   ;;  %v7066_v62 = vld [vmem:[%s10640_s1 + $0x84] ss:$8 sps:$4 sm:$0xff]  }
  0x21   : > { %4724 = vmatpush1.bf16.msra.mxu0 %v7010_v22  ;;  %v7065_v61 = vld [vmem:[%s10640_s1 + $0x190] ss:$8 sps:$4 sm:$0xff]   ;;  %v7068_v63 = vld [vmem:[%s10640_s1 + $0x184] ss:$8 sps:$4 sm:$0xff]   ;;  %v7070_v0 = vld [vmem:[%s10640_s1 + $0x80] ss:$8 sps:$4 sm:$0xff]  }
  0x22   : > { %4797 = vmatpush1.bf16.msra.mxu1 %v7011_v23  ;;  %4725 = vmatprep.subr.bf16.mxu0 %v7012_v24  ;;  %v7071_v1 = vld [vmem:[%s10640_s1 + $0x180] ss:$8 sps:$4 sm:$0xff]   ;;  %v7080_v2 = vld [vmem:[%s10640_s1 + $0x274] ss:$8 sps:$4 sm:$0xff]   ;;  %v7078_v6 = vld [vmem:[%s10640_s1 + $0x270] ss:$8 sps:$4 sm:$0xff]  }
  0x23   : > { %4798 = vmatprep.subr.bf16.mxu1 %v7014_v25  ;;  %v7083_v3 = vld [vmem:[%s10640_s1 + $0x374] ss:$8 sps:$4 sm:$0xff]   ;;  %v7072_v4 = vld [vmem:[%s8283_s13] ss:$152 sps:$4 sm:$0xff]   ;;  %v7086_v8 = vld [vmem:[%s10640_s1 + $0x264] ss:$8 sps:$4 sm:$0xff]  }
  0x24   : > { %v7075_v5 = vld [vmem:[%s8283_s13 + $0x8] ss:$152 sps:$4 sm:$0xff]   ;;  %v7081_v7 = vld [vmem:[%s10640_s1 + $0x370] ss:$8 sps:$4 sm:$0xff]   ;;  %v7089_v9 = vld [vmem:[%s10640_s1 + $0x364] ss:$8 sps:$4 sm:$0xff]  }
  0x25   : > { %4726 = vmatpush1.bf16.msra.mxu0 %v7016_v26  ;;  %v7084_v10 = vld [vmem:[%s10640_s1 + $0x260] ss:$8 sps:$4 sm:$0xff]   ;;  %v7126_v11 = vld [vmem:[%s8283_s13 + $0x134] ss:$152 sps:$4 sm:$0xff]   ;;  %v7090_v15 = vld [vmem:[%s10640_s1 + $0x250] ss:$8 sps:$4 sm:$0xff]  }
  0x26   : > { %4799 = vmatpush1.bf16.msra.mxu1 %v7017_v27  ;;  %4727 = vmatprep.subr.bf16.mxu0 %v7018_v28  ;;  %v7087_v12 = vld [vmem:[%s10640_s1 + $0x360] ss:$8 sps:$4 sm:$0xff]   ;;  %v7092_v13 = vld [vmem:[%s10640_s1 + $0x254] ss:$8 sps:$4 sm:$0xff]   ;;  %v7093_v16 = vld [vmem:[%s10640_s1 + $0x350] ss:$8 sps:$4 sm:$0xff]  }
  0x27   : > { %4800 = vmatprep.subr.bf16.mxu1 %v7020_v29  ;;  %v7095_v14 = vld [vmem:[%s10640_s1 + $0x354] ss:$8 sps:$4 sm:$0xff]   ;;  %v7134_v17 = vld [vmem:[%s8283_s13 + $0x130] ss:$152 sps:$4 sm:$0xff]   ;;  %v7098_v20 = vld [vmem:[%s10640_s1 + $0x244] ss:$8 sps:$4 sm:$0xff]  }
  0x28   : > { %v7135_v18 = vld [vmem:[%s8283_s13 + $0x13c] ss:$152 sps:$4 sm:$0xff]   ;;  %v7137_v19 = vld [vmem:[%s8283_s13 + $0x138] ss:$152 sps:$4 sm:$0xff]   ;;  %v7101_v21 = vld [vmem:[%s10640_s1 + $0x344] ss:$8 sps:$4 sm:$0xff]  }
  0x29   : > { %4728 = vmatpush1.bf16.msra.mxu0 %v7022_v30  ;;  %v7096_v22 = vld [vmem:[%s10640_s1 + $0x240] ss:$8 sps:$4 sm:$0xff]   ;;  %v7144_v23 = vld [vmem:[%s8283_s13 + $0x264] ss:$152 sps:$4 sm:$0xff]   ;;  %v7102_v27 = vld [vmem:[%s10640_s1 + $0x230] ss:$8 sps:$4 sm:$0xff]  }
  0x2a   : > { %4801 = vmatpush1.bf16.msra.mxu1 %v7023_v31  ;;  %4729 = vmatprep.subr.bf16.mxu0 %v7024_v32  ;;  %v7099_v24 = vld [vmem:[%s10640_s1 + $0x340] ss:$8 sps:$4 sm:$0xff]   ;;  %v7104_v25 = vld [vmem:[%s10640_s1 + $0x234] ss:$8 sps:$4 sm:$0xff]   ;;  %v7105_v28 = vld [vmem:[%s10640_s1 + $0x330] ss:$8 sps:$4 sm:$0xff]  }
  0x2b   : > { %4802 = vmatprep.subr.bf16.mxu1 %v7026_v33  ;;  %v7107_v26 = vld [vmem:[%s10640_s1 + $0x334] ss:$8 sps:$4 sm:$0xff]   ;;  %v7152_v29 = vld [vmem:[%s8283_s13 + $0x260] ss:$152 sps:$4 sm:$0xff]   ;;  %v7153_v30 = vld [vmem:[%s8283_s13 + $0x26c] ss:$152 sps:$4 sm:$0xff]  }
  0x2c   : > { %v7155_v31 = vld [vmem:[%s8283_s13 + $0x268] ss:$152 sps:$4 sm:$0xff]   ;;  %v7110_v32 = vld [vmem:[%s10640_s1 + $0x224] ss:$8 sps:$4 sm:$0xff]   ;;  %v7133_v49 = vld [vmem:[%s10640_s1 + $0x3f4] ss:$8 sps:$4 sm:$0xff]  }
  0x2d   : > { %4730 = vmatpush2.bf16.msra.mxu0 %v7028_v34  ;;  %v7113_v33 = vld [vmem:[%s10640_s1 + $0x324] ss:$8 sps:$4 sm:$0xff]   ;;  %v7108_v34 = vld [vmem:[%s10640_s1 + $0x220] ss:$8 sps:$4 sm:$0xff]   ;;  %v7131_v51 = vld [vmem:[%s10640_s1 + $0x3f0] ss:$8 sps:$4 sm:$0xff]  }
  0x2e   : > { %4803 = vmatpush2.bf16.msra.mxu1 %v7029_v35  ;;  %4731 = vmatprep.subr.bf16.mxu0 %v7030_v36  ;;  %v7162_v35 = vld [vmem:[%s8283_s13 + $0x394] ss:$152 sps:$4 sm:$0xff]   ;;  %v7111_v36 = vld [vmem:[%s10640_s1 + $0x320] ss:$8 sps:$4 sm:$0xff]  }
  0x2f   : > { %4804 = vmatprep.subr.bf16.mxu1 %v7032_v37  ;;  %v7116_v37 = vld [vmem:[%s10640_s1 + $0x214] ss:$8 sps:$4 sm:$0xff]  }
  0x31   : > { %4732 = vmatpush2.bf16.msra.mxu0 %v7034_v38  ;;  %v7119_v38 = vld [vmem:[%s10640_s1 + $0x314] ss:$8 sps:$4 sm:$0xff]  }
  0x32   : > { %4805 = vmatpush2.bf16.msra.mxu1 %v7035_v39  ;;  %4733 = vmatprep.subr.bf16.mxu0 %v7036_v40  ;;  %v7114_v39 = vld [vmem:[%s10640_s1 + $0x210] ss:$8 sps:$4 sm:$0xff]  }
  0x33   : > { %4806 = vmatprep.subr.bf16.mxu1 %v7038_v41  ;;  %v7117_v40 = vld [vmem:[%s10640_s1 + $0x310] ss:$8 sps:$4 sm:$0xff]  }
  0x34   : > { %v7170_v41 = vld [vmem:[%s8283_s13 + $0x390] ss:$152 sps:$4 sm:$0xff]  }
  0x35   : > { %4734 = vmatpush2.bf16.msra.mxu0 %v7040_v42  ;;  %v7171_v42 = vld [vmem:[%s8283_s13 + $0x39c] ss:$152 sps:$4 sm:$0xff]  }
  0x36   : > { %4807 = vmatpush2.bf16.msra.mxu1 %v7041_v43  ;;  %4735 = vmatprep.subr.bf16.mxu0 %v7042_v44  ;;  %v7173_v43 = vld [vmem:[%s8283_s13 + $0x398] ss:$152 sps:$4 sm:$0xff]   ;;  %v7122_v44 = vld [vmem:[%s10640_s1 + $0x204] ss:$8 sps:$4 sm:$0xff]  }
  0x37   : > { %4808 = vmatprep.subr.bf16.mxu1 %v7044_v45  ;;  %v7125_v45 = vld [vmem:[%s10640_s1 + $0x304] ss:$8 sps:$4 sm:$0xff]  }
  0x39   : > { %4736 = vmatpush2.bf16.msra.mxu0 %v7046_v46  ;;  %v7120_v46 = vld [vmem:[%s10640_s1 + $0x200] ss:$8 sps:$4 sm:$0xff]  }
  0x3a   : > { %4809 = vmatpush2.bf16.msra.mxu1 %v7047_v47  ;;  %4737 = vmatprep.subr.bf16.mxu0 %v7048_v48  ;;  %v7123_v47 = vld [vmem:[%s10640_s1 + $0x300] ss:$8 sps:$4 sm:$0xff]   ;;  %v7130_v48 = vld [vmem:[%s10640_s1 + $0x2f4] ss:$8 sps:$4 sm:$0xff]  }
  0x3b   : > { %4810 = vmatprep.subr.bf16.mxu1 %v7050_v50  ;;  %v7128_v50 = vld [vmem:[%s10640_s1 + $0x2f0] ss:$8 sps:$4 sm:$0xff]  }
  0x3d   : > { %4738 = vmatpush2.bf16.msra.mxu0 %v7052_v52  ;;  %v7140_v52 = vld [vmem:[%s10640_s1 + $0x2e4] ss:$8 sps:$4 sm:$0xff]  }
  0x3e   : > { %4811 = vmatpush2.bf16.msra.mxu1 %v7053_v53  ;;  %4739 = vmatprep.subr.bf16.mxu0 %v7054_v54  ;;  %v7143_v53 = vld [vmem:[%s10640_s1 + $0x3e4] ss:$8 sps:$4 sm:$0xff]  }
  0x3f   : > { %4812 = vmatprep.subr.bf16.mxu1 %v7056_v55  ;;  %v7194_v54 = vld [vmem:[%s8283_s13 + $0x14] ss:$152 sps:$4 sm:$0xff]  }
  0x40   : > { %v7197_v55 = vld [vmem:[%s8283_s13 + $0x1c] ss:$152 sps:$4 sm:$0xff]  }
  0x41   : > { %4740 = vmatpush2.bf16.msra.mxu0 %v7058_v56  ;;  %v7138_v56 = vld [vmem:[%s10640_s1 + $0x2e0] ss:$8 sps:$4 sm:$0xff]  }
  0x42   : > { %4813 = vmatpush2.bf16.msra.mxu1 %v7059_v57  ;;  %4741 = vmatprep.subr.bf16.mxu0 %v7060_v58  ;;  %v7141_v57 = vld [vmem:[%s10640_s1 + $0x3e0] ss:$8 sps:$4 sm:$0xff]   ;;  %v7148_v58 = vld [vmem:[%s10640_s1 + $0x2d4] ss:$8 sps:$4 sm:$0xff]  }
  0x43   : > { %4814 = vmatprep.subr.bf16.mxu1 %v7062_v59  ;;  %v7151_v59 = vld [vmem:[%s10640_s1 + $0x3d4] ss:$8 sps:$4 sm:$0xff]  }
  0x45   : > { %4742 = vmatpush2.bf16.msra.mxu0 %v7064_v60  ;;  %v7146_v60 = vld [vmem:[%s10640_s1 + $0x2d0] ss:$8 sps:$4 sm:$0xff]  }
  0x46   : > { %4815 = vmatpush2.bf16.msra.mxu1 %v7065_v61  ;;  %4743 = vmatprep.subr.bf16.mxu0 %v7066_v62  ;;  %v7149_v61 = vld [vmem:[%s10640_s1 + $0x3d0] ss:$8 sps:$4 sm:$0xff]   ;;  %v7158_v62 = vld [vmem:[%s10640_s1 + $0x2c4] ss:$8 sps:$4 sm:$0xff]  }
  0x47   : > { %4816 = vmatprep.subr.bf16.mxu1 %v7068_v63  ;;  %v7161_v63 = vld [vmem:[%s10640_s1 + $0x3c4] ss:$8 sps:$4 sm:$0xff]  }
  0x49   : > { %4744 = vmatpush2.bf16.msra.mxu0 %v7070_v0  ;;  %v7156_v0 = vld [vmem:[%s10640_s1 + $0x2c0] ss:$8 sps:$4 sm:$0xff]  }
  0x4a   : > { %4817 = vmatpush2.bf16.msra.mxu1 %v7071_v1  ;;  %4859 = vmatprep.subr.bf16.mxu0 %v7080_v2  ;;  %v7159_v1 = vld [vmem:[%s10640_s1 + $0x3c0] ss:$8 sps:$4 sm:$0xff]   ;;  %v7166_v2 = vld [vmem:[%s10640_s1 + $0x2b4] ss:$8 sps:$4 sm:$0xff]  }
  0x4b   : > { %4932 = vmatprep.subr.bf16.mxu1 %v7083_v3  ;;  %v7169_v3 = vld [vmem:[%s10640_s1 + $0x3b4] ss:$8 sps:$4 sm:$0xff]  }
  0x4c   : > { %4746 = vmatmul.mubr.bf16.vlgmr.msra.gmra.mxu0 %v7072_v4  ;;  %v7164_v4 = vld [vmem:[%s10640_s1 + $0x2b0] ss:$8 sps:$4 sm:$0xff]  }
  0x4d   : > { %4819 = vmatmul.mubr.bf16.vlgmr.msra.gmra.mxu1 %v7075_v5  ;;  %4860 = vmatpush1.bf16.msra.mxu0 %v7078_v6  ;;  %v7167_v5 = vld [vmem:[%s10640_s1 + $0x3b0] ss:$8 sps:$4 sm:$0xff]   ;;  %v7176_v6 = vld [vmem:[%s10640_s1 + $0x2a4] ss:$8 sps:$4 sm:$0xff]  }
  0x4e   : > { %4933 = vmatpush1.bf16.msra.mxu1 %v7081_v7  ;;  %4861 = vmatprep.subr.bf16.mxu0 %v7086_v8  ;;  %v7179_v7 = vld [vmem:[%s10640_s1 + $0x3a4] ss:$8 sps:$4 sm:$0xff]   ;;  %v7174_v8 = vld [vmem:[%s10640_s1 + $0x2a0] ss:$8 sps:$4 sm:$0xff]  }
  0x4f   : > { %4934 = vmatprep.subr.bf16.mxu1 %v7089_v9  ;;  %4755 = vmatprep.mubr.bf16.mxu0 %v7126_v11  ;;  %v7177_v9 = vld [vmem:[%s10640_s1 + $0x3a0] ss:$8 sps:$4 sm:$0xff]   ;;  %v7185_v11 = vld [vmem:[%s10640_s1 + $0x394] ss:$8 sps:$4 sm:$0xff]  }
  0x50   : > { %4828 = vmatprep.mubr.bf16.mxu1 %v7135_v18  ;;  %v7200_v18 = vld [vmem:[%s10640_s1 + $0x474] ss:$8 sps:$4 sm:$0xff]  }
  0x51   : > { %4862 = vmatpush1.bf16.msra.mxu0 %v7084_v10  ;;  %v7182_v10 = vld [vmem:[%s10640_s1 + $0x294] ss:$8 sps:$4 sm:$0xff]  }
  0x52   : > { %4935 = vmatpush1.bf16.msra.mxu1 %v7087_v12  ;;  %4863 = vmatprep.subr.bf16.mxu0 %v7092_v13  ;;  %v7180_v12 = vld [vmem:[%s10640_s1 + $0x290] ss:$8 sps:$4 sm:$0xff]  }
  0x53   : > { %4936 = vmatprep.subr.bf16.mxu1 %v7095_v14  ;;  %v7183_v13 = vld [vmem:[%s10640_s1 + $0x390] ss:$8 sps:$4 sm:$0xff]   ;;  %v7188_v14 = vld [vmem:[%s10640_s1 + $0x284] ss:$8 sps:$4 sm:$0xff]  }
  0x54   : > { %4756 = vmatmul.mubr.bf16.gmra.mxu0 %v7134_v17  ;;  %v7189_v17 = vld [vmem:[%s10640_s1 + $0x380] ss:$8 sps:$4 sm:$0xff]  }
  0x55   : > { %4829 = vmatmul.mubr.bf16.gmra.mxu1 %v7137_v19  ;;  %4864 = vmatpush1.bf16.msra.mxu0 %v7090_v15  ;;  %v7191_v15 = vld [vmem:[%s10640_s1 + $0x384] ss:$8 sps:$4 sm:$0xff]   ;;  %v7203_v19 = vld [vmem:[%s10640_s1 + $0x574] ss:$8 sps:$4 sm:$0xff]  }
  0x56   : > { %4937 = vmatpush1.bf16.msra.mxu1 %v7093_v16  ;;  %4865 = vmatprep.subr.bf16.mxu0 %v7098_v20  ;;  %v7186_v16 = vld [vmem:[%s10640_s1 + $0x280] ss:$8 sps:$4 sm:$0xff]  }
  0x57   : > { %4938 = vmatprep.subr.bf16.mxu1 %v7101_v21  ;;  %4765 = vmatprep.mubr.bf16.mxu0 %v7144_v23  ;;  %v7192_v20 = vld [vmem:[%s8283_s13 + $0x10] ss:$152 sps:$4 sm:$0xff]  }
  0x58   : > { %4838 = vmatprep.mubr.bf16.mxu1 %v7153_v30  ;;  %v7195_v21 = vld [vmem:[%s8283_s13 + $0x18] ss:$152 sps:$4 sm:$0xff]   ;;  %v7215_v30 = vld [vmem:[%s10640_s1 + $0x454] ss:$8 sps:$4 sm:$0xff]  }
  0x59   : > { %4866 = vmatpush1.bf16.msra.mxu0 %v7096_v22  ;;  %v7198_v22 = vld [vmem:[%s10640_s1 + $0x470] ss:$8 sps:$4 sm:$0xff]  }
  0x5a   : > { %4939 = vmatpush1.bf16.msra.mxu1 %v7099_v24  ;;  %4867 = vmatprep.subr.bf16.mxu0 %v7104_v25  ;;  %v7201_v23 = vld [vmem:[%s10640_s1 + $0x570] ss:$8 sps:$4 sm:$0xff]   ;;  %v7206_v24 = vld [vmem:[%s10640_s1 + $0x464] ss:$8 sps:$4 sm:$0xff]  }
  0x5b   : > { %4940 = vmatprep.subr.bf16.mxu1 %v7107_v26  ;;  %v7209_v25 = vld [vmem:[%s10640_s1 + $0x564] ss:$8 sps:$4 sm:$0xff]  }
  0x5c   : > { %4766 = vmatmul.mubr.bf16.gmra.mxu0 %v7152_v29  ;;  %v7210_v26 = vld [vmem:[%s8283_s13 + $0x144] ss:$152 sps:$4 sm:$0xff]   ;;  %v7207_v29 = vld [vmem:[%s10640_s1 + $0x560] ss:$8 sps:$4 sm:$0xff]  }
  0x5d   : > { %4839 = vmatmul.mubr.bf16.gmra.mxu1 %v7155_v31  ;;  %4868 = vmatpush1.bf16.msra.mxu0 %v7102_v27  ;;  %v7219_v27 = vld [vmem:[%s8283_s13 + $0x14c] ss:$152 sps:$4 sm:$0xff]   ;;  %v7218_v31 = vld [vmem:[%s10640_s1 + $0x554] ss:$8 sps:$4 sm:$0xff]  }
  0x5e   : > { %4941 = vmatpush1.bf16.msra.mxu1 %v7105_v28  ;;  %4869 = vmatprep.subr.bf16.mxu0 %v7110_v32  ;;  %v7204_v28 = vld [vmem:[%s10640_s1 + $0x460] ss:$8 sps:$4 sm:$0xff]  }
  0x5f   : > { %4942 = vmatprep.subr.bf16.mxu1 %v7113_v33  ;;  %4775 = vmatprep.mubr.bf16.mxu0 %v7162_v35  ;;  %v7212_v32 = vld [vmem:[%s8283_s13 + $0x140] ss:$152 sps:$4 sm:$0xff]  }
  0x60   : > { %4848 = vmatprep.mubr.bf16.mxu1 %v7171_v42  ;;  %v7213_v33 = vld [vmem:[%s10640_s1 + $0x450] ss:$8 sps:$4 sm:$0xff]   ;;  %v7221_v35 = vld [vmem:[%s8283_s13 + $0x148] ss:$152 sps:$4 sm:$0xff]   ;;  %v7233_v42 = vld [vmem:[%s10640_s1 + $0x434] ss:$8 sps:$4 sm:$0xff]  }
  0x61   : > { %4870 = vmatpush1.bf16.msra.mxu0 %v7108_v34  ;;  %v7216_v34 = vld [vmem:[%s10640_s1 + $0x550] ss:$8 sps:$4 sm:$0xff]  }
  0x62   : > { %4943 = vmatpush1.bf16.msra.mxu1 %v7111_v36  ;;  %4871 = vmatprep.subr.bf16.mxu0 %v7116_v37  ;;  %v7224_v36 = vld [vmem:[%s10640_s1 + $0x444] ss:$8 sps:$4 sm:$0xff]  }
  0x63   : > { %4944 = vmatprep.subr.bf16.mxu1 %v7119_v38  ;;  %v7227_v37 = vld [vmem:[%s10640_s1 + $0x544] ss:$8 sps:$4 sm:$0xff]  }
  0x64   : > { %4776 = vmatmul.mubr.bf16.gmra.mxu0 %v7170_v41  ;;  %v7228_v38 = vld [vmem:[%s8283_s13 + $0x274] ss:$152 sps:$4 sm:$0xff]   ;;  %v7225_v41 = vld [vmem:[%s10640_s1 + $0x540] ss:$8 sps:$4 sm:$0xff]  }
  0x65   : > { %4849 = vmatmul.mubr.bf16.gmra.mxu1 %v7173_v43  ;;  %4872 = vmatpush1.bf16.msra.mxu0 %v7114_v39  ;;  %v7237_v39 = vld [vmem:[%s8283_s13 + $0x27c] ss:$152 sps:$4 sm:$0xff]  }
  0x66   : > { %4945 = vmatpush1.bf16.msra.mxu1 %v7117_v40  ;;  %4873 = vmatprep.subr.bf16.mxu0 %v7122_v44  ;;  %v7222_v40 = vld [vmem:[%s10640_s1 + $0x440] ss:$8 sps:$4 sm:$0xff]   ;;  %v7236_v43 = vld [vmem:[%s10640_s1 + $0x534] ss:$8 sps:$4 sm:$0xff]  }
  0x67   : > { %4946 = vmatprep.subr.bf16.mxu1 %v7125_v45  ;;  %4891 = vmatprep.mubr.bf16.mxu0 %v7194_v54  ;;  %v7230_v44 = vld [vmem:[%s8283_s13 + $0x270] ss:$152 sps:$4 sm:$0xff]   ;;  %v7251_v54 = vld [vmem:[%s10640_s1 + $0x414] ss:$8 sps:$4 sm:$0xff]  }
  0x68   : > { %4964 = vmatprep.mubr.bf16.mxu1 %v7197_v55  ;;  %v7231_v45 = vld [vmem:[%s10640_s1 + $0x430] ss:$8 sps:$4 sm:$0xff]   ;;  %v7254_v55 = vld [vmem:[%s10640_s1 + $0x514] ss:$8 sps:$4 sm:$0xff]  }
  0x69   : > { %4874 = vmatpush1.bf16.msra.mxu0 %v7120_v46  ;;  %v7234_v46 = vld [vmem:[%s10640_s1 + $0x530] ss:$8 sps:$4 sm:$0xff]  }
  0x6a   : > { %4947 = vmatpush1.bf16.msra.mxu1 %v7123_v47  ;;  %4875 = vmatprep.subr.bf16.mxu0 %v7130_v48  ;;  %v7239_v47 = vld [vmem:[%s8283_s13 + $0x278] ss:$152 sps:$4 sm:$0xff]   ;;  %v7242_v48 = vld [vmem:[%s10640_s1 + $0x424] ss:$8 sps:$4 sm:$0xff]  }
  0x6b   : > { %4948 = vmatprep.subr.bf16.mxu1 %v7133_v49  ;;  %v7245_v49 = vld [vmem:[%s10640_s1 + $0x524] ss:$8 sps:$4 sm:$0xff]  }
  0x6d   : > { %4876 = vmatpush2.bf16.msra.mxu0 %v7128_v50  ;;  %v7246_v50 = vld [vmem:[%s8283_s13 + $0x3a4] ss:$152 sps:$4 sm:$0xff]  }
  0x6e   : > { %4949 = vmatpush2.bf16.msra.mxu1 %v7131_v51  ;;  %4877 = vmatprep.subr.bf16.mxu0 %v7140_v52  ;;  %v7255_v51 = vld [vmem:[%s8283_s13 + $0x3ac] ss:$152 sps:$4 sm:$0xff]   ;;  %v7240_v52 = vld [vmem:[%s10640_s1 + $0x420] ss:$8 sps:$4 sm:$0xff]  }
  0x6f   : > { %4950 = vmatprep.subr.bf16.mxu1 %v7143_v53  ;;  %v7243_v53 = vld [vmem:[%s10640_s1 + $0x520] ss:$8 sps:$4 sm:$0xff]  }
  0x71   : > { %4878 = vmatpush2.bf16.msra.mxu0 %v7138_v56  ;;  %v7248_v56 = vld [vmem:[%s8283_s13 + $0x3a0] ss:$152 sps:$4 sm:$0xff]  }
  0x72   : > { %4951 = vmatpush2.bf16.msra.mxu1 %v7141_v57  ;;  %4879 = vmatprep.subr.bf16.mxu0 %v7148_v58  ;;  %v7249_v57 = vld [vmem:[%s10640_s1 + $0x410] ss:$8 sps:$4 sm:$0xff]  }
  0x73   : > { %4952 = vmatprep.subr.bf16.mxu1 %v7151_v59  ;;  %v7252_v58 = vld [vmem:[%s10640_s1 + $0x510] ss:$8 sps:$4 sm:$0xff]   ;;  %v7257_v59 = vld [vmem:[%s8283_s13 + $0x3a8] ss:$152 sps:$4 sm:$0xff]  }
  0x75   : > { %4880 = vmatpush2.bf16.msra.mxu0 %v7146_v60  ;;  %v7260_v60 = vld [vmem:[%s10640_s1 + $0x404] ss:$8 sps:$4 sm:$0xff]  }
  0x76   : > { %4953 = vmatpush2.bf16.msra.mxu1 %v7149_v61  ;;  %4881 = vmatprep.subr.bf16.mxu0 %v7158_v62  ;;  %v7263_v61 = vld [vmem:[%s10640_s1 + $0x504] ss:$8 sps:$4 sm:$0xff]  }
  0x77   : > { %4954 = vmatprep.subr.bf16.mxu1 %v7161_v63  ;;  %v7314_v62 = vld [vmem:[%s8283_s13 + $0x24] ss:$152 sps:$4 sm:$0xff]  }
  0x78   : > { %v7317_v63 = vld [vmem:[%s8283_s13 + $0x2c] ss:$152 sps:$4 sm:$0xff]  }
  0x79   : > { %4882 = vmatpush2.bf16.msra.mxu0 %v7156_v0  ;;  %v7258_v0 = vld [vmem:[%s10640_s1 + $0x400] ss:$8 sps:$4 sm:$0xff]  }
  0x7a   : > { %4955 = vmatpush2.bf16.msra.mxu1 %v7159_v1  ;;  %4883 = vmatprep.subr.bf16.mxu0 %v7166_v2  ;;  %v7261_v1 = vld [vmem:[%s10640_s1 + $0x500] ss:$8 sps:$4 sm:$0xff]   ;;  %v7266_v2 = vld [vmem:[%s10640_s1 + $0x4f4] ss:$8 sps:$4 sm:$0xff]  }
  0x7b   : > { %4956 = vmatprep.subr.bf16.mxu1 %v7169_v3  ;;  %v7269_v3 = vld [vmem:[%s10640_s1 + $0x5f4] ss:$8 sps:$4 sm:$0xff]  }
  0x7d   : > { %4884 = vmatpush2.bf16.msra.mxu0 %v7164_v4  ;;  %v7264_v4 = vld [vmem:[%s10640_s1 + $0x4f0] ss:$8 sps:$4 sm:$0xff]  }
  0x7e   : > { %4957 = vmatpush2.bf16.msra.mxu1 %v7167_v5  ;;  %4885 = vmatprep.subr.bf16.mxu0 %v7176_v6  ;;  %v7267_v5 = vld [vmem:[%s10640_s1 + $0x5f0] ss:$8 sps:$4 sm:$0xff]   ;;  %v7272_v6 = vld [vmem:[%s10640_s1 + $0x4e4] ss:$8 sps:$4 sm:$0xff]  }
  0x7f   : > { %4958 = vmatprep.subr.bf16.mxu1 %v7179_v7  ;;  %v7275_v7 = vld [vmem:[%s10640_s1 + $0x5e4] ss:$8 sps:$4 sm:$0xff]  }
  0x81   : > { %4886 = vmatpush2.bf16.msra.mxu0 %v7174_v8  ;;  %v7270_v8 = vld [vmem:[%s10640_s1 + $0x4e0] ss:$8 sps:$4 sm:$0xff]  }
  0x82   : > { %4959 = vmatpush2.bf16.msra.mxu1 %v7177_v9  ;;  %4887 = vmatprep.subr.bf16.mxu0 %v7182_v10  ;;  %v7273_v9 = vld [vmem:[%s10640_s1 + $0x5e0] ss:$8 sps:$4 sm:$0xff]   ;;  %v7278_v10 = vld [vmem:[%s10640_s1 + $0x4d4] ss:$8 sps:$4 sm:$0xff]  }
  0x83   : > { %4960 = vmatprep.subr.bf16.mxu1 %v7185_v11  ;;  %v7281_v11 = vld [vmem:[%s10640_s1 + $0x5d4] ss:$8 sps:$4 sm:$0xff]  }
  0x85   : > { %4888 = vmatpush2.bf16.msra.mxu0 %v7180_v12  ;;  %v7276_v12 = vld [vmem:[%s10640_s1 + $0x4d0] ss:$8 sps:$4 sm:$0xff]  }
  0x86   : > { %4961 = vmatpush2.bf16.msra.mxu1 %v7183_v13  ;;  %4889 = vmatprep.subr.bf16.mxu0 %v7188_v14  ;;  %v7279_v13 = vld [vmem:[%s10640_s1 + $0x5d0] ss:$8 sps:$4 sm:$0xff]   ;;  %v7284_v14 = vld [vmem:[%s10640_s1 + $0x4c4] ss:$8 sps:$4 sm:$0xff]  }
  0x87   : > { %4962 = vmatprep.subr.bf16.mxu1 %v7191_v15  ;;  %v7287_v15 = vld [vmem:[%s10640_s1 + $0x5c4] ss:$8 sps:$4 sm:$0xff]  }
  0x89   : > { %4890 = vmatpush2.bf16.msra.mxu0 %v7186_v16  ;;  %v7282_v16 = vld [vmem:[%s10640_s1 + $0x4c0] ss:$8 sps:$4 sm:$0xff]  }
  0x8a   : > { %4963 = vmatpush2.bf16.msra.mxu1 %v7189_v17  ;;  %5005 = vmatprep.subr.bf16.mxu0 %v7200_v18  ;;  %v7285_v17 = vld [vmem:[%s10640_s1 + $0x5c0] ss:$8 sps:$4 sm:$0xff]   ;;  %v7290_v18 = vld [vmem:[%s10640_s1 + $0x4b4] ss:$8 sps:$4 sm:$0xff]  }
  0x8b   : > { %5078 = vmatprep.subr.bf16.mxu1 %v7203_v19  ;;  %v7293_v19 = vld [vmem:[%s10640_s1 + $0x5b4] ss:$8 sps:$4 sm:$0xff]  }
  0x8c   : > { %4892 = vmatmul.mubr.bf16.vlgmr.msra.gmra.mxu0 %v7192_v20  ;;  %v7288_v20 = vld [vmem:[%s10640_s1 + $0x4b0] ss:$8 sps:$4 sm:$0xff]  }
  0x8d   : > { %4965 = vmatmul.mubr.bf16.vlgmr.msra.gmra.mxu1 %v7195_v21  ;;  %5006 = vmatpush1.bf16.msra.mxu0 %v7198_v22  ;;  %v7291_v21 = vld [vmem:[%s10640_s1 + $0x5b0] ss:$8 sps:$4 sm:$0xff]   ;;  %v7296_v22 = vld [vmem:[%s10640_s1 + $0x4a4] ss:$8 sps:$4 sm:$0xff]  }
  0x8e   : > { %5079 = vmatpush1.bf16.msra.mxu1 %v7201_v23  ;;  %5007 = vmatprep.subr.bf16.mxu0 %v7206_v24  ;;  %v7299_v23 = vld [vmem:[%s10640_s1 + $0x5a4] ss:$8 sps:$4 sm:$0xff]   ;;  %v7294_v24 = vld [vmem:[%s10640_s1 + $0x4a0] ss:$8 sps:$4 sm:$0xff]  }
  0x8f   : > { %5080 = vmatprep.subr.bf16.mxu1 %v7209_v25  ;;  %4901 = vmatprep.mubr.bf16.mxu0 %v7210_v26  ;;  %v7297_v25 = vld [vmem:[%s10640_s1 + $0x5a0] ss:$8 sps:$4 sm:$0xff]   ;;  %v7302_v26 = vld [vmem:[%s10640_s1 + $0x494] ss:$8 sps:$4 sm:$0xff]  }
  0x90   : > { %4974 = vmatprep.mubr.bf16.mxu1 %v7219_v27  ;;  %v7305_v27 = vld [vmem:[%s10640_s1 + $0x594] ss:$8 sps:$4 sm:$0xff]  }
  0x91   : > { %5008 = vmatpush1.bf16.msra.mxu0 %v7204_v28  ;;  %v7300_v28 = vld [vmem:[%s10640_s1 + $0x490] ss:$8 sps:$4 sm:$0xff]  }
  0x92   : > { %5081 = vmatpush1.bf16.msra.mxu1 %v7207_v29  ;;  %5009 = vmatprep.subr.bf16.mxu0 %v7215_v30  ;;  %v7303_v29 = vld [vmem:[%s10640_s1 + $0x590] ss:$8 sps:$4 sm:$0xff]   ;;  %v7308_v30 = vld [vmem:[%s10640_s1 + $0x484] ss:$8 sps:$4 sm:$0xff]  }
  0x93   : > { %5082 = vmatprep.subr.bf16.mxu1 %v7218_v31  ;;  %v7311_v31 = vld [vmem:[%s10640_s1 + $0x584] ss:$8 sps:$4 sm:$0xff]  }
  0x94   : > { %4902 = vmatmul.mubr.bf16.gmra.mxu0 %v7212_v32  ;;  %v7306_v32 = vld [vmem:[%s10640_s1 + $0x480] ss:$8 sps:$4 sm:$0xff]  }
  0x95   : > { %4975 = vmatmul.mubr.bf16.gmra.mxu1 %v7221_v35  ;;  %5010 = vmatpush1.bf16.msra.mxu0 %v7213_v33  ;;  %v7309_v33 = vld [vmem:[%s10640_s1 + $0x580] ss:$8 sps:$4 sm:$0xff]   ;;  %v7323_v35 = vld [vmem:[%s10640_s1 + $0x774] ss:$8 sps:$4 sm:$0xff]  }
  0x96   : > { %5083 = vmatpush1.bf16.msra.mxu1 %v7216_v34  ;;  %5011 = vmatprep.subr.bf16.mxu0 %v7224_v36  ;;  %v7320_v34 = vld [vmem:[%s10640_s1 + $0x674] ss:$8 sps:$4 sm:$0xff]   ;;  %v7312_v36 = vld [vmem:[%s8283_s13 + $0x20] ss:$152 sps:$4 sm:$0xff]  }
  0x97   : > { %5084 = vmatprep.subr.bf16.mxu1 %v7227_v37  ;;  %4911 = vmatprep.mubr.bf16.mxu0 %v7228_v38  ;;  %v7315_v37 = vld [vmem:[%s8283_s13 + $0x28] ss:$152 sps:$4 sm:$0xff]   ;;  %v7318_v38 = vld [vmem:[%s10640_s1 + $0x670] ss:$8 sps:$4 sm:$0xff]  }
  0x98   : > { %4984 = vmatprep.mubr.bf16.mxu1 %v7237_v39  ;;  %v7321_v39 = vld [vmem:[%s10640_s1 + $0x770] ss:$8 sps:$4 sm:$0xff]  }
  0x99   : > { %5012 = vmatpush1.bf16.msra.mxu0 %v7222_v40  ;;  %v7326_v40 = vld [vmem:[%s10640_s1 + $0x664] ss:$8 sps:$4 sm:$0xff]  }
  0x9a   : > { %5085 = vmatpush1.bf16.msra.mxu1 %v7225_v41  ;;  %5013 = vmatprep.subr.bf16.mxu0 %v7233_v42  ;;  %v7329_v41 = vld [vmem:[%s10640_s1 + $0x764] ss:$8 sps:$4 sm:$0xff]  }
  0x9b   : > { %5086 = vmatprep.subr.bf16.mxu1 %v7236_v43  ;;  %v7330_v42 = vld [vmem:[%s8283_s13 + $0x154] ss:$152 sps:$4 sm:$0xff]  }
  0x9c   : > { %4912 = vmatmul.mubr.bf16.gmra.mxu0 %v7230_v44  ;;  %v7339_v43 = vld [vmem:[%s8283_s13 + $0x15c] ss:$152 sps:$4 sm:$0xff]   ;;  %v7324_v44 = vld [vmem:[%s10640_s1 + $0x660] ss:$8 sps:$4 sm:$0xff]  }
  0x9d   : > { %4985 = vmatmul.mubr.bf16.gmra.mxu1 %v7239_v47  ;;  %5014 = vmatpush1.bf16.msra.mxu0 %v7231_v45  ;;  %v7327_v45 = vld [vmem:[%s10640_s1 + $0x760] ss:$8 sps:$4 sm:$0xff]   ;;  %v7338_v47 = vld [vmem:[%s10640_s1 + $0x754] ss:$8 sps:$4 sm:$0xff]  }
  0x9e   : > { %5087 = vmatpush1.bf16.msra.mxu1 %v7234_v46  ;;  %5015 = vmatprep.subr.bf16.mxu0 %v7242_v48  ;;  %v7335_v46 = vld [vmem:[%s10640_s1 + $0x654] ss:$8 sps:$4 sm:$0xff]   ;;  %v7332_v48 = vld [vmem:[%s8283_s13 + $0x150] ss:$152 sps:$4 sm:$0xff]  }
  0x9f   : > { %5088 = vmatprep.subr.bf16.mxu1 %v7245_v49  ;;  %4921 = vmatprep.mubr.bf16.mxu0 %v7246_v50  ;;  %v7333_v49 = vld [vmem:[%s10640_s1 + $0x650] ss:$8 sps:$4 sm:$0xff]  }
  0xa0   : > { %4994 = vmatprep.mubr.bf16.mxu1 %v7255_v51  ;;  %v7336_v50 = vld [vmem:[%s10640_s1 + $0x750] ss:$8 sps:$4 sm:$0xff]  }
  0xa1   : > { %5016 = vmatpush1.bf16.msra.mxu0 %v7240_v52  ;;  %v7341_v51 = vld [vmem:[%s8283_s13 + $0x158] ss:$152 sps:$4 sm:$0xff]   ;;  %v7344_v52 = vld [vmem:[%s10640_s1 + $0x644] ss:$8 sps:$4 sm:$0xff]  }
  0xa2   : > { %5089 = vmatpush1.bf16.msra.mxu1 %v7243_v53  ;;  %5017 = vmatprep.subr.bf16.mxu0 %v7251_v54  ;;  %v7347_v53 = vld [vmem:[%s10640_s1 + $0x744] ss:$8 sps:$4 sm:$0xff]  }
  0xa3   : > { %5090 = vmatprep.subr.bf16.mxu1 %v7254_v55  ;;  %v7348_v54 = vld [vmem:[%s8283_s13 + $0x284] ss:$152 sps:$4 sm:$0xff]  }
  0xa4   : > { %4922 = vmatmul.mubr.bf16.gmra.mxu0 %v7248_v56  ;;  %v7357_v55 = vld [vmem:[%s8283_s13 + $0x28c] ss:$152 sps:$4 sm:$0xff]   ;;  %v7342_v56 = vld [vmem:[%s10640_s1 + $0x640] ss:$8 sps:$4 sm:$0xff]  }
  0xa5   : > { %4995 = vmatmul.mubr.bf16.gmra.mxu1 %v7257_v59  ;;  %5018 = vmatpush1.bf16.msra.mxu0 %v7249_v57  ;;  %v7345_v57 = vld [vmem:[%s10640_s1 + $0x740] ss:$8 sps:$4 sm:$0xff]   ;;  %v7356_v59 = vld [vmem:[%s10640_s1 + $0x734] ss:$8 sps:$4 sm:$0xff]  }
  0xa6   : > { %5091 = vmatpush1.bf16.msra.mxu1 %v7252_v58  ;;  %5019 = vmatprep.subr.bf16.mxu0 %v7260_v60  ;;  %v7353_v58 = vld [vmem:[%s10640_s1 + $0x634] ss:$8 sps:$4 sm:$0xff]   ;;  %v7350_v60 = vld [vmem:[%s8283_s13 + $0x280] ss:$152 sps:$4 sm:$0xff]  }
  0xa7   : > { %5092 = vmatprep.subr.bf16.mxu1 %v7263_v61  ;;  %5037 = vmatprep.mubr.bf16.mxu0 %v7314_v62  ;;  %v7351_v61 = vld [vmem:[%s10640_s1 + $0x630] ss:$8 sps:$4 sm:$0xff]   ;;  %v7359_v62 = vld [vmem:[%s8283_s13 + $0x288] ss:$152 sps:$4 sm:$0xff]  }
  0xa8   : > { %5110 = vmatprep.mubr.bf16.mxu1 %v7317_v63  ;;  %v7354_v63 = vld [vmem:[%s10640_s1 + $0x730] ss:$8 sps:$4 sm:$0xff]  }
  0xa9   : > { %5020 = vmatpush1.bf16.msra.mxu0 %v7258_v0  ;;  %v7362_v0 = vld [vmem:[%s10640_s1 + $0x624] ss:$8 sps:$4 sm:$0xff]  }
  0xaa   : > { %5093 = vmatpush1.bf16.msra.mxu1 %v7261_v1  ;;  %5021 = vmatprep.subr.bf16.mxu0 %v7266_v2  ;;  %v7365_v1 = vld [vmem:[%s10640_s1 + $0x724] ss:$8 sps:$4 sm:$0xff]  }
  0xab   : > { %5094 = vmatprep.subr.bf16.mxu1 %v7269_v3  ;;  %v7366_v2 = vld [vmem:[%s8283_s13 + $0x3b4] ss:$152 sps:$4 sm:$0xff]  }
  0xac   : > { %v7375_v3 = vld [vmem:[%s8283_s13 + $0x3bc] ss:$152 sps:$4 sm:$0xff]  }
  0xad   : > { %5022 = vmatpush2.bf16.msra.mxu0 %v7264_v4  ;;  %v7360_v4 = vld [vmem:[%s10640_s1 + $0x620] ss:$8 sps:$4 sm:$0xff]  }
  0xae   : > { %5095 = vmatpush2.bf16.msra.mxu1 %v7267_v5  ;;  %5023 = vmatprep.subr.bf16.mxu0 %v7272_v6  ;;  %v7363_v5 = vld [vmem:[%s10640_s1 + $0x720] ss:$8 sps:$4 sm:$0xff]   ;;  %v7371_v6 = vld [vmem:[%s10640_s1 + $0x614] ss:$8 sps:$4 sm:$0xff]  }
  0xaf   : > { %5096 = vmatprep.subr.bf16.mxu1 %v7275_v7  ;;  %v7374_v7 = vld [vmem:[%s10640_s1 + $0x714] ss:$8 sps:$4 sm:$0xff]  }
  0xb1   : > { %5024 = vmatpush2.bf16.msra.mxu0 %v7270_v8  ;;  %v7368_v8 = vld [vmem:[%s8283_s13 + $0x3b0] ss:$152 sps:$4 sm:$0xff]  }
  0xb2   : > { %5097 = vmatpush2.bf16.msra.mxu1 %v7273_v9  ;;  %5025 = vmatprep.subr.bf16.mxu0 %v7278_v10  ;;  %v7369_v9 = vld [vmem:[%s10640_s1 + $0x610] ss:$8 sps:$4 sm:$0xff]  }
  0xb3   : > { %5098 = vmatprep.subr.bf16.mxu1 %v7281_v11  ;;  %v7377_v10 = vld [vmem:[%s8283_s13 + $0x3b8] ss:$152 sps:$4 sm:$0xff]  }
  0xb4   : > { %v7372_v11 = vld [vmem:[%s10640_s1 + $0x710] ss:$8 sps:$4 sm:$0xff]  }
  0xb5   : > { %5026 = vmatpush2.bf16.msra.mxu0 %v7276_v12  ;;  %v7380_v12 = vld [vmem:[%s10640_s1 + $0x604] ss:$8 sps:$4 sm:$0xff]  }
  0xb6   : > { %5099 = vmatpush2.bf16.msra.mxu1 %v7279_v13  ;;  %5027 = vmatprep.subr.bf16.mxu0 %v7284_v14  ;;  %v7383_v13 = vld [vmem:[%s10640_s1 + $0x704] ss:$8 sps:$4 sm:$0xff]  }
  0xb7   : > { %5100 = vmatprep.subr.bf16.mxu1 %v7287_v15  ;;  %v7434_v14 = vld [vmem:[%s8283_s13 + $0x34] ss:$152 sps:$4 sm:$0xff]  }
  0xb8   : > { %v7437_v15 = vld [vmem:[%s8283_s13 + $0x3c] ss:$152 sps:$4 sm:$0xff]  }
  0xb9   : > { %5028 = vmatpush2.bf16.msra.mxu0 %v7282_v16  ;;  %v7378_v16 = vld [vmem:[%s10640_s1 + $0x600] ss:$8 sps:$4 sm:$0xff]  }
  0xba   : > { %5101 = vmatpush2.bf16.msra.mxu1 %v7285_v17  ;;  %5029 = vmatprep.subr.bf16.mxu0 %v7290_v18  ;;  %v7381_v17 = vld [vmem:[%s10640_s1 + $0x700] ss:$8 sps:$4 sm:$0xff]   ;;  %v7386_v18 = vld [vmem:[%s10640_s1 + $0x6f4] ss:$8 sps:$4 sm:$0xff]  }
  0xbb   : > { %5102 = vmatprep.subr.bf16.mxu1 %v7293_v19  ;;  %v7389_v19 = vld [vmem:[%s10640_s1 + $0x7f4] ss:$8 sps:$4 sm:$0xff]  }
  0xbd   : > { %5030 = vmatpush2.bf16.msra.mxu0 %v7288_v20  ;;  %v7384_v20 = vld [vmem:[%s10640_s1 + $0x6f0] ss:$8 sps:$4 sm:$0xff]  }
  0xbe   : > { %5103 = vmatpush2.bf16.msra.mxu1 %v7291_v21  ;;  %5031 = vmatprep.subr.bf16.mxu0 %v7296_v22  ;;  %v7387_v21 = vld [vmem:[%s10640_s1 + $0x7f0] ss:$8 sps:$4 sm:$0xff]   ;;  %v7392_v22 = vld [vmem:[%s10640_s1 + $0x6e4] ss:$8 sps:$4 sm:$0xff]  }
  0xbf   : > { %5104 = vmatprep.subr.bf16.mxu1 %v7299_v23  ;;  %v7395_v23 = vld [vmem:[%s10640_s1 + $0x7e4] ss:$8 sps:$4 sm:$0xff]  }
  0xc1   : > { %5032 = vmatpush2.bf16.msra.mxu0 %v7294_v24  ;;  %v7390_v24 = vld [vmem:[%s10640_s1 + $0x6e0] ss:$8 sps:$4 sm:$0xff]  }
  0xc2   : > { %5105 = vmatpush2.bf16.msra.mxu1 %v7297_v25  ;;  %5033 = vmatprep.subr.bf16.mxu0 %v7302_v26  ;;  %v7393_v25 = vld [vmem:[%s10640_s1 + $0x7e0] ss:$8 sps:$4 sm:$0xff]   ;;  %v7398_v26 = vld [vmem:[%s10640_s1 + $0x6d4] ss:$8 sps:$4 sm:$0xff]  }
  0xc3   : > { %5106 = vmatprep.subr.bf16.mxu1 %v7305_v27  ;;  %v7401_v27 = vld [vmem:[%s10640_s1 + $0x7d4] ss:$8 sps:$4 sm:$0xff]  }
  0xc5   : > { %5034 = vmatpush2.bf16.msra.mxu0 %v7300_v28  ;;  %v7396_v28 = vld [vmem:[%s10640_s1 + $0x6d0] ss:$8 sps:$4 sm:$0xff]  }
  0xc6   : > { %5107 = vmatpush2.bf16.msra.mxu1 %v7303_v29  ;;  %5035 = vmatprep.subr.bf16.mxu0 %v7308_v30  ;;  %v7399_v29 = vld [vmem:[%s10640_s1 + $0x7d0] ss:$8 sps:$4 sm:$0xff]   ;;  %v7404_v30 = vld [vmem:[%s10640_s1 + $0x6c4] ss:$8 sps:$4 sm:$0xff]  }
  0xc7   : > { %5108 = vmatprep.subr.bf16.mxu1 %v7311_v31  ;;  %v7407_v31 = vld [vmem:[%s10640_s1 + $0x7c4] ss:$8 sps:$4 sm:$0xff]  }
  0xc9   : > { %5036 = vmatpush2.bf16.msra.mxu0 %v7306_v32  ;;  %v7402_v32 = vld [vmem:[%s10640_s1 + $0x6c0] ss:$8 sps:$4 sm:$0xff]  }
  0xca   : > { %5109 = vmatpush2.bf16.msra.mxu1 %v7309_v33  ;;  %5151 = vmatprep.subr.bf16.mxu0 %v7320_v34  ;;  %v7405_v33 = vld [vmem:[%s10640_s1 + $0x7c0] ss:$8 sps:$4 sm:$0xff]   ;;  %v7410_v34 = vld [vmem:[%s10640_s1 + $0x6b4] ss:$8 sps:$4 sm:$0xff]  }
  0xcb   : > { %5224 = vmatprep.subr.bf16.mxu1 %v7323_v35  ;;  %v7413_v35 = vld [vmem:[%s10640_s1 + $0x7b4] ss:$8 sps:$4 sm:$0xff]  }
  0xcc   : > { %5038 = vmatmul.mubr.bf16.vlgmr.msra.gmra.mxu0 %v7312_v36  ;;  %v7408_v36 = vld [vmem:[%s10640_s1 + $0x6b0] ss:$8 sps:$4 sm:$0xff]  }
  0xcd   : > { %5111 = vmatmul.mubr.bf16.vlgmr.msra.gmra.mxu1 %v7315_v37  ;;  %5152 = vmatpush1.bf16.msra.mxu0 %v7318_v38  ;;  %v7411_v37 = vld [vmem:[%s10640_s1 + $0x7b0] ss:$8 sps:$4 sm:$0xff]   ;;  %v7416_v38 = vld [vmem:[%s10640_s1 + $0x6a4] ss:$8 sps:$4 sm:$0xff]  }
  0xce   : > { %5225 = vmatpush1.bf16.msra.mxu1 %v7321_v39  ;;  %5153 = vmatprep.subr.bf16.mxu0 %v7326_v40  ;;  %v7419_v39 = vld [vmem:[%s10640_s1 + $0x7a4] ss:$8 sps:$4 sm:$0xff]   ;;  %v7414_v40 = vld [vmem:[%s10640_s1 + $0x6a0] ss:$8 sps:$4 sm:$0xff]  }
  0xcf   : > { %5226 = vmatprep.subr.bf16.mxu1 %v7329_v41  ;;  %5047 = vmatprep.mubr.bf16.mxu0 %v7330_v42  ;;  %v7417_v41 = vld [vmem:[%s10640_s1 + $0x7a0] ss:$8 sps:$4 sm:$0xff]   ;;  %v934_v42 = vlaneseq }
  0xd0   : > { %5120 = vmatprep.mubr.bf16.mxu1 %v7339_v43  ;;  %v7422_v43 = vld [vmem:[%s10640_s1 + $0x694] ss:$8 sps:$4 sm:$0xff]  }
  0xd1   : > { %5154 = vmatpush1.bf16.msra.mxu0 %v7324_v44  ;;  %v7425_v44 = vld [vmem:[%s10640_s1 + $0x794] ss:$8 sps:$4 sm:$0xff]  }
  0xd2   : > { %5227 = vmatpush1.bf16.msra.mxu1 %v7327_v45  ;;  %5155 = vmatprep.subr.bf16.mxu0 %v7335_v46  ;;  %v7420_v45 = vld [vmem:[%s10640_s1 + $0x690] ss:$8 sps:$4 sm:$0xff]  }
  0xd3   : > { %5228 = vmatprep.subr.bf16.mxu1 %v7338_v47  ;;  %v7423_v46 = vld [vmem:[%s10640_s1 + $0x790] ss:$8 sps:$4 sm:$0xff]   ;;  %v935_v47 = vshrl.u32 %v934_v42, 7 }
  0xd4   : > { %5048 = vmatmul.mubr.bf16.gmra.mxu0 %v7332_v48  ;;  %v7428_v48 = vld [vmem:[%s10640_s1 + $0x684] ss:$8 sps:$4 sm:$0xff]   ;;  %v7479_v42 = vld [vmem:[%s8283_s13 + $0x298] ss:$152 sps:$4 sm:$0xff]  }
  0xd5   : > { %5121 = vmatmul.mubr.bf16.gmra.mxu1 %v7341_v51  ;;  %5156 = vmatpush1.bf16.msra.mxu0 %v7333_v49  ;;  %v7431_v49 = vld [vmem:[%s10640_s1 + $0x784] ss:$8 sps:$4 sm:$0xff]   ;;  %v7429_v51 = vld [vmem:[%s10640_s1 + $0x780] ss:$8 sps:$4 sm:$0xff]  }
  0xd6   : > { %5229 = vmatpush1.bf16.msra.mxu1 %v7336_v50  ;;  %5157 = vmatprep.subr.bf16.mxu0 %v7344_v52  ;;  %v7426_v50 = vld [vmem:[%s10640_s1 + $0x680] ss:$8 sps:$4 sm:$0xff]  }
  0xd7   : > { %5230 = vmatprep.subr.bf16.mxu1 %v7347_v53  ;;  %5057 = vmatprep.mubr.bf16.mxu0 %v7348_v54  ;;  %v932_v52 = vld [vmem:[%s10641_s2] sm:$0x3]  ;;  %v936_v53 = vsub.s32 0, %v935_v47  ;;  %v7440_v54 = vld [vmem:[%s10640_s1 + $0x874] ss:$8 sps:$4 sm:$0xff]  }
  0xd8   : > { %5130 = vmatprep.mubr.bf16.mxu1 %v7357_v55  ;;  %v7443_v55 = vld [vmem:[%s10640_s1 + $0x974] ss:$8 sps:$4 sm:$0xff]  }
  0xd9   : > { %5158 = vmatpush1.bf16.msra.mxu0 %v7342_v56  ;;  %v7432_v56 = vld [vmem:[%s8283_s13 + $0x30] ss:$152 sps:$4 sm:$0xff]  }
  0xda   : > { %5231 = vmatpush1.bf16.msra.mxu1 %v7345_v57  ;;  %5159 = vmatprep.subr.bf16.mxu0 %v7353_v58  ;;  %v7435_v57 = vld [vmem:[%s8283_s13 + $0x38] ss:$152 sps:$4 sm:$0xff]   ;;  %v940_v58 = vsub.s32 1, %v935_v47 }
  0xdb   : > { %5232 = vmatprep.subr.bf16.mxu1 %v7356_v59  ;;  %v7438_v59 = vld [vmem:[%s10640_s1 + $0x870] ss:$8 sps:$4 sm:$0xff]  }
  0xdc   : > { %5058 = vmatmul.mubr.bf16.gmra.mxu0 %v7350_v60  ;;  %v8982_v60 = vrot.slane %v932_v52, %v936_v53  ;;  %v7495_v53 = vld [vmem:[%s8283_s13 + $0x3cc] ss:$152 sps:$4 sm:$0xff]  }
  0xdd   : > { %5131 = vmatmul.mubr.bf16.gmra.mxu1 %v7359_v62  ;;  %5160 = vmatpush1.bf16.msra.mxu0 %v7351_v61  ;;  %v7441_v61 = vld [vmem:[%s10640_s1 + $0x970] ss:$8 sps:$4 sm:$0xff]   ;;  %v7446_v62 = vld [vmem:[%s10640_s1 + $0x864] ss:$8 sps:$4 sm:$0xff]  }
  0xde   : > { %5233 = vmatpush1.bf16.msra.mxu1 %v7354_v63  ;;  %5161 = vmatprep.subr.bf16.mxu0 %v7362_v0  ;;  %v7449_v63 = vld [vmem:[%s10640_s1 + $0x964] ss:$8 sps:$4 sm:$0xff]   ;;  %v8993_v0 = vrot.slane %v932_v52, %v940_v58  ;;  %v7483_v58 = vld [vmem:[%s10640_s1 + $0x920] ss:$8 sps:$4 sm:$0xff]  }
  0xdf   : > { %5234 = vmatprep.subr.bf16.mxu1 %v7365_v1  ;;  %5067 = vmatprep.mubr.bf16.mxu0 %v7366_v2  ;;  %v7450_v1 = vld [vmem:[%s8283_s13 + $0x164] ss:$152 sps:$4 sm:$0xff]  }
  0xe0   : > { %5140 = vmatprep.mubr.bf16.mxu1 %v7375_v3  ;;  %v7459_v2 = vld [vmem:[%s8283_s13 + $0x16c] ss:$152 sps:$4 sm:$0xff]  }
  0xe1   : > { %5162 = vmatpush1.bf16.msra.mxu0 %v7360_v4  ;;  %v7486_v52 = vld [vmem:[%s8283_s13 + $0x3c4] ss:$152 sps:$4 sm:$0xff]  }
  0xe2   : > { %5235 = vmatpush1.bf16.msra.mxu1 %v7363_v5  ;;  %5163 = vmatprep.subr.bf16.mxu0 %v7371_v6  ;;  %v7444_v5 = vld [vmem:[%s10640_s1 + $0x860] ss:$8 sps:$4 sm:$0xff]  }
  0xe3   : > { %5236 = vmatprep.subr.bf16.mxu1 %v7374_v7  ;;  %v7447_v7 = vld [vmem:[%s10640_s1 + $0x960] ss:$8 sps:$4 sm:$0xff]  }
  0xe4   : > { %5068 = vmatmul.mubr.bf16.gmra.mxu0 %v7368_v8 }
  0xe5   : > { %5141 = vmatmul.mubr.bf16.gmra.mxu1 %v7377_v10  ;;  %5164 = vmatpush1.bf16.msra.mxu0 %v7369_v9  ;;  %v7455_v10 = vld [vmem:[%s10640_s1 + $0x854] ss:$8 sps:$4 sm:$0xff]  }
  0xe6   : > { %5237 = vmatpush1.bf16.msra.mxu1 %v7372_v11  ;;  %5165 = vmatprep.subr.bf16.mxu0 %v7380_v12  ;;  %v7458_v11 = vld [vmem:[%s10640_s1 + $0x954] ss:$8 sps:$4 sm:$0xff]  }
  0xe7   : > { %5238 = vmatprep.subr.bf16.mxu1 %v7383_v13  ;;  %5183 = vmatprep.mubr.bf16.mxu0 %v7434_v14  ;;  %v7452_v14 = vld [vmem:[%s8283_s13 + $0x160] ss:$152 sps:$4 sm:$0xff]  }
  0xe8   : > { %5256 = vmatprep.mubr.bf16.mxu1 %v7437_v15  ;;  %v7453_v15 = vld [vmem:[%s10640_s1 + $0x850] ss:$8 sps:$4 sm:$0xff]  }
  0xe9   : > { %5166 = vmatpush1.bf16.msra.mxu0 %v7378_v16 }
  0xea   : > { %5239 = vmatpush1.bf16.msra.mxu1 %v7381_v17  ;;  %5167 = vmatprep.subr.bf16.mxu0 %v7386_v18  ;;  %v7461_v18 = vld [vmem:[%s8283_s13 + $0x168] ss:$152 sps:$4 sm:$0xff]  }
  0xeb   : > { %5240 = vmatprep.subr.bf16.mxu1 %v7389_v19 }
  0xed   : > { %5168 = vmatpush2.bf16.msra.mxu0 %v7384_v20 }
  0xee   : > { %5241 = vmatpush2.bf16.msra.mxu1 %v7387_v21  ;;  %5169 = vmatprep.subr.bf16.mxu0 %v7392_v22  ;;  %v7456_v21 = vld [vmem:[%s10640_s1 + $0x950] ss:$8 sps:$4 sm:$0xff]  }
  0xef   : > { %5242 = vmatprep.subr.bf16.mxu1 %v7395_v23 }
  0xf1   : > { %5170 = vmatpush2.bf16.msra.mxu0 %v7390_v24  ;;  %v7464_v24 = vld [vmem:[%s10640_s1 + $0x844] ss:$8 sps:$4 sm:$0xff]  }
  0xf2   : > { %5243 = vmatpush2.bf16.msra.mxu1 %v7393_v25  ;;  %5171 = vmatprep.subr.bf16.mxu0 %v7398_v26  ;;  %v7467_v25 = vld [vmem:[%s10640_s1 + $0x944] ss:$8 sps:$4 sm:$0xff]  }
  0xf3   : > { %5244 = vmatprep.subr.bf16.mxu1 %v7401_v27  ;;  %v7468_v27 = vld [vmem:[%s8283_s13 + $0x294] ss:$152 sps:$4 sm:$0xff]  }
  0xf5   : > { %5172 = vmatpush2.bf16.msra.mxu0 %v7396_v28  ;;  %v7477_v28 = vld [vmem:[%s8283_s13 + $0x29c] ss:$152 sps:$4 sm:$0xff]  }
  0xf6   : > { %5245 = vmatpush2.bf16.msra.mxu1 %v7399_v29  ;;  %5173 = vmatprep.subr.bf16.mxu0 %v7404_v30  ;;  %v7462_v29 = vld [vmem:[%s10640_s1 + $0x840] ss:$8 sps:$4 sm:$0xff]  }
  0xf7   : > { %5246 = vmatprep.subr.bf16.mxu1 %v7407_v31 }
  0xf9   : > { %5174 = vmatpush2.bf16.msra.mxu0 %v7402_v32  ;;  %v7465_v32 = vld [vmem:[%s10640_s1 + $0x940] ss:$8 sps:$4 sm:$0xff]  }
  0xfa   : > { %5247 = vmatpush2.bf16.msra.mxu1 %v7405_v33  ;;  %5175 = vmatprep.subr.bf16.mxu0 %v7410_v34  ;;  %v7473_v34 = vld [vmem:[%s10640_s1 + $0x834] ss:$8 sps:$4 sm:$0xff]  }
  0xfb   : > { %5248 = vmatprep.subr.bf16.mxu1 %v7413_v35  ;;  %v7476_v35 = vld [vmem:[%s10640_s1 + $0x934] ss:$8 sps:$4 sm:$0xff]  }
  0xfd   : > { %5176 = vmatpush2.bf16.msra.mxu0 %v7408_v36 }
  0xfe   : > { %5249 = vmatpush2.bf16.msra.mxu1 %v7411_v37  ;;  %5177 = vmatprep.subr.bf16.mxu0 %v7416_v38  ;;  %v7470_v38 = vld [vmem:[%s8283_s13 + $0x290] ss:$152 sps:$4 sm:$0xff]  }
  0xff   : > { %5250 = vmatprep.subr.bf16.mxu1 %v7419_v39  ;;  %v7471_v39 = vld [vmem:[%s10640_s1 + $0x830] ss:$8 sps:$4 sm:$0xff]  }
 0x101   : > { %5178 = vmatpush2.bf16.msra.mxu0 %v7414_v40 }
 0x102   : > { %5251 = vmatpush2.bf16.msra.mxu1 %v7417_v41  ;;  %5179 = vmatprep.subr.bf16.mxu0 %v7422_v43 }
 0x103   : > { %5252 = vmatprep.subr.bf16.mxu1 %v7425_v44 }
 0x105   : > { %5180 = vmatpush2.bf16.msra.mxu0 %v7420_v45  ;;  %v7474_v45 = vld [vmem:[%s10640_s1 + $0x930] ss:$8 sps:$4 sm:$0xff]  }
 0x106   : > { %5253 = vmatpush2.bf16.msra.mxu1 %v7423_v46  ;;  %5181 = vmatprep.subr.bf16.mxu0 %v7428_v48  ;;  %v7482_v48 = vld [vmem:[%s10640_s1 + $0x824] ss:$8 sps:$4 sm:$0xff]  }
 0x107   : > { %5254 = vmatprep.subr.bf16.mxu1 %v7431_v49  ;;  %v7485_v49 = vld [vmem:[%s10640_s1 + $0x924] ss:$8 sps:$4 sm:$0xff]  }
 0x109   : > { %5182 = vmatpush2.bf16.msra.mxu0 %v7426_v50 }
 0x10a   : > { %5255 = vmatpush2.bf16.msra.mxu1 %v7429_v51  ;;  %5297 = vmatprep.subr.bf16.mxu0 %v7440_v54 }
 0x10b   : > { %5370 = vmatprep.subr.bf16.mxu1 %v7443_v55  ;;  %v7480_v55 = vld [vmem:[%s10640_s1 + $0x820] ss:$8 sps:$4 sm:$0xff]  }
 0x10c   : > { %v4747_v3 = vpop.f32.mrf.mxu0  ;;  %5184 = vmatmul.mubr.bf16.vlgmr.msra.gmra.mxu0 %v7432_v56 }
 0x10d   : > { %v4820_v4 = vpop.f32.mrf.mxu1  ;;  %5257 = vmatmul.mubr.bf16.vlgmr.msra.gmra.mxu1 %v7435_v57  ;;  %v4748_v6 = vadd.f32 %v4747_v3, %v8982_v60  ;;  %5298 = vmatpush1.bf16.msra.mxu0 %v7438_v59  ;;  %v7489_v3 = vld [vmem:[%s10640_s1 + $0x810] ss:$8 sps:$4 sm:$0xff]  }
 0x10e   : > { %5371 = vmatpush1.bf16.msra.mxu1 %v7441_v61  ;;  %v4749_v8 = vpop.f32.mrf.mxu0  ;;  %5299 = vmatprep.subr.bf16.mxu0 %v7446_v62  ;;  %v7491_v61 = vld [vmem:[%s10640_s1 + $0x814] ss:$8 sps:$4 sm:$0xff]  }
 0x10f   : > { %v4822_v9 = vpop.f32.mrf.mxu1  ;;  %5372 = vmatprep.subr.bf16.mxu1 %v7449_v63  ;;  %v9010_v12 = vadd.f32 %v4820_v4, %v4748_v6  ;;  %v4750_v13 = vadd.f32 %v4749_v8, %v8993_v0  ;;  %5193 = vmatprep.mubr.bf16.mxu0 %v7450_v1  ;;  %v7494_v62 = vld [vmem:[%s10640_s1 + $0x914] ss:$8 sps:$4 sm:$0xff]   ;;  %v7497_v6 = vld [vmem:[%s8283_s13 + $0x3c8] ss:$152 sps:$4 sm:$0xff]  }
 0x110   : > { %5266 = vmatprep.mubr.bf16.mxu1 %v7459_v2  ;;  %v4751_v16 = vpop.f32.mrf.mxu0  ;;  %v7488_v2 = vld [vmem:[%s8283_s13 + $0x3c0] ss:$152 sps:$4 sm:$0xff]  }
 0x111   : > { %v4824_v17 = vpop.f32.mrf.mxu1  ;;  %v9018_v19 = vadd.f32 %v4822_v9, %v4750_v13  ;;  %v4752_v20 = vadd.f32 %v4751_v16, %v8982_v60  ;;  %5300 = vmatpush1.bf16.msra.mxu0 %v7444_v5  ;;  %v7492_v9 = vld [vmem:[%s10640_s1 + $0x910] ss:$8 sps:$4 sm:$0xff]   ;;  %v7500_v13 = vld [vmem:[%s10640_s1 + $0x804] ss:$8 sps:$4 sm:$0xff]  }
 0x112   : > { %5373 = vmatpush1.bf16.msra.mxu1 %v7447_v7  ;;  %v9024_v22 = vpop.f32.mrf.mxu0  ;;  %5301 = vmatprep.subr.bf16.mxu0 %v7455_v10 }
 0x113   : > { %v9026_v23 = vpop.f32.mrf.mxu1  ;;  %5374 = vmatprep.subr.bf16.mxu1 %v7458_v11  ;;  %v9034_v26 = vadd.f32 %v4824_v17, %v4752_v20  ;;  %v7557_v20 = vld [vmem:[%s8283_s13 + $0x4c] ss:$152 sps:$4 sm:$0xff]  }
 0x114   : > { %5194 = vmatmul.mubr.bf16.gmra.mxu0 %v7452_v14  ;;  %v4757_v30 = vpop.f32.mrf.mxu0  ;;  %v7503_v14 = vld [vmem:[%s10640_s1 + $0x904] ss:$8 sps:$4 sm:$0xff]  }
 0x115   : > { %5267 = vmatmul.mubr.bf16.gmra.mxu1 %v7461_v18  ;;  %v4830_v31 = vpop.f32.mrf.mxu1  ;;  %5302 = vmatpush1.bf16.msra.mxu0 %v7453_v15  ;;  %v4758_v33 = vadd.f32 %v4757_v30, %v8982_v60  ;;  %v7554_v18 = vld [vmem:[%s8283_s13 + $0x44] ss:$152 sps:$4 sm:$0xff]  }
 0x116   : > { %5375 = vmatpush1.bf16.msra.mxu1 %v7456_v21  ;;  %5303 = vmatprep.subr.bf16.mxu0 %v7464_v24  ;;  %v4759_v36 = vpop.f32.mrf.mxu0  ;;  %v7498_v21 = vld [vmem:[%s10640_s1 + $0x800] ss:$8 sps:$4 sm:$0xff]   ;;  %v7509_v30 = vld [vmem:[%s10640_s1 + $0x9f4] ss:$8 sps:$4 sm:$0xff]  }
 0x117   : > { %5376 = vmatprep.subr.bf16.mxu1 %v7467_v25  ;;  %v4832_v37 = vpop.f32.mrf.mxu1  ;;  %5203 = vmatprep.mubr.bf16.mxu0 %v7468_v27  ;;  %v4760_v40 = vadd.f32 %v4759_v36, %v8993_v0  ;;  %v9056_v41 = vadd.f32 %v4830_v31, %v4758_v33  ;;  %v7501_v27 = vld [vmem:[%s10640_s1 + $0x900] ss:$8 sps:$4 sm:$0xff]  }
 0x118   : > { %5276 = vmatprep.mubr.bf16.mxu1 %v7477_v28  ;;  %v4761_v43 = vpop.f32.mrf.mxu0 }
 0x119   : > { %v4834_v44 = vpop.f32.mrf.mxu1  ;;  %5304 = vmatpush1.bf16.msra.mxu0 %v7462_v29  ;;  %v4762_v46 = vadd.f32 %v4761_v43, %v8982_v60  ;;  %v9063_v47 = vadd.f32 %v4832_v37, %v4760_v40  ;;  %v7506_v29 = vld [vmem:[%s10640_s1 + $0x8f4] ss:$8 sps:$4 sm:$0xff]   ;;  %v7507_v37 = vld [vmem:[%s10640_s1 + $0x9f0] ss:$8 sps:$4 sm:$0xff]   ;;  %v7512_v40 = vld [vmem:[%s10640_s1 + $0x8e4] ss:$8 sps:$4 sm:$0xff]  }
 0x11a   : > { %5377 = vmatpush1.bf16.msra.mxu1 %v7465_v32  ;;  %5305 = vmatprep.subr.bf16.mxu0 %v7473_v34  ;;  %v9071_v50 = vpop.f32.mrf.mxu0 }
 0x11b   : > { %5378 = vmatprep.subr.bf16.mxu1 %v7476_v35  ;;  %v9073_v51 = vpop.f32.mrf.mxu1  ;;  %v9077_v54 = vadd.f32 %v4834_v44, %v4762_v46  ;;  %v7504_v35 = vld [vmem:[%s10640_s1 + $0x8f0] ss:$8 sps:$4 sm:$0xff]   ;;  %v7518_v46 = vld [vmem:[%s10640_s1 + $0x8d4] ss:$8 sps:$4 sm:$0xff]  }
 0x11c   : > { %5204 = vmatmul.mubr.bf16.gmra.mxu0 %v7470_v38  ;;  %v4767_v56 = vpop.f32.mrf.mxu0 }
 0x11d   : > { %5277 = vmatmul.mubr.bf16.gmra.mxu1 %v7479_v42  ;;  %v4840_v57 = vpop.f32.mrf.mxu1  ;;  %5306 = vmatpush1.bf16.msra.mxu0 %v7471_v39  ;;  %v4768_v59 = vadd.f32 %v4767_v56, %v8982_v60  ;;  %v7515_v42 = vld [vmem:[%s10640_s1 + $0x9e4] ss:$8 sps:$4 sm:$0xff]   ;;  %v7522_v56 = vld [vmem:[%s10640_s1 + $0x8c0] ss:$8 sps:$4 sm:$0xff]  }
 0x11e   : > { %5379 = vmatpush1.bf16.msra.mxu1 %v7474_v45  ;;  %5307 = vmatprep.subr.bf16.mxu0 %v7482_v48  ;;  %v4769_v63 = vpop.f32.mrf.mxu0  ;;  %v7510_v45 = vld [vmem:[%s10640_s1 + $0x8e0] ss:$8 sps:$4 sm:$0xff]   ;;  %v7521_v48 = vld [vmem:[%s10640_s1 + $0x9d4] ss:$8 sps:$4 sm:$0xff]  }
 0x11f   : > { %5380 = vmatprep.subr.bf16.mxu1 %v7485_v49  ;;  %v4842_v1 = vpop.f32.mrf.mxu1  ;;  %5213 = vmatprep.mubr.bf16.mxu0 %v7486_v52  ;;  %v4770_v4 = vadd.f32 %v4769_v63, %v8993_v0  ;;  %v9097_v5 = vadd.f32 %v4840_v57, %v4768_v59  ;;  %v7516_v49 = vld [vmem:[%s10640_s1 + $0x8d0] ss:$8 sps:$4 sm:$0xff]   ;;  %v7525_v57 = vld [vmem:[%s10640_s1 + $0x9c0] ss:$8 sps:$4 sm:$0xff]   ;;  %v7533_v59 = vld [vmem:[%s10640_s1 + $0x9b4] ss:$8 sps:$4 sm:$0xff]  }
 0x120   : > { %5286 = vmatprep.mubr.bf16.mxu1 %v7495_v53  ;;  %v4771_v7 = vpop.f32.mrf.mxu0  ;;  %v7519_v52 = vld [vmem:[%s10640_s1 + $0x9d0] ss:$8 sps:$4 sm:$0xff]   ;;  %v7524_v53 = vld [vmem:[%s10640_s1 + $0x8c4] ss:$8 sps:$4 sm:$0xff]  }
 0x121   : > { %v4844_v8 = vpop.f32.mrf.mxu1  ;;  %5308 = vmatpush1.bf16.msra.mxu0 %v7480_v55  ;;  %v4772_v10 = vadd.f32 %v4771_v7, %v8982_v60  ;;  %v9104_v11 = vadd.f32 %v4842_v1, %v4770_v4  ;;  %v7527_v55 = vld [vmem:[%s10640_s1 + $0x9c4] ss:$8 sps:$4 sm:$0xff]   ;;  %v7542_v4 = vld [vmem:[%s10640_s1 + $0x894] ss:$8 sps:$4 sm:$0xff]   ;;  %v7540_v7 = vld [vmem:[%s10640_s1 + $0x890] ss:$8 sps:$4 sm:$0xff]  }
 0x122   : > { %5381 = vmatpush1.bf16.msra.mxu1 %v7483_v58  ;;  %5309 = vmatprep.subr.bf16.mxu0 %v7491_v61  ;;  %v9112_v15 = vpop.f32.mrf.mxu0  ;;  %v7530_v58 = vld [vmem:[%s10640_s1 + $0x8b4] ss:$8 sps:$4 sm:$0xff]   ;;  %v7528_v61 = vld [vmem:[%s10640_s1 + $0x8b0] ss:$8 sps:$4 sm:$0xff]   ;;  %v7536_v63 = vld [vmem:[%s10640_s1 + $0x8a4] ss:$8 sps:$4 sm:$0xff]  }
 0x123   : > { %5382 = vmatprep.subr.bf16.mxu1 %v7494_v62  ;;  %v9114_v16 = vpop.f32.mrf.mxu1  ;;  %v9116_v17 = vadd.f32 %v4844_v8, %v4772_v10  ;;  %v7531_v62 = vld [vmem:[%s10640_s1 + $0x9b0] ss:$8 sps:$4 sm:$0xff]   ;;  %v7539_v1 = vld [vmem:[%s10640_s1 + $0x9a4] ss:$8 sps:$4 sm:$0xff]  }
 0x124   : > { %5214 = vmatmul.mubr.bf16.gmra.mxu0 %v7488_v2  ;;  %v4777_v24 = vpop.f32.mrf.mxu0  ;;  %v7534_v2 = vld [vmem:[%s10640_s1 + $0x8a0] ss:$8 sps:$4 sm:$0xff]   ;;  %v7543_v8 = vld [vmem:[%s10640_s1 + $0x990] ss:$8 sps:$4 sm:$0xff]   ;;  %v7551_v10 = vld [vmem:[%s10640_s1 + $0x984] ss:$8 sps:$4 sm:$0xff]  }
 0x125   : > { %5287 = vmatmul.mubr.bf16.gmra.mxu1 %v7497_v6  ;;  %v4850_v25 = vpop.f32.mrf.mxu1  ;;  %5310 = vmatpush1.bf16.msra.mxu0 %v7489_v3  ;;  %v4778_v28 = vadd.f32 %v4777_v24, %v8982_v60  ;;  %v7537_v3 = vld [vmem:[%s10640_s1 + $0x9a0] ss:$8 sps:$4 sm:$0xff]   ;;  %v7545_v6 = vld [vmem:[%s10640_s1 + $0x994] ss:$8 sps:$4 sm:$0xff]  }
 0x126   : > { %5383 = vmatpush1.bf16.msra.mxu1 %v7492_v9  ;;  %5311 = vmatprep.subr.bf16.mxu0 %v7500_v13  ;;  %v4779_v31 = vpop.f32.mrf.mxu0  ;;  %v7548_v9 = vld [vmem:[%s10640_s1 + $0x884] ss:$8 sps:$4 sm:$0xff]   ;;  %v7546_v13 = vld [vmem:[%s10640_s1 + $0x880] ss:$8 sps:$4 sm:$0xff]  }
 0x127   : > { %5384 = vmatprep.subr.bf16.mxu1 %v7503_v14  ;;  %v4852_v32 = vpop.f32.mrf.mxu1  ;;  %v4780_v33 = vadd.f32 %v4779_v31, %v8993_v0  ;;  %v9134_v34 = vadd.f32 %v4850_v25, %v4778_v28  ;;  %5329 = vmatprep.mubr.bf16.mxu0 %v7554_v18  ;;  %v7549_v14 = vld [vmem:[%s10640_s1 + $0x980] ss:$8 sps:$4 sm:$0xff]   ;;  %v7560_v18 = vld [vmem:[%s10640_s1 + $0xa74] ss:$8 sps:$4 sm:$0xff]   ;;  %v7558_v25 = vld [vmem:[%s10640_s1 + $0xa70] ss:$8 sps:$4 sm:$0xff]  }
 0x128   : > { %5402 = vmatprep.mubr.bf16.mxu1 %v7557_v20  ;;  %v4781_v36 = vpop.f32.mrf.mxu0  ;;  %v7563_v20 = vld [vmem:[%s10640_s1 + $0xb74] ss:$8 sps:$4 sm:$0xff]   ;;  %v7555_v24 = vld [vmem:[%s8283_s13 + $0x48] ss:$152 sps:$4 sm:$0xff]   ;;  %v7569_v31 = vld [vmem:[%s10640_s1 + $0xb64] ss:$8 sps:$4 sm:$0xff]  }
 0x129   : > { %5312 = vmatpush1.bf16.msra.mxu0 %v7498_v21  ;;  %v4782_v38 = vadd.f32 %v4781_v36, %v8982_v60  ;;  %v9143_v39 = vadd.f32 %v4852_v32, %v4780_v33  ;;  %v4854_v43 = vpop.f32.mrf.mxu1  ;;  %v7513_v60 = vld [vmem:[%s10640_s1 + $0x9e0] ss:$8 sps:$4 sm:$0xff]   ;;  %v7570_v32 = vld [vmem:[%s8283_s13 + $0x174] ss:$152 sps:$4 sm:$0xff]  }
 0x12a   : > { %5385 = vmatpush1.bf16.msra.mxu1 %v7501_v27  ;;  %5313 = vmatprep.subr.bf16.mxu0 %v7506_v29  ;;  %v7552_v21 = vld [vmem:[%s8283_s13 + $0x40] ss:$152 sps:$4 sm:$0xff]   ;;  %v9245_v28 = vpop.f32.mrf.mxu0  ;;  %v7579_v33 = vld [vmem:[%s8283_s13 + $0x17c] ss:$152 sps:$4 sm:$0xff]  }
 0x12b   : > { %5386 = vmatprep.subr.bf16.mxu1 %v7509_v30  ;;  %v9151_v44 = vadd.f32 %v4854_v43, %v4782_v38  ;;  %v7561_v27 = vld [vmem:[%s10640_s1 + $0xb70] ss:$8 sps:$4 sm:$0xff]   ;;  %v9247_v29 = vpop.f32.mrf.mxu1  ;;  %v7566_v30 = vld [vmem:[%s10640_s1 + $0xa64] ss:$8 sps:$4 sm:$0xff]  }
 0x12d   : > { %5314 = vmatpush2.bf16.msra.mxu0 %v7504_v35 }
 0x12e   : > { %5387 = vmatpush2.bf16.msra.mxu1 %v7507_v37  ;;  %5315 = vmatprep.subr.bf16.mxu0 %v7512_v40  ;;  %v7564_v37 = vld [vmem:[%s10640_s1 + $0xa60] ss:$8 sps:$4 sm:$0xff]  }
 0x12f   : > { %5388 = vmatprep.subr.bf16.mxu1 %v7515_v42  ;;  %v7567_v40 = vld [vmem:[%s10640_s1 + $0xb60] ss:$8 sps:$4 sm:$0xff]  }
 0x131   : > { %5316 = vmatpush2.bf16.msra.mxu0 %v7510_v45  ;;  %v7575_v45 = vld [vmem:[%s10640_s1 + $0xa54] ss:$8 sps:$4 sm:$0xff]  }
 0x132   : > { %5389 = vmatpush2.bf16.msra.mxu1 %v7513_v60  ;;  %5317 = vmatprep.subr.bf16.mxu0 %v7518_v46  ;;  %v7578_v60 = vld [vmem:[%s10640_s1 + $0xb54] ss:$8 sps:$4 sm:$0xff]  }
 0x133   : > { %5390 = vmatprep.subr.bf16.mxu1 %v7521_v48  ;;  %v7572_v48 = vld [vmem:[%s8283_s13 + $0x170] ss:$152 sps:$4 sm:$0xff]  }
 0x135   : > { %5318 = vmatpush2.bf16.msra.mxu0 %v7516_v49  ;;  %v7573_v49 = vld [vmem:[%s10640_s1 + $0xa50] ss:$8 sps:$4 sm:$0xff]  }
 0x136   : > { %5391 = vmatpush2.bf16.msra.mxu1 %v7519_v52  ;;  %5319 = vmatprep.subr.bf16.mxu0 %v7524_v53 }
 0x137   : > { %5392 = vmatprep.subr.bf16.mxu1 %v7527_v55  ;;  %v7581_v55 = vld [vmem:[%s8283_s13 + $0x178] ss:$152 sps:$4 sm:$0xff]  }
 0x139   : > { %5320 = vmatpush2.bf16.msra.mxu0 %v7522_v56 }
 0x13a   : > { %5393 = vmatpush2.bf16.msra.mxu1 %v7525_v57  ;;  %5321 = vmatprep.subr.bf16.mxu0 %v7530_v58 }
 0x13b   : > { %5394 = vmatprep.subr.bf16.mxu1 %v7533_v59 }
 0x13d   : > { %5322 = vmatpush2.bf16.msra.mxu0 %v7528_v61  ;;  %v7584_v61 = vld [vmem:[%s10640_s1 + $0xa44] ss:$8 sps:$4 sm:$0xff]  }
 0x13e   : > { %5395 = vmatpush2.bf16.msra.mxu1 %v7531_v62  ;;  %5323 = vmatprep.subr.bf16.mxu0 %v7536_v63  ;;  %v7588_v63 = vld [vmem:[%s8283_s13 + $0x2a4] ss:$152 sps:$4 sm:$0xff]  }
 0x13f   : > { %5396 = vmatprep.subr.bf16.mxu1 %v7539_v1  ;;  %v7597_v1 = vld [vmem:[%s8283_s13 + $0x2ac] ss:$152 sps:$4 sm:$0xff]  }
 0x141   : > { %5324 = vmatpush2.bf16.msra.mxu0 %v7534_v2 }
 0x142   : > { %5397 = vmatpush2.bf16.msra.mxu1 %v7537_v3  ;;  %5325 = vmatprep.subr.bf16.mxu0 %v7542_v4  ;;  %v7582_v4 = vld [vmem:[%s10640_s1 + $0xa40] ss:$8 sps:$4 sm:$0xff]  }
 0x143   : > { %5398 = vmatprep.subr.bf16.mxu1 %v7545_v6 }
 0x145   : > { %5326 = vmatpush2.bf16.msra.mxu0 %v7540_v7  ;;  %v7585_v7 = vld [vmem:[%s10640_s1 + $0xb40] ss:$8 sps:$4 sm:$0xff]  }
 0x146   : > { %5399 = vmatpush2.bf16.msra.mxu1 %v7543_v8  ;;  %5327 = vmatprep.subr.bf16.mxu0 %v7548_v9 }
 0x147   : > { %5400 = vmatprep.subr.bf16.mxu1 %v7551_v10  ;;  %v7593_v10 = vld [vmem:[%s10640_s1 + $0xa34] ss:$8 sps:$4 sm:$0xff]  }
 0x149   : > { %5328 = vmatpush2.bf16.msra.mxu0 %v7546_v13  ;;  %v7596_v13 = vld [vmem:[%s10640_s1 + $0xb34] ss:$8 sps:$4 sm:$0xff]  }
 0x14a   : > { %5401 = vmatpush2.bf16.msra.mxu1 %v7549_v14  ;;  %5443 = vmatprep.subr.bf16.mxu0 %v7560_v18  ;;  %v7590_v18 = vld [vmem:[%s8283_s13 + $0x2a0] ss:$152 sps:$4 sm:$0xff]  }
 0x14b   : > { %5516 = vmatprep.subr.bf16.mxu1 %v7563_v20  ;;  %v7591_v20 = vld [vmem:[%s10640_s1 + $0xa30] ss:$8 sps:$4 sm:$0xff]  }
 0x14c   : > { %v4893_v35 = vpop.f32.mrf.mxu0  ;;  %5330 = vmatmul.mubr.bf16.vlgmr.msra.gmra.mxu0 %v7552_v21 }
 0x14d   : > { %v4966_v36 = vpop.f32.mrf.mxu1  ;;  %5403 = vmatmul.mubr.bf16.vlgmr.msra.gmra.mxu1 %v7555_v24  ;;  %v4894_v38 = vadd.f32 %v4893_v35, %v9010_v12  ;;  %5444 = vmatpush1.bf16.msra.mxu0 %v7558_v25  ;;  %v7599_v25 = vld [vmem:[%s8283_s13 + $0x2a8] ss:$152 sps:$4 sm:$0xff]  }
 0x14e   : > { %5517 = vmatpush1.bf16.msra.mxu1 %v7561_v27  ;;  %v4895_v42 = vpop.f32.mrf.mxu0  ;;  %5445 = vmatprep.subr.bf16.mxu0 %v7566_v30 }
 0x14f   : > { %v4968_v43 = vpop.f32.mrf.mxu1  ;;  %5518 = vmatprep.subr.bf16.mxu1 %v7569_v31  ;;  %v9270_v12 = vadd.f32 %v4966_v36, %v4894_v38  ;;  %v4896_v46 = vadd.f32 %v4895_v42, %v9018_v19  ;;  %5339 = vmatprep.mubr.bf16.mxu0 %v7570_v32  ;;  %v7576_v19 = vld [vmem:[%s10640_s1 + $0xb50] ss:$8 sps:$4 sm:$0xff]   ;;  %v7606_v36 = vld [vmem:[%s8283_s13 + $0x3d4] ss:$152 sps:$4 sm:$0xff]   ;;  %v7600_v42 = vld [vmem:[%s10640_s1 + $0xa20] ss:$8 sps:$4 sm:$0xff]  }
 0x150   : > { %5412 = vmatprep.mubr.bf16.mxu1 %v7579_v33  ;;  %v4897_v52 = vpop.f32.mrf.mxu0  ;;  %v7602_v33 = vld [vmem:[%s10640_s1 + $0xa24] ss:$8 sps:$4 sm:$0xff]  }
 0x151   : > { %v4970_v53 = vpop.f32.mrf.mxu1  ;;  %v9278_v56 = vadd.f32 %v4968_v43, %v4896_v46  ;;  %v4898_v57 = vadd.f32 %v4897_v52, %v9034_v26  ;;  %5446 = vmatpush1.bf16.msra.mxu0 %v7564_v37  ;;  %v7587_v26 = vld [vmem:[%s10640_s1 + $0xb44] ss:$8 sps:$4 sm:$0xff]   ;;  %v7615_v37 = vld [vmem:[%s8283_s13 + $0x3dc] ss:$152 sps:$4 sm:$0xff]  }
 0x152   : > { %5519 = vmatpush1.bf16.msra.mxu1 %v7567_v40  ;;  %v9284_v58 = vpop.f32.mrf.mxu0  ;;  %5447 = vmatprep.subr.bf16.mxu0 %v7575_v45  ;;  %v7603_v45 = vld [vmem:[%s10640_s1 + $0xb20] ss:$8 sps:$4 sm:$0xff]  }
 0x153   : > { %v9286_v59 = vpop.f32.mrf.mxu1  ;;  %5520 = vmatprep.subr.bf16.mxu1 %v7578_v60  ;;  %v9294_v62 = vadd.f32 %v4970_v53, %v4898_v57  ;;  %v7608_v53 = vld [vmem:[%s8283_s13 + $0x3d0] ss:$152 sps:$4 sm:$0xff]  }
 0x154   : > { %v4903_v2 = vpop.f32.mrf.mxu0  ;;  %5340 = vmatmul.mubr.bf16.gmra.mxu0 %v7572_v48  ;;  %v7611_v48 = vld [vmem:[%s10640_s1 + $0xa14] ss:$8 sps:$4 sm:$0xff]  }
 0x155   : > { %v4976_v3 = vpop.f32.mrf.mxu1  ;;  %5413 = vmatmul.mubr.bf16.gmra.mxu1 %v7581_v55  ;;  %v4904_v6 = vadd.f32 %v4903_v2, %v9056_v41  ;;  %5448 = vmatpush1.bf16.msra.mxu0 %v7573_v49  ;;  %v7614_v49 = vld [vmem:[%s10640_s1 + $0xb14] ss:$8 sps:$4 sm:$0xff]   ;;  %v7609_v55 = vld [vmem:[%s10640_s1 + $0xa10] ss:$8 sps:$4 sm:$0xff]  }
 0x156   : > { %5521 = vmatpush1.bf16.msra.mxu1 %v7576_v19  ;;  %v4905_v8 = vpop.f32.mrf.mxu0  ;;  %5449 = vmatprep.subr.bf16.mxu0 %v7584_v61  ;;  %v7617_v61 = vld [vmem:[%s8283_s13 + $0x3d8] ss:$152 sps:$4 sm:$0xff]  }
 0x157   : > { %v4978_v9 = vpop.f32.mrf.mxu1  ;;  %5522 = vmatprep.subr.bf16.mxu1 %v7587_v26  ;;  %v4906_v41 = vadd.f32 %v4905_v8, %v9063_v47  ;;  %v9312_v14 = vadd.f32 %v4976_v3, %v4904_v6  ;;  %5349 = vmatprep.mubr.bf16.mxu0 %v7588_v63  ;;  %v7594_v47 = vld [vmem:[%s10640_s1 + $0xb30] ss:$8 sps:$4 sm:$0xff]   ;;  %v7620_v3 = vld [vmem:[%s10640_s1 + $0xa04] ss:$8 sps:$4 sm:$0xff]  }
 0x158   : > { %5422 = vmatprep.mubr.bf16.mxu1 %v7597_v1  ;;  %v4907_v21 = vpop.f32.mrf.mxu0  ;;  %v7674_v6 = vld [vmem:[%s8283_s13 + $0x54] ss:$152 sps:$4 sm:$0xff]  }
 0x159   : > { %v4980_v24 = vpop.f32.mrf.mxu1  ;;  %v4908_v27 = vadd.f32 %v4907_v21, %v9077_v54  ;;  %v9320_v30 = vadd.f32 %v4978_v9, %v4906_v41  ;;  %5450 = vmatpush1.bf16.msra.mxu0 %v7582_v4  ;;  %v7605_v54 = vld [vmem:[%s10640_s1 + $0xb24] ss:$8 sps:$4 sm:$0xff]   ;;  %v7621_v41 = vld [vmem:[%s10640_s1 + $0xb00] ss:$8 sps:$4 sm:$0xff]   ;;  %v7626_v21 = vld [vmem:[%s10640_s1 + $0xaf4] ss:$8 sps:$4 sm:$0xff]  }
 0x15a   : > { %5523 = vmatpush1.bf16.msra.mxu1 %v7585_v7  ;;  %v9325_v31 = vpop.f32.mrf.mxu0  ;;  %5451 = vmatprep.subr.bf16.mxu0 %v7593_v10  ;;  %v7677_v7 = vld [vmem:[%s8283_s13 + $0x5c] ss:$152 sps:$4 sm:$0xff]   ;;  %v7618_v10 = vld [vmem:[%s10640_s1 + $0xa00] ss:$8 sps:$4 sm:$0xff]  }
 0x15b   : > { %v9327_v32 = vpop.f32.mrf.mxu1  ;;  %5524 = vmatprep.subr.bf16.mxu1 %v7596_v13  ;;  %v9335_v35 = vadd.f32 %v4980_v24, %v4908_v27  ;;  %v7629_v24 = vld [vmem:[%s10640_s1 + $0xbf4] ss:$8 sps:$4 sm:$0xff]  }
 0x15c   : > { %v4913_v38 = vpop.f32.mrf.mxu0  ;;  %5350 = vmatmul.mubr.bf16.gmra.mxu0 %v7590_v18 }
 0x15d   : > { %v4986_v40 = vpop.f32.mrf.mxu1  ;;  %5423 = vmatmul.mubr.bf16.gmra.mxu1 %v7599_v25  ;;  %v4914_v43 = vadd.f32 %v4913_v38, %v9097_v5  ;;  %5452 = vmatpush1.bf16.msra.mxu0 %v7591_v20  ;;  %v7635_v38 = vld [vmem:[%s10640_s1 + $0xbe4] ss:$8 sps:$4 sm:$0xff]  }
 0x15e   : > { %5525 = vmatpush1.bf16.msra.mxu1 %v7594_v47  ;;  %v4915_v60 = vpop.f32.mrf.mxu0  ;;  %5453 = vmatprep.subr.bf16.mxu0 %v7602_v33  ;;  %v7624_v33 = vld [vmem:[%s10640_s1 + $0xaf0] ss:$8 sps:$4 sm:$0xff]  }
 0x15f   : > { %v4988_v46 = vpop.f32.mrf.mxu1  ;;  %5526 = vmatprep.subr.bf16.mxu1 %v7605_v54  ;;  %v4916_v5 = vadd.f32 %v4915_v60, %v9104_v11  ;;  %v9353_v52 = vadd.f32 %v4986_v40, %v4914_v43  ;;  %5359 = vmatprep.mubr.bf16.mxu0 %v7606_v36  ;;  %v7612_v11 = vld [vmem:[%s10640_s1 + $0xb10] ss:$8 sps:$4 sm:$0xff]   ;;  %v7638_v43 = vld [vmem:[%s10640_s1 + $0xad4] ss:$8 sps:$4 sm:$0xff]  }
 0x160   : > { %5432 = vmatprep.mubr.bf16.mxu1 %v7615_v37  ;;  %v4917_v57 = vpop.f32.mrf.mxu0  ;;  %v7632_v37 = vld [vmem:[%s10640_s1 + $0xae4] ss:$8 sps:$4 sm:$0xff]   ;;  %v7636_v60 = vld [vmem:[%s10640_s1 + $0xad0] ss:$8 sps:$4 sm:$0xff]  }
 0x161   : > { %v4990_v19 = vpop.f32.mrf.mxu1  ;;  %v4918_v26 = vadd.f32 %v4917_v57, %v9116_v17  ;;  %v9361_v63 = vadd.f32 %v4988_v46, %v4916_v5  ;;  %5454 = vmatpush1.bf16.msra.mxu0 %v7600_v42  ;;  %v7623_v17 = vld [vmem:[%s10640_s1 + $0xb04] ss:$8 sps:$4 sm:$0xff]   ;;  %v7633_v42 = vld [vmem:[%s10640_s1 + $0xbe0] ss:$8 sps:$4 sm:$0xff]   ;;  %v7639_v46 = vld [vmem:[%s10640_s1 + $0xbd0] ss:$8 sps:$4 sm:$0xff]  }
 0x162   : > { %5527 = vmatpush1.bf16.msra.mxu1 %v7603_v45  ;;  %v9366_v1 = vpop.f32.mrf.mxu0  ;;  %5455 = vmatprep.subr.bf16.mxu0 %v7611_v48  ;;  %v7641_v45 = vld [vmem:[%s10640_s1 + $0xbd4] ss:$8 sps:$4 sm:$0xff]   ;;  %v7644_v48 = vld [vmem:[%s10640_s1 + $0xac4] ss:$8 sps:$4 sm:$0xff]   ;;  %v7642_v5 = vld [vmem:[%s10640_s1 + $0xac0] ss:$8 sps:$4 sm:$0xff]  }
 0x163   : > { %v9368_v2 = vpop.f32.mrf.mxu1  ;;  %5528 = vmatprep.subr.bf16.mxu1 %v7614_v49  ;;  %v9376_v4 = vadd.f32 %v4990_v19, %v4918_v26  ;;  %v7647_v49 = vld [vmem:[%s10640_s1 + $0xbc4] ss:$8 sps:$4 sm:$0xff]   ;;  %v7653_v57 = vld [vmem:[%s10640_s1 + $0xbb4] ss:$8 sps:$4 sm:$0xff]   ;;  %v7648_v19 = vld [vmem:[%s10640_s1 + $0xab0] ss:$8 sps:$4 sm:$0xff]  }
 0x164   : > { %v4923_v8 = vpop.f32.mrf.mxu0  ;;  %5360 = vmatmul.mubr.bf16.gmra.mxu0 %v7608_v53  ;;  %v7645_v53 = vld [vmem:[%s10640_s1 + $0xbc0] ss:$8 sps:$4 sm:$0xff]   ;;  %v7656_v26 = vld [vmem:[%s10640_s1 + $0xaa4] ss:$8 sps:$4 sm:$0xff]  }
 0x165   : > { %v4996_v9 = vpop.f32.mrf.mxu1  ;;  %5433 = vmatmul.mubr.bf16.gmra.mxu1 %v7617_v61  ;;  %v4924_v13 = vadd.f32 %v4923_v8, %v9134_v34  ;;  %5456 = vmatpush1.bf16.msra.mxu0 %v7609_v55  ;;  %v7650_v55 = vld [vmem:[%s10640_s1 + $0xab4] ss:$8 sps:$4 sm:$0xff]   ;;  %v7651_v61 = vld [vmem:[%s10640_s1 + $0xbb0] ss:$8 sps:$4 sm:$0xff]  }
 0x166   : > { %5529 = vmatpush1.bf16.msra.mxu1 %v7612_v11  ;;  %v4925_v18 = vpop.f32.mrf.mxu0  ;;  %5457 = vmatprep.subr.bf16.mxu0 %v7620_v3  ;;  %v7659_v11 = vld [vmem:[%s10640_s1 + $0xba4] ss:$8 sps:$4 sm:$0xff]   ;;  %v7654_v3 = vld [vmem:[%s10640_s1 + $0xaa0] ss:$8 sps:$4 sm:$0xff]   ;;  %v7660_v8 = vld [vmem:[%s10640_s1 + $0xa90] ss:$8 sps:$4 sm:$0xff]  }
 0x167   : > { %v4998_v20 = vpop.f32.mrf.mxu1  ;;  %5530 = vmatprep.subr.bf16.mxu1 %v7623_v17  ;;  %v4926_v34 = vadd.f32 %v4925_v18, %v9143_v39  ;;  %v9394_v25 = vadd.f32 %v4996_v9, %v4924_v13  ;;  %5475 = vmatprep.mubr.bf16.mxu0 %v7674_v6  ;;  %v7627_v39 = vld [vmem:[%s10640_s1 + $0xbf0] ss:$8 sps:$4 sm:$0xff]   ;;  %v7657_v17 = vld [vmem:[%s10640_s1 + $0xba0] ss:$8 sps:$4 sm:$0xff]   ;;  %v7662_v6 = vld [vmem:[%s10640_s1 + $0xa94] ss:$8 sps:$4 sm:$0xff]  }
 0x168   : > { %5548 = vmatprep.mubr.bf16.mxu1 %v7677_v7  ;;  %v4927_v27 = vpop.f32.mrf.mxu0  ;;  %v7665_v7 = vld [vmem:[%s10640_s1 + $0xb94] ss:$8 sps:$4 sm:$0xff]   ;;  %v7663_v9 = vld [vmem:[%s10640_s1 + $0xb90] ss:$8 sps:$4 sm:$0xff]   ;;  %v7671_v13 = vld [vmem:[%s10640_s1 + $0xb84] ss:$8 sps:$4 sm:$0xff]  }
 0x169   : > { %v5000_v47 = vpop.f32.mrf.mxu1  ;;  %v4928_v54 = vadd.f32 %v4927_v27, %v9151_v44  ;;  %v9400_v36 = vadd.f32 %v4998_v20, %v4926_v34  ;;  %5458 = vmatpush1.bf16.msra.mxu0 %v7618_v10  ;;  %v7630_v44 = vld [vmem:[%s10640_s1 + $0xae0] ss:$8 sps:$4 sm:$0xff]   ;;  %v7668_v10 = vld [vmem:[%s10640_s1 + $0xa84] ss:$8 sps:$4 sm:$0xff]   ;;  %v7680_v20 = vld [vmem:[%s10640_s1 + $0xc74] ss:$8 sps:$4 sm:$0xff]  }
 0x16a   : > { %5531 = vmatpush1.bf16.msra.mxu1 %v7621_v41  ;;  %5459 = vmatprep.subr.bf16.mxu0 %v7626_v21  ;;  %v7666_v41 = vld [vmem:[%s10640_s1 + $0xa80] ss:$8 sps:$4 sm:$0xff]   ;;  %v7683_v21 = vld [vmem:[%s10640_s1 + $0xd74] ss:$8 sps:$4 sm:$0xff]   ;;  %v7675_v34 = vld [vmem:[%s8283_s13 + $0x58] ss:$152 sps:$4 sm:$0xff]  }
 0x16b   : > { %5532 = vmatprep.subr.bf16.mxu1 %v7629_v24  ;;  %v9411_v40 = vadd.f32 %v5000_v47, %v4928_v54  ;;  %v7669_v18 = vld [vmem:[%s10640_s1 + $0xb80] ss:$8 sps:$4 sm:$0xff]   ;;  %v7678_v27 = vld [vmem:[%s10640_s1 + $0xc70] ss:$8 sps:$4 sm:$0xff]   ;;  %v9507_v54 = vpop.f32.mrf.mxu1 }
 0x16c   : > { %v7672_v24 = vld [vmem:[%s8283_s13 + $0x50] ss:$152 sps:$4 sm:$0xff]  }
 0x16d   : > { %5460 = vmatpush2.bf16.msra.mxu0 %v7624_v33  ;;  %v7681_v47 = vld [vmem:[%s10640_s1 + $0xd70] ss:$8 sps:$4 sm:$0xff]   ;;  %v9505_v33 = vpop.f32.mrf.mxu0 }
 0x16e   : > { %5533 = vmatpush2.bf16.msra.mxu1 %v7627_v39  ;;  %5461 = vmatprep.subr.bf16.mxu0 %v7632_v37  ;;  %v7686_v39 = vld [vmem:[%s10640_s1 + $0xc64] ss:$8 sps:$4 sm:$0xff]  }
 0x16f   : > { %5534 = vmatprep.subr.bf16.mxu1 %v7635_v38  ;;  %v7689_v37 = vld [vmem:[%s10640_s1 + $0xd64] ss:$8 sps:$4 sm:$0xff]  }
 0x170   : > { %v7690_v38 = vld [vmem:[%s8283_s13 + $0x184] ss:$152 sps:$4 sm:$0xff]  }
 0x171   : > { %5462 = vmatpush2.bf16.msra.mxu0 %v7630_v44  ;;  %v7699_v44 = vld [vmem:[%s8283_s13 + $0x18c] ss:$152 sps:$4 sm:$0xff]  }
 0x172   : > { %5535 = vmatpush2.bf16.msra.mxu1 %v7633_v42  ;;  %5463 = vmatprep.subr.bf16.mxu0 %v7638_v43 }
 0x173   : > { %5536 = vmatprep.subr.bf16.mxu1 %v7641_v45  ;;  %v7684_v45 = vld [vmem:[%s10640_s1 + $0xc60] ss:$8 sps:$4 sm:$0xff]  }
 0x175   : > { %5464 = vmatpush2.bf16.msra.mxu0 %v7636_v60 }
 0x176   : > { %5537 = vmatpush2.bf16.msra.mxu1 %v7639_v46  ;;  %5465 = vmatprep.subr.bf16.mxu0 %v7644_v48  ;;  %v7687_v46 = vld [vmem:[%s10640_s1 + $0xd60] ss:$8 sps:$4 sm:$0xff]  }
 0x177   : > { %5538 = vmatprep.subr.bf16.mxu1 %v7647_v49 }
 0x179   : > { %5466 = vmatpush2.bf16.msra.mxu0 %v7642_v5  ;;  %v7695_v5 = vld [vmem:[%s10640_s1 + $0xc54] ss:$8 sps:$4 sm:$0xff]  }
 0x17a   : > { %5539 = vmatpush2.bf16.msra.mxu1 %v7645_v53  ;;  %5467 = vmatprep.subr.bf16.mxu0 %v7650_v55  ;;  %v7698_v53 = vld [vmem:[%s10640_s1 + $0xd54] ss:$8 sps:$4 sm:$0xff]  }
 0x17b   : > { %5540 = vmatprep.subr.bf16.mxu1 %v7653_v57  ;;  %v7692_v57 = vld [vmem:[%s8283_s13 + $0x180] ss:$152 sps:$4 sm:$0xff]  }
 0x17d   : > { %5468 = vmatpush2.bf16.msra.mxu0 %v7648_v19  ;;  %v7693_v19 = vld [vmem:[%s10640_s1 + $0xc50] ss:$8 sps:$4 sm:$0xff]  }
 0x17e   : > { %5541 = vmatpush2.bf16.msra.mxu1 %v7651_v61  ;;  %5469 = vmatprep.subr.bf16.mxu0 %v7656_v26 }
 0x17f   : > { %5542 = vmatprep.subr.bf16.mxu1 %v7659_v11  ;;  %v7701_v11 = vld [vmem:[%s8283_s13 + $0x188] ss:$152 sps:$4 sm:$0xff]  }
 0x181   : > { %5470 = vmatpush2.bf16.msra.mxu0 %v7654_v3 }
 0x182   : > { %5543 = vmatpush2.bf16.msra.mxu1 %v7657_v17  ;;  %5471 = vmatprep.subr.bf16.mxu0 %v7662_v6 }
 0x183   : > { %5544 = vmatprep.subr.bf16.mxu1 %v7665_v7 }
 0x185   : > { %5472 = vmatpush2.bf16.msra.mxu0 %v7660_v8  ;;  %v7704_v8 = vld [vmem:[%s10640_s1 + $0xc44] ss:$8 sps:$4 sm:$0xff]  }
 0x186   : > { %5545 = vmatpush2.bf16.msra.mxu1 %v7663_v9  ;;  %5473 = vmatprep.subr.bf16.mxu0 %v7668_v10  ;;  %v7708_v10 = vld [vmem:[%s8283_s13 + $0x2b4] ss:$152 sps:$4 sm:$0xff]  }
 0x187   : > { %5546 = vmatprep.subr.bf16.mxu1 %v7671_v13  ;;  %v7717_v13 = vld [vmem:[%s8283_s13 + $0x2bc] ss:$152 sps:$4 sm:$0xff]  }
 0x189   : > { %5474 = vmatpush2.bf16.msra.mxu0 %v7666_v41 }
 0x18a   : > { %5547 = vmatpush2.bf16.msra.mxu1 %v7669_v18  ;;  %5589 = vmatprep.subr.bf16.mxu0 %v7680_v20  ;;  %v7702_v20 = vld [vmem:[%s10640_s1 + $0xc40] ss:$8 sps:$4 sm:$0xff]  }
 0x18b   : > { %5662 = vmatprep.subr.bf16.mxu1 %v7683_v21 }
 0x18c   : > { %v5039_v42 = vpop.f32.mrf.mxu0  ;;  %5476 = vmatmul.mubr.bf16.vlgmr.msra.gmra.mxu0 %v7672_v24  ;;  %v7705_v24 = vld [vmem:[%s10640_s1 + $0xd40] ss:$8 sps:$4 sm:$0xff]  }
 0x18d   : > { %v5112_v43 = vpop.f32.mrf.mxu1  ;;  %5549 = vmatmul.mubr.bf16.vlgmr.msra.gmra.mxu1 %v7675_v34  ;;  %v5040_v60 = vadd.f32 %v5039_v42, %v9270_v12  ;;  %5590 = vmatpush1.bf16.msra.mxu0 %v7678_v27  ;;  %v7711_v42 = vld [vmem:[%s10640_s1 + $0xc30] ss:$8 sps:$4 sm:$0xff]  }
 0x18e   : > { %5663 = vmatpush1.bf16.msra.mxu1 %v7681_v47  ;;  %v5041_v48 = vpop.f32.mrf.mxu0  ;;  %5591 = vmatprep.subr.bf16.mxu0 %v7686_v39  ;;  %v7713_v47 = vld [vmem:[%s10640_s1 + $0xc34] ss:$8 sps:$4 sm:$0xff]  }
 0x18f   : > { %v5114_v49 = vpop.f32.mrf.mxu1  ;;  %5664 = vmatprep.subr.bf16.mxu1 %v7689_v37  ;;  %v9530_v12 = vadd.f32 %v5112_v43, %v5040_v60  ;;  %v5042_v55 = vadd.f32 %v5041_v48, %v9278_v56  ;;  %5485 = vmatprep.mubr.bf16.mxu0 %v7690_v38  ;;  %v7696_v56 = vld [vmem:[%s10640_s1 + $0xd50] ss:$8 sps:$4 sm:$0xff]   ;;  %v7716_v39 = vld [vmem:[%s10640_s1 + $0xd34] ss:$8 sps:$4 sm:$0xff]  }
 0x190   : > { %5558 = vmatprep.mubr.bf16.mxu1 %v7699_v44  ;;  %v5043_v61 = vpop.f32.mrf.mxu0  ;;  %v7710_v44 = vld [vmem:[%s8283_s13 + $0x2b0] ss:$152 sps:$4 sm:$0xff]  }
 0x191   : > { %v5116_v26 = vpop.f32.mrf.mxu1  ;;  %v9538_v3 = vadd.f32 %v5114_v49, %v5042_v55  ;;  %v5044_v17 = vadd.f32 %v5043_v61, %v9294_v62  ;;  %5592 = vmatpush1.bf16.msra.mxu0 %v7684_v45  ;;  %v7707_v62 = vld [vmem:[%s10640_s1 + $0xd44] ss:$8 sps:$4 sm:$0xff]   ;;  %v7719_v60 = vld [vmem:[%s8283_s13 + $0x2b8] ss:$152 sps:$4 sm:$0xff]  }
 0x192   : > { %5665 = vmatpush1.bf16.msra.mxu1 %v7687_v46  ;;  %v9544_v6 = vpop.f32.mrf.mxu0  ;;  %5593 = vmatprep.subr.bf16.mxu0 %v7695_v5  ;;  %v7722_v5 = vld [vmem:[%s10640_s1 + $0xc24] ss:$8 sps:$4 sm:$0xff]  }
 0x193   : > { %v9546_v7 = vpop.f32.mrf.mxu1  ;;  %5666 = vmatprep.subr.bf16.mxu1 %v7698_v53  ;;  %v9554_v9 = vadd.f32 %v5116_v26, %v5044_v17 }
 0x194   : > { %v5049_v41 = vpop.f32.mrf.mxu0  ;;  %5486 = vmatmul.mubr.bf16.gmra.mxu0 %v7692_v57  ;;  %v7726_v57 = vld [vmem:[%s8283_s13 + $0x3e4] ss:$152 sps:$4 sm:$0xff]  }
 0x195   : > { %v5122_v18 = vpop.f32.mrf.mxu1  ;;  %5559 = vmatmul.mubr.bf16.gmra.mxu1 %v7701_v11  ;;  %v5050_v21 = vadd.f32 %v5049_v41, %v9312_v14  ;;  %5594 = vmatpush1.bf16.msra.mxu0 %v7693_v19  ;;  %v4774_v14 = vadd.f32 %v9112_v15, %v8993_v0  ;;  %v7714_v15 = vld [vmem:[%s10640_s1 + $0xd30] ss:$8 sps:$4 sm:$0xff]   ;;  %v7735_v19 = vld [vmem:[%s8283_s13 + $0x3ec] ss:$152 sps:$4 sm:$0xff]   ;;  %v7720_v11 = vld [vmem:[%s10640_s1 + $0xc20] ss:$8 sps:$4 sm:$0xff]  }
 0x196   : > { %5667 = vmatpush1.bf16.msra.mxu1 %v7696_v56  ;;  %v5051_v34 = vpop.f32.mrf.mxu0  ;;  %5595 = vmatprep.subr.bf16.mxu0 %v7704_v8 }
 0x197   : > { %v5124_v27 = vpop.f32.mrf.mxu1  ;;  %5668 = vmatprep.subr.bf16.mxu1 %v7707_v62  ;;  %v5052_v37 = vadd.f32 %v5051_v34, %v9320_v30  ;;  %v9574_v38 = vadd.f32 %v5122_v18, %v5050_v21  ;;  %5495 = vmatprep.mubr.bf16.mxu0 %v7708_v10  ;;  %v4847_v53 = vadd.f32 %v9114_v16, %v4774_v14  ;;  %v7723_v16 = vld [vmem:[%s10640_s1 + $0xd20] ss:$8 sps:$4 sm:$0xff]   ;;  %v7731_v10 = vld [vmem:[%s10640_s1 + $0xc14] ss:$8 sps:$4 sm:$0xff]  }
 0x198   : > { %5568 = vmatprep.mubr.bf16.mxu1 %v7717_v13  ;;  %v5053_v43 = vpop.f32.mrf.mxu0  ;;  %v7728_v18 = vld [vmem:[%s8283_s13 + $0x3e0] ss:$152 sps:$4 sm:$0xff]  }
 0x199   : > { %v5126_v45 = vpop.f32.mrf.mxu1  ;;  %v5054_v46 = vadd.f32 %v5053_v43, %v9335_v35  ;;  %v9582_v48 = vadd.f32 %v5124_v27, %v5052_v37  ;;  %5596 = vmatpush1.bf16.msra.mxu0 %v7702_v20  ;;  %v7725_v35 = vld [vmem:[%s10640_s1 + $0xd24] ss:$8 sps:$4 sm:$0xff]   ;;  %v4920_v17 = vadd.f32 %v9366_v1, %v4847_v53  ;;  %v7734_v1 = vld [vmem:[%s10640_s1 + $0xd14] ss:$8 sps:$4 sm:$0xff]   ;;  %v7729_v20 = vld [vmem:[%s10640_s1 + $0xc10] ss:$8 sps:$4 sm:$0xff]  }
 0x19a   : > { %5669 = vmatpush1.bf16.msra.mxu1 %v7705_v24  ;;  %v9587_v30 = vpop.f32.mrf.mxu0  ;;  %5597 = vmatprep.subr.bf16.mxu0 %v7713_v47  ;;  %v7737_v34 = vld [vmem:[%s8283_s13 + $0x3e8] ss:$152 sps:$4 sm:$0xff]   ;;  %v7740_v37 = vld [vmem:[%s10640_s1 + $0xc04] ss:$8 sps:$4 sm:$0xff]  }
 0x19b   : > { %v9589_v49 = vpop.f32.mrf.mxu1  ;;  %5670 = vmatprep.subr.bf16.mxu1 %v7716_v39  ;;  %v9598_v55 = vadd.f32 %v5126_v45, %v5054_v46  ;;  %v4993_v27 = vadd.f32 %v9368_v2, %v4920_v17  ;;  %v7743_v2 = vld [vmem:[%s10640_s1 + $0xd04] ss:$8 sps:$4 sm:$0xff]  }
 0x19c   : > { %v5059_v61 = vpop.f32.mrf.mxu0  ;;  %5496 = vmatmul.mubr.bf16.gmra.mxu0 %v7710_v44  ;;  %v7794_v43 = vld [vmem:[%s8283_s13 + $0x64] ss:$152 sps:$4 sm:$0xff]  }
 0x19d   : > { %v5132_v26 = vpop.f32.mrf.mxu1  ;;  %5569 = vmatmul.mubr.bf16.gmra.mxu1 %v7719_v60  ;;  %v5060_v56 = vadd.f32 %v5059_v61, %v9353_v52  ;;  %5598 = vmatpush1.bf16.msra.mxu0 %v7711_v42  ;;  %v4784_v52 = vadd.f32 %v9245_v28, %v8993_v0  ;;  %v7797_v45 = vld [vmem:[%s8283_s13 + $0x6c] ss:$152 sps:$4 sm:$0xff]   ;;  %v7746_v61 = vld [vmem:[%s10640_s1 + $0xcf4] ss:$8 sps:$4 sm:$0xff]  }
 0x19e   : > { %5671 = vmatpush1.bf16.msra.mxu1 %v7714_v15  ;;  %v5061_v8 = vpop.f32.mrf.mxu0  ;;  %5599 = vmatprep.subr.bf16.mxu0 %v7722_v5  ;;  %v7738_v15 = vld [vmem:[%s10640_s1 + $0xc00] ss:$8 sps:$4 sm:$0xff]  }
 0x19f   : > { %v5134_v62 = vpop.f32.mrf.mxu1  ;;  %5672 = vmatprep.subr.bf16.mxu1 %v7725_v35  ;;  %v5062_v13 = vadd.f32 %v5061_v8, %v9361_v63  ;;  %v9619_v41 = vadd.f32 %v5132_v26, %v5060_v56  ;;  %5505 = vmatprep.mubr.bf16.mxu0 %v7726_v57  ;;  %v7732_v63 = vld [vmem:[%s10640_s1 + $0xd10] ss:$8 sps:$4 sm:$0xff]  }
 0x1a0   : > { %5578 = vmatprep.mubr.bf16.mxu1 %v7735_v19  ;;  %v5063_v21 = vpop.f32.mrf.mxu0  ;;  %v7744_v56 = vld [vmem:[%s10640_s1 + $0xcf0] ss:$8 sps:$4 sm:$0xff]  }
 0x1a1   : > { %v5136_v24 = vpop.f32.mrf.mxu1  ;;  %v5064_v28 = vadd.f32 %v5063_v21, %v9376_v4  ;;  %v9628_v47 = vadd.f32 %v5134_v62, %v5062_v13  ;;  %5600 = vmatpush1.bf16.msra.mxu0 %v7720_v11  ;;  %v4857_v4 = vadd.f32 %v9247_v29, %v4784_v52  ;;  %v7741_v29 = vld [vmem:[%s10640_s1 + $0xd00] ss:$8 sps:$4 sm:$0xff]   ;;  %v7752_v52 = vld [vmem:[%s10640_s1 + $0xce4] ss:$8 sps:$4 sm:$0xff]  }
 0x1a2   : > { %5673 = vmatpush1.bf16.msra.mxu1 %v7723_v16  ;;  %v5065_v39 = vpop.f32.mrf.mxu0  ;;  %5601 = vmatprep.subr.bf16.mxu0 %v7731_v10  ;;  %v7753_v21 = vld [vmem:[%s10640_s1 + $0xde0] ss:$8 sps:$4 sm:$0xff]  }
 0x1a3   : > { %v5138_v14 = vpop.f32.mrf.mxu1  ;;  %5674 = vmatprep.subr.bf16.mxu1 %v7734_v1  ;;  %v5066_v44 = vadd.f32 %v5065_v39, %v4993_v27  ;;  %v9640_v42 = vadd.f32 %v5136_v24, %v5064_v28  ;;  %v4930_v5 = vadd.f32 %v9505_v33, %v4857_v4  ;;  %v7758_v24 = vld [vmem:[%s10640_s1 + $0xcd4] ss:$8 sps:$4 sm:$0xff]   ;;  %v7756_v27 = vld [vmem:[%s10640_s1 + $0xcd0] ss:$8 sps:$4 sm:$0xff]   ;;  %v7767_v39 = vld [vmem:[%s10640_s1 + $0xdc4] ss:$8 sps:$4 sm:$0xff]  }
 0x1a4   : > { %v5069_v60 = vpop.f32.mrf.mxu0  ;;  %5506 = vmatmul.mubr.bf16.gmra.mxu0 %v7728_v18  ;;  %v7750_v18 = vld [vmem:[%s10640_s1 + $0xce0] ss:$8 sps:$4 sm:$0xff]   ;;  %v7759_v28 = vld [vmem:[%s10640_s1 + $0xdd0] ss:$8 sps:$4 sm:$0xff]   ;;  %v7773_v4 = vld [vmem:[%s10640_s1 + $0xdb4] ss:$8 sps:$4 sm:$0xff]  }
 0x1a5   : > { %v5142_v46 = vpop.f32.mrf.mxu1  ;;  %5579 = vmatmul.mubr.bf16.gmra.mxu1 %v7737_v34  ;;  %v5070_v35 = vadd.f32 %v5069_v60, %v9394_v25  ;;  %v9649_v53 = vadd.f32 %v5138_v14, %v5066_v44  ;;  %5602 = vmatpush1.bf16.msra.mxu0 %v7729_v20  ;;  %v7749_v25 = vld [vmem:[%s10640_s1 + $0xdf4] ss:$8 sps:$4 sm:$0xff]   ;;  %v5003_v16 = vadd.f32 %v9507_v54, %v4930_v5  ;;  %v7762_v14 = vld [vmem:[%s10640_s1 + $0xcc0] ss:$8 sps:$4 sm:$0xff]   ;;  %v7768_v44 = vld [vmem:[%s10640_s1 + $0xcb0] ss:$8 sps:$4 sm:$0xff]  }
 0x1a6   : > { %5675 = vmatpush1.bf16.msra.mxu1 %v7732_v63  ;;  %v5071_v57 = vpop.f32.mrf.mxu0  ;;  %5603 = vmatprep.subr.bf16.mxu0 %v7740_v37  ;;  %v7761_v34 = vld [vmem:[%s10640_s1 + $0xdd4] ss:$8 sps:$4 sm:$0xff]   ;;  %v7764_v63 = vld [vmem:[%s10640_s1 + $0xcc4] ss:$8 sps:$4 sm:$0xff]   ;;  %v7765_v37 = vld [vmem:[%s10640_s1 + $0xdc0] ss:$8 sps:$4 sm:$0xff]  }
 0x1a7   : > { %v5144_v19 = vpop.f32.mrf.mxu1  ;;  %5676 = vmatprep.subr.bf16.mxu1 %v7743_v2  ;;  %v5072_v33 = vadd.f32 %v5071_v57, %v9400_v36  ;;  %v9661_v26 = vadd.f32 %v5142_v46, %v5070_v35  ;;  %5621 = vmatprep.mubr.bf16.mxu0 %v7794_v43  ;;  %v7747_v36 = vld [vmem:[%s10640_s1 + $0xdf0] ss:$8 sps:$4 sm:$0xff]   ;;  %v7770_v2 = vld [vmem:[%s10640_s1 + $0xcb4] ss:$8 sps:$4 sm:$0xff]   ;;  %v7779_v60 = vld [vmem:[%s10640_s1 + $0xda4] ss:$8 sps:$4 sm:$0xff]   ;;  %v4754_v57 = vadd.f32 %v9024_v22, %v8993_v0 }
 0x1a8   : > { %5694 = vmatprep.mubr.bf16.mxu1 %v7797_v45  ;;  %v5073_v11 = vpop.f32.mrf.mxu0  ;;  %v7771_v43 = vld [vmem:[%s10640_s1 + $0xdb0] ss:$8 sps:$4 sm:$0xff]   ;;  %v7776_v45 = vld [vmem:[%s10640_s1 + $0xca4] ss:$8 sps:$4 sm:$0xff]   ;;  %v7774_v46 = vld [vmem:[%s10640_s1 + $0xca0] ss:$8 sps:$4 sm:$0xff]  }
 0x1a9   : > { %v5146_v17 = vpop.f32.mrf.mxu1  ;;  %v5074_v8 = vadd.f32 %v5073_v11, %v9411_v40  ;;  %v9668_v62 = vadd.f32 %v5144_v19, %v5072_v33  ;;  %5604 = vmatpush1.bf16.msra.mxu0 %v7738_v15  ;;  %v7755_v40 = vld [vmem:[%s10640_s1 + $0xde4] ss:$8 sps:$4 sm:$0xff]   ;;  %v7777_v15 = vld [vmem:[%s10640_s1 + $0xda0] ss:$8 sps:$4 sm:$0xff]   ;;  %v7782_v5 = vld [vmem:[%s10640_s1 + $0xc94] ss:$8 sps:$4 sm:$0xff]   ;;  %v4827_v33 = vadd.f32 %v9026_v23, %v4754_v57 }
 0x1aa   : > { %5677 = vmatpush1.bf16.msra.mxu1 %v7741_v29  ;;  %v5075_v10 = vpop.f32.mrf.mxu0  ;;  %5605 = vmatprep.subr.bf16.mxu0 %v7746_v61  ;;  %v7785_v35 = vld [vmem:[%s10640_s1 + $0xd94] ss:$8 sps:$4 sm:$0xff]   ;;  %v7780_v29 = vld [vmem:[%s10640_s1 + $0xc90] ss:$8 sps:$4 sm:$0xff]   ;;  %v7788_v61 = vld [vmem:[%s10640_s1 + $0xc84] ss:$8 sps:$4 sm:$0xff]  }
 0x1ab   : > { %v5148_v1 = vpop.f32.mrf.mxu1  ;;  %5678 = vmatprep.subr.bf16.mxu1 %v7749_v25  ;;  %v5076_v54 = vadd.f32 %v5075_v10, %v5003_v16  ;;  %v9679_v13 = vadd.f32 %v5146_v17, %v5074_v8  ;;  %v7783_v19 = vld [vmem:[%s10640_s1 + $0xd90] ss:$8 sps:$4 sm:$0xff]   ;;  %v7791_v25 = vld [vmem:[%s10640_s1 + $0xd84] ss:$8 sps:$4 sm:$0xff]   ;;  %v7786_v22 = vld [vmem:[%s10640_s1 + $0xc80] ss:$8 sps:$4 sm:$0xff]   ;;  %v4900_v23 = vadd.f32 %v9284_v58, %v4827_v33  ;;  %v4764_v10 = vadd.f32 %v9071_v50, %v8993_v0 }
 0x1ac   : > { %v7789_v11 = vld [vmem:[%s10640_s1 + $0xd80] ss:$8 sps:$4 sm:$0xff]   ;;  %v7800_v17 = vld [vmem:[%s10640_s1 + $0xe74] ss:$8 sps:$4 sm:$0xff]   ;;  %v7806_v58 = vld [vmem:[%s10640_s1 + $0xe64] ss:$8 sps:$4 sm:$0xff]  }
 0x1ad   : > { %v9684_v20 = vadd.f32 %v5148_v1, %v5076_v54  ;;  %5606 = vmatpush2.bf16.msra.mxu0 %v7744_v56  ;;  %v7803_v56 = vld [vmem:[%s10640_s1 + $0xf74] ss:$8 sps:$4 sm:$0xff]   ;;  %v7792_v16 = vld [vmem:[%s8283_s13 + $0x60] ss:$152 sps:$4 sm:$0xff]  }
 0x1ae   : > { %5679 = vmatpush2.bf16.msra.mxu1 %v7747_v36  ;;  %5607 = vmatprep.subr.bf16.mxu0 %v7752_v52  ;;  %v7795_v8 = vld [vmem:[%s8283_s13 + $0x68] ss:$152 sps:$4 sm:$0xff]   ;;  %v7798_v36 = vld [vmem:[%s10640_s1 + $0xe70] ss:$8 sps:$4 sm:$0xff]   ;;  %v7809_v52 = vld [vmem:[%s10640_s1 + $0xf64] ss:$8 sps:$4 sm:$0xff]  }
 0x1af   : > { %5680 = vmatprep.subr.bf16.mxu1 %v7755_v40  ;;  %v7801_v1 = vld [vmem:[%s10640_s1 + $0xf70] ss:$8 sps:$4 sm:$0xff]   ;;  %v4973_v40 = vadd.f32 %v9286_v59, %v4900_v23  ;;  %v7810_v54 = vld [vmem:[%s8283_s13 + $0x194] ss:$152 sps:$4 sm:$0xff]   ;;  %v7807_v59 = vld [vmem:[%s10640_s1 + $0xf60] ss:$8 sps:$4 sm:$0xff]  }
 0x1b0   : > { %v7819_v0 = vld [vmem:[%s8283_s13 + $0x19c] ss:$152 sps:$4 sm:$0xff]  }
 0x1b1   : > { %5608 = vmatpush2.bf16.msra.mxu0 %v7750_v18  ;;  %v7828_v57 = vld [vmem:[%s8283_s13 + $0x2c4] ss:$152 sps:$4 sm:$0xff]  }
 0x1b2   : > { %5681 = vmatpush2.bf16.msra.mxu1 %v7753_v21  ;;  %5609 = vmatprep.subr.bf16.mxu0 %v7758_v24  ;;  %v7804_v21 = vld [vmem:[%s10640_s1 + $0xe60] ss:$8 sps:$4 sm:$0xff]   ;;  %v4837_v24 = vadd.f32 %v9073_v51, %v4764_v10  ;;  %v7815_v51 = vld [vmem:[%s10640_s1 + $0xe54] ss:$8 sps:$4 sm:$0xff]   ;;  %v7831_v10 = vld [vmem:[%s10640_s1 + $0xe30] ss:$8 sps:$4 sm:$0xff]  }
 0x1b3   : > { %5682 = vmatprep.subr.bf16.mxu1 %v7761_v34  ;;  %v5046_v34 = vadd.f32 %v9544_v6, %v4973_v40  ;;  %v7818_v6 = vld [vmem:[%s10640_s1 + $0xf54] ss:$8 sps:$4 sm:$0xff]  }
 0x1b5   : > { %5610 = vmatpush2.bf16.msra.mxu0 %v7756_v27 }
 0x1b6   : > { %5683 = vmatpush2.bf16.msra.mxu1 %v7759_v28  ;;  %5611 = vmatprep.subr.bf16.mxu0 %v7764_v63 }
 0x1b7   : > { %5684 = vmatprep.subr.bf16.mxu1 %v7767_v39 }
 0x1b9   : > { %5612 = vmatpush2.bf16.msra.mxu0 %v7762_v14 }
 0x1ba   : > { %5685 = vmatpush2.bf16.msra.mxu1 %v7765_v37  ;;  %5613 = vmatprep.subr.bf16.mxu0 %v7770_v2  ;;  %v7812_v37 = vld [vmem:[%s8283_s13 + $0x190] ss:$152 sps:$4 sm:$0xff]  }
 0x1bb   : > { %5686 = vmatprep.subr.bf16.mxu1 %v7773_v4  ;;  %v7813_v2 = vld [vmem:[%s10640_s1 + $0xe50] ss:$8 sps:$4 sm:$0xff]  }
 0x1bd   : > { %5614 = vmatpush2.bf16.msra.mxu0 %v7768_v44 }
 0x1be   : > { %5687 = vmatpush2.bf16.msra.mxu1 %v7771_v43  ;;  %5615 = vmatprep.subr.bf16.mxu0 %v7776_v45  ;;  %v7821_v43 = vld [vmem:[%s8283_s13 + $0x198] ss:$152 sps:$4 sm:$0xff]   ;;  %v5119_v45 = vadd.f32 %v9546_v7, %v5046_v34  ;;  %v7827_v7 = vld [vmem:[%s10640_s1 + $0xf44] ss:$8 sps:$4 sm:$0xff]  }
 0x1bf   : > { %5688 = vmatprep.subr.bf16.mxu1 %v7779_v60  ;;  %v7846_v34 = vld [vmem:[%s8283_s13 + $0x3f4] ss:$152 sps:$4 sm:$0xff]  }
 0x1c1   : > { %5616 = vmatpush2.bf16.msra.mxu0 %v7774_v46 }
 0x1c2   : > { %5689 = vmatpush2.bf16.msra.mxu1 %v7777_v15  ;;  %5617 = vmatprep.subr.bf16.mxu0 %v7782_v5  ;;  %v7824_v5 = vld [vmem:[%s10640_s1 + $0xe44] ss:$8 sps:$4 sm:$0xff]  }
 0x1c3   : > { %5690 = vmatprep.subr.bf16.mxu1 %v7785_v35 }
 0x1c5   : > { %5618 = vmatpush2.bf16.msra.mxu0 %v7780_v29 }
 0x1c6   : > { %5691 = vmatpush2.bf16.msra.mxu1 %v7783_v19  ;;  %5619 = vmatprep.subr.bf16.mxu0 %v7788_v61  ;;  %v7837_v19 = vld [vmem:[%s8283_s13 + $0x2cc] ss:$152 sps:$4 sm:$0xff]  }
 0x1c7   : > { %5692 = vmatprep.subr.bf16.mxu1 %v7791_v25 }
 0x1c9   : > { %5620 = vmatpush2.bf16.msra.mxu0 %v7786_v22  ;;  %v7822_v22 = vld [vmem:[%s10640_s1 + $0xe40] ss:$8 sps:$4 sm:$0xff]  }
 0x1ca   : > { %5693 = vmatpush2.bf16.msra.mxu1 %v7789_v11  ;;  %5735 = vmatprep.subr.bf16.mxu0 %v7800_v17  ;;  %v7825_v17 = vld [vmem:[%s10640_s1 + $0xf40] ss:$8 sps:$4 sm:$0xff]  }
 0x1cb   : > { %5808 = vmatprep.subr.bf16.mxu1 %v7803_v56 }
 0x1cc   : > { %v5185_v50 = vpop.f32.mrf.mxu0  ;;  %5622 = vmatmul.mubr.bf16.vlgmr.msra.gmra.mxu0 %v7792_v16  ;;  %v7833_v16 = vld [vmem:[%s10640_s1 + $0xe34] ss:$8 sps:$4 sm:$0xff]  }
 0x1cd   : > { %v5258_v18 = vpop.f32.mrf.mxu1  ;;  %5695 = vmatmul.mubr.bf16.vlgmr.msra.gmra.mxu1 %v7795_v8  ;;  %v5186_v27 = vadd.f32 %v5185_v50, %v9530_v12  ;;  %5736 = vmatpush1.bf16.msra.mxu0 %v7798_v36  ;;  %v4910_v12 = vadd.f32 %v9325_v31, %v4837_v24  ;;  %v7830_v36 = vld [vmem:[%s8283_s13 + $0x2c0] ss:$152 sps:$4 sm:$0xff]  }
 0x1ce   : > { %5809 = vmatpush1.bf16.msra.mxu1 %v7801_v1  ;;  %v5187_v28 = vpop.f32.mrf.mxu0  ;;  %5737 = vmatprep.subr.bf16.mxu0 %v7806_v58 }
 0x1cf   : > { %v5260_v63 = vpop.f32.mrf.mxu1  ;;  %5810 = vmatprep.subr.bf16.mxu1 %v7809_v52  ;;  %v9806_v39 = vadd.f32 %v5258_v18, %v5186_v27  ;;  %v5188_v14 = vadd.f32 %v5187_v28, %v9538_v3  ;;  %5631 = vmatprep.mubr.bf16.mxu0 %v7810_v54  ;;  %v7816_v3 = vld [vmem:[%s10640_s1 + $0xf50] ss:$8 sps:$4 sm:$0xff]   ;;  %v7839_v52 = vld [vmem:[%s8283_s13 + $0x2c8] ss:$152 sps:$4 sm:$0xff]   ;;  %v7855_v27 = vld [vmem:[%s8283_s13 + $0x3fc] ss:$152 sps:$4 sm:$0xff]  }
 0x1d0   : > { %5704 = vmatprep.mubr.bf16.mxu1 %v7819_v0  ;;  %v5189_v4 = vpop.f32.mrf.mxu0 }
 0x1d1   : > { %v5262_v44 = vpop.f32.mrf.mxu1  ;;  %v9815_v60 = vadd.f32 %v5260_v63, %v5188_v14  ;;  %v5190_v31 = vadd.f32 %v5189_v4, %v9554_v9  ;;  %5738 = vmatpush1.bf16.msra.mxu0 %v7804_v21  ;;  %v4983_v9 = vadd.f32 %v9327_v32, %v4910_v12  ;;  %v7842_v21 = vld [vmem:[%s10640_s1 + $0xe24] ss:$8 sps:$4 sm:$0xff]   ;;  %v7840_v63 = vld [vmem:[%s10640_s1 + $0xe20] ss:$8 sps:$4 sm:$0xff]  }
 0x1d2   : > { %5811 = vmatpush1.bf16.msra.mxu1 %v7807_v59  ;;  %v5191_v46 = vpop.f32.mrf.mxu0  ;;  %5739 = vmatprep.subr.bf16.mxu0 %v7815_v51  ;;  %v7843_v12 = vld [vmem:[%s10640_s1 + $0xf20] ss:$8 sps:$4 sm:$0xff]  }
 0x1d3   : > { %v5264_v15 = vpop.f32.mrf.mxu1  ;;  %5812 = vmatprep.subr.bf16.mxu1 %v7818_v6  ;;  %v9828_v35 = vadd.f32 %v5262_v44, %v5190_v31  ;;  %v5192_v29 = vadd.f32 %v5191_v46, %v5119_v45  ;;  %v5056_v33 = vadd.f32 %v9587_v30, %v4983_v9  ;;  %v7836_v30 = vld [vmem:[%s10640_s1 + $0xf34] ss:$8 sps:$4 sm:$0xff]   ;;  %v7849_v45 = vld [vmem:[%s10640_s1 + $0xe10] ss:$8 sps:$4 sm:$0xff]  }
 0x1d4   : > { %v5195_v61 = vpop.f32.mrf.mxu0  ;;  %5632 = vmatmul.mubr.bf16.gmra.mxu0 %v7812_v37  ;;  %v7857_v46 = vld [vmem:[%s8283_s13 + $0x3f8] ss:$152 sps:$4 sm:$0xff]  }
 0x1d5   : > { %v5268_v25 = vpop.f32.mrf.mxu1  ;;  %5705 = vmatmul.mubr.bf16.gmra.mxu1 %v7821_v43  ;;  %v9836_v11 = vadd.f32 %v5264_v15, %v5192_v29  ;;  %v5196_v32 = vadd.f32 %v5195_v61, %v9574_v38  ;;  %5740 = vmatpush1.bf16.msra.mxu0 %v7813_v2  ;;  %v5129_v40 = vadd.f32 %v9589_v49, %v5056_v33  ;;  %v7845_v49 = vld [vmem:[%s10640_s1 + $0xf24] ss:$8 sps:$4 sm:$0xff]   ;;  %v7851_v2 = vld [vmem:[%s10640_s1 + $0xe14] ss:$8 sps:$4 sm:$0xff]   ;;  %v7848_v43 = vld [vmem:[%s8283_s13 + $0x3f0] ss:$152 sps:$4 sm:$0xff]  }
 0x1d6   : > { %5813 = vmatpush1.bf16.msra.mxu1 %v7816_v3  ;;  %v5197_v56 = vpop.f32.mrf.mxu0  ;;  %5741 = vmatprep.subr.bf16.mxu0 %v7824_v5  ;;  %v7860_v29 = vld [vmem:[%s10640_s1 + $0xe04] ss:$8 sps:$4 sm:$0xff]  }
 0x1d7   : > { %v5270_v23 = vpop.f32.mrf.mxu1  ;;  %5814 = vmatprep.subr.bf16.mxu1 %v7827_v7  ;;  %v5198_v38 = vadd.f32 %v5197_v56, %v9582_v48  ;;  %v9849_v8 = vadd.f32 %v5268_v25, %v5196_v32  ;;  %5641 = vmatprep.mubr.bf16.mxu0 %v7828_v57  ;;  %v7834_v48 = vld [vmem:[%s10640_s1 + $0xf30] ss:$8 sps:$4 sm:$0xff]   ;;  %v7914_v61 = vld [vmem:[%s8283_s13 + $0x74] ss:$152 sps:$4 sm:$0xff]   ;;  %v7858_v32 = vld [vmem:[%s10640_s1 + $0xe00] ss:$8 sps:$4 sm:$0xff]  }
 0x1d8   : > { %5714 = vmatprep.mubr.bf16.mxu1 %v7837_v19  ;;  %v5199_v1 = vpop.f32.mrf.mxu0  ;;  %v7917_v25 = vld [vmem:[%s8283_s13 + $0x7c] ss:$152 sps:$4 sm:$0xff]  }
 0x1d9   : > { %v5272_v58 = vpop.f32.mrf.mxu1  ;;  %v5200_v54 = vadd.f32 %v5199_v1, %v9598_v55  ;;  %v9858_v0 = vadd.f32 %v5270_v23, %v5198_v38  ;;  %5742 = vmatpush1.bf16.msra.mxu0 %v7822_v22 }
 0x1da   : > { %5815 = vmatpush1.bf16.msra.mxu1 %v7825_v17  ;;  %v5201_v50 = vpop.f32.mrf.mxu0  ;;  %5743 = vmatprep.subr.bf16.mxu0 %v7833_v16 }
 0x1db   : > { %v5274_v18 = vpop.f32.mrf.mxu1  ;;  %5816 = vmatprep.subr.bf16.mxu1 %v7836_v30  ;;  %v5202_v55 = vadd.f32 %v5201_v50, %v5129_v40  ;;  %v9869_v24 = vadd.f32 %v5272_v58, %v5200_v54  ;;  %v7866_v30 = vld [vmem:[%s10640_s1 + $0xef4] ss:$8 sps:$4 sm:$0xff]   ;;  %v7864_v58 = vld [vmem:[%s10640_s1 + $0xef0] ss:$8 sps:$4 sm:$0xff]   ;;  %v7872_v50 = vld [vmem:[%s10640_s1 + $0xee4] ss:$8 sps:$4 sm:$0xff]  }
 0x1dc   : > { %v5205_v59 = vpop.f32.mrf.mxu0  ;;  %5642 = vmatmul.mubr.bf16.gmra.mxu0 %v7830_v36 }
 0x1dd   : > { %v5278_v28 = vpop.f32.mrf.mxu1  ;;  %5715 = vmatmul.mubr.bf16.gmra.mxu1 %v7839_v52  ;;  %v5206_v51 = vadd.f32 %v5205_v59, %v9619_v41  ;;  %v9877_v6 = vadd.f32 %v5274_v18, %v5202_v55  ;;  %5744 = vmatpush1.bf16.msra.mxu0 %v7831_v10  ;;  %v7854_v41 = vld [vmem:[%s10640_s1 + $0xf14] ss:$8 sps:$4 sm:$0xff]   ;;  %v7876_v59 = vld [vmem:[%s10640_s1 + $0xed0] ss:$8 sps:$4 sm:$0xff]  }
 0x1de   : > { %5817 = vmatpush1.bf16.msra.mxu1 %v7834_v48  ;;  %v5207_v14 = vpop.f32.mrf.mxu0  ;;  %5745 = vmatprep.subr.bf16.mxu0 %v7842_v21 }
 0x1df   : > { %v5280_v37 = vpop.f32.mrf.mxu1  ;;  %5818 = vmatprep.subr.bf16.mxu1 %v7845_v49  ;;  %v5208_v4 = vadd.f32 %v5207_v14, %v9628_v47  ;;  %v9889_v44 = vadd.f32 %v5278_v28, %v5206_v51  ;;  %5651 = vmatprep.mubr.bf16.mxu0 %v7846_v34  ;;  %v7852_v47 = vld [vmem:[%s10640_s1 + $0xf10] ss:$8 sps:$4 sm:$0xff]   ;;  %v7870_v49 = vld [vmem:[%s10640_s1 + $0xee0] ss:$8 sps:$4 sm:$0xff]   ;;  %v7887_v51 = vld [vmem:[%s10640_s1 + $0xfc4] ss:$8 sps:$4 sm:$0xff]  }
 0x1e0   : > { %5724 = vmatprep.mubr.bf16.mxu1 %v7855_v27  ;;  %v5209_v31 = vpop.f32.mrf.mxu0  ;;  %v7873_v34 = vld [vmem:[%s10640_s1 + $0xfe0] ss:$8 sps:$4 sm:$0xff]   ;;  %v7881_v27 = vld [vmem:[%s10640_s1 + $0xfd4] ss:$8 sps:$4 sm:$0xff]   ;;  %v7879_v28 = vld [vmem:[%s10640_s1 + $0xfd0] ss:$8 sps:$4 sm:$0xff]  }
 0x1e1   : > { %v5282_v3 = vpop.f32.mrf.mxu1  ;;  %v5210_v15 = vadd.f32 %v5209_v31, %v9640_v42  ;;  %v9897_v5 = vadd.f32 %v5280_v37, %v5208_v4  ;;  %5746 = vmatpush1.bf16.msra.mxu0 %v7840_v63  ;;  %v7863_v42 = vld [vmem:[%s10640_s1 + $0xf04] ss:$8 sps:$4 sm:$0xff]   ;;  %v7885_v14 = vld [vmem:[%s10640_s1 + $0xfc0] ss:$8 sps:$4 sm:$0xff]   ;;  %v7890_v37 = vld [vmem:[%s10640_s1 + $0xeb4] ss:$8 sps:$4 sm:$0xff]  }
 0x1e2   : > { %5819 = vmatpush1.bf16.msra.mxu1 %v7843_v12  ;;  %v5211_v7 = vpop.f32.mrf.mxu0  ;;  %5747 = vmatprep.subr.bf16.mxu0 %v7851_v2  ;;  %v7884_v63 = vld [vmem:[%s10640_s1 + $0xec4] ss:$8 sps:$4 sm:$0xff]   ;;  %v7882_v12 = vld [vmem:[%s10640_s1 + $0xec0] ss:$8 sps:$4 sm:$0xff]   ;;  %v7893_v2 = vld [vmem:[%s10640_s1 + $0xfb4] ss:$8 sps:$4 sm:$0xff]  }
 0x1e3   : > { %v5284_v9 = vpop.f32.mrf.mxu1  ;;  %5820 = vmatprep.subr.bf16.mxu1 %v7854_v41  ;;  %v5212_v57 = vadd.f32 %v5211_v7, %v9649_v53  ;;  %v9909_v19 = vadd.f32 %v5282_v3, %v5210_v15  ;;  %v7861_v53 = vld [vmem:[%s10640_s1 + $0xf00] ss:$8 sps:$4 sm:$0xff]   ;;  %v7888_v41 = vld [vmem:[%s10640_s1 + $0xeb0] ss:$8 sps:$4 sm:$0xff]   ;;  %v7905_v15 = vld [vmem:[%s10640_s1 + $0xf94] ss:$8 sps:$4 sm:$0xff]  }
 0x1e4   : > { %v5215_v22 = vpop.f32.mrf.mxu0  ;;  %5652 = vmatmul.mubr.bf16.gmra.mxu0 %v7848_v43  ;;  %v7891_v4 = vld [vmem:[%s10640_s1 + $0xfb0] ss:$8 sps:$4 sm:$0xff]   ;;  %v7896_v43 = vld [vmem:[%s10640_s1 + $0xea4] ss:$8 sps:$4 sm:$0xff]   ;;  %v7894_v31 = vld [vmem:[%s10640_s1 + $0xea0] ss:$8 sps:$4 sm:$0xff]  }
 0x1e5   : > { %v5288_v33 = vpop.f32.mrf.mxu1  ;;  %5725 = vmatmul.mubr.bf16.gmra.mxu1 %v7857_v46  ;;  %v5216_v17 = vadd.f32 %v5215_v22, %v9661_v26  ;;  %v9917_v56 = vadd.f32 %v5284_v9, %v5212_v57  ;;  %5748 = vmatpush1.bf16.msra.mxu0 %v7849_v45  ;;  %v7869_v26 = vld [vmem:[%s10640_s1 + $0xff4] ss:$8 sps:$4 sm:$0xff]   ;;  %v7899_v45 = vld [vmem:[%s10640_s1 + $0xfa4] ss:$8 sps:$4 sm:$0xff]   ;;  %v7897_v3 = vld [vmem:[%s10640_s1 + $0xfa0] ss:$8 sps:$4 sm:$0xff]  }
 0x1e6   : > { %5821 = vmatpush1.bf16.msra.mxu1 %v7852_v47  ;;  %v5217_v23 = vpop.f32.mrf.mxu0  ;;  %5749 = vmatprep.subr.bf16.mxu0 %v7860_v29  ;;  %v7902_v46 = vld [vmem:[%s10640_s1 + $0xe94] ss:$8 sps:$4 sm:$0xff]   ;;  %v7900_v47 = vld [vmem:[%s10640_s1 + $0xe90] ss:$8 sps:$4 sm:$0xff]   ;;  %v7908_v9 = vld [vmem:[%s10640_s1 + $0xe84] ss:$8 sps:$4 sm:$0xff]  }
 0x1e7   : > { %v5290_v16 = vpop.f32.mrf.mxu1  ;;  %5822 = vmatprep.subr.bf16.mxu1 %v7863_v42  ;;  %v5218_v38 = vadd.f32 %v5217_v23, %v9668_v62  ;;  %v9929_v36 = vadd.f32 %v5288_v33, %v5216_v17  ;;  %5767 = vmatprep.mubr.bf16.mxu0 %v7914_v61  ;;  %v7867_v62 = vld [vmem:[%s10640_s1 + $0xff0] ss:$8 sps:$4 sm:$0xff]   ;;  %v7911_v29 = vld [vmem:[%s10640_s1 + $0xf84] ss:$8 sps:$4 sm:$0xff]   ;;  %v7906_v42 = vld [vmem:[%s10640_s1 + $0xe80] ss:$8 sps:$4 sm:$0xff]  }
 0x1e8   : > { %5840 = vmatprep.mubr.bf16.mxu1 %v7917_v25  ;;  %v5219_v10 = vpop.f32.mrf.mxu0  ;;  %v7903_v7 = vld [vmem:[%s10640_s1 + $0xf90] ss:$8 sps:$4 sm:$0xff]   ;;  %v7909_v57 = vld [vmem:[%s10640_s1 + $0xf80] ss:$8 sps:$4 sm:$0xff]   ;;  %v7920_v61 = vld [vmem:[%s10640_s1 + $0x1074] ss:$8 sps:$4 sm:$0xff]  }
 0x1e9   : > { %v5292_v1 = vpop.f32.mrf.mxu1  ;;  %v5220_v52 = vadd.f32 %v5219_v10, %v9679_v13  ;;  %v9935_v40 = vadd.f32 %v5290_v16, %v5218_v38  ;;  %5750 = vmatpush1.bf16.msra.mxu0 %v7858_v32  ;;  %v7875_v13 = vld [vmem:[%s10640_s1 + $0xfe4] ss:$8 sps:$4 sm:$0xff]   ;;  %v7923_v25 = vld [vmem:[%s10640_s1 + $0x1174] ss:$8 sps:$4 sm:$0xff]   ;;  %v7912_v22 = vld [vmem:[%s8283_s13 + $0x70] ss:$152 sps:$4 sm:$0xff]  }
 0x1ea   : > { %5823 = vmatpush1.bf16.msra.mxu1 %v7861_v53  ;;  %v5221_v54 = vpop.f32.mrf.mxu0  ;;  %5751 = vmatprep.subr.bf16.mxu0 %v7866_v30  ;;  %v7915_v33 = vld [vmem:[%s8283_s13 + $0x78] ss:$152 sps:$4 sm:$0xff]   ;;  %v7926_v53 = vld [vmem:[%s10640_s1 + $0x1064] ss:$8 sps:$4 sm:$0xff]  }
 0x1eb   : > { %v5294_v48 = vpop.f32.mrf.mxu1  ;;  %5824 = vmatprep.subr.bf16.mxu1 %v7869_v26  ;;  %v5222_v18 = vadd.f32 %v5221_v54, %v9684_v20  ;;  %v9947_v21 = vadd.f32 %v5292_v1, %v5220_v52  ;;  %v7878_v20 = vld [vmem:[%s10640_s1 + $0xed4] ss:$8 sps:$4 sm:$0xff]   ;;  %v7918_v32 = vld [vmem:[%s10640_s1 + $0x1070] ss:$8 sps:$4 sm:$0xff]   ;;  %v7929_v23 = vld [vmem:[%s10640_s1 + $0x1164] ss:$8 sps:$4 sm:$0xff]  }
 0x1ec   : > { %v7921_v17 = vld [vmem:[%s10640_s1 + $0x1170] ss:$8 sps:$4 sm:$0xff]   ;;  %v7932_v16 = vld [vmem:[%s8283_s13 + $0x1a4] ss:$152 sps:$4 sm:$0xff]   ;;  %v7924_v1 = vld [vmem:[%s10640_s1 + $0x1060] ss:$8 sps:$4 sm:$0xff]  }
 0x1ed   : > { %v9952_v55 = vadd.f32 %v5294_v48, %v5222_v18  ;;  %5752 = vmatpush2.bf16.msra.mxu0 %v7864_v58  ;;  %v7941_v30 = vld [vmem:[%s8283_s13 + $0x1ac] ss:$152 sps:$4 sm:$0xff]   ;;  %v7927_v58 = vld [vmem:[%s10640_s1 + $0x1160] ss:$8 sps:$4 sm:$0xff]   ;;  %v7938_v54 = vld [vmem:[%s10640_s1 + $0x1154] ss:$8 sps:$4 sm:$0xff]  }
 0x1ee   : > { %5825 = vmatpush2.bf16.msra.mxu1 %v7867_v62  ;;  %5753 = vmatprep.subr.bf16.mxu0 %v7872_v50 }
 0x1ef   : > { %5826 = vmatprep.subr.bf16.mxu1 %v7875_v13 }
 0x1f1   : > { %5754 = vmatpush2.bf16.msra.mxu0 %v7870_v49  ;;  %v7930_v49 = vld [vmem:[%s8283_s13 + $0x1a0] ss:$152 sps:$4 sm:$0xff]  }
 0x1f2   : > { %5827 = vmatpush2.bf16.msra.mxu1 %v7873_v34  ;;  %5755 = vmatprep.subr.bf16.mxu0 %v7878_v20  ;;  %v7939_v34 = vld [vmem:[%s8283_s13 + $0x1a8] ss:$152 sps:$4 sm:$0xff]  }
 0x1f3   : > { %5828 = vmatprep.subr.bf16.mxu1 %v7881_v27 }
 0x1f5   : > { %5756 = vmatpush2.bf16.msra.mxu0 %v7876_v59  ;;  %v7933_v59 = vld [vmem:[%s10640_s1 + $0x1050] ss:$8 sps:$4 sm:$0xff]  }
 0x1f6   : > { %5829 = vmatpush2.bf16.msra.mxu1 %v7879_v28  ;;  %5757 = vmatprep.subr.bf16.mxu0 %v7884_v63 }
 0x1f7   : > { %5830 = vmatprep.subr.bf16.mxu1 %v7887_v51  ;;  %v7944_v51 = vld [vmem:[%s10640_s1 + $0x1044] ss:$8 sps:$4 sm:$0xff]  }
 0x1f9   : > { %5758 = vmatpush2.bf16.msra.mxu0 %v7882_v12 }
 0x1fa   : > { %5831 = vmatpush2.bf16.msra.mxu1 %v7885_v14  ;;  %5759 = vmatprep.subr.bf16.mxu0 %v7890_v37  ;;  %v7950_v37 = vld [vmem:[%s8283_s13 + $0x2d4] ss:$152 sps:$4 sm:$0xff]  }
 0x1fb   : > { %5832 = vmatprep.subr.bf16.mxu1 %v7893_v2  ;;  %v7959_v2 = vld [vmem:[%s8283_s13 + $0x2dc] ss:$152 sps:$4 sm:$0xff]  }
 0x1fd   : > { %5760 = vmatpush2.bf16.msra.mxu0 %v7888_v41 }
 0x1fe   : > { %5833 = vmatpush2.bf16.msra.mxu1 %v7891_v4  ;;  %5761 = vmatprep.subr.bf16.mxu0 %v7896_v43 }
 0x1ff   : > { %5834 = vmatprep.subr.bf16.mxu1 %v7899_v45 }
 0x201   : > { %5762 = vmatpush2.bf16.msra.mxu0 %v7894_v31  ;;  %v7942_v31 = vld [vmem:[%s10640_s1 + $0x1040] ss:$8 sps:$4 sm:$0xff]  }
 0x202   : > { %5835 = vmatpush2.bf16.msra.mxu1 %v7897_v3  ;;  %5763 = vmatprep.subr.bf16.mxu0 %v7902_v46 }
 0x203   : > { %5836 = vmatprep.subr.bf16.mxu1 %v7905_v15  ;;  %v7956_v15 = vld [vmem:[%s10640_s1 + $0x1134] ss:$8 sps:$4 sm:$0xff]  }
 0x205   : > { %5764 = vmatpush2.bf16.msra.mxu0 %v7900_v47 }
 0x206   : > { %5837 = vmatpush2.bf16.msra.mxu1 %v7903_v7  ;;  %5765 = vmatprep.subr.bf16.mxu0 %v7908_v9 }
 0x207   : > { %5838 = vmatprep.subr.bf16.mxu1 %v7911_v29 }
 0x209   : > { %5766 = vmatpush2.bf16.msra.mxu0 %v7906_v42  ;;  %v7948_v42 = vld [vmem:[%s8283_s13 + $0x2d0] ss:$152 sps:$4 sm:$0xff]  }
 0x20a   : > { %5839 = vmatpush2.bf16.msra.mxu1 %v7909_v57  ;;  %5881 = vmatprep.subr.bf16.mxu0 %v7920_v61  ;;  %v7957_v57 = vld [vmem:[%s8283_s13 + $0x2d8] ss:$152 sps:$4 sm:$0xff]  }
 0x20b   : > { %5954 = vmatprep.subr.bf16.mxu1 %v7923_v25 }
 0x20c   : > { %v5331_v26 = vpop.f32.mrf.mxu0  ;;  %5768 = vmatmul.mubr.bf16.vlgmr.msra.gmra.mxu0 %v7912_v22  ;;  %v7954_v22 = vld [vmem:[%s10640_s1 + $0x1130] ss:$8 sps:$4 sm:$0xff]  }
 0x20d   : > { %v5404_v38 = vpop.f32.mrf.mxu1  ;;  %5841 = vmatmul.mubr.bf16.vlgmr.msra.gmra.mxu1 %v7915_v33  ;;  %v5332_v10 = vadd.f32 %v5331_v26, %v9806_v39  ;;  %5882 = vmatpush1.bf16.msra.mxu0 %v7918_v32  ;;  %v7935_v39 = vld [vmem:[%s10640_s1 + $0x1054] ss:$8 sps:$4 sm:$0xff]  }
 0x20e   : > { %5955 = vmatpush1.bf16.msra.mxu1 %v7921_v17  ;;  %v5333_v52 = vpop.f32.mrf.mxu0  ;;  %5883 = vmatprep.subr.bf16.mxu0 %v7926_v53  ;;  %v7965_v17 = vld [vmem:[%s10640_s1 + $0x1124] ss:$8 sps:$4 sm:$0xff]  }
 0x20f   : > { %v5406_v62 = vpop.f32.mrf.mxu1  ;;  %5956 = vmatprep.subr.bf16.mxu1 %v7929_v23  ;;  %v10064_v48 = vadd.f32 %v5404_v38, %v5332_v10  ;;  %v5334_v50 = vadd.f32 %v5333_v52, %v9815_v60  ;;  %5777 = vmatprep.mubr.bf16.mxu0 %v7932_v16  ;;  %v7936_v60 = vld [vmem:[%s10640_s1 + $0x1150] ss:$8 sps:$4 sm:$0xff]   ;;  %v7968_v16 = vld [vmem:[%s8283_s13 + $0x404] ss:$152 sps:$4 sm:$0xff]  }
 0x210   : > { %5850 = vmatprep.mubr.bf16.mxu1 %v7941_v30  ;;  %v5335_v13 = vpop.f32.mrf.mxu0  ;;  %v7977_v30 = vld [vmem:[%s8283_s13 + $0x40c] ss:$152 sps:$4 sm:$0xff]  }
 0x211   : > { %v5408_v18 = vpop.f32.mrf.mxu1  ;;  %v10069_v20 = vadd.f32 %v5406_v62, %v5334_v50  ;;  %v5336_v27 = vadd.f32 %v5335_v13, %v9828_v35  ;;  %5884 = vmatpush1.bf16.msra.mxu0 %v7924_v1  ;;  %v7947_v35 = vld [vmem:[%s10640_s1 + $0x1144] ss:$8 sps:$4 sm:$0xff]  }
 0x212   : > { %5957 = vmatpush1.bf16.msra.mxu1 %v7927_v58  ;;  %v5337_v28 = vpop.f32.mrf.mxu0  ;;  %5885 = vmatprep.subr.bf16.mxu0 %v7935_v39  ;;  %v7963_v58 = vld [vmem:[%s10640_s1 + $0x1120] ss:$8 sps:$4 sm:$0xff]   ;;  %v7974_v39 = vld [vmem:[%s10640_s1 + $0x1114] ss:$8 sps:$4 sm:$0xff]  }
 0x213   : > { %v5410_v63 = vpop.f32.mrf.mxu1  ;;  %5958 = vmatprep.subr.bf16.mxu1 %v7938_v54  ;;  %v10084_v12 = vadd.f32 %v5408_v18, %v5336_v27  ;;  %v5338_v14 = vadd.f32 %v5337_v28, %v9836_v11  ;;  %v7945_v11 = vld [vmem:[%s10640_s1 + $0x1140] ss:$8 sps:$4 sm:$0xff]  }
 0x214   : > { %v5341_v41 = vpop.f32.mrf.mxu0  ;;  %5778 = vmatmul.mubr.bf16.gmra.mxu0 %v7930_v49  ;;  %v7966_v49 = vld [vmem:[%s8283_s13 + $0x400] ss:$152 sps:$4 sm:$0xff]  }
 0x215   : > { %v5414_v4 = vpop.f32.mrf.mxu1  ;;  %5851 = vmatmul.mubr.bf16.gmra.mxu1 %v7939_v34  ;;  %v10089_v43 = vadd.f32 %v5410_v63, %v5338_v14  ;;  %v5342_v45 = vadd.f32 %v5341_v41, %v9849_v8  ;;  %5886 = vmatpush1.bf16.msra.mxu0 %v7933_v59  ;;  %v7953_v8 = vld [vmem:[%s10640_s1 + $0x1034] ss:$8 sps:$4 sm:$0xff]   ;;  %v7975_v34 = vld [vmem:[%s8283_s13 + $0x408] ss:$152 sps:$4 sm:$0xff]  }
 0x216   : > { %5959 = vmatpush1.bf16.msra.mxu1 %v7936_v60  ;;  %v5343_v3 = vpop.f32.mrf.mxu0  ;;  %5887 = vmatprep.subr.bf16.mxu0 %v7944_v51  ;;  %v7972_v60 = vld [vmem:[%s10640_s1 + $0x1110] ss:$8 sps:$4 sm:$0xff]   ;;  %v7983_v51 = vld [vmem:[%s10640_s1 + $0x1104] ss:$8 sps:$4 sm:$0xff]  }
 0x217   : > { %v5416_v46 = vpop.f32.mrf.mxu1  ;;  %5960 = vmatprep.subr.bf16.mxu1 %v7947_v35  ;;  %v5344_v47 = vadd.f32 %v5343_v3, %v9858_v0  ;;  %v10105_v7 = vadd.f32 %v5414_v4, %v5342_v45  ;;  %5787 = vmatprep.mubr.bf16.mxu0 %v7950_v37  ;;  %v7951_v0 = vld [vmem:[%s10640_s1 + $0x1030] ss:$8 sps:$4 sm:$0xff]   ;;  %v8034_v37 = vld [vmem:[%s8283_s13 + $0x84] ss:$152 sps:$4 sm:$0xff]  }
 0x218   : > { %5860 = vmatprep.mubr.bf16.mxu1 %v7959_v2  ;;  %v5345_v9 = vpop.f32.mrf.mxu0  ;;  %v8037_v2 = vld [vmem:[%s8283_s13 + $0x8c] ss:$152 sps:$4 sm:$0xff]  }
 0x219   : > { %v5418_v29 = vpop.f32.mrf.mxu1  ;;  %v5346_v61 = vadd.f32 %v5345_v9, %v9869_v24  ;;  %v10110_v25 = vadd.f32 %v5416_v46, %v5344_v47  ;;  %5888 = vmatpush1.bf16.msra.mxu0 %v7942_v31  ;;  %v7962_v24 = vld [vmem:[%s10640_s1 + $0x1024] ss:$8 sps:$4 sm:$0xff]  }
 0x21a   : > { %5961 = vmatpush1.bf16.msra.mxu1 %v7945_v11  ;;  %v5347_v33 = vpop.f32.mrf.mxu0  ;;  %5889 = vmatprep.subr.bf16.mxu0 %v7953_v8  ;;  %v7978_v11 = vld [vmem:[%s10640_s1 + $0x1000] ss:$8 sps:$4 sm:$0xff]   ;;  %v7989_v8 = vld [vmem:[%s10640_s1 + $0x11f4] ss:$8 sps:$4 sm:$0xff]  }
 0x21b   : > { %v5420_v32 = vpop.f32.mrf.mxu1  ;;  %5962 = vmatprep.subr.bf16.mxu1 %v7956_v15  ;;  %v5348_v53 = vadd.f32 %v5347_v33, %v9877_v6  ;;  %v10125_v23 = vadd.f32 %v5418_v29, %v5346_v61  ;;  %v7960_v6 = vld [vmem:[%s10640_s1 + $0x1020] ss:$8 sps:$4 sm:$0xff]   ;;  %v7984_v61 = vld [vmem:[%s10640_s1 + $0x10f0] ss:$8 sps:$4 sm:$0xff]   ;;  %v7995_v33 = vld [vmem:[%s10640_s1 + $0x11e4] ss:$8 sps:$4 sm:$0xff]  }
 0x21c   : > { %v5351_v26 = vpop.f32.mrf.mxu0  ;;  %5788 = vmatmul.mubr.bf16.gmra.mxu0 %v7948_v42 }
 0x21d   : > { %v5424_v38 = vpop.f32.mrf.mxu1  ;;  %5861 = vmatmul.mubr.bf16.gmra.mxu1 %v7957_v57  ;;  %v5352_v10 = vadd.f32 %v5351_v26, %v9889_v44  ;;  %v10130_v1 = vadd.f32 %v5420_v32, %v5348_v53  ;;  %5890 = vmatpush1.bf16.msra.mxu0 %v7951_v0  ;;  %v7971_v44 = vld [vmem:[%s10640_s1 + $0x1014] ss:$8 sps:$4 sm:$0xff]   ;;  %v7990_v53 = vld [vmem:[%s10640_s1 + $0x10e0] ss:$8 sps:$4 sm:$0xff]   ;;  %v7996_v26 = vld [vmem:[%s10640_s1 + $0x10d0] ss:$8 sps:$4 sm:$0xff]  }
 0x21e   : > { %5963 = vmatpush1.bf16.msra.mxu1 %v7954_v22  ;;  %v5353_v52 = vpop.f32.mrf.mxu0  ;;  %5891 = vmatprep.subr.bf16.mxu0 %v7962_v24 }
 0x21f   : > { %v5426_v62 = vpop.f32.mrf.mxu1  ;;  %5964 = vmatprep.subr.bf16.mxu1 %v7965_v17  ;;  %v5354_v54 = vadd.f32 %v5353_v52, %v9897_v5  ;;  %v10145_v50 = vadd.f32 %v5424_v38, %v5352_v10  ;;  %5797 = vmatprep.mubr.bf16.mxu0 %v7968_v16  ;;  %v7969_v5 = vld [vmem:[%s10640_s1 + $0x1010] ss:$8 sps:$4 sm:$0xff]   ;;  %v7993_v16 = vld [vmem:[%s10640_s1 + $0x11e0] ss:$8 sps:$4 sm:$0xff]   ;;  %v8004_v10 = vld [vmem:[%s10640_s1 + $0x10c4] ss:$8 sps:$4 sm:$0xff]  }
 0x220   : > { %5870 = vmatprep.mubr.bf16.mxu1 %v7977_v30  ;;  %v5355_v13 = vpop.f32.mrf.mxu0  ;;  %v8001_v30 = vld [vmem:[%s10640_s1 + $0x11d4] ss:$8 sps:$4 sm:$0xff]   ;;  %v7999_v38 = vld [vmem:[%s10640_s1 + $0x11d0] ss:$8 sps:$4 sm:$0xff]   ;;  %v8005_v52 = vld [vmem:[%s10640_s1 + $0x11c0] ss:$8 sps:$4 sm:$0xff]  }
 0x221   : > { %v5428_v18 = vpop.f32.mrf.mxu1  ;;  %v5356_v27 = vadd.f32 %v5355_v13, %v9909_v19  ;;  %v10150_v59 = vadd.f32 %v5426_v62, %v5354_v54  ;;  %5892 = vmatpush1.bf16.msra.mxu0 %v7960_v6  ;;  %v7980_v19 = vld [vmem:[%s10640_s1 + $0x1004] ss:$8 sps:$4 sm:$0xff]   ;;  %v8010_v62 = vld [vmem:[%s10640_s1 + $0x10b4] ss:$8 sps:$4 sm:$0xff]   ;;  %v8011_v54 = vld [vmem:[%s10640_s1 + $0x11b0] ss:$8 sps:$4 sm:$0xff]  }
 0x222   : > { %5965 = vmatpush1.bf16.msra.mxu1 %v7963_v58  ;;  %v5357_v28 = vpop.f32.mrf.mxu0  ;;  %5893 = vmatprep.subr.bf16.mxu0 %v7971_v44  ;;  %v8007_v6 = vld [vmem:[%s10640_s1 + $0x11c4] ss:$8 sps:$4 sm:$0xff]   ;;  %v8002_v58 = vld [vmem:[%s10640_s1 + $0x10c0] ss:$8 sps:$4 sm:$0xff]   ;;  %v8013_v44 = vld [vmem:[%s10640_s1 + $0x11b4] ss:$8 sps:$4 sm:$0xff]  }
 0x223   : > { %v5430_v63 = vpop.f32.mrf.mxu1  ;;  %5966 = vmatprep.subr.bf16.mxu1 %v7974_v39  ;;  %v5358_v35 = vadd.f32 %v5357_v28, %v9917_v56  ;;  %v10165_v14 = vadd.f32 %v5428_v18, %v5356_v27  ;;  %v7981_v56 = vld [vmem:[%s10640_s1 + $0x1100] ss:$8 sps:$4 sm:$0xff]   ;;  %v8008_v39 = vld [vmem:[%s10640_s1 + $0x10b0] ss:$8 sps:$4 sm:$0xff]   ;;  %v8016_v13 = vld [vmem:[%s10640_s1 + $0x10a4] ss:$8 sps:$4 sm:$0xff]  }
 0x224   : > { %v5361_v41 = vpop.f32.mrf.mxu0  ;;  %5798 = vmatmul.mubr.bf16.gmra.mxu0 %v7966_v49  ;;  %v8019_v18 = vld [vmem:[%s10640_s1 + $0x11a4] ss:$8 sps:$4 sm:$0xff]   ;;  %v8014_v49 = vld [vmem:[%s10640_s1 + $0x10a0] ss:$8 sps:$4 sm:$0xff]   ;;  %v8022_v27 = vld [vmem:[%s10640_s1 + $0x1094] ss:$8 sps:$4 sm:$0xff]  }
 0x225   : > { %v5434_v4 = vpop.f32.mrf.mxu1  ;;  %5871 = vmatmul.mubr.bf16.gmra.mxu1 %v7975_v34  ;;  %v5362_v45 = vadd.f32 %v5361_v41, %v9929_v36  ;;  %v10170_v31 = vadd.f32 %v5430_v63, %v5358_v35  ;;  %5894 = vmatpush1.bf16.msra.mxu0 %v7969_v5  ;;  %v7986_v36 = vld [vmem:[%s10640_s1 + $0x10f4] ss:$8 sps:$4 sm:$0xff]   ;;  %v8017_v34 = vld [vmem:[%s10640_s1 + $0x11a0] ss:$8 sps:$4 sm:$0xff]   ;;  %v8023_v28 = vld [vmem:[%s10640_s1 + $0x1190] ss:$8 sps:$4 sm:$0xff]  }
 0x226   : > { %5967 = vmatpush1.bf16.msra.mxu1 %v7972_v60  ;;  %v5363_v3 = vpop.f32.mrf.mxu0  ;;  %5895 = vmatprep.subr.bf16.mxu0 %v7980_v19  ;;  %v8025_v5 = vld [vmem:[%s10640_s1 + $0x1194] ss:$8 sps:$4 sm:$0xff]   ;;  %v8020_v60 = vld [vmem:[%s10640_s1 + $0x1090] ss:$8 sps:$4 sm:$0xff]   ;;  %v8028_v63 = vld [vmem:[%s10640_s1 + $0x1084] ss:$8 sps:$4 sm:$0xff]  }
 0x227   : > { %v5436_v46 = vpop.f32.mrf.mxu1  ;;  %5968 = vmatprep.subr.bf16.mxu1 %v7983_v51  ;;  %v5364_v15 = vadd.f32 %v5363_v3, %v9935_v40  ;;  %v10185_v47 = vadd.f32 %v5434_v4, %v5362_v45  ;;  %5913 = vmatprep.mubr.bf16.mxu0 %v8034_v37  ;;  %v7987_v40 = vld [vmem:[%s10640_s1 + $0x11f0] ss:$8 sps:$4 sm:$0xff]   ;;  %v8031_v19 = vld [vmem:[%s10640_s1 + $0x1184] ss:$8 sps:$4 sm:$0xff]   ;;  %v8026_v51 = vld [vmem:[%s10640_s1 + $0x1080] ss:$8 sps:$4 sm:$0xff]  }
 0x228   : > { %5986 = vmatprep.mubr.bf16.mxu1 %v8037_v2  ;;  %v5365_v9 = vpop.f32.mrf.mxu0  ;;  %v8029_v35 = vld [vmem:[%s10640_s1 + $0x1180] ss:$8 sps:$4 sm:$0xff]   ;;  %v8040_v37 = vld [vmem:[%s10640_s1 + $0x1274] ss:$8 sps:$4 sm:$0xff]   ;;  %v8038_v4 = vld [vmem:[%s10640_s1 + $0x1270] ss:$8 sps:$4 sm:$0xff]  }
 0x229   : > { %v5438_v29 = vpop.f32.mrf.mxu1  ;;  %v5366_v42 = vadd.f32 %v5365_v9, %v9947_v21  ;;  %v10188_v57 = vadd.f32 %v5436_v46, %v5364_v15  ;;  %5896 = vmatpush1.bf16.msra.mxu0 %v7978_v11  ;;  %v7992_v21 = vld [vmem:[%s10640_s1 + $0x10e4] ss:$8 sps:$4 sm:$0xff]   ;;  %v8032_v2 = vld [vmem:[%s8283_s13 + $0x80] ss:$152 sps:$4 sm:$0xff]  }
 0x22a   : > { %5969 = vmatpush1.bf16.msra.mxu1 %v7981_v56  ;;  %v5367_v0 = vpop.f32.mrf.mxu0  ;;  %5897 = vmatprep.subr.bf16.mxu0 %v7986_v36  ;;  %v8035_v41 = vld [vmem:[%s8283_s13 + $0x88] ss:$152 sps:$4 sm:$0xff]   ;;  %v8043_v45 = vld [vmem:[%s10640_s1 + $0x1264] ss:$8 sps:$4 sm:$0xff]   ;;  %v8052_v56 = vld [vmem:[%s8283_s13 + $0x1bc] ss:$152 sps:$4 sm:$0xff]  }
 0x22b   : > { %v5440_v22 = vpop.f32.mrf.mxu1  ;;  %5970 = vmatprep.subr.bf16.mxu1 %v7989_v8  ;;  %v5368_v32 = vadd.f32 %v5367_v0, %v9952_v55  ;;  %v10203_v24 = vadd.f32 %v5438_v29, %v5366_v42  ;;  %v7998_v55 = vld [vmem:[%s10640_s1 + $0x10d4] ss:$8 sps:$4 sm:$0xff]   ;;  %v8041_v8 = vld [vmem:[%s10640_s1 + $0x1260] ss:$8 sps:$4 sm:$0xff]  }
 0x22c   : > { %v8046_v11 = vld [vmem:[%s8283_s13 + $0x1b4] ss:$152 sps:$4 sm:$0xff]   ;;  %v8044_v0 = vld [vmem:[%s8283_s13 + $0x1b0] ss:$152 sps:$4 sm:$0xff]  }
 0x22d   : > { %v10205_v17 = vadd.f32 %v5440_v22, %v5368_v32  ;;  %5898 = vmatpush2.bf16.msra.mxu0 %v7984_v61  ;;  %v8049_v29 = vld [vmem:[%s10640_s1 + $0x1254] ss:$8 sps:$4 sm:$0xff]   ;;  %v8050_v22 = vld [vmem:[%s8283_s13 + $0x1b8] ss:$152 sps:$4 sm:$0xff]  }
 0x22e   : > { %5971 = vmatpush2.bf16.msra.mxu1 %v7987_v40  ;;  %5899 = vmatprep.subr.bf16.mxu0 %v7992_v21  ;;  %v8047_v32 = vld [vmem:[%s10640_s1 + $0x1250] ss:$8 sps:$4 sm:$0xff]  }
 0x22f   : > { %5972 = vmatprep.subr.bf16.mxu1 %v7995_v33 }
 0x231   : > { %5900 = vmatpush2.bf16.msra.mxu0 %v7990_v53 }
 0x232   : > { %5973 = vmatpush2.bf16.msra.mxu1 %v7993_v16  ;;  %5901 = vmatprep.subr.bf16.mxu0 %v7998_v55  ;;  %v8055_v16 = vld [vmem:[%s10640_s1 + $0x1244] ss:$8 sps:$4 sm:$0xff]  }
 0x233   : > { %5974 = vmatprep.subr.bf16.mxu1 %v8001_v30 }
 0x235   : > { %5902 = vmatpush2.bf16.msra.mxu0 %v7996_v26  ;;  %v8058_v26 = vld [vmem:[%s8283_s13 + $0x2e4] ss:$152 sps:$4 sm:$0xff]  }
 0x236   : > { %5975 = vmatpush2.bf16.msra.mxu1 %v7999_v38  ;;  %5903 = vmatprep.subr.bf16.mxu0 %v8004_v10 }
 0x237   : > { %5976 = vmatprep.subr.bf16.mxu1 %v8007_v6 }
 0x239   : > { %5904 = vmatpush2.bf16.msra.mxu0 %v8002_v58 }
 0x23a   : > { %5977 = vmatpush2.bf16.msra.mxu1 %v8005_v52  ;;  %5905 = vmatprep.subr.bf16.mxu0 %v8010_v62  ;;  %v8053_v52 = vld [vmem:[%s10640_s1 + $0x1240] ss:$8 sps:$4 sm:$0xff]  }
 0x23b   : > { %5978 = vmatprep.subr.bf16.mxu1 %v8013_v44  ;;  %v8061_v44 = vld [vmem:[%s10640_s1 + $0x1234] ss:$8 sps:$4 sm:$0xff]  }
 0x23d   : > { %5906 = vmatpush2.bf16.msra.mxu0 %v8008_v39 }
 0x23e   : > { %5979 = vmatpush2.bf16.msra.mxu1 %v8011_v54  ;;  %5907 = vmatprep.subr.bf16.mxu0 %v8016_v13 }
 0x23f   : > { %5980 = vmatprep.subr.bf16.mxu1 %v8019_v18  ;;  %v8056_v18 = vld [vmem:[%s8283_s13 + $0x2e0] ss:$152 sps:$4 sm:$0xff]  }
 0x241   : > { %5908 = vmatpush2.bf16.msra.mxu0 %v8014_v49  ;;  %v8062_v49 = vld [vmem:[%s8283_s13 + $0x2e8] ss:$152 sps:$4 sm:$0xff]  }
 0x242   : > { %5981 = vmatpush2.bf16.msra.mxu1 %v8017_v34  ;;  %5909 = vmatprep.subr.bf16.mxu0 %v8022_v27 }
 0x243   : > { %5982 = vmatprep.subr.bf16.mxu1 %v8025_v5 }
 0x245   : > { %5910 = vmatpush2.bf16.msra.mxu0 %v8020_v60 }
 0x246   : > { %5983 = vmatpush2.bf16.msra.mxu1 %v8023_v28  ;;  %5911 = vmatprep.subr.bf16.mxu0 %v8028_v63  ;;  %v8067_v28 = vld [vmem:[%s10640_s1 + $0x1224] ss:$8 sps:$4 sm:$0xff]  }
 0x247   : > { %5984 = vmatprep.subr.bf16.mxu1 %v8031_v19 }
 0x249   : > { %5912 = vmatpush2.bf16.msra.mxu0 %v8026_v51  ;;  %v8076_v51 = vld [vmem:[%s8283_s13 + $0x41c] ss:$152 sps:$4 sm:$0xff]  }
 0x24a   : > { %5985 = vmatpush2.bf16.msra.mxu1 %v8029_v35  ;;  %6027 = vmatprep.subr.bf16.mxu0 %v8040_v37 }
 0x24b   : > { %6943 = vmatprep.subr.bf16.mxu1 %v8040_v37 }
 0x24c   : > { %v5477_v3 = vpop.f32.mrf.mxu0  ;;  %5914 = vmatmul.mubr.bf16.vlgmr.msra.gmra.mxu0 %v8032_v2 }
 0x24d   : > { %v5550_v46 = vpop.f32.mrf.mxu1  ;;  %5987 = vmatmul.mubr.bf16.vlgmr.msra.gmra.mxu1 %v8035_v41  ;;  %v5478_v36 = vadd.f32 %v5477_v3, %v10064_v48  ;;  %6028 = vmatpush1.bf16.msra.mxu0 %v8038_v4 }
 0x24e   : > { %6955 = vmatpush1.bf16.msra.mxu1 %v8038_v4  ;;  %v5479_v15 = vpop.f32.mrf.mxu0  ;;  %6029 = vmatprep.subr.bf16.mxu0 %v8043_v45 }
 0x24f   : > { %v5552_v9 = vpop.f32.mrf.mxu1  ;;  %6944 = vmatprep.subr.bf16.mxu1 %v8043_v45  ;;  %v10305_v42 = vadd.f32 %v5550_v46, %v5478_v36  ;;  %v5480_v61 = vadd.f32 %v5479_v15, %v10069_v20  ;;  %5923 = vmatprep.mubr.bf16.mxu0 %v8046_v11  ;;  %v8073_v11 = vld [vmem:[%s10640_s1 + $0x1214] ss:$8 sps:$4 sm:$0xff]   ;;  %v8068_v36 = vld [vmem:[%s8283_s13 + $0x410] ss:$152 sps:$4 sm:$0xff]  }
 0x250   : > { %5996 = vmatprep.mubr.bf16.mxu1 %v8052_v56  ;;  %v5481_v48 = vpop.f32.mrf.mxu0 }
 0x251   : > { %v5554_v40 = vpop.f32.mrf.mxu1  ;;  %v10310_v21 = vadd.f32 %v5552_v9, %v5480_v61  ;;  %v5482_v33 = vadd.f32 %v5481_v48, %v10084_v12  ;;  %6030 = vmatpush1.bf16.msra.mxu0 %v8041_v8  ;;  %v8064_v12 = vld [vmem:[%s8283_s13 + $0x2ec] ss:$152 sps:$4 sm:$0xff]  }
 0x252   : > { %6956 = vmatpush1.bf16.msra.mxu1 %v8041_v8  ;;  %v5483_v53 = vpop.f32.mrf.mxu0  ;;  %6031 = vmatprep.subr.bf16.mxu0 %v8049_v29  ;;  %v8074_v8 = vld [vmem:[%s8283_s13 + $0x418] ss:$152 sps:$4 sm:$0xff]   ;;  %v8079_v48 = vld [vmem:[%s10640_s1 + $0x1204] ss:$8 sps:$4 sm:$0xff]  }
 0x253   : > { %v5556_v20 = vpop.f32.mrf.mxu1  ;;  %6945 = vmatprep.subr.bf16.mxu1 %v8049_v29  ;;  %v10319_v55 = vadd.f32 %v5554_v40, %v5482_v33  ;;  %v5484_v30 = vadd.f32 %v5483_v53, %v10089_v43 }
 0x254   : > { %v5487_v38 = vpop.f32.mrf.mxu0  ;;  %5924 = vmatmul.mubr.bf16.gmra.mxu0 %v8044_v0 }
 0x255   : > { %v5560_v10 = vpop.f32.mrf.mxu1  ;;  %5997 = vmatmul.mubr.bf16.gmra.mxu1 %v8050_v22  ;;  %v10324_v6 = vadd.f32 %v5556_v20, %v5484_v30  ;;  %v5488_v58 = vadd.f32 %v5487_v38, %v10105_v7  ;;  %6032 = vmatpush1.bf16.msra.mxu0 %v8047_v32  ;;  %v8097_v22 = vld [vmem:[%s8283_s13 + $0x2f4] ss:$152 sps:$4 sm:$0xff]  }
 0x256   : > { %6957 = vmatpush1.bf16.msra.mxu1 %v8047_v32  ;;  %v5489_v62 = vpop.f32.mrf.mxu0  ;;  %6033 = vmatprep.subr.bf16.mxu0 %v8055_v16 }
 0x257   : > { %v5562_v43 = vpop.f32.mrf.mxu1  ;;  %6946 = vmatprep.subr.bf16.mxu1 %v8055_v16  ;;  %v5490_v39 = vadd.f32 %v5489_v62, %v10110_v25  ;;  %v10334_v54 = vadd.f32 %v5560_v10, %v5488_v58  ;;  %5933 = vmatprep.mubr.bf16.mxu0 %v8058_v26  ;;  %v8059_v25 = vld [vmem:[%s10640_s1 + $0x1230] ss:$8 sps:$4 sm:$0xff]   ;;  %v8077_v16 = vld [vmem:[%s10640_s1 + $0x1200] ss:$8 sps:$4 sm:$0xff]   ;;  %v8082_v26 = vld [vmem:[%s10640_s1 + $0x12b4] ss:$8 sps:$4 sm:$0xff]  }
 0x258   : > { %6006 = vmatprep.mubr.bf16.mxu1 %v8064_v12  ;;  %v5491_v7 = vpop.f32.mrf.mxu0  ;;  %v8080_v62 = vld [vmem:[%s10640_s1 + $0x12b0] ss:$8 sps:$4 sm:$0xff]  }
 0x259   : > { %v5564_v13 = vpop.f32.mrf.mxu1  ;;  %v5492_v34 = vadd.f32 %v5491_v7, %v10125_v23  ;;  %v10339_v27 = vadd.f32 %v5562_v43, %v5490_v39  ;;  %6034 = vmatpush1.bf16.msra.mxu0 %v8053_v52  ;;  %v8070_v23 = vld [vmem:[%s8283_s13 + $0x414] ss:$152 sps:$4 sm:$0xff]  }
 0x25a   : > { %6958 = vmatpush1.bf16.msra.mxu1 %v8053_v52  ;;  %v5493_v5 = vpop.f32.mrf.mxu0  ;;  %6035 = vmatprep.subr.bf16.mxu0 %v8061_v44 }
 0x25b   : > { %v5566_v60 = vpop.f32.mrf.mxu1  ;;  %6947 = vmatprep.subr.bf16.mxu1 %v8061_v44  ;;  %v5494_v63 = vadd.f32 %v5493_v5, %v10130_v1  ;;  %v10348_v19 = vadd.f32 %v5564_v13, %v5492_v34  ;;  %v8065_v1 = vld [vmem:[%s10640_s1 + $0x1220] ss:$8 sps:$4 sm:$0xff]   ;;  %v8085_v44 = vld [vmem:[%s10640_s1 + $0x12a4] ss:$8 sps:$4 sm:$0xff]  }
 0x25c   : > { %v5497_v35 = vpop.f32.mrf.mxu0  ;;  %5934 = vmatmul.mubr.bf16.gmra.mxu0 %v8056_v18  ;;  %v8083_v13 = vld [vmem:[%s10640_s1 + $0x12a0] ss:$8 sps:$4 sm:$0xff]   ;;  %v8088_v18 = vld [vmem:[%s10640_s1 + $0x1294] ss:$8 sps:$4 sm:$0xff]  }
 0x25d   : > { %v5570_v37 = vpop.f32.mrf.mxu1  ;;  %6007 = vmatmul.mubr.bf16.gmra.mxu1 %v8062_v49  ;;  %v5498_v2 = vadd.f32 %v5497_v35, %v10145_v50  ;;  %v10353_v41 = vadd.f32 %v5566_v60, %v5494_v63  ;;  %6036 = vmatpush1.bf16.msra.mxu0 %v8059_v25  ;;  %v8091_v49 = vld [vmem:[%s10640_s1 + $0x1284] ss:$8 sps:$4 sm:$0xff]   ;;  %v8089_v34 = vld [vmem:[%s10640_s1 + $0x1280] ss:$8 sps:$4 sm:$0xff]  }
 0x25e   : > { %6959 = vmatpush1.bf16.msra.mxu1 %v8059_v25  ;;  %v5499_v4 = vpop.f32.mrf.mxu0  ;;  %6037 = vmatprep.subr.bf16.mxu0 %v8067_v28  ;;  %v8092_v25 = vld [vmem:[%s8283_s13 + $0x90] ss:$152 sps:$4 sm:$0xff]   ;;  %v8098_v60 = vld [vmem:[%s8283_s13 + $0x1c4] ss:$152 sps:$4 sm:$0xff]   ;;  %v8102_v63 = vld [vmem:[%s8283_s13 + $0x1c0] ss:$152 sps:$4 sm:$0xff]  }
 0x25f   : > { %v5572_v45 = vpop.f32.mrf.mxu1  ;;  %6948 = vmatprep.subr.bf16.mxu1 %v8067_v28  ;;  %v5500_v50 = vadd.f32 %v5499_v4, %v10150_v59  ;;  %v10362_v56 = vadd.f32 %v5570_v37, %v5498_v2  ;;  %5943 = vmatprep.mubr.bf16.mxu0 %v8070_v23  ;;  %v8071_v59 = vld [vmem:[%s10640_s1 + $0x1210] ss:$8 sps:$4 sm:$0xff]   ;;  %v8100_v28 = vld [vmem:[%s8283_s13 + $0x424] ss:$152 sps:$4 sm:$0xff]  }
 0x260   : > { %6016 = vmatprep.mubr.bf16.mxu1 %v8076_v51  ;;  %v5501_v3 = vpop.f32.mrf.mxu0  ;;  %v8095_v5 = vld [vmem:[%s8283_s13 + $0x2f0] ss:$152 sps:$4 sm:$0xff]   ;;  %v8103_v23 = vld [vmem:[%s8283_s13 + $0x420] ss:$152 sps:$4 sm:$0xff]  }
 0x261   : > { %v5574_v46 = vpop.f32.mrf.mxu1  ;;  %v5502_v15 = vadd.f32 %v5501_v3, %v10165_v14  ;;  %v10367_v9 = vadd.f32 %v5572_v45, %v5500_v50  ;;  %6038 = vmatpush1.bf16.msra.mxu0 %v8065_v1  ;;  %v8094_v14 = vld [vmem:[%s8283_s13 + $0x94] ss:$152 sps:$4 sm:$0xff]   ;;  %s6942_s13 = sshll.u32 %s10686_s24, 4 }
 0x262   : > { %6960 = vmatpush1.bf16.msra.mxu1 %v8065_v1  ;;  %v5503_v29 = vpop.f32.mrf.mxu0  ;;  %6039 = vmatprep.subr.bf16.mxu0 %v8073_v11  ;;  %s10586_s17 = scalar_lea.vmem %s10642_s3, %s6942_s13 }
 0x263   : > { %v5576_v61 = vpop.f32.mrf.mxu1  ;;  %6949 = vmatprep.subr.bf16.mxu1 %v8073_v11  ;;  %v5504_v40 = vadd.f32 %v5503_v29, %v10170_v31  ;;  %v10376_v0 = vadd.f32 %v5574_v46, %v5502_v15 }
 0x264   : > { %v5507_v33 = vpop.f32.mrf.mxu0  ;;  %5944 = vmatmul.mubr.bf16.gmra.mxu0 %v8068_v36 }
 0x265   : > { %v5580_v32 = vpop.f32.mrf.mxu1  ;;  %6017 = vmatmul.mubr.bf16.gmra.mxu1 %v8074_v8  ;;  %v5508_v53 = vadd.f32 %v5507_v33, %v10185_v47  ;;  %v10381_v20 = vadd.f32 %v5576_v61, %v5504_v40  ;;  %6040 = vmatpush1.bf16.msra.mxu0 %v8071_v59 }
 0x266   : > { %6961 = vmatpush1.bf16.msra.mxu1 %v8071_v59  ;;  %v5509_v31 = vpop.f32.mrf.mxu0  ;;  %6041 = vmatprep.subr.bf16.mxu0 %v8079_v48 }
 0x267   : > { %v5582_v30 = vpop.f32.mrf.mxu1  ;;  %6950 = vmatprep.subr.bf16.mxu1 %v8079_v48  ;;  %v5510_v12 = vadd.f32 %v5509_v31, %v10188_v57  ;;  %v10390_v38 = vadd.f32 %v5580_v32, %v5508_v53  ;;  %6936 = vmatprep.mubr.msk.bf16.mxu0 %vm4700_vm0, %v8094_v14 }
 0x268   : > { %6938 = vmatprep.mubr.msk.bf16.mxu1 %vm4700_vm0, %v8097_v22  ;;  %v5511_v47 = vpop.f32.mrf.mxu0 }
 0x269   : > { %v5584_v10 = vpop.f32.mrf.mxu1  ;;  %v5512_v58 = vadd.f32 %v5511_v47, %v10203_v24  ;;  %v10395_v52 = vadd.f32 %v5582_v30, %v5510_v12  ;;  %6042 = vmatpush1.bf16.msra.mxu0 %v8077_v16 }
 0x26a   : > { %6962 = vmatpush1.bf16.msra.mxu1 %v8077_v16  ;;  %v5513_v43 = vpop.f32.mrf.mxu0  ;;  %6051 = vmatprep.subr.bf16.mxu0 %v8082_v26 }
 0x26b   : > { %v5586_v57 = vpop.f32.mrf.mxu1  ;;  %6951 = vmatprep.subr.bf16.mxu1 %v8082_v26  ;;  %v5514_v39 = vadd.f32 %v5513_v43, %v10205_v17  ;;  %v10404_v7 = vadd.f32 %v5584_v10, %v5512_v58  ;;  %v8086_v17 = vld [vmem:[%s10640_s1 + $0x1290] ss:$8 sps:$4 sm:$0xff]  }
 0x26d   : > { %v10406_v24 = vadd.f32 %v5586_v57, %v5514_v39  ;;  %6052 = vmatpush2.bf16.msra.mxu0 %v8080_v62 }
 0x26e   : > { %6963 = vmatpush2.bf16.msra.mxu1 %v8080_v62  ;;  %6053 = vmatprep.subr.bf16.mxu0 %v8085_v44 }
 0x26f   : > { %6952 = vmatprep.subr.bf16.mxu1 %v8085_v44 }
 0x271   : > { %6054 = vmatpush2.bf16.msra.mxu0 %v8083_v13 }
 0x272   : > { %6964 = vmatpush2.bf16.msra.mxu1 %v8083_v13  ;;  %6055 = vmatprep.subr.bf16.mxu0 %v8088_v18 }
 0x273   : > { %6953 = vmatprep.subr.bf16.mxu1 %v8088_v18 }
 0x275   : > { %6056 = vmatpush2.bf16.msra.mxu0 %v8086_v17 }
 0x276   : > { %6965 = vmatpush2.bf16.msra.mxu1 %v8086_v17  ;;  %6057 = vmatprep.subr.bf16.mxu0 %v8091_v49 }
 0x277   : > { %6954 = vmatprep.subr.bf16.mxu1 %v8091_v49 }
 0x279   : > { %6058 = vmatpush2.bf16.msra.mxu0 %v8089_v34 }
 0x27a   : > { %6966 = vmatpush2.bf16.msra.mxu1 %v8089_v34 }
 0x27c   : > { %6060 = vmatmul.mubr.bf16.vlgmr.msra.gmra.mxu0 %v8092_v25 }
 0x27d   : > { %6080 = vmatmul.mubr.bf16.vlgmr.msra.gmra.mxu1 %v8095_v5  ;;  %6937 = vmatprep.mubr.msk.bf16.mxu0 %vm4700_vm0, %v8098_v60 }
 0x27e   : > { %6939 = vmatprep.mubr.msk.bf16.mxu1 %vm4700_vm0, %v8100_v28 }
 0x284   : > { %6070 = vmatmul.mubr.bf16.gmra.mxu0 %v8102_v63 }
 0x285   : > { %6090 = vmatmul.mubr.bf16.gmra.mxu1 %v8103_v23 }
 0x28c   : > { %v5623_v51 = vpop.f32.mrf.mxu0 }
 0x28d   : > { %v5696_v35 = vpop.f32.mrf.mxu1  ;;  %v5624_v37 = vadd.f32 %v5623_v51, %v10305_v42 }
 0x28e   : > { %v5625_v2 = vpop.f32.mrf.mxu0 }
 0x28f   : > { %v5698_v1 = vpop.f32.mrf.mxu1  ;;  %v10432_v4 = vadd.f32 %v5696_v35, %v5624_v37  ;;  %v5626_v45 = vadd.f32 %v5625_v2, %v10310_v21 }
 0x290   : > { %v5627_v11 = vpop.f32.mrf.mxu0 }
 0x291   : > { %v5700_v50 = vpop.f32.mrf.mxu1  ;;  %v10435_v3 = vadd.f32 %v5698_v1, %v5626_v45  ;;  %v5628_v46 = vadd.f32 %v5627_v11, %v10319_v55 }
 0x292   : > { %v5629_v36 = vpop.f32.mrf.mxu0 }
 0x293   : > { %v5702_v8 = vpop.f32.mrf.mxu1  ;;  %v10438_v15 = vadd.f32 %v5700_v50, %v5628_v46  ;;  %v5630_v59 = vadd.f32 %v5629_v36, %v10324_v6 }
 0x294   : > { %v5633_v29 = vpop.f32.mrf.mxu0 }
 0x295   : > { %v5706_v42 = vpop.f32.mrf.mxu1  ;;  %v10441_v61 = vadd.f32 %v5702_v8, %v5630_v59  ;;  %v5634_v48 = vadd.f32 %v5633_v29, %v10334_v54 }
 0x296   : > { %v5635_v40 = vpop.f32.mrf.mxu0 }
 0x297   : > { %v5708_v21 = vpop.f32.mrf.mxu1  ;;  %v5636_v14 = vadd.f32 %v5635_v40, %v10339_v27  ;;  %v10445_v22 = vadd.f32 %v5706_v42, %v5634_v48 }
 0x298   : > { %v5637_v33 = vpop.f32.mrf.mxu0 }
 0x299   : > { %v5710_v55 = vpop.f32.mrf.mxu1  ;;  %v5638_v32 = vadd.f32 %v5637_v33, %v10348_v19  ;;  %v10448_v53 = vadd.f32 %v5708_v21, %v5636_v14 }
 0x29a   : > { %v5639_v16 = vpop.f32.mrf.mxu0 }
 0x29b   : > { %v5712_v6 = vpop.f32.mrf.mxu1  ;;  %v5640_v31 = vadd.f32 %v5639_v16, %v10353_v41  ;;  %v10451_v30 = vadd.f32 %v5710_v55, %v5638_v32 }
 0x29c   : > { %v5643_v26 = vpop.f32.mrf.mxu0 }
 0x29d   : > { %v5716_v54 = vpop.f32.mrf.mxu1  ;;  %v5644_v12 = vadd.f32 %v5643_v26, %v10362_v56  ;;  %v10454_v47 = vadd.f32 %v5712_v6, %v5640_v31 }
 0x29e   : > { %v5645_v27 = vpop.f32.mrf.mxu0 }
 0x29f   : > { %v5718_v10 = vpop.f32.mrf.mxu1  ;;  %v5646_v58 = vadd.f32 %v5645_v27, %v10367_v9  ;;  %v10457_v62 = vadd.f32 %v5716_v54, %v5644_v12 }
 0x2a0   : > { %v5647_v19 = vpop.f32.mrf.mxu0 }
 0x2a1   : > { %v5720_v43 = vpop.f32.mrf.mxu1  ;;  %v5648_v57 = vadd.f32 %v5647_v19, %v10376_v0  ;;  %v10460_v44 = vadd.f32 %v5718_v10, %v5646_v58 }
 0x2a2   : > { %v5649_v41 = vpop.f32.mrf.mxu0 }
 0x2a3   : > { %v5722_v39 = vpop.f32.mrf.mxu1  ;;  %v5650_v13 = vadd.f32 %v5649_v41, %v10381_v20  ;;  %v10463_v18 = vadd.f32 %v5720_v43, %v5648_v57 }
 0x2a4   : > { %v5653_v56 = vpop.f32.mrf.mxu0 }
 0x2a5   : > { %v5726_v17 = vpop.f32.mrf.mxu1  ;;  %v5654_v49 = vadd.f32 %v5653_v56, %v10390_v38  ;;  %v10466_v34 = vadd.f32 %v5722_v39, %v5650_v13 }
 0x2a6   : > { %v5655_v9 = vpop.f32.mrf.mxu0 }
 0x2a7   : > { %v5728_v25 = vpop.f32.mrf.mxu1  ;;  %v5656_v5 = vadd.f32 %v5655_v9, %v10395_v52  ;;  %v10469_v60 = vadd.f32 %v5726_v17, %v5654_v49 }
 0x2a8   : > { %v5657_v0 = vpop.f32.mrf.mxu0 }
 0x2a9   : > { %v5730_v28 = vpop.f32.mrf.mxu1  ;;  %v5658_v63 = vadd.f32 %v5657_v0, %v10404_v7  ;;  %v10472_v23 = vadd.f32 %v5728_v25, %v5656_v5 }
 0x2aa   : > { %v5659_v20 = vpop.f32.mrf.mxu0 }
 0x2ab   : > { %v5732_v51 = vpop.f32.mrf.mxu1  ;;  %v5660_v35 = vadd.f32 %v5659_v20, %v10406_v24  ;;  %v10475_v37 = vadd.f32 %v5730_v28, %v5658_v63 }
 0x2ad   : > { %v10477_v38 = vadd.f32 %v5732_v51, %v5660_v35 }
 0x2af   : > { %10643 = vst [vmem:[#allocation2_spill] sm:$0xff] %v10477_v38 }
 0x2cc   : > { %v5769_v2 = vpop.f32.mrf.mxu0 }
 0x2cd   : > { %v10479_v1 = vpop.f32.mrf.mxu1 }
 0x2ce   : > { %v5771_v52 = vpop.f32.mrf.mxu0 }
 0x2cf   : > { %v10481_v45 = vpop.f32.mrf.mxu1 }
 0x2d0   : > { %v5773_v11 = vpop.f32.mrf.mxu0 }
 0x2d1   : > { %v10483_v50 = vpop.f32.mrf.mxu1 }
 0x2d2   : > { %v5775_v7 = vpop.f32.mrf.mxu0 }
 0x2d3   : > { %v10485_v46 = vpop.f32.mrf.mxu1 }
 0x2d4   : > { %v5779_v36 = vpop.f32.mrf.mxu0 }
 0x2d5   : > { %v10487_v8 = vpop.f32.mrf.mxu1 }
 0x2d6   : > { %v5781_v24 = vpop.f32.mrf.mxu0 }
 0x2d7   : > { %v10489_v59 = vpop.f32.mrf.mxu1 }
 0x2d8   : > { %v10491_v29 = vpop.f32.mrf.mxu0 }
 0x2d9   : > { %v10493_v42 = vpop.f32.mrf.mxu1 }
 0x2da   : > { %10644 = vst [vmem:[#allocation3_spill] sm:$0xff] %v10493_v42  ;;  %v10495_v48 = vpop.f32.mrf.mxu0 }
 0x2db   : > { %v10497_v40 = vpop.f32.mrf.mxu1 }
 0x2dc   : > { %10645 = vst [vmem:[#allocation4_spill] sm:$0xff] %v10497_v40  ;;  %v5789_v21 = vpop.f32.mrf.mxu0 }
 0x2dd   : > { %v5862_v14 = vpop.f32.mrf.mxu1 }
 0x2de   : > { %v5791_v33 = vpop.f32.mrf.mxu0 }
 0x2df   : > { %v5864_v55 = vpop.f32.mrf.mxu1  ;;  %v5792_v38 = vadd.f32 %v5791_v33, %v10460_v44 }
 0x2e0   : > { %v5793_v32 = vpop.f32.mrf.mxu0 }
 0x2e1   : > { %v10499_v16 = vpop.f32.mrf.mxu1  ;;  %v5865_v44 = vadd.f32 %v5864_v55, %v5792_v38  ;;  %v5786_v38 = vadd.f32 %v10495_v48, %v10454_v47 }
 0x2e2   : > { %v5795_v6 = vpop.f32.mrf.mxu0 }
 0x2e3   : > { %v10501_v31 = vpop.f32.mrf.mxu1 }
 0x2e4   : > { %v5799_v26 = vpop.f32.mrf.mxu0 }
 0x2e5   : > { %v10503_v54 = vpop.f32.mrf.mxu1 }
 0x2e6   : > { %v10505_v12 = vpop.f32.mrf.mxu0 }
 0x2e7   : > { %v10507_v27 = vpop.f32.mrf.mxu1 }
 0x2e8   : > { %10646 = vst [vmem:[#allocation5_spill] sm:$0xff] %v10507_v27  ;;  %v10509_v10 = vpop.f32.mrf.mxu0  ;;  %v5774_v27 = vadd.f32 %v5773_v11, %v10438_v15  ;;  %v5796_v15 = vadd.f32 %v5795_v6, %v10466_v34 }
 0x2e9   : > { %10647 = vst [vmem:[#allocation6_spill] sm:$0xff] %v10509_v10  ;;  %v10511_v58 = vpop.f32.mrf.mxu1 }
 0x2ea   : > { %10648 = vst [vmem:[#allocation7_spill] sm:$0xff] %v10511_v58  ;;  %v10513_v19 = vpop.f32.mrf.mxu0 }
 0x2eb   : > { %10649 = vst [vmem:[#allocation8_spill] sm:$0xff] %v10513_v19  ;;  %v10515_v43 = vpop.f32.mrf.mxu1 }
 0x2ec   : > { %10650 = vst [vmem:[#allocation9_spill] sm:$0xff] %v10515_v43 }
 0x2f0   : > { %v10664_v55 = vld [vmem:[#allocation6_spill] sm:$0xff] }
 0x30c   : > { %v5915_v57 = vpop.f32.mrf.mxu0 }
 0x30d   : > { %v5988_v41 = vpop.f32.mrf.mxu1 }
 0x30e   : > { %v5917_v39 = vpop.f32.mrf.mxu0 }
 0x30f   : > { %v10517_v13 = vpop.f32.mrf.mxu1 }
 0x310   : > { %10651 = vst [vmem:[#allocation10_spill] sm:$0xff] %v10517_v13  ;;  %v5919_v56 = vpop.f32.mrf.mxu0  ;;  %v5776_v13 = vadd.f32 %v5775_v7, %v10441_v61 }
 0x311   : > { %v10519_v17 = vpop.f32.mrf.mxu1 }
 0x312   : > { %10652 = vst [vmem:[#allocation11_spill] sm:$0xff] %v10519_v17  ;;  %v5921_v49 = vpop.f32.mrf.mxu0 }
 0x313   : > { %v10521_v9 = vpop.f32.mrf.mxu1 }
 0x314   : > { %10653 = vst [vmem:[#allocation12_spill] sm:$0xff] %v10521_v9  ;;  %v10523_v25 = vpop.f32.mrf.mxu0 }
 0x315   : > { %10654 = vst [vmem:[#allocation13_spill] sm:$0xff] %v10523_v25  ;;  %v10525_v5 = vpop.f32.mrf.mxu1 }
 0x316   : > { %10655 = vst [vmem:[#allocation14_spill] sm:$0xff] %v10525_v5  ;;  %v10527_v0 = vpop.f32.mrf.mxu0 }
 0x317   : > { %10656 = vst [vmem:[#allocation15_spill] sm:$0xff] %v10527_v0  ;;  %v10529_v28 = vpop.f32.mrf.mxu1 }
 0x318   : > { %10657 = vst [vmem:[#allocation16_spill] sm:$0xff] %v10529_v28  ;;  %v10531_v63 = vpop.f32.mrf.mxu0  ;;  %v5770_v28 = vadd.f32 %v5769_v2, %v10432_v4  ;;  %v5794_v4 = vadd.f32 %v5793_v32, %v10463_v18  ;;  %v5800_v18 = vadd.f32 %v5799_v26, %v10469_v60  ;;  %v10665_v32 = vld [vmem:[#allocation10_spill] sm:$0xff]  ;;  %v10666_v26 = vld [vmem:[#allocation5_spill] sm:$0xff] }
 0x319   : > { %10658 = vst [vmem:[#allocation17_spill] sm:$0xff] %v10531_v63  ;;  %v10533_v20 = vpop.f32.mrf.mxu1 }
 0x31a   : > { %10659 = vst [vmem:[#allocation18_spill] sm:$0xff] %v10533_v20  ;;  %v10535_v51 = vpop.f32.mrf.mxu0  ;;  %v5790_v20 = vadd.f32 %v5789_v21, %v10457_v62  ;;  %v5873_v33 = vadd.f32 %v10503_v54, %v5800_v18  ;;  %v10677_v18 = vld [vmem:[#allocation9_spill] sm:$0xff] }
 0x31b   : > { %10660 = vst [vmem:[#allocation19_spill] sm:$0xff] %v10535_v51  ;;  %v10537_v35 = vpop.f32.mrf.mxu1  ;;  %v5772_v51 = vadd.f32 %v5771_v52, %v10435_v3  ;;  %v5782_v3 = vadd.f32 %v5781_v24, %v10448_v53  ;;  %v5784_v53 = vadd.f32 %v10491_v29, %v10451_v30 }
 0x31c   : > { %10661 = vst [vmem:[#allocation20_spill] sm:$0xff] %v10537_v35  ;;  %v5935_v43 = vpop.f32.mrf.mxu0  ;;  %v5863_v10 = vadd.f32 %v5862_v14, %v5790_v20  ;;  %v10673_v20 = vld [vmem:[#allocation12_spill] sm:$0xff] }
 0x31d   : > { %v6008_v40 = vpop.f32.mrf.mxu1  ;;  %v5845_v62 = vadd.f32 %v10481_v45, %v5772_v51  ;;  %v5855_v34 = vadd.f32 %v10489_v59, %v5782_v3  ;;  %v5804_v59 = vadd.f32 %v10664_v55, %v10475_v37  ;;  %v10668_v37 = vld [vmem:[#allocation8_spill] sm:$0xff] }
 0x31e   : > { %v5937_v58 = vpop.f32.mrf.mxu0  ;;  %v5936_v11 = vadd.f32 %v5935_v43, %v5863_v10  ;;  %v10669_v10 = vld [vmem:[#allocation11_spill] sm:$0xff] }
 0x31f   : > { %v6010_v9 = vpop.f32.mrf.mxu1  ;;  %v5918_v7 = vadd.f32 %v5917_v39, %v5845_v62  ;;  %v5938_v24 = vadd.f32 %v5937_v58, %v5865_v44 }
 0x320   : > { %v5939_v42 = vpop.f32.mrf.mxu0  ;;  %v6009_v30 = vadd.f32 %v6008_v40, %v5936_v11 }
 0x321   : > { %v6012_v25 = vpop.f32.mrf.mxu1  ;;  %v6011_v6 = vadd.f32 %v6010_v9, %v5938_v24 }
 0x322   : > { %v5941_v17 = vpop.f32.mrf.mxu0 }
 0x323   : > { %v10539_v5 = vpop.f32.mrf.mxu1 }
 0x324   : > { %10662 = vst [vmem:[#allocation21_spill] sm:$0xff] %v10539_v5  ;;  %v5945_v0 = vpop.f32.mrf.mxu0  ;;  %v5843_v5 = vadd.f32 %v10479_v1, %v5770_v28  ;;  %v5847_v1 = vadd.f32 %v10483_v50, %v5774_v27  ;;  %v5802_v50 = vadd.f32 %v10505_v12, %v10472_v23  ;;  %v10667_v12 = vld [vmem:[#allocation2_spill] sm:$0xff] }
 0x325   : > { %v10541_v19 = vpop.f32.mrf.mxu1  ;;  %v5806_v27 = vadd.f32 %v10668_v37, %v10667_v12  ;;  %v10684_v12 = vld [vmem:[#allocation20_spill] sm:$0xff] }
 0x326   : > { %10663 = vst [vmem:[#allocation22_spill] sm:$0xff] %v10541_v19  ;;  %v10546_v63 = vpop.f32.mrf.mxu0  ;;  %v5780_v19 = vadd.f32 %v5779_v36, %v10445_v22  ;;  %v5916_v61 = vadd.f32 %v5915_v57, %v5843_v5  ;;  %v5849_v22 = vadd.f32 %v10485_v46, %v5776_v13  ;;  %v5867_v36 = vadd.f32 %v10499_v16, %v5794_v4  ;;  %v10672_v5 = vld [vmem:[#allocation7_spill] sm:$0xff] }
 0x327   : > { %v10548_v35 = vpop.f32.mrf.mxu1  ;;  %v5920_v46 = vadd.f32 %v5919_v56, %v5847_v1  ;;  %v5991_v16 = vadd.f32 %v10665_v32, %v5918_v7  ;;  %v5875_v54 = vadd.f32 %v10666_v26, %v5802_v50  ;;  %v5946_v13 = vadd.f32 %v5945_v0, %v5873_v33  ;;  %v10674_v4 = vld [vmem:[#allocation15_spill] sm:$0xff]  ;;  %v10676_v1 = vld [vmem:[#allocation4_spill] sm:$0xff] }
 0x328   : > { %v10558_v2 = vpop.f32.mrf.mxu0  ;;  %v5853_v45 = vadd.f32 %v10487_v8, %v5780_v19  ;;  %v5869_v8 = vadd.f32 %v10501_v31, %v5796_v15  ;;  %v5989_v14 = vadd.f32 %v5988_v41, %v5916_v61  ;;  %v5940_v29 = vadd.f32 %v5939_v42, %v5867_v36  ;;  %v10670_v19 = vld [vmem:[#allocation13_spill] sm:$0xff]  ;;  %v10682_v33 = vld [vmem:[#allocation19_spill] sm:$0xff] }
 0x329   : > { %v10560_v52 = vpop.f32.mrf.mxu1  ;;  %v5922_v47 = vadd.f32 %v5921_v49, %v5849_v22  ;;  %v5993_v58 = vadd.f32 %v10669_v10, %v5920_v46  ;;  %v10671_v49 = vld [vmem:[#allocation3_spill] sm:$0xff]  ;;  %v5877_v28 = vadd.f32 %v10672_v5, %v5804_v59  ;;  %v5928_v62 = vadd.f32 %v10674_v4, %v5855_v34  ;;  %v10679_v36 = vld [vmem:[#allocation17_spill] sm:$0xff] }
 0x32a   : > { %v5951_v60 = vpop.f32.mrf.mxu0  ;;  %v5942_v40 = vadd.f32 %v5941_v17, %v5869_v8  ;;  %v5926_v43 = vadd.f32 %v10670_v19, %v5853_v45  ;;  %v6013_v39 = vadd.f32 %v6012_v25, %v5940_v29  ;;  %v5857_v9 = vadd.f32 %v10671_v49, %v5784_v53  ;;  %v10678_v45 = vld [vmem:[#allocation14_spill] sm:$0xff] }
 0x32b   : > { %v10576_v21 = vpop.f32.mrf.mxu1  ;;  %v5995_v51 = vadd.f32 %v10673_v20, %v5922_v47  ;;  %v10675_v15 = vld [vmem:[#allocation21_spill] sm:$0xff]  ;;  %v5948_v25 = vadd.f32 %v10546_v63, %v5875_v54  ;;  %v5859_v22 = vadd.f32 %v10676_v1, %v5786_v38  ;;  %v5879_v7 = vadd.f32 %v10677_v18, %v5806_v27  ;;  %v10681_v38 = vld [vmem:[#allocation16_spill] sm:$0xff] }
 0x32c   : > { %v6015_v61 = vadd.f32 %v10675_v15, %v5942_v40  ;;  %v5999_v53 = vadd.f32 %v10678_v45, %v5926_v43  ;;  %v5930_v24 = vadd.f32 %v10679_v36, %v5857_v9  ;;  %v5950_v8 = vadd.f32 %v10558_v2, %v5877_v28  ;;  %v10683_v40 = vld [vmem:[#allocation18_spill] sm:$0xff] }
 0x32d   : > { %v10680_v46 = vld [vmem:[#allocation22_spill] sm:$0xff]  ;;  %v6001_v29 = vadd.f32 %v10681_v38, %v5928_v62  ;;  %v5932_v55 = vadd.f32 %v10682_v33, %v5859_v22  ;;  %v5952_v47 = vadd.f32 %v5951_v60, %v5879_v7 }
 0x32e   : > { %v6019_v63 = vadd.f32 %v10680_v46, %v5946_v13 }
 0x32f   : > { %v6005_v37 = vadd.f32 %v10684_v12, %v5932_v55  ;;  %v6025_v27 = vadd.f32 %v10576_v21, %v5952_v47 }
 0x33c   : > { %v6061_v23 = vpop.f32.mrf.mxu0 }
 0x33d   : > { %v6081_v48 = vpop.f32.mrf.mxu1  ;;  %v6062_v42 = vadd.f32 %v6061_v23, %v5989_v14 }
 0x33e   : > { %v6082_v31 = vadd.f32 %v6081_v48, %v6009_v30  ;;  %v6063_v57 = vpop.f32.mrf.mxu0 }
 0x33f   : > { %v6083_v41 = vpop.f32.mrf.mxu1  ;;  %6100 = vst [vmem:[%s10586_s17] sm:$0xff] %v6062_v42  ;;  %v6064_v56 = vadd.f32 %v6063_v57, %v5991_v16  ;;  %v6021_v16 = vadd.f32 %v10548_v35, %v5948_v25  ;;  %v6003_v42 = vadd.f32 %v10683_v40, %v5930_v24 }
 0x340   : > { %6108 = vst [vmem:[%s10586_s17 + $0x40] sm:$0xff] %v6082_v31  ;;  %v6084_v17 = vadd.f32 %v6083_v41, %v6011_v6  ;;  %v6065_v3 = vpop.f32.mrf.mxu0  ;;  %v6023_v31 = vadd.f32 %v10560_v52, %v5950_v8 }
 0x341   : > { %v6085_v44 = vpop.f32.mrf.mxu1  ;;  %6101 = vst.msk [vmem:[%s10586_s17 + $0x8] sm:$0xff] %vm4700_vm0, %v6064_v56  ;;  %v6066_v0 = vadd.f32 %v6065_v3, %v5993_v58 }
 0x342   : > { %6109 = vst.msk [vmem:[%s10586_s17 + $0x48] sm:$0xff] %vm4700_vm0, %v6084_v17  ;;  %v6086_v11 = vadd.f32 %v6085_v44, %v6013_v39  ;;  %v6067_v34 = vpop.f32.mrf.mxu0 }
 0x343   : > { %v6087_v50 = vpop.f32.mrf.mxu1  ;;  %6102 = vst [vmem:[%s10586_s17 + $0x10] sm:$0xff] %v6066_v0  ;;  %v6068_v14 = vadd.f32 %v6067_v34, %v5995_v51 }
 0x344   : > { %6110 = vst [vmem:[%s10586_s17 + $0x50] sm:$0xff] %v6086_v11  ;;  %v6088_v30 = vadd.f32 %v6087_v50, %v6015_v61  ;;  %v6071_v59 = vpop.f32.mrf.mxu0 }
 0x345   : > { %v6091_v32 = vpop.f32.mrf.mxu1  ;;  %6103 = vst.msk [vmem:[%s10586_s17 + $0x18] sm:$0xff] %vm4700_vm0, %v6068_v14  ;;  %v6072_v2 = vadd.f32 %v6071_v59, %v5999_v53 }
 0x346   : > { %6111 = vst.msk [vmem:[%s10586_s17 + $0x58] sm:$0xff] %vm4700_vm0, %v6088_v30  ;;  %v6092_v23 = vadd.f32 %v6091_v32, %v6019_v63  ;;  %v6073_v48 = vpop.f32.mrf.mxu0 }
 0x347   : > { %v6093_v6 = vpop.f32.mrf.mxu1  ;;  %6104 = vst [vmem:[%s10586_s17 + $0x20] sm:$0xff] %v6072_v2  ;;  %v6074_v35 = vadd.f32 %v6073_v48, %v6001_v29 }
 0x348   : > { %6112 = vst [vmem:[%s10586_s17 + $0x60] sm:$0xff] %v6092_v23  ;;  %v6094_v60 = vadd.f32 %v6093_v6, %v6021_v16  ;;  %v6075_v26 = vpop.f32.mrf.mxu0 }
 0x349   : > { %v6095_v54 = vpop.f32.mrf.mxu1  ;;  %6105 = vst.msk [vmem:[%s10586_s17 + $0x28] sm:$0xff] %vm4700_vm0, %v6074_v35  ;;  %v6076_v10 = vadd.f32 %v6075_v26, %v6003_v42 }
 0x34a   : > { %6113 = vst.msk [vmem:[%s10586_s17 + $0x68] sm:$0xff] %vm4700_vm0, %v6094_v60  ;;  %v6096_v58 = vadd.f32 %v6095_v54, %v6023_v31  ;;  %v6077_v52 = vpop.f32.mrf.mxu0 }
 0x34b   : > { %v6097_v19 = vpop.f32.mrf.mxu1  ;;  %6106 = vst [vmem:[%s10586_s17 + $0x30] sm:$0xff] %v6076_v10  ;;  %v6078_v43 = vadd.f32 %v6077_v52, %v6005_v37 }
 0x34c   : > { %6114 = vst [vmem:[%s10586_s17 + $0x70] sm:$0xff] %v6096_v58  ;;  %v6098_v57 = vadd.f32 %v6097_v19, %v6025_v27 }
 0x34d   : > { %6107 = vst.msk [vmem:[%s10586_s17 + $0x38] sm:$0xff] %vm4700_vm0, %v6078_v43 }
 0x34e   : > { %6115 = vst.msk [vmem:[%s10586_s17 + $0x78] sm:$0xff] %vm4700_vm0, %v6098_v57 }
 0x34f PF: > { %s13_s12 = sadd.s32 1, %s8110_s12  }
 0x350   : > { %p10_p4 = scmp.ge.s32.totalorder %s13_s12, 4  }
 0x352   :  { %12 = sbr.rel (!%p10_p4) target bundleno = 1 (0x1), region = 62 }

// kernel: hyper_encoder_forward.25
= control target key start
LH: loop header
LB: loop body
LE: loop exit
PB: predicated region body
PF: predicated region fallthrough
CT: control target
= control target key end

     0   :  { %s6548_s12 = smov 0   ;;  %s8429_s0 = inlined_call_operand.vmem [shape: bf16[32,4800], index: 0, kind: input, shape index: {}]   ;;  %s8430_s1 = inlined_call_operand.vmem [shape: bf16[4800,192], index: 1, kind: input, shape index: {}]   ;;  %s8431_s2 = inlined_call_operand.vmem [shape: f32[1,192], index: 2, kind: input, shape index: {}]   ;;  %s8432_s3 = inlined_call_operand.vmem [shape: f32[32,192], index: 3, kind: output, shape index: {}]  }
   0x1 LB: > { %s4902_s13 = sadd.s32 4294967295, %s6526_s12   ;;  %p4906_p0 = scmp.ge.s32.totalorder %s6526_s12, 1  ;;  %s6526_s12 = sphi %s6548_s12, %s13_s12  }
   0x2   : > { %p139_p1 = scmp.lt.s32.totalorder %s6526_s12, 3 }
   0x4   : > { %p140_p2 = pnand %p4906_p0, %p139_p1 }
   0x6   : > { %143 = sbr.rel (%p140_p2) target bundleno = 838 (0x346), region = 32 }
   0xb   : > { %v5563_v0 = vld [vmem:[%s8430_s1 + $0x74] ss:$8 sps:$4 sm:$0xff]   ;;  %v5565_v1 = vld [vmem:[%s8430_s1 + $0x70] ss:$8 sps:$4 sm:$0xff]   ;;  %v5569_v4 = vld [vmem:[%s8430_s1 + $0x64] ss:$8 sps:$4 sm:$0xff]  }
   0xc   : > { %4023 = vmatprep.subr.bf16.mxu0 %v5563_v0  ;;  %v5566_v2 = vld [vmem:[%s8430_s1 + $0x174] ss:$8 sps:$4 sm:$0xff]   ;;  %v5568_v3 = vld [vmem:[%s8430_s1 + $0x170] ss:$8 sps:$4 sm:$0xff]   ;;  %v5571_v5 = vld [vmem:[%s8430_s1 + $0x60] ss:$8 sps:$4 sm:$0xff]  }
   0xd   : > { %4024 = vmatpush1.bf16.msra.mxu0 %v5565_v1  ;;  %4066 = vmatprep.subr.bf16.mxu1 %v5566_v2  ;;  %v5572_v6 = vld [vmem:[%s8430_s1 + $0x164] ss:$8 sps:$4 sm:$0xff]   ;;  %v5574_v7 = vld [vmem:[%s8430_s1 + $0x160] ss:$8 sps:$4 sm:$0xff]   ;;  %v5575_v8 = vld [vmem:[%s8430_s1 + $0x54] ss:$8 sps:$4 sm:$0xff]  }
   0xe   : > { %4067 = vmatpush1.bf16.msra.mxu1 %v5568_v3  ;;  %4025 = vmatprep.subr.bf16.mxu0 %v5569_v4  ;;  %v5577_v9 = vld [vmem:[%s8430_s1 + $0x50] ss:$8 sps:$4 sm:$0xff]   ;;  %v5578_v10 = vld [vmem:[%s8430_s1 + $0x154] ss:$8 sps:$4 sm:$0xff]   ;;  %v5581_v11 = vld [vmem:[%s8430_s1 + $0x44] ss:$8 sps:$4 sm:$0xff]  }
   0xf   : > { %4068 = vmatprep.subr.bf16.mxu1 %v5572_v6  ;;  %v5580_v12 = vld [vmem:[%s8430_s1 + $0x150] ss:$8 sps:$4 sm:$0xff]   ;;  %v5584_v13 = vld [vmem:[%s8430_s1 + $0x144] ss:$8 sps:$4 sm:$0xff]   ;;  %v5583_v14 = vld [vmem:[%s8430_s1 + $0x40] ss:$8 sps:$4 sm:$0xff]  }
  0x10   : > { %v5587_v15 = vld [vmem:[%s8430_s1 + $0x34] ss:$8 sps:$4 sm:$0xff]   ;;  %v5586_v16 = vld [vmem:[%s8430_s1 + $0x140] ss:$8 sps:$4 sm:$0xff]   ;;  %v5589_v18 = vld [vmem:[%s8430_s1 + $0x30] ss:$8 sps:$4 sm:$0xff]  }
  0x11   : > { %4026 = vmatpush1.bf16.msra.mxu0 %v5571_v5  ;;  %v5590_v17 = vld [vmem:[%s8430_s1 + $0x134] ss:$8 sps:$4 sm:$0xff]   ;;  %v5593_v19 = vld [vmem:[%s8430_s1 + $0x24] ss:$8 sps:$4 sm:$0xff]   ;;  %v5592_v20 = vld [vmem:[%s8430_s1 + $0x130] ss:$8 sps:$4 sm:$0xff]  }
  0x12   : > { %4027 = vmatprep.subr.bf16.mxu0 %v5575_v8  ;;  %4069 = vmatpush1.bf16.msra.mxu1 %v5574_v7  ;;  %v5596_v21 = vld [vmem:[%s8430_s1 + $0x124] ss:$8 sps:$4 sm:$0xff]   ;;  %v5595_v22 = vld [vmem:[%s8430_s1 + $0x20] ss:$8 sps:$4 sm:$0xff]   ;;  %v5599_v23 = vld [vmem:[%s8430_s1 + $0x14] ss:$8 sps:$4 sm:$0xff]  }
  0x13   : > { %4070 = vmatprep.subr.bf16.mxu1 %v5578_v10  ;;  %v5598_v24 = vld [vmem:[%s8430_s1 + $0x120] ss:$8 sps:$4 sm:$0xff]   ;;  %v5602_v25 = vld [vmem:[%s8430_s1 + $0x114] ss:$8 sps:$4 sm:$0xff]   ;;  %v5601_v26 = vld [vmem:[%s8430_s1 + $0x10] ss:$8 sps:$4 sm:$0xff]  }
  0x14   : > { %v5605_v27 = vld [vmem:[%s8430_s1 + $0x4] ss:$8 sps:$4 sm:$0xff]   ;;  %v5604_v28 = vld [vmem:[%s8430_s1 + $0x110] ss:$8 sps:$4 sm:$0xff]   ;;  %s4907_s22 = sshll.u32 %s4902_s13, 1  ;;  %vm4019_vm0 = vcmask 523264  }
  0x15   : > { %4028 = vmatpush1.bf16.msra.mxu0 %v5577_v9  ;;  %v5608_v29 = vld [vmem:[%s8430_s1 + $0x104] ss:$8 sps:$4 sm:$0xff]   ;;  %v5607_v30 = vld [vmem:[%s8430_s1] ss:$8 sps:$4 sm:$0xff]   ;;  %v5611_v31 = vld [vmem:[%s8430_s1 + $0xf4] ss:$8 sps:$4 sm:$0xff]  }
  0x16   : > { %4029 = vmatprep.subr.bf16.mxu0 %v5581_v11  ;;  %4071 = vmatpush1.bf16.msra.mxu1 %v5580_v12  ;;  %p166_p3 = scmp.lt.s32.totalorder %s4907_s22, 3  ;;  %v5610_v32 = vld [vmem:[%s8430_s1 + $0x100] ss:$8 sps:$4 sm:$0xff]   ;;  %v5614_v33 = vld [vmem:[%s8430_s1 + $0x1f4] ss:$8 sps:$4 sm:$0xff]  }
  0x17   : > { %4072 = vmatprep.subr.bf16.mxu1 %v5584_v13  ;;  %v5613_v34 = vld [vmem:[%s8430_s1 + $0xf0] ss:$8 sps:$4 sm:$0xff]   ;;  %v5617_v35 = vld [vmem:[%s8430_s1 + $0xe4] ss:$8 sps:$4 sm:$0xff]   ;;  %v5619_v38 = vld [vmem:[%s8430_s1 + $0xe0] ss:$8 sps:$4 sm:$0xff]  }
  0x18   : > { %s8436_s22 = smov (!%p166_p3, %s4907_s22), 3  ;;  %v5616_v36 = vld [vmem:[%s8430_s1 + $0x1f0] ss:$8 sps:$4 sm:$0xff]   ;;  %v5620_v37 = vld [vmem:[%s8430_s1 + $0x1e4] ss:$8 sps:$4 sm:$0xff]  }
  0x19   : > { %4030 = vmatpush1.bf16.msra.mxu0 %v5583_v14  ;;  %v5623_v39 = vld [vmem:[%s8430_s1 + $0xd4] ss:$8 sps:$4 sm:$0xff]   ;;  %s5554_s19 = smul.u32 152, %s8436_s22  ;;  %v5622_v40 = vld [vmem:[%s8430_s1 + $0x1e0] ss:$8 sps:$4 sm:$0xff]   ;;  %s5553_s15 = sshll.u32 %s8436_s22, 4 }
  0x1a   : > { %4031 = vmatprep.subr.bf16.mxu0 %v5587_v15  ;;  %4073 = vmatpush1.bf16.msra.mxu1 %v5586_v16  ;;  %v5626_v41 = vld [vmem:[%s8430_s1 + $0x1d4] ss:$8 sps:$4 sm:$0xff]   ;;  %v5625_v42 = vld [vmem:[%s8430_s1 + $0xd0] ss:$8 sps:$4 sm:$0xff]   ;;  %v5629_v43 = vld [vmem:[%s8430_s1 + $0xc4] ss:$8 sps:$4 sm:$0xff]   ;;  %s177_s18 = scalar_lea.vmem %s8432_s3, %s5553_s15 }
  0x1b   : > { %4074 = vmatprep.subr.bf16.mxu1 %v5590_v17  ;;  %s6696_s13 = scalar_lea.vmem %s8429_s0, %s5554_s19  ;;  %v5628_v44 = vld [vmem:[%s8430_s1 + $0x1d0] ss:$8 sps:$4 sm:$0xff]   ;;  %v5632_v45 = vld [vmem:[%s8430_s1 + $0x1c4] ss:$8 sps:$4 sm:$0xff]   ;;  %v5631_v46 = vld [vmem:[%s8430_s1 + $0xc0] ss:$8 sps:$4 sm:$0xff]  }
  0x1c   : > { %v5660_v47 = vld [vmem:[%s6696_s13 + $0x4] ss:$152 sps:$4 sm:$0xff]   ;;  %v5634_v49 = vld [vmem:[%s8430_s1 + $0x1c0] ss:$8 sps:$4 sm:$0xff]   ;;  %v5637_v52 = vld [vmem:[%s8430_s1 + $0xb0] ss:$8 sps:$4 sm:$0xff]  }
  0x1d   : > { %4032 = vmatpush1.bf16.msra.mxu0 %v5589_v18  ;;  %v5635_v48 = vld [vmem:[%s8430_s1 + $0xb4] ss:$8 sps:$4 sm:$0xff]   ;;  %4055 = vmatprep.mubr.bf16.mxu0 %v5660_v47  ;;  %v5667_v51 = vld [vmem:[%s6696_s13 + $0xc] ss:$152 sps:$4 sm:$0xff]   ;;  %v5640_v54 = vld [vmem:[%s8430_s1 + $0x1b0] ss:$8 sps:$4 sm:$0xff]  }
  0x1e   : > { %4033 = vmatprep.subr.bf16.mxu0 %v5593_v19  ;;  %4075 = vmatpush1.bf16.msra.mxu1 %v5592_v20  ;;  %v5638_v50 = vld [vmem:[%s8430_s1 + $0x1b4] ss:$8 sps:$4 sm:$0xff]   ;;  %v5641_v53 = vld [vmem:[%s8430_s1 + $0xa4] ss:$8 sps:$4 sm:$0xff]   ;;  %v5643_v56 = vld [vmem:[%s8430_s1 + $0xa0] ss:$8 sps:$4 sm:$0xff]  }
  0x1f   : > { %4076 = vmatprep.subr.bf16.mxu1 %v5596_v21  ;;  %4098 = vmatprep.mubr.bf16.mxu1 %v5667_v51  ;;  %v5644_v55 = vld [vmem:[%s8430_s1 + $0x1a4] ss:$8 sps:$4 sm:$0xff]   ;;  %v5647_v57 = vld [vmem:[%s8430_s1 + $0x94] ss:$8 sps:$4 sm:$0xff]   ;;  %v5646_v58 = vld [vmem:[%s8430_s1 + $0x1a0] ss:$8 sps:$4 sm:$0xff]  }
  0x20   : > { %v5650_v59 = vld [vmem:[%s8430_s1 + $0x194] ss:$8 sps:$4 sm:$0xff]   ;;  %v5649_v60 = vld [vmem:[%s8430_s1 + $0x90] ss:$8 sps:$4 sm:$0xff]   ;;  %v5653_v61 = vld [vmem:[%s8430_s1 + $0x84] ss:$8 sps:$4 sm:$0xff]  }
  0x21   : > { %4034 = vmatpush1.bf16.msra.mxu0 %v5595_v22  ;;  %v5652_v62 = vld [vmem:[%s8430_s1 + $0x190] ss:$8 sps:$4 sm:$0xff]   ;;  %v5656_v63 = vld [vmem:[%s8430_s1 + $0x184] ss:$8 sps:$4 sm:$0xff]   ;;  %v5655_v0 = vld [vmem:[%s8430_s1 + $0x80] ss:$8 sps:$4 sm:$0xff]  }
  0x22   : > { %4035 = vmatprep.subr.bf16.mxu0 %v5599_v23  ;;  %4077 = vmatpush1.bf16.msra.mxu1 %v5598_v24  ;;  %v5664_v1 = vld [vmem:[%s8430_s1 + $0x274] ss:$8 sps:$4 sm:$0xff]   ;;  %v5661_v2 = vld [vmem:[%s8430_s1 + $0x180] ss:$8 sps:$4 sm:$0xff]   ;;  %v5662_v5 = vld [vmem:[%s8430_s1 + $0x270] ss:$8 sps:$4 sm:$0xff]  }
  0x23   : > { %4078 = vmatprep.subr.bf16.mxu1 %v5602_v25  ;;  %v5658_v3 = vld [vmem:[%s6696_s13] ss:$152 sps:$4 sm:$0xff]   ;;  %v5670_v4 = vld [vmem:[%s8430_s1 + $0x374] ss:$8 sps:$4 sm:$0xff]   ;;  %v5673_v7 = vld [vmem:[%s8430_s1 + $0x264] ss:$8 sps:$4 sm:$0xff]  }
  0x24   : > { %v5665_v6 = vld [vmem:[%s6696_s13 + $0x8] ss:$152 sps:$4 sm:$0xff]   ;;  %v5668_v8 = vld [vmem:[%s8430_s1 + $0x370] ss:$8 sps:$4 sm:$0xff]   ;;  %v5676_v9 = vld [vmem:[%s8430_s1 + $0x364] ss:$8 sps:$4 sm:$0xff]  }
  0x25   : > { %4036 = vmatpush1.bf16.msra.mxu0 %v5601_v26  ;;  %v5671_v10 = vld [vmem:[%s8430_s1 + $0x260] ss:$8 sps:$4 sm:$0xff]   ;;  %v5679_v11 = vld [vmem:[%s8430_s1 + $0x254] ss:$8 sps:$4 sm:$0xff]   ;;  %v5677_v14 = vld [vmem:[%s8430_s1 + $0x250] ss:$8 sps:$4 sm:$0xff]  }
  0x26   : > { %4037 = vmatprep.subr.bf16.mxu0 %v5605_v27  ;;  %4079 = vmatpush1.bf16.msra.mxu1 %v5604_v28  ;;  %v5674_v12 = vld [vmem:[%s8430_s1 + $0x360] ss:$8 sps:$4 sm:$0xff]   ;;  %v5682_v13 = vld [vmem:[%s8430_s1 + $0x354] ss:$8 sps:$4 sm:$0xff]   ;;  %v5685_v15 = vld [vmem:[%s8430_s1 + $0x244] ss:$8 sps:$4 sm:$0xff]  }
  0x27   : > { %4080 = vmatprep.subr.bf16.mxu1 %v5608_v29  ;;  %v5680_v16 = vld [vmem:[%s8430_s1 + $0x350] ss:$8 sps:$4 sm:$0xff]   ;;  %v5688_v17 = vld [vmem:[%s8430_s1 + $0x344] ss:$8 sps:$4 sm:$0xff]   ;;  %v5683_v18 = vld [vmem:[%s8430_s1 + $0x240] ss:$8 sps:$4 sm:$0xff]  }
  0x28   : > { %v5691_v19 = vld [vmem:[%s8430_s1 + $0x234] ss:$8 sps:$4 sm:$0xff]   ;;  %v5686_v20 = vld [vmem:[%s8430_s1 + $0x340] ss:$8 sps:$4 sm:$0xff]   ;;  %v5689_v22 = vld [vmem:[%s8430_s1 + $0x230] ss:$8 sps:$4 sm:$0xff]  }
  0x29   : > { %4038 = vmatpush1.bf16.msra.mxu0 %v5607_v30  ;;  %v5694_v21 = vld [vmem:[%s8430_s1 + $0x334] ss:$8 sps:$4 sm:$0xff]   ;;  %v5697_v23 = vld [vmem:[%s8430_s1 + $0x224] ss:$8 sps:$4 sm:$0xff]   ;;  %v5692_v24 = vld [vmem:[%s8430_s1 + $0x330] ss:$8 sps:$4 sm:$0xff]  }
  0x2a   : > { %4039 = vmatprep.subr.bf16.mxu0 %v5611_v31  ;;  %4081 = vmatpush1.bf16.msra.mxu1 %v5610_v32  ;;  %v5700_v25 = vld [vmem:[%s8430_s1 + $0x324] ss:$8 sps:$4 sm:$0xff]   ;;  %v5695_v26 = vld [vmem:[%s8430_s1 + $0x220] ss:$8 sps:$4 sm:$0xff]   ;;  %v5703_v27 = vld [vmem:[%s8430_s1 + $0x214] ss:$8 sps:$4 sm:$0xff]  }
  0x2b   : > { %4082 = vmatprep.subr.bf16.mxu1 %v5614_v33  ;;  %v5698_v28 = vld [vmem:[%s8430_s1 + $0x320] ss:$8 sps:$4 sm:$0xff]   ;;  %v5706_v29 = vld [vmem:[%s8430_s1 + $0x314] ss:$8 sps:$4 sm:$0xff]   ;;  %v5701_v30 = vld [vmem:[%s8430_s1 + $0x210] ss:$8 sps:$4 sm:$0xff]  }
  0x2c   : > { %v5704_v31 = vld [vmem:[%s8430_s1 + $0x310] ss:$8 sps:$4 sm:$0xff]   ;;  %v5709_v32 = vld [vmem:[%s8430_s1 + $0x204] ss:$8 sps:$4 sm:$0xff]   ;;  %v5730_v47 = vld [vmem:[%s8430_s1 + $0x3d4] ss:$8 sps:$4 sm:$0xff]  }
  0x2d   : > { %4040 = vmatpush2.bf16.msra.mxu0 %v5613_v34  ;;  %v5763_v33 = vld [vmem:[%s6696_s13 + $0x14] ss:$152 sps:$4 sm:$0xff]  }
  0x2e   : > { %4041 = vmatprep.subr.bf16.mxu0 %v5617_v35  ;;  %4083 = vmatpush2.bf16.msra.mxu1 %v5616_v36  ;;  %v5712_v34 = vld [vmem:[%s8430_s1 + $0x304] ss:$8 sps:$4 sm:$0xff]   ;;  %v5707_v35 = vld [vmem:[%s8430_s1 + $0x200] ss:$8 sps:$4 sm:$0xff]   ;;  %v5769_v36 = vld [vmem:[%s6696_s13 + $0x1c] ss:$152 sps:$4 sm:$0xff]  }
  0x2f   : > { %4084 = vmatprep.subr.bf16.mxu1 %v5620_v37  ;;  %v5715_v37 = vld [vmem:[%s8430_s1 + $0x2f4] ss:$8 sps:$4 sm:$0xff]   ;;  %v5736_v51 = vld [vmem:[%s8430_s1 + $0x3c4] ss:$8 sps:$4 sm:$0xff]  }
  0x31   : > { %4042 = vmatpush2.bf16.msra.mxu0 %v5619_v38  ;;  %v5710_v38 = vld [vmem:[%s8430_s1 + $0x300] ss:$8 sps:$4 sm:$0xff]  }
  0x32   : > { %4043 = vmatprep.subr.bf16.mxu0 %v5623_v39  ;;  %4085 = vmatpush2.bf16.msra.mxu1 %v5622_v40  ;;  %v5718_v39 = vld [vmem:[%s8430_s1 + $0x3f4] ss:$8 sps:$4 sm:$0xff]   ;;  %v5713_v40 = vld [vmem:[%s8430_s1 + $0x2f0] ss:$8 sps:$4 sm:$0xff]  }
  0x33   : > { %4086 = vmatprep.subr.bf16.mxu1 %v5626_v41  ;;  %v5721_v41 = vld [vmem:[%s8430_s1 + $0x2e4] ss:$8 sps:$4 sm:$0xff]  }
  0x35   : > { %4044 = vmatpush2.bf16.msra.mxu0 %v5625_v42  ;;  %v5716_v42 = vld [vmem:[%s8430_s1 + $0x3f0] ss:$8 sps:$4 sm:$0xff]  }
  0x36   : > { %4045 = vmatprep.subr.bf16.mxu0 %v5629_v43  ;;  %4087 = vmatpush2.bf16.msra.mxu1 %v5628_v44  ;;  %v5724_v43 = vld [vmem:[%s8430_s1 + $0x3e4] ss:$8 sps:$4 sm:$0xff]   ;;  %v5719_v44 = vld [vmem:[%s8430_s1 + $0x2e0] ss:$8 sps:$4 sm:$0xff]  }
  0x37   : > { %4088 = vmatprep.subr.bf16.mxu1 %v5632_v45  ;;  %v5727_v45 = vld [vmem:[%s8430_s1 + $0x2d4] ss:$8 sps:$4 sm:$0xff]  }
  0x39   : > { %4046 = vmatpush2.bf16.msra.mxu0 %v5631_v46  ;;  %v5722_v46 = vld [vmem:[%s8430_s1 + $0x3e0] ss:$8 sps:$4 sm:$0xff]  }
  0x3a   : > { %4047 = vmatprep.subr.bf16.mxu0 %v5635_v48  ;;  %4089 = vmatpush2.bf16.msra.mxu1 %v5634_v49  ;;  %v5725_v48 = vld [vmem:[%s8430_s1 + $0x2d0] ss:$8 sps:$4 sm:$0xff]   ;;  %v5733_v49 = vld [vmem:[%s8430_s1 + $0x2c4] ss:$8 sps:$4 sm:$0xff]  }
  0x3b   : > { %4090 = vmatprep.subr.bf16.mxu1 %v5638_v50  ;;  %v5728_v50 = vld [vmem:[%s8430_s1 + $0x3d0] ss:$8 sps:$4 sm:$0xff]  }
  0x3d   : > { %4048 = vmatpush2.bf16.msra.mxu0 %v5637_v52  ;;  %v5731_v52 = vld [vmem:[%s8430_s1 + $0x2c0] ss:$8 sps:$4 sm:$0xff]  }
  0x3e   : > { %4049 = vmatprep.subr.bf16.mxu0 %v5641_v53  ;;  %4091 = vmatpush2.bf16.msra.mxu1 %v5640_v54  ;;  %v5739_v53 = vld [vmem:[%s8430_s1 + $0x2b4] ss:$8 sps:$4 sm:$0xff]   ;;  %v5734_v54 = vld [vmem:[%s8430_s1 + $0x3c0] ss:$8 sps:$4 sm:$0xff]  }
  0x3f   : > { %4092 = vmatprep.subr.bf16.mxu1 %v5644_v55  ;;  %v5742_v55 = vld [vmem:[%s8430_s1 + $0x3b4] ss:$8 sps:$4 sm:$0xff]  }
  0x41   : > { %4050 = vmatpush2.bf16.msra.mxu0 %v5643_v56  ;;  %v5737_v56 = vld [vmem:[%s8430_s1 + $0x2b0] ss:$8 sps:$4 sm:$0xff]  }
  0x42   : > { %4051 = vmatprep.subr.bf16.mxu0 %v5647_v57  ;;  %4093 = vmatpush2.bf16.msra.mxu1 %v5646_v58  ;;  %v5745_v57 = vld [vmem:[%s8430_s1 + $0x2a4] ss:$8 sps:$4 sm:$0xff]   ;;  %v5740_v58 = vld [vmem:[%s8430_s1 + $0x3b0] ss:$8 sps:$4 sm:$0xff]  }
  0x43   : > { %4094 = vmatprep.subr.bf16.mxu1 %v5650_v59  ;;  %v5748_v59 = vld [vmem:[%s8430_s1 + $0x3a4] ss:$8 sps:$4 sm:$0xff]  }
  0x45   : > { %4052 = vmatpush2.bf16.msra.mxu0 %v5649_v60  ;;  %v5743_v60 = vld [vmem:[%s8430_s1 + $0x2a0] ss:$8 sps:$4 sm:$0xff]  }
  0x46   : > { %4053 = vmatprep.subr.bf16.mxu0 %v5653_v61  ;;  %4095 = vmatpush2.bf16.msra.mxu1 %v5652_v62  ;;  %v5751_v61 = vld [vmem:[%s8430_s1 + $0x294] ss:$8 sps:$4 sm:$0xff]   ;;  %v5746_v62 = vld [vmem:[%s8430_s1 + $0x3a0] ss:$8 sps:$4 sm:$0xff]  }
  0x47   : > { %4096 = vmatprep.subr.bf16.mxu1 %v5656_v63  ;;  %v5754_v63 = vld [vmem:[%s8430_s1 + $0x394] ss:$8 sps:$4 sm:$0xff]  }
  0x49   : > { %4054 = vmatpush2.bf16.msra.mxu0 %v5655_v0  ;;  %v5749_v0 = vld [vmem:[%s8430_s1 + $0x290] ss:$8 sps:$4 sm:$0xff]  }
  0x4a   : > { %4109 = vmatprep.subr.bf16.mxu0 %v5664_v1  ;;  %4097 = vmatpush2.bf16.msra.mxu1 %v5661_v2  ;;  %v5757_v1 = vld [vmem:[%s8430_s1 + $0x284] ss:$8 sps:$4 sm:$0xff]   ;;  %v5752_v2 = vld [vmem:[%s8430_s1 + $0x390] ss:$8 sps:$4 sm:$0xff]  }
  0x4b   : > { %4152 = vmatprep.subr.bf16.mxu1 %v5670_v4  ;;  %v5755_v4 = vld [vmem:[%s8430_s1 + $0x280] ss:$8 sps:$4 sm:$0xff]  }
  0x4c   : > { %4056 = vmatmul.mubr.bf16.vlgmr.msra.gmra.mxu0 %v5658_v3  ;;  %v5760_v3 = vld [vmem:[%s8430_s1 + $0x384] ss:$8 sps:$4 sm:$0xff]  }
  0x4d   : > { %4110 = vmatpush1.bf16.msra.mxu0 %v5662_v5  ;;  %4099 = vmatmul.mubr.bf16.vlgmr.msra.gmra.mxu1 %v5665_v6  ;;  %v5766_v5 = vld [vmem:[%s8430_s1 + $0x474] ss:$8 sps:$4 sm:$0xff]   ;;  %v5758_v6 = vld [vmem:[%s8430_s1 + $0x380] ss:$8 sps:$4 sm:$0xff]  }
  0x4e   : > { %4111 = vmatprep.subr.bf16.mxu0 %v5673_v7  ;;  %4153 = vmatpush1.bf16.msra.mxu1 %v5668_v8  ;;  %v5761_v7 = vld [vmem:[%s6696_s13 + $0x10] ss:$152 sps:$4 sm:$0xff]   ;;  %v5772_v8 = vld [vmem:[%s8430_s1 + $0x574] ss:$8 sps:$4 sm:$0xff]  }
  0x4f   : > { %4154 = vmatprep.subr.bf16.mxu1 %v5676_v9  ;;  %4141 = vmatprep.mubr.bf16.mxu0 %v5763_v33  ;;  %v5764_v9 = vld [vmem:[%s8430_s1 + $0x470] ss:$8 sps:$4 sm:$0xff]   ;;  %v5805_v33 = vld [vmem:[%s8430_s1 + $0x414] ss:$8 sps:$4 sm:$0xff]  }
  0x50   : > { %4184 = vmatprep.mubr.bf16.mxu1 %v5769_v36  ;;  %v5803_v36 = vld [vmem:[%s8430_s1 + $0x410] ss:$8 sps:$4 sm:$0xff]  }
  0x51   : > { %4112 = vmatpush1.bf16.msra.mxu0 %v5671_v10  ;;  %v5767_v10 = vld [vmem:[%s6696_s13 + $0x18] ss:$152 sps:$4 sm:$0xff]  }
  0x52   : > { %4113 = vmatprep.subr.bf16.mxu0 %v5679_v11  ;;  %4155 = vmatpush1.bf16.msra.mxu1 %v5674_v12  ;;  %v5775_v11 = vld [vmem:[%s8430_s1 + $0x464] ss:$8 sps:$4 sm:$0xff]   ;;  %v5770_v12 = vld [vmem:[%s8430_s1 + $0x570] ss:$8 sps:$4 sm:$0xff]  }
  0x53   : > { %4156 = vmatprep.subr.bf16.mxu1 %v5682_v13  ;;  %v5778_v13 = vld [vmem:[%s8430_s1 + $0x564] ss:$8 sps:$4 sm:$0xff]  }
  0x55   : > { %4114 = vmatpush1.bf16.msra.mxu0 %v5677_v14  ;;  %v5773_v14 = vld [vmem:[%s8430_s1 + $0x460] ss:$8 sps:$4 sm:$0xff]  }
  0x56   : > { %4115 = vmatprep.subr.bf16.mxu0 %v5685_v15  ;;  %4157 = vmatpush1.bf16.msra.mxu1 %v5680_v16  ;;  %v5781_v15 = vld [vmem:[%s8430_s1 + $0x454] ss:$8 sps:$4 sm:$0xff]   ;;  %v5776_v16 = vld [vmem:[%s8430_s1 + $0x560] ss:$8 sps:$4 sm:$0xff]  }
  0x57   : > { %4158 = vmatprep.subr.bf16.mxu1 %v5688_v17  ;;  %v5784_v17 = vld [vmem:[%s8430_s1 + $0x554] ss:$8 sps:$4 sm:$0xff]  }
  0x59   : > { %4116 = vmatpush1.bf16.msra.mxu0 %v5683_v18  ;;  %v5865_v18 = vld [vmem:[%s6696_s13 + $0x24] ss:$152 sps:$4 sm:$0xff]  }
  0x5a   : > { %4117 = vmatprep.subr.bf16.mxu0 %v5691_v19  ;;  %4159 = vmatpush1.bf16.msra.mxu1 %v5686_v20  ;;  %v5779_v19 = vld [vmem:[%s8430_s1 + $0x450] ss:$8 sps:$4 sm:$0xff]  }
  0x5b   : > { %4160 = vmatprep.subr.bf16.mxu1 %v5694_v21  ;;  %v5782_v20 = vld [vmem:[%s8430_s1 + $0x550] ss:$8 sps:$4 sm:$0xff]   ;;  %v5787_v21 = vld [vmem:[%s8430_s1 + $0x444] ss:$8 sps:$4 sm:$0xff]  }
  0x5d   : > { %4118 = vmatpush1.bf16.msra.mxu0 %v5689_v22  ;;  %v5871_v22 = vld [vmem:[%s6696_s13 + $0x2c] ss:$152 sps:$4 sm:$0xff]  }
  0x5e   : > { %4119 = vmatprep.subr.bf16.mxu0 %v5697_v23  ;;  %4161 = vmatpush1.bf16.msra.mxu1 %v5692_v24  ;;  %v5790_v23 = vld [vmem:[%s8430_s1 + $0x544] ss:$8 sps:$4 sm:$0xff]   ;;  %v5785_v24 = vld [vmem:[%s8430_s1 + $0x440] ss:$8 sps:$4 sm:$0xff]  }
  0x5f   : > { %4162 = vmatprep.subr.bf16.mxu1 %v5700_v25  ;;  %v5793_v25 = vld [vmem:[%s8430_s1 + $0x434] ss:$8 sps:$4 sm:$0xff]  }
  0x61   : > { %4120 = vmatpush1.bf16.msra.mxu0 %v5695_v26  ;;  %v5788_v26 = vld [vmem:[%s8430_s1 + $0x540] ss:$8 sps:$4 sm:$0xff]  }
  0x62   : > { %4121 = vmatprep.subr.bf16.mxu0 %v5703_v27  ;;  %4163 = vmatpush1.bf16.msra.mxu1 %v5698_v28  ;;  %v5796_v27 = vld [vmem:[%s8430_s1 + $0x534] ss:$8 sps:$4 sm:$0xff]   ;;  %v5791_v28 = vld [vmem:[%s8430_s1 + $0x430] ss:$8 sps:$4 sm:$0xff]  }
  0x63   : > { %4164 = vmatprep.subr.bf16.mxu1 %v5706_v29  ;;  %v5799_v29 = vld [vmem:[%s8430_s1 + $0x424] ss:$8 sps:$4 sm:$0xff]  }
  0x65   : > { %4122 = vmatpush1.bf16.msra.mxu0 %v5701_v30  ;;  %v5794_v30 = vld [vmem:[%s8430_s1 + $0x530] ss:$8 sps:$4 sm:$0xff]  }
  0x66   : > { %4123 = vmatprep.subr.bf16.mxu0 %v5709_v32  ;;  %4165 = vmatpush1.bf16.msra.mxu1 %v5704_v31  ;;  %v5802_v31 = vld [vmem:[%s8430_s1 + $0x524] ss:$8 sps:$4 sm:$0xff]   ;;  %v5797_v32 = vld [vmem:[%s8430_s1 + $0x420] ss:$8 sps:$4 sm:$0xff]  }
  0x67   : > { %4166 = vmatprep.subr.bf16.mxu1 %v5712_v34  ;;  %v5800_v34 = vld [vmem:[%s8430_s1 + $0x520] ss:$8 sps:$4 sm:$0xff]  }
  0x69   : > { %4124 = vmatpush1.bf16.msra.mxu0 %v5707_v35  ;;  %v5808_v35 = vld [vmem:[%s8430_s1 + $0x514] ss:$8 sps:$4 sm:$0xff]  }
  0x6a   : > { %4125 = vmatprep.subr.bf16.mxu0 %v5715_v37  ;;  %4167 = vmatpush1.bf16.msra.mxu1 %v5710_v38  ;;  %v5811_v37 = vld [vmem:[%s8430_s1 + $0x404] ss:$8 sps:$4 sm:$0xff]   ;;  %v5806_v38 = vld [vmem:[%s8430_s1 + $0x510] ss:$8 sps:$4 sm:$0xff]  }
  0x6b   : > { %4168 = vmatprep.subr.bf16.mxu1 %v5718_v39  ;;  %v5814_v39 = vld [vmem:[%s8430_s1 + $0x504] ss:$8 sps:$4 sm:$0xff]  }
  0x6d   : > { %4126 = vmatpush2.bf16.msra.mxu0 %v5713_v40  ;;  %v5809_v40 = vld [vmem:[%s8430_s1 + $0x400] ss:$8 sps:$4 sm:$0xff]  }
  0x6e   : > { %4127 = vmatprep.subr.bf16.mxu0 %v5721_v41  ;;  %4169 = vmatpush2.bf16.msra.mxu1 %v5716_v42  ;;  %v5817_v41 = vld [vmem:[%s8430_s1 + $0x4f4] ss:$8 sps:$4 sm:$0xff]   ;;  %v5812_v42 = vld [vmem:[%s8430_s1 + $0x500] ss:$8 sps:$4 sm:$0xff]  }
  0x6f   : > { %4170 = vmatprep.subr.bf16.mxu1 %v5724_v43  ;;  %v5820_v43 = vld [vmem:[%s8430_s1 + $0x5f4] ss:$8 sps:$4 sm:$0xff]  }
  0x71   : > { %4128 = vmatpush2.bf16.msra.mxu0 %v5719_v44  ;;  %v5815_v44 = vld [vmem:[%s8430_s1 + $0x4f0] ss:$8 sps:$4 sm:$0xff]  }
  0x72   : > { %4129 = vmatprep.subr.bf16.mxu0 %v5727_v45  ;;  %4171 = vmatpush2.bf16.msra.mxu1 %v5722_v46  ;;  %v5823_v45 = vld [vmem:[%s8430_s1 + $0x4e4] ss:$8 sps:$4 sm:$0xff]   ;;  %v5818_v46 = vld [vmem:[%s8430_s1 + $0x5f0] ss:$8 sps:$4 sm:$0xff]  }
  0x73   : > { %4172 = vmatprep.subr.bf16.mxu1 %v5730_v47  ;;  %v5826_v47 = vld [vmem:[%s8430_s1 + $0x5e4] ss:$8 sps:$4 sm:$0xff]  }
  0x75   : > { %4130 = vmatpush2.bf16.msra.mxu0 %v5725_v48  ;;  %v5821_v48 = vld [vmem:[%s8430_s1 + $0x4e0] ss:$8 sps:$4 sm:$0xff]  }
  0x76   : > { %4131 = vmatprep.subr.bf16.mxu0 %v5733_v49  ;;  %4173 = vmatpush2.bf16.msra.mxu1 %v5728_v50  ;;  %v5829_v49 = vld [vmem:[%s8430_s1 + $0x4d4] ss:$8 sps:$4 sm:$0xff]   ;;  %v5824_v50 = vld [vmem:[%s8430_s1 + $0x5e0] ss:$8 sps:$4 sm:$0xff]  }
  0x77   : > { %4174 = vmatprep.subr.bf16.mxu1 %v5736_v51  ;;  %v5832_v51 = vld [vmem:[%s8430_s1 + $0x5d4] ss:$8 sps:$4 sm:$0xff]  }
  0x79   : > { %4132 = vmatpush2.bf16.msra.mxu0 %v5731_v52  ;;  %v5827_v52 = vld [vmem:[%s8430_s1 + $0x4d0] ss:$8 sps:$4 sm:$0xff]  }
  0x7a   : > { %4133 = vmatprep.subr.bf16.mxu0 %v5739_v53  ;;  %4175 = vmatpush2.bf16.msra.mxu1 %v5734_v54  ;;  %v5835_v53 = vld [vmem:[%s8430_s1 + $0x4c4] ss:$8 sps:$4 sm:$0xff]   ;;  %v5830_v54 = vld [vmem:[%s8430_s1 + $0x5d0] ss:$8 sps:$4 sm:$0xff]  }
  0x7b   : > { %4176 = vmatprep.subr.bf16.mxu1 %v5742_v55  ;;  %v5838_v55 = vld [vmem:[%s8430_s1 + $0x5c4] ss:$8 sps:$4 sm:$0xff]  }
  0x7d   : > { %4134 = vmatpush2.bf16.msra.mxu0 %v5737_v56  ;;  %v5833_v56 = vld [vmem:[%s8430_s1 + $0x4c0] ss:$8 sps:$4 sm:$0xff]  }
  0x7e   : > { %4135 = vmatprep.subr.bf16.mxu0 %v5745_v57  ;;  %4177 = vmatpush2.bf16.msra.mxu1 %v5740_v58  ;;  %v5841_v57 = vld [vmem:[%s8430_s1 + $0x4b4] ss:$8 sps:$4 sm:$0xff]   ;;  %v5836_v58 = vld [vmem:[%s8430_s1 + $0x5c0] ss:$8 sps:$4 sm:$0xff]  }
  0x7f   : > { %4178 = vmatprep.subr.bf16.mxu1 %v5748_v59  ;;  %v5844_v59 = vld [vmem:[%s8430_s1 + $0x5b4] ss:$8 sps:$4 sm:$0xff]  }
  0x81   : > { %4136 = vmatpush2.bf16.msra.mxu0 %v5743_v60  ;;  %v5839_v60 = vld [vmem:[%s8430_s1 + $0x4b0] ss:$8 sps:$4 sm:$0xff]  }
  0x82   : > { %4137 = vmatprep.subr.bf16.mxu0 %v5751_v61  ;;  %4179 = vmatpush2.bf16.msra.mxu1 %v5746_v62  ;;  %v5847_v61 = vld [vmem:[%s8430_s1 + $0x4a4] ss:$8 sps:$4 sm:$0xff]   ;;  %v5842_v62 = vld [vmem:[%s8430_s1 + $0x5b0] ss:$8 sps:$4 sm:$0xff]  }
  0x83   : > { %4180 = vmatprep.subr.bf16.mxu1 %v5754_v63  ;;  %v5850_v63 = vld [vmem:[%s8430_s1 + $0x5a4] ss:$8 sps:$4 sm:$0xff]  }
  0x85   : > { %4138 = vmatpush2.bf16.msra.mxu0 %v5749_v0  ;;  %v5845_v0 = vld [vmem:[%s8430_s1 + $0x4a0] ss:$8 sps:$4 sm:$0xff]  }
  0x86   : > { %4139 = vmatprep.subr.bf16.mxu0 %v5757_v1  ;;  %4181 = vmatpush2.bf16.msra.mxu1 %v5752_v2  ;;  %v5853_v1 = vld [vmem:[%s8430_s1 + $0x494] ss:$8 sps:$4 sm:$0xff]   ;;  %v5848_v2 = vld [vmem:[%s8430_s1 + $0x5a0] ss:$8 sps:$4 sm:$0xff]  }
  0x87   : > { %4182 = vmatprep.subr.bf16.mxu1 %v5760_v3  ;;  %v5856_v3 = vld [vmem:[%s8430_s1 + $0x594] ss:$8 sps:$4 sm:$0xff]  }
  0x89   : > { %4140 = vmatpush2.bf16.msra.mxu0 %v5755_v4  ;;  %v5851_v4 = vld [vmem:[%s8430_s1 + $0x490] ss:$8 sps:$4 sm:$0xff]  }
  0x8a   : > { %4195 = vmatprep.subr.bf16.mxu0 %v5766_v5  ;;  %4183 = vmatpush2.bf16.msra.mxu1 %v5758_v6  ;;  %v5859_v5 = vld [vmem:[%s8430_s1 + $0x484] ss:$8 sps:$4 sm:$0xff]   ;;  %v5854_v6 = vld [vmem:[%s8430_s1 + $0x590] ss:$8 sps:$4 sm:$0xff]  }
  0x8b   : > { %4238 = vmatprep.subr.bf16.mxu1 %v5772_v8  ;;  %v5862_v8 = vld [vmem:[%s8430_s1 + $0x584] ss:$8 sps:$4 sm:$0xff]  }
  0x8c   : > { %4142 = vmatmul.mubr.bf16.vlgmr.msra.gmra.mxu0 %v5761_v7  ;;  %v5857_v7 = vld [vmem:[%s8430_s1 + $0x480] ss:$8 sps:$4 sm:$0xff]  }
  0x8d   : > { %4196 = vmatpush1.bf16.msra.mxu0 %v5764_v9  ;;  %4185 = vmatmul.mubr.bf16.vlgmr.msra.gmra.mxu1 %v5767_v10  ;;  %v5860_v9 = vld [vmem:[%s8430_s1 + $0x580] ss:$8 sps:$4 sm:$0xff]   ;;  %v5868_v10 = vld [vmem:[%s8430_s1 + $0x674] ss:$8 sps:$4 sm:$0xff]  }
  0x8e   : > { %4197 = vmatprep.subr.bf16.mxu0 %v5775_v11  ;;  %4239 = vmatpush1.bf16.msra.mxu1 %v5770_v12  ;;  %v5863_v11 = vld [vmem:[%s6696_s13 + $0x20] ss:$152 sps:$4 sm:$0xff]  }
  0x8f   : > { %4240 = vmatprep.subr.bf16.mxu1 %v5778_v13  ;;  %4227 = vmatprep.mubr.bf16.mxu0 %v5865_v18  ;;  %v5866_v12 = vld [vmem:[%s8430_s1 + $0x670] ss:$8 sps:$4 sm:$0xff]   ;;  %v5869_v13 = vld [vmem:[%s6696_s13 + $0x28] ss:$152 sps:$4 sm:$0xff]   ;;  %v5973_v18 = vld [vmem:[%s6696_s13 + $0x3c] ss:$152 sps:$4 sm:$0xff]  }
  0x90   : > { %4270 = vmatprep.mubr.bf16.mxu1 %v5871_v22  ;;  %v5878_v22 = vld [vmem:[%s8430_s1 + $0x760] ss:$8 sps:$4 sm:$0xff]  }
  0x91   : > { %4198 = vmatpush1.bf16.msra.mxu0 %v5773_v14  ;;  %v5874_v14 = vld [vmem:[%s8430_s1 + $0x774] ss:$8 sps:$4 sm:$0xff]  }
  0x92   : > { %4199 = vmatprep.subr.bf16.mxu0 %v5781_v15  ;;  %4241 = vmatpush1.bf16.msra.mxu1 %v5776_v16  ;;  %v5967_v15 = vld [vmem:[%s6696_s13 + $0x34] ss:$152 sps:$4 sm:$0xff]  }
  0x93   : > { %4242 = vmatprep.subr.bf16.mxu1 %v5784_v17  ;;  %v5877_v16 = vld [vmem:[%s8430_s1 + $0x664] ss:$8 sps:$4 sm:$0xff]   ;;  %v5872_v17 = vld [vmem:[%s8430_s1 + $0x770] ss:$8 sps:$4 sm:$0xff]  }
  0x95   : > { %4200 = vmatpush1.bf16.msra.mxu0 %v5779_v19  ;;  %v5880_v19 = vld [vmem:[%s8430_s1 + $0x764] ss:$8 sps:$4 sm:$0xff]  }
  0x96   : > { %4201 = vmatprep.subr.bf16.mxu0 %v5787_v21  ;;  %4243 = vmatpush1.bf16.msra.mxu1 %v5782_v20  ;;  %v5875_v20 = vld [vmem:[%s8430_s1 + $0x660] ss:$8 sps:$4 sm:$0xff]   ;;  %v5883_v21 = vld [vmem:[%s8430_s1 + $0x654] ss:$8 sps:$4 sm:$0xff]  }
  0x97   : > { %4244 = vmatprep.subr.bf16.mxu1 %v5790_v23  ;;  %v5886_v23 = vld [vmem:[%s8430_s1 + $0x754] ss:$8 sps:$4 sm:$0xff]  }
  0x99   : > { %4202 = vmatpush1.bf16.msra.mxu0 %v5785_v24  ;;  %v5881_v24 = vld [vmem:[%s8430_s1 + $0x650] ss:$8 sps:$4 sm:$0xff]  }
  0x9a   : > { %4203 = vmatprep.subr.bf16.mxu0 %v5793_v25  ;;  %4245 = vmatpush1.bf16.msra.mxu1 %v5788_v26  ;;  %v5889_v25 = vld [vmem:[%s8430_s1 + $0x644] ss:$8 sps:$4 sm:$0xff]   ;;  %v5884_v26 = vld [vmem:[%s8430_s1 + $0x750] ss:$8 sps:$4 sm:$0xff]  }
  0x9b   : > { %4246 = vmatprep.subr.bf16.mxu1 %v5796_v27  ;;  %v5892_v27 = vld [vmem:[%s8430_s1 + $0x744] ss:$8 sps:$4 sm:$0xff]  }
  0x9d   : > { %4204 = vmatpush1.bf16.msra.mxu0 %v5791_v28  ;;  %v5887_v28 = vld [vmem:[%s8430_s1 + $0x640] ss:$8 sps:$4 sm:$0xff]  }
  0x9e   : > { %4205 = vmatprep.subr.bf16.mxu0 %v5799_v29  ;;  %4247 = vmatpush1.bf16.msra.mxu1 %v5794_v30  ;;  %v5895_v29 = vld [vmem:[%s8430_s1 + $0x634] ss:$8 sps:$4 sm:$0xff]   ;;  %v5890_v30 = vld [vmem:[%s8430_s1 + $0x740] ss:$8 sps:$4 sm:$0xff]  }
  0x9f   : > { %4248 = vmatprep.subr.bf16.mxu1 %v5802_v31  ;;  %v5898_v31 = vld [vmem:[%s8430_s1 + $0x734] ss:$8 sps:$4 sm:$0xff]  }
  0xa1   : > { %4206 = vmatpush1.bf16.msra.mxu0 %v5797_v32  ;;  %v5893_v32 = vld [vmem:[%s8430_s1 + $0x630] ss:$8 sps:$4 sm:$0xff]  }
  0xa2   : > { %4207 = vmatprep.subr.bf16.mxu0 %v5805_v33  ;;  %4249 = vmatpush1.bf16.msra.mxu1 %v5800_v34  ;;  %v5901_v33 = vld [vmem:[%s8430_s1 + $0x624] ss:$8 sps:$4 sm:$0xff]   ;;  %v5896_v34 = vld [vmem:[%s8430_s1 + $0x730] ss:$8 sps:$4 sm:$0xff]  }
  0xa3   : > { %4250 = vmatprep.subr.bf16.mxu1 %v5808_v35  ;;  %v5904_v35 = vld [vmem:[%s8430_s1 + $0x724] ss:$8 sps:$4 sm:$0xff]  }
  0xa5   : > { %4208 = vmatpush1.bf16.msra.mxu0 %v5803_v36  ;;  %v5899_v36 = vld [vmem:[%s8430_s1 + $0x620] ss:$8 sps:$4 sm:$0xff]  }
  0xa6   : > { %4209 = vmatprep.subr.bf16.mxu0 %v5811_v37  ;;  %4251 = vmatpush1.bf16.msra.mxu1 %v5806_v38  ;;  %v5907_v37 = vld [vmem:[%s8430_s1 + $0x614] ss:$8 sps:$4 sm:$0xff]   ;;  %v5902_v38 = vld [vmem:[%s8430_s1 + $0x720] ss:$8 sps:$4 sm:$0xff]  }
  0xa7   : > { %4252 = vmatprep.subr.bf16.mxu1 %v5814_v39  ;;  %v5910_v39 = vld [vmem:[%s8430_s1 + $0x714] ss:$8 sps:$4 sm:$0xff]  }
  0xa9   : > { %4210 = vmatpush1.bf16.msra.mxu0 %v5809_v40  ;;  %v5905_v40 = vld [vmem:[%s8430_s1 + $0x610] ss:$8 sps:$4 sm:$0xff]  }
  0xaa   : > { %4211 = vmatprep.subr.bf16.mxu0 %v5817_v41  ;;  %4253 = vmatpush1.bf16.msra.mxu1 %v5812_v42  ;;  %v5913_v41 = vld [vmem:[%s8430_s1 + $0x604] ss:$8 sps:$4 sm:$0xff]   ;;  %v5908_v42 = vld [vmem:[%s8430_s1 + $0x710] ss:$8 sps:$4 sm:$0xff]  }
  0xab   : > { %4254 = vmatprep.subr.bf16.mxu1 %v5820_v43  ;;  %v5916_v43 = vld [vmem:[%s8430_s1 + $0x704] ss:$8 sps:$4 sm:$0xff]  }
  0xad   : > { %4212 = vmatpush2.bf16.msra.mxu0 %v5815_v44  ;;  %v5911_v44 = vld [vmem:[%s8430_s1 + $0x600] ss:$8 sps:$4 sm:$0xff]  }
  0xae   : > { %4213 = vmatprep.subr.bf16.mxu0 %v5823_v45  ;;  %4255 = vmatpush2.bf16.msra.mxu1 %v5818_v46  ;;  %v5919_v45 = vld [vmem:[%s8430_s1 + $0x6f4] ss:$8 sps:$4 sm:$0xff]   ;;  %v5914_v46 = vld [vmem:[%s8430_s1 + $0x700] ss:$8 sps:$4 sm:$0xff]  }
  0xaf   : > { %4256 = vmatprep.subr.bf16.mxu1 %v5826_v47  ;;  %v5922_v47 = vld [vmem:[%s8430_s1 + $0x7f4] ss:$8 sps:$4 sm:$0xff]  }
  0xb1   : > { %4214 = vmatpush2.bf16.msra.mxu0 %v5821_v48  ;;  %v5917_v48 = vld [vmem:[%s8430_s1 + $0x6f0] ss:$8 sps:$4 sm:$0xff]  }
  0xb2   : > { %4215 = vmatprep.subr.bf16.mxu0 %v5829_v49  ;;  %4257 = vmatpush2.bf16.msra.mxu1 %v5824_v50  ;;  %v5925_v49 = vld [vmem:[%s8430_s1 + $0x6e4] ss:$8 sps:$4 sm:$0xff]   ;;  %v5920_v50 = vld [vmem:[%s8430_s1 + $0x7f0] ss:$8 sps:$4 sm:$0xff]  }
  0xb3   : > { %4258 = vmatprep.subr.bf16.mxu1 %v5832_v51  ;;  %v5928_v51 = vld [vmem:[%s8430_s1 + $0x7e4] ss:$8 sps:$4 sm:$0xff]  }
  0xb5   : > { %4216 = vmatpush2.bf16.msra.mxu0 %v5827_v52  ;;  %v5923_v52 = vld [vmem:[%s8430_s1 + $0x6e0] ss:$8 sps:$4 sm:$0xff]  }
  0xb6   : > { %4217 = vmatprep.subr.bf16.mxu0 %v5835_v53  ;;  %4259 = vmatpush2.bf16.msra.mxu1 %v5830_v54  ;;  %v5931_v53 = vld [vmem:[%s8430_s1 + $0x6d4] ss:$8 sps:$4 sm:$0xff]   ;;  %v5926_v54 = vld [vmem:[%s8430_s1 + $0x7e0] ss:$8 sps:$4 sm:$0xff]  }
  0xb7   : > { %4260 = vmatprep.subr.bf16.mxu1 %v5838_v55  ;;  %v5934_v55 = vld [vmem:[%s8430_s1 + $0x7d4] ss:$8 sps:$4 sm:$0xff]  }
  0xb9   : > { %4218 = vmatpush2.bf16.msra.mxu0 %v5833_v56  ;;  %v5929_v56 = vld [vmem:[%s8430_s1 + $0x6d0] ss:$8 sps:$4 sm:$0xff]  }
  0xba   : > { %4219 = vmatprep.subr.bf16.mxu0 %v5841_v57  ;;  %4261 = vmatpush2.bf16.msra.mxu1 %v5836_v58  ;;  %v5937_v57 = vld [vmem:[%s8430_s1 + $0x6c4] ss:$8 sps:$4 sm:$0xff]   ;;  %v5932_v58 = vld [vmem:[%s8430_s1 + $0x7d0] ss:$8 sps:$4 sm:$0xff]  }
  0xbb   : > { %4262 = vmatprep.subr.bf16.mxu1 %v5844_v59  ;;  %v5940_v59 = vld [vmem:[%s8430_s1 + $0x7c4] ss:$8 sps:$4 sm:$0xff]  }
  0xbd   : > { %4220 = vmatpush2.bf16.msra.mxu0 %v5839_v60  ;;  %v5935_v60 = vld [vmem:[%s8430_s1 + $0x6c0] ss:$8 sps:$4 sm:$0xff]  }
  0xbe   : > { %4221 = vmatprep.subr.bf16.mxu0 %v5847_v61  ;;  %4263 = vmatpush2.bf16.msra.mxu1 %v5842_v62  ;;  %v5943_v61 = vld [vmem:[%s8430_s1 + $0x6b4] ss:$8 sps:$4 sm:$0xff]   ;;  %v5938_v62 = vld [vmem:[%s8430_s1 + $0x7c0] ss:$8 sps:$4 sm:$0xff]  }
  0xbf   : > { %4264 = vmatprep.subr.bf16.mxu1 %v5850_v63  ;;  %v5946_v63 = vld [vmem:[%s8430_s1 + $0x7b4] ss:$8 sps:$4 sm:$0xff]  }
  0xc1   : > { %4222 = vmatpush2.bf16.msra.mxu0 %v5845_v0  ;;  %v5941_v0 = vld [vmem:[%s8430_s1 + $0x6b0] ss:$8 sps:$4 sm:$0xff]  }
  0xc2   : > { %4223 = vmatprep.subr.bf16.mxu0 %v5853_v1  ;;  %4265 = vmatpush2.bf16.msra.mxu1 %v5848_v2  ;;  %v5949_v1 = vld [vmem:[%s8430_s1 + $0x6a4] ss:$8 sps:$4 sm:$0xff]   ;;  %v5944_v2 = vld [vmem:[%s8430_s1 + $0x7b0] ss:$8 sps:$4 sm:$0xff]  }
  0xc3   : > { %4266 = vmatprep.subr.bf16.mxu1 %v5856_v3  ;;  %v5952_v3 = vld [vmem:[%s8430_s1 + $0x7a4] ss:$8 sps:$4 sm:$0xff]  }
  0xc5   : > { %4224 = vmatpush2.bf16.msra.mxu0 %v5851_v4  ;;  %v5947_v4 = vld [vmem:[%s8430_s1 + $0x6a0] ss:$8 sps:$4 sm:$0xff]  }
  0xc6   : > { %4225 = vmatprep.subr.bf16.mxu0 %v5859_v5  ;;  %4267 = vmatpush2.bf16.msra.mxu1 %v5854_v6  ;;  %v5955_v5 = vld [vmem:[%s8430_s1 + $0x694] ss:$8 sps:$4 sm:$0xff]   ;;  %v5950_v6 = vld [vmem:[%s8430_s1 + $0x7a0] ss:$8 sps:$4 sm:$0xff]  }
  0xc7   : > { %4268 = vmatprep.subr.bf16.mxu1 %v5862_v8  ;;  %v5953_v8 = vld [vmem:[%s8430_s1 + $0x690] ss:$8 sps:$4 sm:$0xff]  }
  0xc9   : > { %4226 = vmatpush2.bf16.msra.mxu0 %v5857_v7  ;;  %v5958_v7 = vld [vmem:[%s8430_s1 + $0x794] ss:$8 sps:$4 sm:$0xff]  }
  0xca   : > { %4281 = vmatprep.subr.bf16.mxu0 %v5868_v10  ;;  %4269 = vmatpush2.bf16.msra.mxu1 %v5860_v9  ;;  %v5961_v9 = vld [vmem:[%s8430_s1 + $0x684] ss:$8 sps:$4 sm:$0xff]   ;;  %v5956_v10 = vld [vmem:[%s8430_s1 + $0x790] ss:$8 sps:$4 sm:$0xff]  }
  0xcb   : > { %4324 = vmatprep.subr.bf16.mxu1 %v5874_v14  ;;  %v5970_v14 = vld [vmem:[%s8430_s1 + $0x874] ss:$8 sps:$4 sm:$0xff]  }
  0xcc   : > { %4228 = vmatmul.mubr.bf16.vlgmr.msra.gmra.mxu0 %v5863_v11  ;;  %v5959_v11 = vld [vmem:[%s8430_s1 + $0x680] ss:$8 sps:$4 sm:$0xff]  }
  0xcd   : > { %4282 = vmatpush1.bf16.msra.mxu0 %v5866_v12  ;;  %4313 = vmatprep.mubr.bf16.mxu0 %v5967_v15  ;;  %v5964_v12 = vld [vmem:[%s8430_s1 + $0x784] ss:$8 sps:$4 sm:$0xff]   ;;  %v5965_v15 = vld [vmem:[%s6696_s13 + $0x30] ss:$152 sps:$4 sm:$0xff]  }
  0xce   : > { %4271 = vmatmul.mubr.bf16.vlgmr.msra.gmra.mxu1 %v5869_v13  ;;  %4283 = vmatprep.subr.bf16.mxu0 %v5877_v16  ;;  %v5962_v13 = vld [vmem:[%s8430_s1 + $0x780] ss:$8 sps:$4 sm:$0xff]   ;;  %v5968_v16 = vld [vmem:[%s8430_s1 + $0x870] ss:$8 sps:$4 sm:$0xff]  }
  0xcf   : > { %4325 = vmatpush1.bf16.msra.mxu1 %v5872_v17  ;;  %4356 = vmatprep.mubr.bf16.mxu1 %v5973_v18  ;;  %v5971_v17 = vld [vmem:[%s6696_s13 + $0x38] ss:$152 sps:$4 sm:$0xff]   ;;  %v5976_v18 = vld [vmem:[%s8430_s1 + $0x974] ss:$8 sps:$4 sm:$0xff]  }
  0xd0   : > { %4326 = vmatprep.subr.bf16.mxu1 %v5880_v19  ;;  %v6069_v19 = vld [vmem:[%s6696_s13 + $0x44] ss:$152 sps:$4 sm:$0xff]  }
  0xd1   : > { %4284 = vmatpush1.bf16.msra.mxu0 %v5875_v20  ;;  %v5979_v20 = vld [vmem:[%s8430_s1 + $0x864] ss:$8 sps:$4 sm:$0xff]  }
  0xd2   : > { %4285 = vmatprep.subr.bf16.mxu0 %v5883_v21  ;;  %v5974_v21 = vld [vmem:[%s8430_s1 + $0x970] ss:$8 sps:$4 sm:$0xff]  }
  0xd3   : > { %4327 = vmatpush1.bf16.msra.mxu1 %v5878_v22  ;;  %v6075_v22 = vld [vmem:[%s6696_s13 + $0x4c] ss:$152 sps:$4 sm:$0xff]  }
  0xd4   : > { %4328 = vmatprep.subr.bf16.mxu1 %v5886_v23  ;;  %v5982_v23 = vld [vmem:[%s8430_s1 + $0x964] ss:$8 sps:$4 sm:$0xff]  }
  0xd5   : > { %4286 = vmatpush1.bf16.msra.mxu0 %v5881_v24  ;;  %v5977_v24 = vld [vmem:[%s8430_s1 + $0x860] ss:$8 sps:$4 sm:$0xff]  }
  0xd6   : > { %4287 = vmatprep.subr.bf16.mxu0 %v5889_v25  ;;  %v5985_v25 = vld [vmem:[%s8430_s1 + $0x854] ss:$8 sps:$4 sm:$0xff]  }
  0xd7   : > { %4329 = vmatpush1.bf16.msra.mxu1 %v5884_v26  ;;  %v5980_v26 = vld [vmem:[%s8430_s1 + $0x960] ss:$8 sps:$4 sm:$0xff]  }
  0xd8   : > { %4330 = vmatprep.subr.bf16.mxu1 %v5892_v27  ;;  %v5988_v27 = vld [vmem:[%s8430_s1 + $0x954] ss:$8 sps:$4 sm:$0xff]  }
  0xd9   : > { %4288 = vmatpush1.bf16.msra.mxu0 %v5887_v28  ;;  %v5983_v28 = vld [vmem:[%s8430_s1 + $0x850] ss:$8 sps:$4 sm:$0xff]  }
  0xda   : > { %4289 = vmatprep.subr.bf16.mxu0 %v5895_v29  ;;  %v5991_v29 = vld [vmem:[%s8430_s1 + $0x844] ss:$8 sps:$4 sm:$0xff]  }
  0xdb   : > { %4331 = vmatpush1.bf16.msra.mxu1 %v5890_v30  ;;  %v5986_v30 = vld [vmem:[%s8430_s1 + $0x950] ss:$8 sps:$4 sm:$0xff]  }
  0xdc   : > { %4332 = vmatprep.subr.bf16.mxu1 %v5898_v31  ;;  %v5994_v31 = vld [vmem:[%s8430_s1 + $0x944] ss:$8 sps:$4 sm:$0xff]  }
  0xdd   : > { %4290 = vmatpush1.bf16.msra.mxu0 %v5893_v32  ;;  %v5989_v32 = vld [vmem:[%s8430_s1 + $0x840] ss:$8 sps:$4 sm:$0xff]  }
  0xde   : > { %4291 = vmatprep.subr.bf16.mxu0 %v5901_v33  ;;  %v5997_v33 = vld [vmem:[%s8430_s1 + $0x834] ss:$8 sps:$4 sm:$0xff]  }
  0xdf   : > { %4333 = vmatpush1.bf16.msra.mxu1 %v5896_v34  ;;  %v5992_v34 = vld [vmem:[%s8430_s1 + $0x940] ss:$8 sps:$4 sm:$0xff]  }
  0xe0   : > { %4334 = vmatprep.subr.bf16.mxu1 %v5904_v35  ;;  %v6000_v35 = vld [vmem:[%s8430_s1 + $0x934] ss:$8 sps:$4 sm:$0xff]  }
  0xe1   : > { %4292 = vmatpush1.bf16.msra.mxu0 %v5899_v36  ;;  %v5995_v36 = vld [vmem:[%s8430_s1 + $0x830] ss:$8 sps:$4 sm:$0xff]  }
  0xe2   : > { %4293 = vmatprep.subr.bf16.mxu0 %v5907_v37  ;;  %v6003_v37 = vld [vmem:[%s8430_s1 + $0x824] ss:$8 sps:$4 sm:$0xff]  }
  0xe3   : > { %4335 = vmatpush1.bf16.msra.mxu1 %v5902_v38  ;;  %v5998_v38 = vld [vmem:[%s8430_s1 + $0x930] ss:$8 sps:$4 sm:$0xff]  }
  0xe4   : > { %4336 = vmatprep.subr.bf16.mxu1 %v5910_v39  ;;  %v6006_v39 = vld [vmem:[%s8430_s1 + $0x924] ss:$8 sps:$4 sm:$0xff]  }
  0xe5   : > { %4294 = vmatpush1.bf16.msra.mxu0 %v5905_v40  ;;  %v6001_v40 = vld [vmem:[%s8430_s1 + $0x820] ss:$8 sps:$4 sm:$0xff]  }
  0xe6   : > { %4295 = vmatprep.subr.bf16.mxu0 %v5913_v41  ;;  %v6009_v41 = vld [vmem:[%s8430_s1 + $0x814] ss:$8 sps:$4 sm:$0xff]  }
  0xe7   : > { %4337 = vmatpush1.bf16.msra.mxu1 %v5908_v42  ;;  %v6004_v42 = vld [vmem:[%s8430_s1 + $0x920] ss:$8 sps:$4 sm:$0xff]  }
  0xe8   : > { %4338 = vmatprep.subr.bf16.mxu1 %v5916_v43  ;;  %v6012_v43 = vld [vmem:[%s8430_s1 + $0x914] ss:$8 sps:$4 sm:$0xff]  }
  0xe9   : > { %4296 = vmatpush1.bf16.msra.mxu0 %v5911_v44  ;;  %v6007_v44 = vld [vmem:[%s8430_s1 + $0x810] ss:$8 sps:$4 sm:$0xff]  }
  0xea   : > { %4297 = vmatprep.subr.bf16.mxu0 %v5919_v45  ;;  %v6015_v45 = vld [vmem:[%s8430_s1 + $0x804] ss:$8 sps:$4 sm:$0xff]  }
  0xeb   : > { %4339 = vmatpush1.bf16.msra.mxu1 %v5914_v46  ;;  %v6010_v46 = vld [vmem:[%s8430_s1 + $0x910] ss:$8 sps:$4 sm:$0xff]  }
  0xec   : > { %4340 = vmatprep.subr.bf16.mxu1 %v5922_v47  ;;  %v6018_v47 = vld [vmem:[%s8430_s1 + $0x904] ss:$8 sps:$4 sm:$0xff]  }
  0xed   : > { %4298 = vmatpush2.bf16.msra.mxu0 %v5917_v48  ;;  %v6013_v48 = vld [vmem:[%s8430_s1 + $0x800] ss:$8 sps:$4 sm:$0xff]  }
  0xee   : > { %4299 = vmatprep.subr.bf16.mxu0 %v5925_v49  ;;  %v6021_v49 = vld [vmem:[%s8430_s1 + $0x8f4] ss:$8 sps:$4 sm:$0xff]  }
  0xef   : > { %4341 = vmatpush2.bf16.msra.mxu1 %v5920_v50  ;;  %v6016_v50 = vld [vmem:[%s8430_s1 + $0x900] ss:$8 sps:$4 sm:$0xff]  }
  0xf0   : > { %4342 = vmatprep.subr.bf16.mxu1 %v5928_v51  ;;  %v6024_v51 = vld [vmem:[%s8430_s1 + $0x9f4] ss:$8 sps:$4 sm:$0xff]  }
  0xf1   : > { %4300 = vmatpush2.bf16.msra.mxu0 %v5923_v52  ;;  %v6019_v52 = vld [vmem:[%s8430_s1 + $0x8f0] ss:$8 sps:$4 sm:$0xff]  }
  0xf2   : > { %4301 = vmatprep.subr.bf16.mxu0 %v5931_v53  ;;  %v6027_v53 = vld [vmem:[%s8430_s1 + $0x8e4] ss:$8 sps:$4 sm:$0xff]  }
  0xf3   : > { %4343 = vmatpush2.bf16.msra.mxu1 %v5926_v54  ;;  %v6022_v54 = vld [vmem:[%s8430_s1 + $0x9f0] ss:$8 sps:$4 sm:$0xff]  }
  0xf4   : > { %4344 = vmatprep.subr.bf16.mxu1 %v5934_v55  ;;  %v6030_v55 = vld [vmem:[%s8430_s1 + $0x9e4] ss:$8 sps:$4 sm:$0xff]  }
  0xf5   : > { %4302 = vmatpush2.bf16.msra.mxu0 %v5929_v56  ;;  %v6025_v56 = vld [vmem:[%s8430_s1 + $0x8e0] ss:$8 sps:$4 sm:$0xff]  }
  0xf6   : > { %4303 = vmatprep.subr.bf16.mxu0 %v5937_v57  ;;  %v6033_v57 = vld [vmem:[%s8430_s1 + $0x8d4] ss:$8 sps:$4 sm:$0xff]  }
  0xf7   : > { %4345 = vmatpush2.bf16.msra.mxu1 %v5932_v58  ;;  %v6028_v58 = vld [vmem:[%s8430_s1 + $0x9e0] ss:$8 sps:$4 sm:$0xff]  }
  0xf8   : > { %4346 = vmatprep.subr.bf16.mxu1 %v5940_v59  ;;  %v6036_v59 = vld [vmem:[%s8430_s1 + $0x9d4] ss:$8 sps:$4 sm:$0xff]  }
  0xf9   : > { %4304 = vmatpush2.bf16.msra.mxu0 %v5935_v60  ;;  %v6031_v60 = vld [vmem:[%s8430_s1 + $0x8d0] ss:$8 sps:$4 sm:$0xff]  }
  0xfa   : > { %4305 = vmatprep.subr.bf16.mxu0 %v5943_v61  ;;  %v6039_v61 = vld [vmem:[%s8430_s1 + $0x8c4] ss:$8 sps:$4 sm:$0xff]  }
  0xfb   : > { %4347 = vmatpush2.bf16.msra.mxu1 %v5938_v62  ;;  %v6034_v62 = vld [vmem:[%s8430_s1 + $0x9d0] ss:$8 sps:$4 sm:$0xff]  }
  0xfc   : > { %4348 = vmatprep.subr.bf16.mxu1 %v5946_v63  ;;  %v6042_v63 = vld [vmem:[%s8430_s1 + $0x9c4] ss:$8 sps:$4 sm:$0xff]  }
  0xfd   : > { %4306 = vmatpush2.bf16.msra.mxu0 %v5941_v0  ;;  %v6037_v0 = vld [vmem:[%s8430_s1 + $0x8c0] ss:$8 sps:$4 sm:$0xff]  }
  0xfe   : > { %4307 = vmatprep.subr.bf16.mxu0 %v5949_v1  ;;  %v6045_v1 = vld [vmem:[%s8430_s1 + $0x8b4] ss:$8 sps:$4 sm:$0xff]  }
  0xff   : > { %4349 = vmatpush2.bf16.msra.mxu1 %v5944_v2  ;;  %v6040_v2 = vld [vmem:[%s8430_s1 + $0x9c0] ss:$8 sps:$4 sm:$0xff]  }
 0x100   : > { %4350 = vmatprep.subr.bf16.mxu1 %v5952_v3  ;;  %v6048_v3 = vld [vmem:[%s8430_s1 + $0x9b4] ss:$8 sps:$4 sm:$0xff]  }
 0x101   : > { %4308 = vmatpush2.bf16.msra.mxu0 %v5947_v4  ;;  %v6043_v4 = vld [vmem:[%s8430_s1 + $0x8b0] ss:$8 sps:$4 sm:$0xff]  }
 0x102   : > { %4309 = vmatprep.subr.bf16.mxu0 %v5955_v5  ;;  %v6051_v5 = vld [vmem:[%s8430_s1 + $0x8a4] ss:$8 sps:$4 sm:$0xff]  }
 0x103   : > { %4351 = vmatpush2.bf16.msra.mxu1 %v5950_v6  ;;  %v6046_v6 = vld [vmem:[%s8430_s1 + $0x9b0] ss:$8 sps:$4 sm:$0xff]  }
 0x104   : > { %4352 = vmatprep.subr.bf16.mxu1 %v5958_v7  ;;  %v6049_v7 = vld [vmem:[%s8430_s1 + $0x8a0] ss:$8 sps:$4 sm:$0xff]  }
 0x105   : > { %4310 = vmatpush2.bf16.msra.mxu0 %v5953_v8  ;;  %v6054_v8 = vld [vmem:[%s8430_s1 + $0x9a4] ss:$8 sps:$4 sm:$0xff]  }
 0x106   : > { %4311 = vmatprep.subr.bf16.mxu0 %v5961_v9  ;;  %v6052_v9 = vld [vmem:[%s8430_s1 + $0x9a0] ss:$8 sps:$4 sm:$0xff]  }
 0x107   : > { %4353 = vmatpush2.bf16.msra.mxu1 %v5956_v10  ;;  %v6057_v10 = vld [vmem:[%s8430_s1 + $0x894] ss:$8 sps:$4 sm:$0xff]  }
 0x108   : > { %4354 = vmatprep.subr.bf16.mxu1 %v5964_v12  ;;  %v6060_v12 = vld [vmem:[%s8430_s1 + $0x994] ss:$8 sps:$4 sm:$0xff]  }
 0x109   : > { %4312 = vmatpush2.bf16.msra.mxu0 %v5959_v11  ;;  %v6055_v11 = vld [vmem:[%s8430_s1 + $0x890] ss:$8 sps:$4 sm:$0xff]  }
 0x10a   : > { %4367 = vmatprep.subr.bf16.mxu0 %v5970_v14  ;;  %v6063_v14 = vld [vmem:[%s8430_s1 + $0x884] ss:$8 sps:$4 sm:$0xff]  }
 0x10b   : > { %4355 = vmatpush2.bf16.msra.mxu1 %v5962_v13  ;;  %v6058_v13 = vld [vmem:[%s8430_s1 + $0x990] ss:$8 sps:$4 sm:$0xff]  }
 0x10c   : > { %4314 = vmatmul.mubr.bf16.vlgmr.msra.gmra.mxu0 %v5965_v15  ;;  %4410 = vmatprep.subr.bf16.mxu1 %v5976_v18  ;;  %v6061_v15 = vld [vmem:[%s8430_s1 + $0x880] ss:$8 sps:$4 sm:$0xff]   ;;  %v6072_v18 = vld [vmem:[%s8430_s1 + $0xa74] ss:$8 sps:$4 sm:$0xff]  }
 0x10d   : > { %4368 = vmatpush1.bf16.msra.mxu0 %v5968_v16  ;;  %4399 = vmatprep.mubr.bf16.mxu0 %v6069_v19  ;;  %v6066_v16 = vld [vmem:[%s8430_s1 + $0x984] ss:$8 sps:$4 sm:$0xff]   ;;  %v6067_v19 = vld [vmem:[%s6696_s13 + $0x40] ss:$152 sps:$4 sm:$0xff]  }
 0x10e   : > { %4357 = vmatmul.mubr.bf16.vlgmr.msra.gmra.mxu1 %v5971_v17  ;;  %4369 = vmatprep.subr.bf16.mxu0 %v5979_v20  ;;  %v6064_v17 = vld [vmem:[%s8430_s1 + $0x980] ss:$8 sps:$4 sm:$0xff]   ;;  %v6078_v20 = vld [vmem:[%s8430_s1 + $0xb74] ss:$8 sps:$4 sm:$0xff]  }
 0x10f   : > { %4411 = vmatpush1.bf16.msra.mxu1 %v5974_v21  ;;  %4442 = vmatprep.mubr.bf16.mxu1 %v6075_v22  ;;  %v6070_v21 = vld [vmem:[%s8430_s1 + $0xa70] ss:$8 sps:$4 sm:$0xff]   ;;  %v6073_v22 = vld [vmem:[%s6696_s13 + $0x48] ss:$152 sps:$4 sm:$0xff]  }
 0x110   : > { %4412 = vmatprep.subr.bf16.mxu1 %v5982_v23  ;;  %v6171_v23 = vld [vmem:[%s6696_s13 + $0x54] ss:$152 sps:$4 sm:$0xff]  }
 0x111   : > { %4370 = vmatpush1.bf16.msra.mxu0 %v5977_v24  ;;  %v6081_v24 = vld [vmem:[%s8430_s1 + $0xa64] ss:$8 sps:$4 sm:$0xff]  }
 0x112   : > { %4371 = vmatprep.subr.bf16.mxu0 %v5985_v25  ;;  %v6076_v25 = vld [vmem:[%s8430_s1 + $0xb70] ss:$8 sps:$4 sm:$0xff]  }
 0x113   : > { %4413 = vmatpush1.bf16.msra.mxu1 %v5980_v26  ;;  %v6177_v26 = vld [vmem:[%s6696_s13 + $0x5c] ss:$152 sps:$4 sm:$0xff]  }
 0x114   : > { %4414 = vmatprep.subr.bf16.mxu1 %v5988_v27  ;;  %v6079_v27 = vld [vmem:[%s8430_s1 + $0xa60] ss:$8 sps:$4 sm:$0xff]  }
 0x115   : > { %4372 = vmatpush1.bf16.msra.mxu0 %v5983_v28  ;;  %v6084_v28 = vld [vmem:[%s8430_s1 + $0xb64] ss:$8 sps:$4 sm:$0xff]  }
 0x116   : > { %4373 = vmatprep.subr.bf16.mxu0 %v5991_v29  ;;  %v6082_v29 = vld [vmem:[%s8430_s1 + $0xb60] ss:$8 sps:$4 sm:$0xff]  }
 0x117   : > { %4415 = vmatpush1.bf16.msra.mxu1 %v5986_v30  ;;  %v6087_v30 = vld [vmem:[%s8430_s1 + $0xa54] ss:$8 sps:$4 sm:$0xff]  }
 0x118   : > { %4416 = vmatprep.subr.bf16.mxu1 %v5994_v31  ;;  %v6085_v31 = vld [vmem:[%s8430_s1 + $0xa50] ss:$8 sps:$4 sm:$0xff]  }
 0x119   : > { %4374 = vmatpush1.bf16.msra.mxu0 %v5989_v32  ;;  %v6090_v32 = vld [vmem:[%s8430_s1 + $0xb54] ss:$8 sps:$4 sm:$0xff]  }
 0x11a   : > { %4375 = vmatprep.subr.bf16.mxu0 %v5997_v33  ;;  %v6088_v33 = vld [vmem:[%s8430_s1 + $0xb50] ss:$8 sps:$4 sm:$0xff]  }
 0x11b   : > { %4417 = vmatpush1.bf16.msra.mxu1 %v5992_v34  ;;  %v6093_v34 = vld [vmem:[%s8430_s1 + $0xa44] ss:$8 sps:$4 sm:$0xff]  }
 0x11c   : > { %4418 = vmatprep.subr.bf16.mxu1 %v6000_v35  ;;  %v6091_v35 = vld [vmem:[%s8430_s1 + $0xa40] ss:$8 sps:$4 sm:$0xff]  }
 0x11d   : > { %4376 = vmatpush1.bf16.msra.mxu0 %v5995_v36  ;;  %v6096_v36 = vld [vmem:[%s8430_s1 + $0xb44] ss:$8 sps:$4 sm:$0xff]  }
 0x11e   : > { %4377 = vmatprep.subr.bf16.mxu0 %v6003_v37  ;;  %v6094_v37 = vld [vmem:[%s8430_s1 + $0xb40] ss:$8 sps:$4 sm:$0xff]  }
 0x11f   : > { %4419 = vmatpush1.bf16.msra.mxu1 %v5998_v38  ;;  %v6099_v38 = vld [vmem:[%s8430_s1 + $0xa34] ss:$8 sps:$4 sm:$0xff]  }
 0x120   : > { %4420 = vmatprep.subr.bf16.mxu1 %v6006_v39  ;;  %v6097_v39 = vld [vmem:[%s8430_s1 + $0xa30] ss:$8 sps:$4 sm:$0xff]  }
 0x121   : > { %4378 = vmatpush1.bf16.msra.mxu0 %v6001_v40  ;;  %v6102_v40 = vld [vmem:[%s8430_s1 + $0xb34] ss:$8 sps:$4 sm:$0xff]  }
 0x122   : > { %4379 = vmatprep.subr.bf16.mxu0 %v6009_v41  ;;  %v6100_v41 = vld [vmem:[%s8430_s1 + $0xb30] ss:$8 sps:$4 sm:$0xff]  }
 0x123   : > { %4421 = vmatpush1.bf16.msra.mxu1 %v6004_v42  ;;  %v6105_v42 = vld [vmem:[%s8430_s1 + $0xa24] ss:$8 sps:$4 sm:$0xff]  }
 0x124   : > { %4422 = vmatprep.subr.bf16.mxu1 %v6012_v43  ;;  %v6103_v43 = vld [vmem:[%s8430_s1 + $0xa20] ss:$8 sps:$4 sm:$0xff]  }
 0x125   : > { %4380 = vmatpush1.bf16.msra.mxu0 %v6007_v44  ;;  %v6108_v44 = vld [vmem:[%s8430_s1 + $0xb24] ss:$8 sps:$4 sm:$0xff]  }
 0x126   : > { %4381 = vmatprep.subr.bf16.mxu0 %v6015_v45  ;;  %v6106_v45 = vld [vmem:[%s8430_s1 + $0xb20] ss:$8 sps:$4 sm:$0xff]  }
 0x127   : > { %4423 = vmatpush1.bf16.msra.mxu1 %v6010_v46  ;;  %v6111_v46 = vld [vmem:[%s8430_s1 + $0xa14] ss:$8 sps:$4 sm:$0xff]  }
 0x128   : > { %4424 = vmatprep.subr.bf16.mxu1 %v6018_v47  ;;  %v6109_v47 = vld [vmem:[%s8430_s1 + $0xa10] ss:$8 sps:$4 sm:$0xff]  }
 0x129   : > { %4382 = vmatpush1.bf16.msra.mxu0 %v6013_v48  ;;  %v6114_v48 = vld [vmem:[%s8430_s1 + $0xb14] ss:$8 sps:$4 sm:$0xff]  }
 0x12a   : > { %4383 = vmatprep.subr.bf16.mxu0 %v6021_v49  ;;  %v6112_v49 = vld [vmem:[%s8430_s1 + $0xb10] ss:$8 sps:$4 sm:$0xff]  }
 0x12b   : > { %4425 = vmatpush1.bf16.msra.mxu1 %v6016_v50  ;;  %v6117_v50 = vld [vmem:[%s8430_s1 + $0xa04] ss:$8 sps:$4 sm:$0xff]  }
 0x12c   : > { %4426 = vmatprep.subr.bf16.mxu1 %v6024_v51  ;;  %v6115_v51 = vld [vmem:[%s8430_s1 + $0xa00] ss:$8 sps:$4 sm:$0xff]  }
 0x12d   : > { %4384 = vmatpush2.bf16.msra.mxu0 %v6019_v52  ;;  %v6120_v52 = vld [vmem:[%s8430_s1 + $0xb04] ss:$8 sps:$4 sm:$0xff]  }
 0x12e   : > { %4385 = vmatprep.subr.bf16.mxu0 %v6027_v53  ;;  %v6118_v53 = vld [vmem:[%s8430_s1 + $0xb00] ss:$8 sps:$4 sm:$0xff]  }
 0x12f   : > { %4427 = vmatpush2.bf16.msra.mxu1 %v6022_v54  ;;  %v6123_v54 = vld [vmem:[%s8430_s1 + $0xaf4] ss:$8 sps:$4 sm:$0xff]  }
 0x130   : > { %4428 = vmatprep.subr.bf16.mxu1 %v6030_v55  ;;  %v6121_v55 = vld [vmem:[%s8430_s1 + $0xaf0] ss:$8 sps:$4 sm:$0xff]  }
 0x131   : > { %4386 = vmatpush2.bf16.msra.mxu0 %v6025_v56  ;;  %v6126_v56 = vld [vmem:[%s8430_s1 + $0xbf4] ss:$8 sps:$4 sm:$0xff]  }
 0x132   : > { %4387 = vmatprep.subr.bf16.mxu0 %v6033_v57  ;;  %v6124_v57 = vld [vmem:[%s8430_s1 + $0xbf0] ss:$8 sps:$4 sm:$0xff]  }
 0x133   : > { %4429 = vmatpush2.bf16.msra.mxu1 %v6028_v58  ;;  %v6129_v58 = vld [vmem:[%s8430_s1 + $0xae4] ss:$8 sps:$4 sm:$0xff]  }
 0x134   : > { %4430 = vmatprep.subr.bf16.mxu1 %v6036_v59  ;;  %v6127_v59 = vld [vmem:[%s8430_s1 + $0xae0] ss:$8 sps:$4 sm:$0xff]  }
 0x135   : > { %4388 = vmatpush2.bf16.msra.mxu0 %v6031_v60  ;;  %v6132_v60 = vld [vmem:[%s8430_s1 + $0xbe4] ss:$8 sps:$4 sm:$0xff]  }
 0x136   : > { %4389 = vmatprep.subr.bf16.mxu0 %v6039_v61  ;;  %v6130_v61 = vld [vmem:[%s8430_s1 + $0xbe0] ss:$8 sps:$4 sm:$0xff]  }
 0x137   : > { %4431 = vmatpush2.bf16.msra.mxu1 %v6034_v62  ;;  %v6135_v62 = vld [vmem:[%s8430_s1 + $0xad4] ss:$8 sps:$4 sm:$0xff]  }
 0x138   : > { %4432 = vmatprep.subr.bf16.mxu1 %v6042_v63  ;;  %v6133_v63 = vld [vmem:[%s8430_s1 + $0xad0] ss:$8 sps:$4 sm:$0xff]  }
 0x139   : > { %4390 = vmatpush2.bf16.msra.mxu0 %v6037_v0  ;;  %v6138_v0 = vld [vmem:[%s8430_s1 + $0xbd4] ss:$8 sps:$4 sm:$0xff]  }
 0x13a   : > { %4391 = vmatprep.subr.bf16.mxu0 %v6045_v1  ;;  %v6136_v1 = vld [vmem:[%s8430_s1 + $0xbd0] ss:$8 sps:$4 sm:$0xff]  }
 0x13b   : > { %4433 = vmatpush2.bf16.msra.mxu1 %v6040_v2  ;;  %v6141_v2 = vld [vmem:[%s8430_s1 + $0xac4] ss:$8 sps:$4 sm:$0xff]  }
 0x13c   : > { %4434 = vmatprep.subr.bf16.mxu1 %v6048_v3  ;;  %v6139_v3 = vld [vmem:[%s8430_s1 + $0xac0] ss:$8 sps:$4 sm:$0xff]  }
 0x13d   : > { %4392 = vmatpush2.bf16.msra.mxu0 %v6043_v4  ;;  %v6144_v4 = vld [vmem:[%s8430_s1 + $0xbc4] ss:$8 sps:$4 sm:$0xff]  }
 0x13e   : > { %4393 = vmatprep.subr.bf16.mxu0 %v6051_v5  ;;  %v6142_v5 = vld [vmem:[%s8430_s1 + $0xbc0] ss:$8 sps:$4 sm:$0xff]  }
 0x13f   : > { %4435 = vmatpush2.bf16.msra.mxu1 %v6046_v6  ;;  %v6147_v6 = vld [vmem:[%s8430_s1 + $0xab4] ss:$8 sps:$4 sm:$0xff]  }
 0x140   : > { %4436 = vmatprep.subr.bf16.mxu1 %v6054_v8  ;;  %v6150_v8 = vld [vmem:[%s8430_s1 + $0xbb4] ss:$8 sps:$4 sm:$0xff]  }
 0x141   : > { %4394 = vmatpush2.bf16.msra.mxu0 %v6049_v7  ;;  %v6145_v7 = vld [vmem:[%s8430_s1 + $0xab0] ss:$8 sps:$4 sm:$0xff]  }
 0x142   : > { %4395 = vmatprep.subr.bf16.mxu0 %v6057_v10  ;;  %v6153_v10 = vld [vmem:[%s8430_s1 + $0xaa4] ss:$8 sps:$4 sm:$0xff]  }
 0x143   : > { %4437 = vmatpush2.bf16.msra.mxu1 %v6052_v9  ;;  %v6148_v9 = vld [vmem:[%s8430_s1 + $0xbb0] ss:$8 sps:$4 sm:$0xff]  }
 0x144   : > { %4438 = vmatprep.subr.bf16.mxu1 %v6060_v12  ;;  %v6156_v12 = vld [vmem:[%s8430_s1 + $0xba4] ss:$8 sps:$4 sm:$0xff]  }
 0x145   : > { %4396 = vmatpush2.bf16.msra.mxu0 %v6055_v11  ;;  %v6151_v11 = vld [vmem:[%s8430_s1 + $0xaa0] ss:$8 sps:$4 sm:$0xff]  }
 0x146   : > { %4397 = vmatprep.subr.bf16.mxu0 %v6063_v14  ;;  %v6159_v14 = vld [vmem:[%s8430_s1 + $0xa94] ss:$8 sps:$4 sm:$0xff]  }
 0x147   : > { %4439 = vmatpush2.bf16.msra.mxu1 %v6058_v13  ;;  %v6154_v13 = vld [vmem:[%s8430_s1 + $0xba0] ss:$8 sps:$4 sm:$0xff]  }
 0x148   : > { %4440 = vmatprep.subr.bf16.mxu1 %v6066_v16  ;;  %v6162_v16 = vld [vmem:[%s8430_s1 + $0xb94] ss:$8 sps:$4 sm:$0xff]  }
 0x149   : > { %4398 = vmatpush2.bf16.msra.mxu0 %v6061_v15  ;;  %v6157_v15 = vld [vmem:[%s8430_s1 + $0xa90] ss:$8 sps:$4 sm:$0xff]  }
 0x14a   : > { %4453 = vmatprep.subr.bf16.mxu0 %v6072_v18  ;;  %v6165_v18 = vld [vmem:[%s8430_s1 + $0xa84] ss:$8 sps:$4 sm:$0xff]  }
 0x14b   : > { %4441 = vmatpush2.bf16.msra.mxu1 %v6064_v17  ;;  %v6160_v17 = vld [vmem:[%s8430_s1 + $0xb90] ss:$8 sps:$4 sm:$0xff]  }
 0x14c   : > { %4400 = vmatmul.mubr.bf16.vlgmr.msra.gmra.mxu0 %v6067_v19  ;;  %4496 = vmatprep.subr.bf16.mxu1 %v6078_v20  ;;  %v6163_v19 = vld [vmem:[%s8430_s1 + $0xa80] ss:$8 sps:$4 sm:$0xff]   ;;  %v6168_v20 = vld [vmem:[%s8430_s1 + $0xb84] ss:$8 sps:$4 sm:$0xff]  }
 0x14d   : > { %4454 = vmatpush1.bf16.msra.mxu0 %v6070_v21  ;;  %4485 = vmatprep.mubr.bf16.mxu0 %v6171_v23  ;;  %v6166_v21 = vld [vmem:[%s8430_s1 + $0xb80] ss:$8 sps:$4 sm:$0xff]  }
 0x14e   : > { %4443 = vmatmul.mubr.bf16.vlgmr.msra.gmra.mxu1 %v6073_v22  ;;  %4455 = vmatprep.subr.bf16.mxu0 %v6081_v24  ;;  %v6174_v22 = vld [vmem:[%s8430_s1 + $0xc74] ss:$8 sps:$4 sm:$0xff]   ;;  %v6169_v23 = vld [vmem:[%s6696_s13 + $0x50] ss:$152 sps:$4 sm:$0xff]  }
 0x14f   : > { %4497 = vmatpush1.bf16.msra.mxu1 %v6076_v25  ;;  %4528 = vmatprep.mubr.bf16.mxu1 %v6177_v26  ;;  %v6180_v24 = vld [vmem:[%s8430_s1 + $0xd74] ss:$8 sps:$4 sm:$0xff]   ;;  %v6172_v25 = vld [vmem:[%s8430_s1 + $0xc70] ss:$8 sps:$4 sm:$0xff]  }
 0x150   : > { %4498 = vmatprep.subr.bf16.mxu1 %v6084_v28  ;;  %v6175_v26 = vld [vmem:[%s6696_s13 + $0x58] ss:$152 sps:$4 sm:$0xff]   ;;  %v6183_v28 = vld [vmem:[%s8430_s1 + $0xc64] ss:$8 sps:$4 sm:$0xff]  }
 0x151   : > { %4456 = vmatpush1.bf16.msra.mxu0 %v6079_v27  ;;  %v6273_v27 = vld [vmem:[%s6696_s13 + $0x64] ss:$152 sps:$4 sm:$0xff]  }
 0x152   : > { %4457 = vmatprep.subr.bf16.mxu0 %v6087_v30  ;;  %v6279_v30 = vld [vmem:[%s6696_s13 + $0x6c] ss:$152 sps:$4 sm:$0xff]  }
 0x153   : > { %4499 = vmatpush1.bf16.msra.mxu1 %v6082_v29  ;;  %v6178_v29 = vld [vmem:[%s8430_s1 + $0xd70] ss:$8 sps:$4 sm:$0xff]  }
 0x154   : > { %4500 = vmatprep.subr.bf16.mxu1 %v6090_v32  ;;  %v6181_v32 = vld [vmem:[%s8430_s1 + $0xc60] ss:$8 sps:$4 sm:$0xff]  }
 0x155   : > { %4458 = vmatpush1.bf16.msra.mxu0 %v6085_v31  ;;  %v6186_v31 = vld [vmem:[%s8430_s1 + $0xd64] ss:$8 sps:$4 sm:$0xff]  }
 0x156   : > { %4459 = vmatprep.subr.bf16.mxu0 %v6093_v34  ;;  %v6184_v34 = vld [vmem:[%s8430_s1 + $0xd60] ss:$8 sps:$4 sm:$0xff]  }
 0x157   : > { %4501 = vmatpush1.bf16.msra.mxu1 %v6088_v33  ;;  %v6189_v33 = vld [vmem:[%s8430_s1 + $0xc54] ss:$8 sps:$4 sm:$0xff]  }
 0x158   : > { %4502 = vmatprep.subr.bf16.mxu1 %v6096_v36  ;;  %v6187_v36 = vld [vmem:[%s8430_s1 + $0xc50] ss:$8 sps:$4 sm:$0xff]  }
 0x159   : > { %4460 = vmatpush1.bf16.msra.mxu0 %v6091_v35  ;;  %v6192_v35 = vld [vmem:[%s8430_s1 + $0xd54] ss:$8 sps:$4 sm:$0xff]  }
 0x15a   : > { %4461 = vmatprep.subr.bf16.mxu0 %v6099_v38  ;;  %v6190_v38 = vld [vmem:[%s8430_s1 + $0xd50] ss:$8 sps:$4 sm:$0xff]  }
 0x15b   : > { %4503 = vmatpush1.bf16.msra.mxu1 %v6094_v37  ;;  %v6195_v37 = vld [vmem:[%s8430_s1 + $0xc44] ss:$8 sps:$4 sm:$0xff]  }
 0x15c   : > { %4504 = vmatprep.subr.bf16.mxu1 %v6102_v40  ;;  %v6193_v40 = vld [vmem:[%s8430_s1 + $0xc40] ss:$8 sps:$4 sm:$0xff]  }
 0x15d   : > { %4462 = vmatpush1.bf16.msra.mxu0 %v6097_v39  ;;  %v6198_v39 = vld [vmem:[%s8430_s1 + $0xd44] ss:$8 sps:$4 sm:$0xff]  }
 0x15e   : > { %4463 = vmatprep.subr.bf16.mxu0 %v6105_v42  ;;  %v6196_v42 = vld [vmem:[%s8430_s1 + $0xd40] ss:$8 sps:$4 sm:$0xff]  }
 0x15f   : > { %4505 = vmatpush1.bf16.msra.mxu1 %v6100_v41  ;;  %v6201_v41 = vld [vmem:[%s8430_s1 + $0xc34] ss:$8 sps:$4 sm:$0xff]  }
 0x160   : > { %4506 = vmatprep.subr.bf16.mxu1 %v6108_v44  ;;  %v6199_v44 = vld [vmem:[%s8430_s1 + $0xc30] ss:$8 sps:$4 sm:$0xff]  }
 0x161   : > { %4464 = vmatpush1.bf16.msra.mxu0 %v6103_v43  ;;  %v6204_v43 = vld [vmem:[%s8430_s1 + $0xd34] ss:$8 sps:$4 sm:$0xff]  }
 0x162   : > { %4465 = vmatprep.subr.bf16.mxu0 %v6111_v46  ;;  %v6202_v46 = vld [vmem:[%s8430_s1 + $0xd30] ss:$8 sps:$4 sm:$0xff]  }
 0x163   : > { %4507 = vmatpush1.bf16.msra.mxu1 %v6106_v45  ;;  %v6207_v45 = vld [vmem:[%s8430_s1 + $0xc24] ss:$8 sps:$4 sm:$0xff]  }
 0x164   : > { %4508 = vmatprep.subr.bf16.mxu1 %v6114_v48  ;;  %v6205_v48 = vld [vmem:[%s8430_s1 + $0xc20] ss:$8 sps:$4 sm:$0xff]  }
 0x165   : > { %4466 = vmatpush1.bf16.msra.mxu0 %v6109_v47  ;;  %v6210_v47 = vld [vmem:[%s8430_s1 + $0xd24] ss:$8 sps:$4 sm:$0xff]  }
 0x166   : > { %4467 = vmatprep.subr.bf16.mxu0 %v6117_v50  ;;  %v6208_v50 = vld [vmem:[%s8430_s1 + $0xd20] ss:$8 sps:$4 sm:$0xff]  }
 0x167   : > { %4509 = vmatpush1.bf16.msra.mxu1 %v6112_v49  ;;  %v6213_v49 = vld [vmem:[%s8430_s1 + $0xc14] ss:$8 sps:$4 sm:$0xff]  }
 0x168   : > { %4510 = vmatprep.subr.bf16.mxu1 %v6120_v52  ;;  %v6211_v52 = vld [vmem:[%s8430_s1 + $0xc10] ss:$8 sps:$4 sm:$0xff]  }
 0x169   : > { %4468 = vmatpush1.bf16.msra.mxu0 %v6115_v51  ;;  %v6216_v51 = vld [vmem:[%s8430_s1 + $0xd14] ss:$8 sps:$4 sm:$0xff]  }
 0x16a   : > { %4469 = vmatprep.subr.bf16.mxu0 %v6123_v54  ;;  %v6214_v54 = vld [vmem:[%s8430_s1 + $0xd10] ss:$8 sps:$4 sm:$0xff]  }
 0x16b   : > { %4511 = vmatpush1.bf16.msra.mxu1 %v6118_v53  ;;  %v6219_v53 = vld [vmem:[%s8430_s1 + $0xc04] ss:$8 sps:$4 sm:$0xff]  }
 0x16c   : > { %4512 = vmatprep.subr.bf16.mxu1 %v6126_v56  ;;  %v6217_v56 = vld [vmem:[%s8430_s1 + $0xc00] ss:$8 sps:$4 sm:$0xff]  }
 0x16d   : > { %4470 = vmatpush2.bf16.msra.mxu0 %v6121_v55  ;;  %v6222_v55 = vld [vmem:[%s8430_s1 + $0xd04] ss:$8 sps:$4 sm:$0xff]  }
 0x16e   : > { %4471 = vmatprep.subr.bf16.mxu0 %v6129_v58  ;;  %v6220_v58 = vld [vmem:[%s8430_s1 + $0xd00] ss:$8 sps:$4 sm:$0xff]  }
 0x16f   : > { %4513 = vmatpush2.bf16.msra.mxu1 %v6124_v57  ;;  %v6225_v57 = vld [vmem:[%s8430_s1 + $0xcf4] ss:$8 sps:$4 sm:$0xff]  }
 0x170   : > { %4514 = vmatprep.subr.bf16.mxu1 %v6132_v60  ;;  %v6223_v60 = vld [vmem:[%s8430_s1 + $0xcf0] ss:$8 sps:$4 sm:$0xff]  }
 0x171   : > { %4472 = vmatpush2.bf16.msra.mxu0 %v6127_v59  ;;  %v6228_v59 = vld [vmem:[%s8430_s1 + $0xdf4] ss:$8 sps:$4 sm:$0xff]  }
 0x172   : > { %4473 = vmatprep.subr.bf16.mxu0 %v6135_v62  ;;  %v6226_v62 = vld [vmem:[%s8430_s1 + $0xdf0] ss:$8 sps:$4 sm:$0xff]  }
 0x173   : > { %4515 = vmatpush2.bf16.msra.mxu1 %v6130_v61  ;;  %v6231_v61 = vld [vmem:[%s8430_s1 + $0xce4] ss:$8 sps:$4 sm:$0xff]  }
 0x174   : > { %4516 = vmatprep.subr.bf16.mxu1 %v6138_v0  ;;  %v6229_v0 = vld [vmem:[%s8430_s1 + $0xce0] ss:$8 sps:$4 sm:$0xff]  }
 0x175   : > { %4474 = vmatpush2.bf16.msra.mxu0 %v6133_v63  ;;  %v6234_v63 = vld [vmem:[%s8430_s1 + $0xde4] ss:$8 sps:$4 sm:$0xff]  }
 0x176   : > { %4475 = vmatprep.subr.bf16.mxu0 %v6141_v2  ;;  %v6232_v2 = vld [vmem:[%s8430_s1 + $0xde0] ss:$8 sps:$4 sm:$0xff]  }
 0x177   : > { %4517 = vmatpush2.bf16.msra.mxu1 %v6136_v1  ;;  %v6237_v1 = vld [vmem:[%s8430_s1 + $0xcd4] ss:$8 sps:$4 sm:$0xff]  }
 0x178   : > { %4518 = vmatprep.subr.bf16.mxu1 %v6144_v4  ;;  %v6235_v4 = vld [vmem:[%s8430_s1 + $0xcd0] ss:$8 sps:$4 sm:$0xff]  }
 0x179   : > { %4476 = vmatpush2.bf16.msra.mxu0 %v6139_v3  ;;  %v6240_v3 = vld [vmem:[%s8430_s1 + $0xdd4] ss:$8 sps:$4 sm:$0xff]  }
 0x17a   : > { %4477 = vmatprep.subr.bf16.mxu0 %v6147_v6  ;;  %v6238_v6 = vld [vmem:[%s8430_s1 + $0xdd0] ss:$8 sps:$4 sm:$0xff]  }
 0x17b   : > { %4519 = vmatpush2.bf16.msra.mxu1 %v6142_v5  ;;  %v6243_v5 = vld [vmem:[%s8430_s1 + $0xcc4] ss:$8 sps:$4 sm:$0xff]  }
 0x17c   : > { %4520 = vmatprep.subr.bf16.mxu1 %v6150_v8  ;;  %v6241_v8 = vld [vmem:[%s8430_s1 + $0xcc0] ss:$8 sps:$4 sm:$0xff]  }
 0x17d   : > { %4478 = vmatpush2.bf16.msra.mxu0 %v6145_v7  ;;  %v6246_v7 = vld [vmem:[%s8430_s1 + $0xdc4] ss:$8 sps:$4 sm:$0xff]  }
 0x17e   : > { %4479 = vmatprep.subr.bf16.mxu0 %v6153_v10  ;;  %v6244_v10 = vld [vmem:[%s8430_s1 + $0xdc0] ss:$8 sps:$4 sm:$0xff]  }
 0x17f   : > { %4521 = vmatpush2.bf16.msra.mxu1 %v6148_v9  ;;  %v6249_v9 = vld [vmem:[%s8430_s1 + $0xcb4] ss:$8 sps:$4 sm:$0xff]  }
 0x180   : > { %4522 = vmatprep.subr.bf16.mxu1 %v6156_v12  ;;  %v6247_v12 = vld [vmem:[%s8430_s1 + $0xcb0] ss:$8 sps:$4 sm:$0xff]  }
 0x181   : > { %4480 = vmatpush2.bf16.msra.mxu0 %v6151_v11  ;;  %v6252_v11 = vld [vmem:[%s8430_s1 + $0xdb4] ss:$8 sps:$4 sm:$0xff]  }
 0x182   : > { %4481 = vmatprep.subr.bf16.mxu0 %v6159_v14  ;;  %v6250_v14 = vld [vmem:[%s8430_s1 + $0xdb0] ss:$8 sps:$4 sm:$0xff]  }
 0x183   : > { %4523 = vmatpush2.bf16.msra.mxu1 %v6154_v13  ;;  %v6255_v13 = vld [vmem:[%s8430_s1 + $0xca4] ss:$8 sps:$4 sm:$0xff]  }
 0x184   : > { %4524 = vmatprep.subr.bf16.mxu1 %v6162_v16  ;;  %v6253_v16 = vld [vmem:[%s8430_s1 + $0xca0] ss:$8 sps:$4 sm:$0xff]  }
 0x185   : > { %4482 = vmatpush2.bf16.msra.mxu0 %v6157_v15  ;;  %v6258_v15 = vld [vmem:[%s8430_s1 + $0xda4] ss:$8 sps:$4 sm:$0xff]  }
 0x186   : > { %4483 = vmatprep.subr.bf16.mxu0 %v6165_v18  ;;  %v6256_v18 = vld [vmem:[%s8430_s1 + $0xda0] ss:$8 sps:$4 sm:$0xff]  }
 0x187   : > { %4525 = vmatpush2.bf16.msra.mxu1 %v6160_v17  ;;  %v6261_v17 = vld [vmem:[%s8430_s1 + $0xc94] ss:$8 sps:$4 sm:$0xff]  }
 0x188   : > { %4526 = vmatprep.subr.bf16.mxu1 %v6168_v20  ;;  %v6259_v20 = vld [vmem:[%s8430_s1 + $0xc90] ss:$8 sps:$4 sm:$0xff]  }
 0x189   : > { %4484 = vmatpush2.bf16.msra.mxu0 %v6163_v19  ;;  %v6264_v19 = vld [vmem:[%s8430_s1 + $0xd94] ss:$8 sps:$4 sm:$0xff]  }
 0x18a   : > { %4539 = vmatprep.subr.bf16.mxu0 %v6174_v22  ;;  %v6262_v22 = vld [vmem:[%s8430_s1 + $0xd90] ss:$8 sps:$4 sm:$0xff]  }
 0x18b   : > { %4527 = vmatpush2.bf16.msra.mxu1 %v6166_v21  ;;  %v6267_v21 = vld [vmem:[%s8430_s1 + $0xc84] ss:$8 sps:$4 sm:$0xff]  }
 0x18c   : > { %4486 = vmatmul.mubr.bf16.vlgmr.msra.gmra.mxu0 %v6169_v23  ;;  %4582 = vmatprep.subr.bf16.mxu1 %v6180_v24  ;;  %v6270_v23 = vld [vmem:[%s8430_s1 + $0xd84] ss:$8 sps:$4 sm:$0xff]   ;;  %v6265_v24 = vld [vmem:[%s8430_s1 + $0xc80] ss:$8 sps:$4 sm:$0xff]  }
 0x18d   : > { %4540 = vmatpush1.bf16.msra.mxu0 %v6172_v25  ;;  %4571 = vmatprep.mubr.bf16.mxu0 %v6273_v27  ;;  %v6276_v25 = vld [vmem:[%s8430_s1 + $0xe74] ss:$8 sps:$4 sm:$0xff]   ;;  %v6271_v27 = vld [vmem:[%s6696_s13 + $0x60] ss:$152 sps:$4 sm:$0xff]  }
 0x18e   : > { %4529 = vmatmul.mubr.bf16.vlgmr.msra.gmra.mxu1 %v6175_v26  ;;  %4541 = vmatprep.subr.bf16.mxu0 %v6183_v28  ;;  %v6268_v26 = vld [vmem:[%s8430_s1 + $0xd80] ss:$8 sps:$4 sm:$0xff]   ;;  %v6282_v28 = vld [vmem:[%s8430_s1 + $0xf74] ss:$8 sps:$4 sm:$0xff]  }
 0x18f   : > { %4583 = vmatpush1.bf16.msra.mxu1 %v6178_v29  ;;  %4614 = vmatprep.mubr.bf16.mxu1 %v6279_v30  ;;  %v6274_v29 = vld [vmem:[%s8430_s1 + $0xe70] ss:$8 sps:$4 sm:$0xff]   ;;  %v6375_v30 = vld [vmem:[%s6696_s13 + $0x74] ss:$152 sps:$4 sm:$0xff]  }
 0x190   : > { %4584 = vmatprep.subr.bf16.mxu1 %v6186_v31  ;;  %v6277_v31 = vld [vmem:[%s6696_s13 + $0x68] ss:$152 sps:$4 sm:$0xff]  }
 0x191   : > { %4542 = vmatpush1.bf16.msra.mxu0 %v6181_v32  ;;  %v6285_v32 = vld [vmem:[%s8430_s1 + $0xe64] ss:$8 sps:$4 sm:$0xff]  }
 0x192   : > { %4543 = vmatprep.subr.bf16.mxu0 %v6189_v33  ;;  %v6280_v33 = vld [vmem:[%s8430_s1 + $0xf70] ss:$8 sps:$4 sm:$0xff]  }
 0x193   : > { %4585 = vmatpush1.bf16.msra.mxu1 %v6184_v34  ;;  %v6381_v34 = vld [vmem:[%s6696_s13 + $0x7c] ss:$152 sps:$4 sm:$0xff]  }
 0x194   : > { %4586 = vmatprep.subr.bf16.mxu1 %v6192_v35  ;;  %v6288_v35 = vld [vmem:[%s8430_s1 + $0xf64] ss:$8 sps:$4 sm:$0xff]  }
 0x195   : > { %4544 = vmatpush1.bf16.msra.mxu0 %v6187_v36  ;;  %v6283_v36 = vld [vmem:[%s8430_s1 + $0xe60] ss:$8 sps:$4 sm:$0xff]  }
 0x196   : > { %4545 = vmatprep.subr.bf16.mxu0 %v6195_v37  ;;  %v6291_v37 = vld [vmem:[%s8430_s1 + $0xe54] ss:$8 sps:$4 sm:$0xff]  }
 0x197   : > { %4587 = vmatpush1.bf16.msra.mxu1 %v6190_v38  ;;  %v6286_v38 = vld [vmem:[%s8430_s1 + $0xf60] ss:$8 sps:$4 sm:$0xff]  }
 0x198   : > { %4588 = vmatprep.subr.bf16.mxu1 %v6198_v39  ;;  %v6294_v39 = vld [vmem:[%s8430_s1 + $0xf54] ss:$8 sps:$4 sm:$0xff]  }
 0x199   : > { %4546 = vmatpush1.bf16.msra.mxu0 %v6193_v40  ;;  %v6289_v40 = vld [vmem:[%s8430_s1 + $0xe50] ss:$8 sps:$4 sm:$0xff]  }
 0x19a   : > { %4547 = vmatprep.subr.bf16.mxu0 %v6201_v41  ;;  %v6297_v41 = vld [vmem:[%s8430_s1 + $0xe44] ss:$8 sps:$4 sm:$0xff]  }
 0x19b   : > { %4589 = vmatpush1.bf16.msra.mxu1 %v6196_v42  ;;  %v6292_v42 = vld [vmem:[%s8430_s1 + $0xf50] ss:$8 sps:$4 sm:$0xff]  }
 0x19c   : > { %4590 = vmatprep.subr.bf16.mxu1 %v6204_v43  ;;  %v6300_v43 = vld [vmem:[%s8430_s1 + $0xf44] ss:$8 sps:$4 sm:$0xff]  }
 0x19d   : > { %4548 = vmatpush1.bf16.msra.mxu0 %v6199_v44  ;;  %v6295_v44 = vld [vmem:[%s8430_s1 + $0xe40] ss:$8 sps:$4 sm:$0xff]  }
 0x19e   : > { %4549 = vmatprep.subr.bf16.mxu0 %v6207_v45  ;;  %v6303_v45 = vld [vmem:[%s8430_s1 + $0xe34] ss:$8 sps:$4 sm:$0xff]  }
 0x19f   : > { %4591 = vmatpush1.bf16.msra.mxu1 %v6202_v46  ;;  %v6298_v46 = vld [vmem:[%s8430_s1 + $0xf40] ss:$8 sps:$4 sm:$0xff]  }
 0x1a0   : > { %4592 = vmatprep.subr.bf16.mxu1 %v6210_v47  ;;  %v6306_v47 = vld [vmem:[%s8430_s1 + $0xf34] ss:$8 sps:$4 sm:$0xff]  }
 0x1a1   : > { %4550 = vmatpush1.bf16.msra.mxu0 %v6205_v48  ;;  %v6301_v48 = vld [vmem:[%s8430_s1 + $0xe30] ss:$8 sps:$4 sm:$0xff]  }
 0x1a2   : > { %4551 = vmatprep.subr.bf16.mxu0 %v6213_v49  ;;  %v6309_v49 = vld [vmem:[%s8430_s1 + $0xe24] ss:$8 sps:$4 sm:$0xff]  }
 0x1a3   : > { %4593 = vmatpush1.bf16.msra.mxu1 %v6208_v50  ;;  %v6304_v50 = vld [vmem:[%s8430_s1 + $0xf30] ss:$8 sps:$4 sm:$0xff]  }
 0x1a4   : > { %4594 = vmatprep.subr.bf16.mxu1 %v6216_v51  ;;  %v6312_v51 = vld [vmem:[%s8430_s1 + $0xf24] ss:$8 sps:$4 sm:$0xff]  }
 0x1a5   : > { %4552 = vmatpush1.bf16.msra.mxu0 %v6211_v52  ;;  %v6307_v52 = vld [vmem:[%s8430_s1 + $0xe20] ss:$8 sps:$4 sm:$0xff]  }
 0x1a6   : > { %4553 = vmatprep.subr.bf16.mxu0 %v6219_v53  ;;  %v6315_v53 = vld [vmem:[%s8430_s1 + $0xe14] ss:$8 sps:$4 sm:$0xff]  }
 0x1a7   : > { %4595 = vmatpush1.bf16.msra.mxu1 %v6214_v54  ;;  %v6310_v54 = vld [vmem:[%s8430_s1 + $0xf20] ss:$8 sps:$4 sm:$0xff]  }
 0x1a8   : > { %4596 = vmatprep.subr.bf16.mxu1 %v6222_v55  ;;  %v6318_v55 = vld [vmem:[%s8430_s1 + $0xf14] ss:$8 sps:$4 sm:$0xff]  }
 0x1a9   : > { %4554 = vmatpush1.bf16.msra.mxu0 %v6217_v56  ;;  %v6313_v56 = vld [vmem:[%s8430_s1 + $0xe10] ss:$8 sps:$4 sm:$0xff]  }
 0x1aa   : > { %4555 = vmatprep.subr.bf16.mxu0 %v6225_v57  ;;  %v6321_v57 = vld [vmem:[%s8430_s1 + $0xe04] ss:$8 sps:$4 sm:$0xff]  }
 0x1ab   : > { %4597 = vmatpush1.bf16.msra.mxu1 %v6220_v58  ;;  %v6316_v58 = vld [vmem:[%s8430_s1 + $0xf10] ss:$8 sps:$4 sm:$0xff]  }
 0x1ac   : > { %4598 = vmatprep.subr.bf16.mxu1 %v6228_v59  ;;  %v6324_v59 = vld [vmem:[%s8430_s1 + $0xf04] ss:$8 sps:$4 sm:$0xff]  }
 0x1ad   : > { %4556 = vmatpush2.bf16.msra.mxu0 %v6223_v60  ;;  %v6319_v60 = vld [vmem:[%s8430_s1 + $0xe00] ss:$8 sps:$4 sm:$0xff]  }
 0x1ae   : > { %4557 = vmatprep.subr.bf16.mxu0 %v6231_v61  ;;  %v6327_v61 = vld [vmem:[%s8430_s1 + $0xef4] ss:$8 sps:$4 sm:$0xff]  }
 0x1af   : > { %4599 = vmatpush2.bf16.msra.mxu1 %v6226_v62  ;;  %v6322_v62 = vld [vmem:[%s8430_s1 + $0xf00] ss:$8 sps:$4 sm:$0xff]  }
 0x1b0   : > { %4600 = vmatprep.subr.bf16.mxu1 %v6234_v63  ;;  %v6330_v63 = vld [vmem:[%s8430_s1 + $0xff4] ss:$8 sps:$4 sm:$0xff]  }
 0x1b1   : > { %4558 = vmatpush2.bf16.msra.mxu0 %v6229_v0  ;;  %v6325_v0 = vld [vmem:[%s8430_s1 + $0xef0] ss:$8 sps:$4 sm:$0xff]  }
 0x1b2   : > { %4559 = vmatprep.subr.bf16.mxu0 %v6237_v1  ;;  %v6333_v1 = vld [vmem:[%s8430_s1 + $0xee4] ss:$8 sps:$4 sm:$0xff]  }
 0x1b3   : > { %4601 = vmatpush2.bf16.msra.mxu1 %v6232_v2  ;;  %v6328_v2 = vld [vmem:[%s8430_s1 + $0xff0] ss:$8 sps:$4 sm:$0xff]  }
 0x1b4   : > { %4602 = vmatprep.subr.bf16.mxu1 %v6240_v3  ;;  %v6336_v3 = vld [vmem:[%s8430_s1 + $0xfe4] ss:$8 sps:$4 sm:$0xff]  }
 0x1b5   : > { %4560 = vmatpush2.bf16.msra.mxu0 %v6235_v4  ;;  %v6331_v4 = vld [vmem:[%s8430_s1 + $0xee0] ss:$8 sps:$4 sm:$0xff]  }
 0x1b6   : > { %4561 = vmatprep.subr.bf16.mxu0 %v6243_v5  ;;  %v6339_v5 = vld [vmem:[%s8430_s1 + $0xed4] ss:$8 sps:$4 sm:$0xff]  }
 0x1b7   : > { %4603 = vmatpush2.bf16.msra.mxu1 %v6238_v6  ;;  %v6334_v6 = vld [vmem:[%s8430_s1 + $0xfe0] ss:$8 sps:$4 sm:$0xff]  }
 0x1b8   : > { %4604 = vmatprep.subr.bf16.mxu1 %v6246_v7  ;;  %v6342_v7 = vld [vmem:[%s8430_s1 + $0xfd4] ss:$8 sps:$4 sm:$0xff]  }
 0x1b9   : > { %4562 = vmatpush2.bf16.msra.mxu0 %v6241_v8  ;;  %v6337_v8 = vld [vmem:[%s8430_s1 + $0xed0] ss:$8 sps:$4 sm:$0xff]  }
 0x1ba   : > { %4563 = vmatprep.subr.bf16.mxu0 %v6249_v9  ;;  %v6345_v9 = vld [vmem:[%s8430_s1 + $0xec4] ss:$8 sps:$4 sm:$0xff]  }
 0x1bb   : > { %4605 = vmatpush2.bf16.msra.mxu1 %v6244_v10  ;;  %v6340_v10 = vld [vmem:[%s8430_s1 + $0xfd0] ss:$8 sps:$4 sm:$0xff]  }
 0x1bc   : > { %4606 = vmatprep.subr.bf16.mxu1 %v6252_v11  ;;  %v6348_v11 = vld [vmem:[%s8430_s1 + $0xfc4] ss:$8 sps:$4 sm:$0xff]  }
 0x1bd   : > { %4564 = vmatpush2.bf16.msra.mxu0 %v6247_v12  ;;  %v6343_v12 = vld [vmem:[%s8430_s1 + $0xec0] ss:$8 sps:$4 sm:$0xff]  }
 0x1be   : > { %4565 = vmatprep.subr.bf16.mxu0 %v6255_v13  ;;  %v6351_v13 = vld [vmem:[%s8430_s1 + $0xeb4] ss:$8 sps:$4 sm:$0xff]  }
 0x1bf   : > { %4607 = vmatpush2.bf16.msra.mxu1 %v6250_v14  ;;  %v6346_v14 = vld [vmem:[%s8430_s1 + $0xfc0] ss:$8 sps:$4 sm:$0xff]  }
 0x1c0   : > { %4608 = vmatprep.subr.bf16.mxu1 %v6258_v15  ;;  %v6354_v15 = vld [vmem:[%s8430_s1 + $0xfb4] ss:$8 sps:$4 sm:$0xff]  }
 0x1c1   : > { %4566 = vmatpush2.bf16.msra.mxu0 %v6253_v16  ;;  %v6349_v16 = vld [vmem:[%s8430_s1 + $0xeb0] ss:$8 sps:$4 sm:$0xff]  }
 0x1c2   : > { %4567 = vmatprep.subr.bf16.mxu0 %v6261_v17  ;;  %v6357_v17 = vld [vmem:[%s8430_s1 + $0xea4] ss:$8 sps:$4 sm:$0xff]  }
 0x1c3   : > { %4609 = vmatpush2.bf16.msra.mxu1 %v6256_v18  ;;  %v6352_v18 = vld [vmem:[%s8430_s1 + $0xfb0] ss:$8 sps:$4 sm:$0xff]  }
 0x1c4   : > { %4610 = vmatprep.subr.bf16.mxu1 %v6264_v19  ;;  %v6360_v19 = vld [vmem:[%s8430_s1 + $0xfa4] ss:$8 sps:$4 sm:$0xff]  }
 0x1c5   : > { %4568 = vmatpush2.bf16.msra.mxu0 %v6259_v20  ;;  %v6355_v20 = vld [vmem:[%s8430_s1 + $0xea0] ss:$8 sps:$4 sm:$0xff]  }
 0x1c6   : > { %4569 = vmatprep.subr.bf16.mxu0 %v6267_v21  ;;  %v6363_v21 = vld [vmem:[%s8430_s1 + $0xe94] ss:$8 sps:$4 sm:$0xff]  }
 0x1c7   : > { %4611 = vmatpush2.bf16.msra.mxu1 %v6262_v22  ;;  %v6358_v22 = vld [vmem:[%s8430_s1 + $0xfa0] ss:$8 sps:$4 sm:$0xff]  }
 0x1c8   : > { %4612 = vmatprep.subr.bf16.mxu1 %v6270_v23  ;;  %v6366_v23 = vld [vmem:[%s8430_s1 + $0xf94] ss:$8 sps:$4 sm:$0xff]  }
 0x1c9   : > { %4570 = vmatpush2.bf16.msra.mxu0 %v6265_v24  ;;  %v6361_v24 = vld [vmem:[%s8430_s1 + $0xe90] ss:$8 sps:$4 sm:$0xff]  }
 0x1ca   : > { %4625 = vmatprep.subr.bf16.mxu0 %v6276_v25  ;;  %v6369_v25 = vld [vmem:[%s8430_s1 + $0xe84] ss:$8 sps:$4 sm:$0xff]  }
 0x1cb   : > { %4613 = vmatpush2.bf16.msra.mxu1 %v6268_v26  ;;  %v6364_v26 = vld [vmem:[%s8430_s1 + $0xf90] ss:$8 sps:$4 sm:$0xff]  }
 0x1cc   : > { %4572 = vmatmul.mubr.bf16.vlgmr.msra.gmra.mxu0 %v6271_v27  ;;  %4668 = vmatprep.subr.bf16.mxu1 %v6282_v28  ;;  %v6372_v27 = vld [vmem:[%s8430_s1 + $0xf84] ss:$8 sps:$4 sm:$0xff]   ;;  %v6367_v28 = vld [vmem:[%s8430_s1 + $0xe80] ss:$8 sps:$4 sm:$0xff]  }
 0x1cd   : > { %4626 = vmatpush1.bf16.msra.mxu0 %v6274_v29  ;;  %4657 = vmatprep.mubr.bf16.mxu0 %v6375_v30  ;;  %v6378_v29 = vld [vmem:[%s8430_s1 + $0x1074] ss:$8 sps:$4 sm:$0xff]   ;;  %v6370_v30 = vld [vmem:[%s8430_s1 + $0xf80] ss:$8 sps:$4 sm:$0xff]  }
 0x1ce   : > { %4615 = vmatmul.mubr.bf16.vlgmr.msra.gmra.mxu1 %v6277_v31  ;;  %4627 = vmatprep.subr.bf16.mxu0 %v6285_v32  ;;  %v6373_v31 = vld [vmem:[%s6696_s13 + $0x70] ss:$152 sps:$4 sm:$0xff]   ;;  %v6384_v32 = vld [vmem:[%s8430_s1 + $0x1174] ss:$8 sps:$4 sm:$0xff]  }
 0x1cf   : > { %4669 = vmatpush1.bf16.msra.mxu1 %v6280_v33  ;;  %4700 = vmatprep.mubr.bf16.mxu1 %v6381_v34  ;;  %v6376_v33 = vld [vmem:[%s8430_s1 + $0x1070] ss:$8 sps:$4 sm:$0xff]   ;;  %v6477_v34 = vld [vmem:[%s6696_s13 + $0x84] ss:$152 sps:$4 sm:$0xff]  }
 0x1d0   : > { %4670 = vmatprep.subr.bf16.mxu1 %v6288_v35  ;;  %v6379_v35 = vld [vmem:[%s6696_s13 + $0x78] ss:$152 sps:$4 sm:$0xff]  }
 0x1d1   : > { %4628 = vmatpush1.bf16.msra.mxu0 %v6283_v36  ;;  %v6387_v36 = vld [vmem:[%s8430_s1 + $0x1064] ss:$8 sps:$4 sm:$0xff]  }
 0x1d2   : > { %4629 = vmatprep.subr.bf16.mxu0 %v6291_v37  ;;  %v6382_v37 = vld [vmem:[%s8430_s1 + $0x1170] ss:$8 sps:$4 sm:$0xff]  }
 0x1d3   : > { %4671 = vmatpush1.bf16.msra.mxu1 %v6286_v38  ;;  %v6483_v38 = vld [vmem:[%s6696_s13 + $0x8c] ss:$152 sps:$4 sm:$0xff]  }
 0x1d4   : > { %4672 = vmatprep.subr.bf16.mxu1 %v6294_v39  ;;  %v6390_v39 = vld [vmem:[%s8430_s1 + $0x1164] ss:$8 sps:$4 sm:$0xff]  }
 0x1d5   : > { %4630 = vmatpush1.bf16.msra.mxu0 %v6289_v40  ;;  %v6385_v40 = vld [vmem:[%s8430_s1 + $0x1060] ss:$8 sps:$4 sm:$0xff]  }
 0x1d6   : > { %4631 = vmatprep.subr.bf16.mxu0 %v6297_v41  ;;  %v6393_v41 = vld [vmem:[%s8430_s1 + $0x1054] ss:$8 sps:$4 sm:$0xff]  }
 0x1d7   : > { %4673 = vmatpush1.bf16.msra.mxu1 %v6292_v42  ;;  %v6388_v42 = vld [vmem:[%s8430_s1 + $0x1160] ss:$8 sps:$4 sm:$0xff]  }
 0x1d8   : > { %4674 = vmatprep.subr.bf16.mxu1 %v6300_v43  ;;  %v6396_v43 = vld [vmem:[%s8430_s1 + $0x1154] ss:$8 sps:$4 sm:$0xff]  }
 0x1d9   : > { %4632 = vmatpush1.bf16.msra.mxu0 %v6295_v44  ;;  %v6391_v44 = vld [vmem:[%s8430_s1 + $0x1050] ss:$8 sps:$4 sm:$0xff]  }
 0x1da   : > { %4633 = vmatprep.subr.bf16.mxu0 %v6303_v45  ;;  %v6399_v45 = vld [vmem:[%s8430_s1 + $0x1044] ss:$8 sps:$4 sm:$0xff]  }
 0x1db   : > { %4675 = vmatpush1.bf16.msra.mxu1 %v6298_v46  ;;  %v6394_v46 = vld [vmem:[%s8430_s1 + $0x1150] ss:$8 sps:$4 sm:$0xff]  }
 0x1dc   : > { %4676 = vmatprep.subr.bf16.mxu1 %v6306_v47  ;;  %v6402_v47 = vld [vmem:[%s8430_s1 + $0x1144] ss:$8 sps:$4 sm:$0xff]  }
 0x1dd   : > { %4634 = vmatpush1.bf16.msra.mxu0 %v6301_v48  ;;  %v6397_v48 = vld [vmem:[%s8430_s1 + $0x1040] ss:$8 sps:$4 sm:$0xff]  }
 0x1de   : > { %4635 = vmatprep.subr.bf16.mxu0 %v6309_v49  ;;  %v6405_v49 = vld [vmem:[%s8430_s1 + $0x1034] ss:$8 sps:$4 sm:$0xff]  }
 0x1df   : > { %4677 = vmatpush1.bf16.msra.mxu1 %v6304_v50  ;;  %v6400_v50 = vld [vmem:[%s8430_s1 + $0x1140] ss:$8 sps:$4 sm:$0xff]  }
 0x1e0   : > { %4678 = vmatprep.subr.bf16.mxu1 %v6312_v51  ;;  %v6408_v51 = vld [vmem:[%s8430_s1 + $0x1134] ss:$8 sps:$4 sm:$0xff]  }
 0x1e1   : > { %4636 = vmatpush1.bf16.msra.mxu0 %v6307_v52  ;;  %v6403_v52 = vld [vmem:[%s8430_s1 + $0x1030] ss:$8 sps:$4 sm:$0xff]  }
 0x1e2   : > { %4637 = vmatprep.subr.bf16.mxu0 %v6315_v53  ;;  %v6411_v53 = vld [vmem:[%s8430_s1 + $0x1024] ss:$8 sps:$4 sm:$0xff]  }
 0x1e3   : > { %4679 = vmatpush1.bf16.msra.mxu1 %v6310_v54  ;;  %v6406_v54 = vld [vmem:[%s8430_s1 + $0x1130] ss:$8 sps:$4 sm:$0xff]  }
 0x1e4   : > { %4680 = vmatprep.subr.bf16.mxu1 %v6318_v55  ;;  %v6414_v55 = vld [vmem:[%s8430_s1 + $0x1124] ss:$8 sps:$4 sm:$0xff]  }
 0x1e5   : > { %4638 = vmatpush1.bf16.msra.mxu0 %v6313_v56  ;;  %v6409_v56 = vld [vmem:[%s8430_s1 + $0x1020] ss:$8 sps:$4 sm:$0xff]  }
 0x1e6   : > { %4639 = vmatprep.subr.bf16.mxu0 %v6321_v57  ;;  %v6417_v57 = vld [vmem:[%s8430_s1 + $0x1014] ss:$8 sps:$4 sm:$0xff]  }
 0x1e7   : > { %4681 = vmatpush1.bf16.msra.mxu1 %v6316_v58  ;;  %v6412_v58 = vld [vmem:[%s8430_s1 + $0x1120] ss:$8 sps:$4 sm:$0xff]  }
 0x1e8   : > { %4682 = vmatprep.subr.bf16.mxu1 %v6324_v59  ;;  %v6420_v59 = vld [vmem:[%s8430_s1 + $0x1114] ss:$8 sps:$4 sm:$0xff]  }
 0x1e9   : > { %4640 = vmatpush1.bf16.msra.mxu0 %v6319_v60  ;;  %v6415_v60 = vld [vmem:[%s8430_s1 + $0x1010] ss:$8 sps:$4 sm:$0xff]  }
 0x1ea   : > { %4641 = vmatprep.subr.bf16.mxu0 %v6327_v61  ;;  %v6423_v61 = vld [vmem:[%s8430_s1 + $0x1004] ss:$8 sps:$4 sm:$0xff]  }
 0x1eb   : > { %4683 = vmatpush1.bf16.msra.mxu1 %v6322_v62  ;;  %v6418_v62 = vld [vmem:[%s8430_s1 + $0x1110] ss:$8 sps:$4 sm:$0xff]  }
 0x1ec   : > { %4684 = vmatprep.subr.bf16.mxu1 %v6330_v63  ;;  %v6426_v63 = vld [vmem:[%s8430_s1 + $0x1104] ss:$8 sps:$4 sm:$0xff]  }
 0x1ed   : > { %4642 = vmatpush2.bf16.msra.mxu0 %v6325_v0  ;;  %v6421_v0 = vld [vmem:[%s8430_s1 + $0x1000] ss:$8 sps:$4 sm:$0xff]  }
 0x1ee   : > { %4643 = vmatprep.subr.bf16.mxu0 %v6333_v1  ;;  %v6429_v1 = vld [vmem:[%s8430_s1 + $0x10f4] ss:$8 sps:$4 sm:$0xff]  }
 0x1ef   : > { %4685 = vmatpush2.bf16.msra.mxu1 %v6328_v2  ;;  %v6424_v2 = vld [vmem:[%s8430_s1 + $0x1100] ss:$8 sps:$4 sm:$0xff]  }
 0x1f0   : > { %4686 = vmatprep.subr.bf16.mxu1 %v6336_v3  ;;  %v6432_v3 = vld [vmem:[%s8430_s1 + $0x11f4] ss:$8 sps:$4 sm:$0xff]  }
 0x1f1   : > { %4644 = vmatpush2.bf16.msra.mxu0 %v6331_v4  ;;  %v6427_v4 = vld [vmem:[%s8430_s1 + $0x10f0] ss:$8 sps:$4 sm:$0xff]  }
 0x1f2   : > { %4645 = vmatprep.subr.bf16.mxu0 %v6339_v5  ;;  %v6435_v5 = vld [vmem:[%s8430_s1 + $0x10e4] ss:$8 sps:$4 sm:$0xff]  }
 0x1f3   : > { %4687 = vmatpush2.bf16.msra.mxu1 %v6334_v6  ;;  %v6430_v6 = vld [vmem:[%s8430_s1 + $0x11f0] ss:$8 sps:$4 sm:$0xff]  }
 0x1f4   : > { %4688 = vmatprep.subr.bf16.mxu1 %v6342_v7  ;;  %v6438_v7 = vld [vmem:[%s8430_s1 + $0x11e4] ss:$8 sps:$4 sm:$0xff]  }
 0x1f5   : > { %4646 = vmatpush2.bf16.msra.mxu0 %v6337_v8  ;;  %v6433_v8 = vld [vmem:[%s8430_s1 + $0x10e0] ss:$8 sps:$4 sm:$0xff]  }
 0x1f6   : > { %4647 = vmatprep.subr.bf16.mxu0 %v6345_v9  ;;  %v6441_v9 = vld [vmem:[%s8430_s1 + $0x10d4] ss:$8 sps:$4 sm:$0xff]  }
 0x1f7   : > { %4689 = vmatpush2.bf16.msra.mxu1 %v6340_v10  ;;  %v6436_v10 = vld [vmem:[%s8430_s1 + $0x11e0] ss:$8 sps:$4 sm:$0xff]  }
 0x1f8   : > { %4690 = vmatprep.subr.bf16.mxu1 %v6348_v11  ;;  %v6444_v11 = vld [vmem:[%s8430_s1 + $0x11d4] ss:$8 sps:$4 sm:$0xff]  }
 0x1f9   : > { %4648 = vmatpush2.bf16.msra.mxu0 %v6343_v12  ;;  %v6439_v12 = vld [vmem:[%s8430_s1 + $0x10d0] ss:$8 sps:$4 sm:$0xff]  }
 0x1fa   : > { %4649 = vmatprep.subr.bf16.mxu0 %v6351_v13  ;;  %v6447_v13 = vld [vmem:[%s8430_s1 + $0x10c4] ss:$8 sps:$4 sm:$0xff]  }
 0x1fb   : > { %4691 = vmatpush2.bf16.msra.mxu1 %v6346_v14  ;;  %v6442_v14 = vld [vmem:[%s8430_s1 + $0x11d0] ss:$8 sps:$4 sm:$0xff]  }
 0x1fc   : > { %4692 = vmatprep.subr.bf16.mxu1 %v6354_v15  ;;  %v6450_v15 = vld [vmem:[%s8430_s1 + $0x11c4] ss:$8 sps:$4 sm:$0xff]  }
 0x1fd   : > { %4650 = vmatpush2.bf16.msra.mxu0 %v6349_v16  ;;  %v6445_v16 = vld [vmem:[%s8430_s1 + $0x10c0] ss:$8 sps:$4 sm:$0xff]  }
 0x1fe   : > { %4651 = vmatprep.subr.bf16.mxu0 %v6357_v17  ;;  %v6453_v17 = vld [vmem:[%s8430_s1 + $0x10b4] ss:$8 sps:$4 sm:$0xff]  }
 0x1ff   : > { %4693 = vmatpush2.bf16.msra.mxu1 %v6352_v18  ;;  %v6448_v18 = vld [vmem:[%s8430_s1 + $0x11c0] ss:$8 sps:$4 sm:$0xff]  }
 0x200   : > { %4694 = vmatprep.subr.bf16.mxu1 %v6360_v19  ;;  %v6456_v19 = vld [vmem:[%s8430_s1 + $0x11b4] ss:$8 sps:$4 sm:$0xff]  }
 0x201   : > { %4652 = vmatpush2.bf16.msra.mxu0 %v6355_v20  ;;  %v6451_v20 = vld [vmem:[%s8430_s1 + $0x10b0] ss:$8 sps:$4 sm:$0xff]  }
 0x202   : > { %4653 = vmatprep.subr.bf16.mxu0 %v6363_v21  ;;  %v6459_v21 = vld [vmem:[%s8430_s1 + $0x10a4] ss:$8 sps:$4 sm:$0xff]  }
 0x203   : > { %4695 = vmatpush2.bf16.msra.mxu1 %v6358_v22  ;;  %v6454_v22 = vld [vmem:[%s8430_s1 + $0x11b0] ss:$8 sps:$4 sm:$0xff]  }
 0x204   : > { %4696 = vmatprep.subr.bf16.mxu1 %v6366_v23  ;;  %v6462_v23 = vld [vmem:[%s8430_s1 + $0x11a4] ss:$8 sps:$4 sm:$0xff]  }
 0x205   : > { %4654 = vmatpush2.bf16.msra.mxu0 %v6361_v24  ;;  %v6457_v24 = vld [vmem:[%s8430_s1 + $0x10a0] ss:$8 sps:$4 sm:$0xff]  }
 0x206   : > { %4655 = vmatprep.subr.bf16.mxu0 %v6369_v25  ;;  %v6465_v25 = vld [vmem:[%s8430_s1 + $0x1094] ss:$8 sps:$4 sm:$0xff]  }
 0x207   : > { %4697 = vmatpush2.bf16.msra.mxu1 %v6364_v26  ;;  %v6460_v26 = vld [vmem:[%s8430_s1 + $0x11a0] ss:$8 sps:$4 sm:$0xff]  }
 0x208   : > { %4698 = vmatprep.subr.bf16.mxu1 %v6372_v27  ;;  %v6468_v27 = vld [vmem:[%s8430_s1 + $0x1194] ss:$8 sps:$4 sm:$0xff]  }
 0x209   : > { %4656 = vmatpush2.bf16.msra.mxu0 %v6367_v28  ;;  %v6463_v28 = vld [vmem:[%s8430_s1 + $0x1090] ss:$8 sps:$4 sm:$0xff]  }
 0x20a   : > { %4711 = vmatprep.subr.bf16.mxu0 %v6378_v29  ;;  %v6471_v29 = vld [vmem:[%s8430_s1 + $0x1084] ss:$8 sps:$4 sm:$0xff]  }
 0x20b   : > { %4699 = vmatpush2.bf16.msra.mxu1 %v6370_v30  ;;  %v6466_v30 = vld [vmem:[%s8430_s1 + $0x1190] ss:$8 sps:$4 sm:$0xff]  }
 0x20c   : > { %4658 = vmatmul.mubr.bf16.vlgmr.msra.gmra.mxu0 %v6373_v31  ;;  %4754 = vmatprep.subr.bf16.mxu1 %v6384_v32  ;;  %v6474_v31 = vld [vmem:[%s8430_s1 + $0x1184] ss:$8 sps:$4 sm:$0xff]   ;;  %v6469_v32 = vld [vmem:[%s8430_s1 + $0x1080] ss:$8 sps:$4 sm:$0xff]  }
 0x20d   : > { %4712 = vmatpush1.bf16.msra.mxu0 %v6376_v33  ;;  %4743 = vmatprep.mubr.bf16.mxu0 %v6477_v34  ;;  %v6480_v33 = vld [vmem:[%s8430_s1 + $0x1274] ss:$8 sps:$4 sm:$0xff]   ;;  %v6472_v34 = vld [vmem:[%s8430_s1 + $0x1180] ss:$8 sps:$4 sm:$0xff]  }
 0x20e   : > { %4701 = vmatmul.mubr.bf16.vlgmr.msra.gmra.mxu1 %v6379_v35  ;;  %4713 = vmatprep.subr.bf16.mxu0 %v6387_v36  ;;  %v6475_v35 = vld [vmem:[%s6696_s13 + $0x80] ss:$152 sps:$4 sm:$0xff]  }
 0x20f   : > { %4755 = vmatpush1.bf16.msra.mxu1 %v6382_v37  ;;  %4786 = vmatprep.mubr.bf16.mxu1 %v6483_v38  ;;  %v6478_v36 = vld [vmem:[%s8430_s1 + $0x1270] ss:$8 sps:$4 sm:$0xff]   ;;  %v6517_v37 = vld [vmem:[%s6696_s13 + $0x94] ss:$152 sps:$4 sm:$0xff]   ;;  %v6481_v38 = vld [vmem:[%s6696_s13 + $0x88] ss:$152 sps:$4 sm:$0xff]  }
 0x210   : > { %4756 = vmatprep.subr.bf16.mxu1 %v6390_v39  ;;  %v6486_v39 = vld [vmem:[%s8430_s1 + $0x1264] ss:$8 sps:$4 sm:$0xff]  }
 0x211   : > { %4714 = vmatpush1.bf16.msra.mxu0 %v6385_v40  ;;  %v6484_v40 = vld [vmem:[%s8430_s1 + $0x1260] ss:$8 sps:$4 sm:$0xff]  }
 0x212   : > { %4715 = vmatprep.subr.bf16.mxu0 %v6393_v41  ;;  %v6489_v41 = vld [vmem:[%s8430_s1 + $0x1254] ss:$8 sps:$4 sm:$0xff]  }
 0x213   : > { %4757 = vmatpush1.bf16.msra.mxu1 %v6388_v42  ;;  %v6487_v42 = vld [vmem:[%s8430_s1 + $0x1250] ss:$8 sps:$4 sm:$0xff]  }
 0x214   : > { %4758 = vmatprep.subr.bf16.mxu1 %v6396_v43  ;;  %v6492_v43 = vld [vmem:[%s8430_s1 + $0x1244] ss:$8 sps:$4 sm:$0xff]  }
 0x215   : > { %4716 = vmatpush1.bf16.msra.mxu0 %v6391_v44  ;;  %v6490_v44 = vld [vmem:[%s8430_s1 + $0x1240] ss:$8 sps:$4 sm:$0xff]  }
 0x216   : > { %4717 = vmatprep.subr.bf16.mxu0 %v6399_v45  ;;  %v6495_v45 = vld [vmem:[%s8430_s1 + $0x1234] ss:$8 sps:$4 sm:$0xff]  }
 0x217   : > { %4759 = vmatpush1.bf16.msra.mxu1 %v6394_v46  ;;  %v6493_v46 = vld [vmem:[%s8430_s1 + $0x1230] ss:$8 sps:$4 sm:$0xff]  }
 0x218   : > { %4760 = vmatprep.subr.bf16.mxu1 %v6402_v47  ;;  %v6498_v47 = vld [vmem:[%s8430_s1 + $0x1224] ss:$8 sps:$4 sm:$0xff]  }
 0x219   : > { %4718 = vmatpush1.bf16.msra.mxu0 %v6397_v48  ;;  %v6496_v48 = vld [vmem:[%s8430_s1 + $0x1220] ss:$8 sps:$4 sm:$0xff]  }
 0x21a   : > { %4719 = vmatprep.subr.bf16.mxu0 %v6405_v49  ;;  %v6501_v49 = vld [vmem:[%s8430_s1 + $0x1214] ss:$8 sps:$4 sm:$0xff]  }
 0x21b   : > { %4761 = vmatpush1.bf16.msra.mxu1 %v6400_v50  ;;  %v6499_v50 = vld [vmem:[%s8430_s1 + $0x1210] ss:$8 sps:$4 sm:$0xff]  }
 0x21c   : > { %4762 = vmatprep.subr.bf16.mxu1 %v6408_v51  ;;  %v6504_v51 = vld [vmem:[%s8430_s1 + $0x1204] ss:$8 sps:$4 sm:$0xff]  }
 0x21d   : > { %4720 = vmatpush1.bf16.msra.mxu0 %v6403_v52  ;;  %v6502_v52 = vld [vmem:[%s8430_s1 + $0x1200] ss:$8 sps:$4 sm:$0xff]  }
 0x21e   : > { %4721 = vmatprep.subr.bf16.mxu0 %v6411_v53  ;;  %v6507_v53 = vld [vmem:[%s8430_s1 + $0x12b4] ss:$8 sps:$4 sm:$0xff]  }
 0x21f   : > { %4763 = vmatpush1.bf16.msra.mxu1 %v6406_v54  ;;  %v6505_v54 = vld [vmem:[%s8430_s1 + $0x12b0] ss:$8 sps:$4 sm:$0xff]  }
 0x220   : > { %4764 = vmatprep.subr.bf16.mxu1 %v6414_v55  ;;  %v6510_v55 = vld [vmem:[%s8430_s1 + $0x12a4] ss:$8 sps:$4 sm:$0xff]  }
 0x221   : > { %4722 = vmatpush1.bf16.msra.mxu0 %v6409_v56  ;;  %v6508_v56 = vld [vmem:[%s8430_s1 + $0x12a0] ss:$8 sps:$4 sm:$0xff]  }
 0x222   : > { %4723 = vmatprep.subr.bf16.mxu0 %v6417_v57  ;;  %v6513_v57 = vld [vmem:[%s8430_s1 + $0x1294] ss:$8 sps:$4 sm:$0xff]  }
 0x223   : > { %4765 = vmatpush1.bf16.msra.mxu1 %v6412_v58  ;;  %v6511_v58 = vld [vmem:[%s8430_s1 + $0x1290] ss:$8 sps:$4 sm:$0xff]  }
 0x224   : > { %4766 = vmatprep.subr.bf16.mxu1 %v6420_v59  ;;  %v6516_v59 = vld [vmem:[%s8430_s1 + $0x1284] ss:$8 sps:$4 sm:$0xff]  }
 0x225   : > { %4724 = vmatpush1.bf16.msra.mxu0 %v6415_v60  ;;  %v6514_v60 = vld [vmem:[%s8430_s1 + $0x1280] ss:$8 sps:$4 sm:$0xff]  }
 0x226   : > { %4725 = vmatprep.subr.bf16.mxu0 %v6423_v61  ;;  %v6519_v61 = vld [vmem:[%s6696_s13 + $0x90] ss:$152 sps:$4 sm:$0xff]  }
 0x227   : > { %4767 = vmatpush1.bf16.msra.mxu1 %v6418_v62  ;;  %v4057_v62 = vpop.f32.mrf.mxu0 }
 0x228   : > { %4768 = vmatprep.subr.bf16.mxu1 %v6426_v63 }
 0x229   : > { %4726 = vmatpush1.bf16.msra.mxu0 %v6421_v0  ;;  %v4059_v63 = vpop.f32.mrf.mxu0  ;;  %v4100_v0 = vpop.f32.mrf.mxu1 }
 0x22a   : > { %4727 = vmatprep.subr.bf16.mxu0 %v6429_v1 }
 0x22b   : > { %4769 = vmatpush1.bf16.msra.mxu1 %v6424_v2  ;;  %v4061_v1 = vpop.f32.mrf.mxu0  ;;  %v4102_v2 = vpop.f32.mrf.mxu1 }
 0x22c   : > { %4770 = vmatprep.subr.bf16.mxu1 %v6432_v3 }
 0x22d   : > { %4728 = vmatpush2.bf16.msra.mxu0 %v6427_v4  ;;  %v4063_v3 = vpop.f32.mrf.mxu0  ;;  %v4104_v4 = vpop.f32.mrf.mxu1 }
 0x22e   : > { %4729 = vmatprep.subr.bf16.mxu0 %v6435_v5 }
 0x22f   : > { %4771 = vmatpush2.bf16.msra.mxu1 %v6430_v6  ;;  %v4143_v5 = vpop.f32.mrf.mxu0  ;;  %v4106_v6 = vpop.f32.mrf.mxu1 }
 0x230   : > { %4772 = vmatprep.subr.bf16.mxu1 %v6438_v7 }
 0x231   : > { %4730 = vmatpush2.bf16.msra.mxu0 %v6433_v8  ;;  %v4145_v7 = vpop.f32.mrf.mxu0  ;;  %v4186_v8 = vpop.f32.mrf.mxu1 }
 0x232   : > { %4731 = vmatprep.subr.bf16.mxu0 %v6441_v9 }
 0x233   : > { %4773 = vmatpush2.bf16.msra.mxu1 %v6436_v10  ;;  %v4147_v9 = vpop.f32.mrf.mxu0  ;;  %v4188_v10 = vpop.f32.mrf.mxu1 }
 0x234   : > { %4774 = vmatprep.subr.bf16.mxu1 %v6444_v11 }
 0x235   : > { %4732 = vmatpush2.bf16.msra.mxu0 %v6439_v12  ;;  %v4149_v11 = vpop.f32.mrf.mxu0  ;;  %v4190_v12 = vpop.f32.mrf.mxu1 }
 0x236   : > { %4733 = vmatprep.subr.bf16.mxu0 %v6447_v13 }
 0x237   : > { %4775 = vmatpush2.bf16.msra.mxu1 %v6442_v14  ;;  %v4229_v13 = vpop.f32.mrf.mxu0  ;;  %v4192_v14 = vpop.f32.mrf.mxu1 }
 0x238   : > { %4776 = vmatprep.subr.bf16.mxu1 %v6450_v15 }
 0x239   : > { %4734 = vmatpush2.bf16.msra.mxu0 %v6445_v16  ;;  %v4231_v15 = vpop.f32.mrf.mxu0  ;;  %v4272_v16 = vpop.f32.mrf.mxu1 }
 0x23a   : > { %4735 = vmatprep.subr.bf16.mxu0 %v6453_v17 }
 0x23b   : > { %4777 = vmatpush2.bf16.msra.mxu1 %v6448_v18  ;;  %v4233_v17 = vpop.f32.mrf.mxu0  ;;  %v4274_v18 = vpop.f32.mrf.mxu1 }
 0x23c   : > { %4778 = vmatprep.subr.bf16.mxu1 %v6456_v19 }
 0x23d   : > { %4736 = vmatpush2.bf16.msra.mxu0 %v6451_v20  ;;  %v4235_v19 = vpop.f32.mrf.mxu0  ;;  %v4276_v20 = vpop.f32.mrf.mxu1 }
 0x23e   : > { %4737 = vmatprep.subr.bf16.mxu0 %v6459_v21 }
 0x23f   : > { %4779 = vmatpush2.bf16.msra.mxu1 %v6454_v22  ;;  %v4315_v21 = vpop.f32.mrf.mxu0  ;;  %v4278_v22 = vpop.f32.mrf.mxu1 }
 0x240   : > { %4780 = vmatprep.subr.bf16.mxu1 %v6462_v23 }
 0x241   : > { %4738 = vmatpush2.bf16.msra.mxu0 %v6457_v24  ;;  %v4317_v23 = vpop.f32.mrf.mxu0  ;;  %v4358_v24 = vpop.f32.mrf.mxu1 }
 0x242   : > { %4739 = vmatprep.subr.bf16.mxu0 %v6465_v25 }
 0x243   : > { %4781 = vmatpush2.bf16.msra.mxu1 %v6460_v26  ;;  %v4319_v25 = vpop.f32.mrf.mxu0  ;;  %v4360_v26 = vpop.f32.mrf.mxu1 }
 0x244   : > { %4782 = vmatprep.subr.bf16.mxu1 %v6468_v27 }
 0x245   : > { %4740 = vmatpush2.bf16.msra.mxu0 %v6463_v28  ;;  %v4321_v27 = vpop.f32.mrf.mxu0  ;;  %v8405_v28 = vpop.f32.mrf.mxu1 }
 0x246   : > { %4741 = vmatprep.subr.bf16.mxu0 %v6471_v29 }
 0x247   : > { %4783 = vmatpush2.bf16.msra.mxu1 %v6466_v30  ;;  %v4401_v29 = vpop.f32.mrf.mxu0  ;;  %v820_v30 = vlaneseq }
 0x248   : > { %4784 = vmatprep.subr.bf16.mxu1 %v6474_v31  ;;  %v8407_v31 = vpop.f32.mrf.mxu1 }
 0x249   : > { %4742 = vmatpush2.bf16.msra.mxu0 %v6469_v32  ;;  %v4403_v32 = vpop.f32.mrf.mxu0 }
 0x24a   : > { %4797 = vmatprep.subr.bf16.mxu0 %v6480_v33  ;;  %v8409_v33 = vpop.f32.mrf.mxu1 }
 0x24b   : > { %4785 = vmatpush2.bf16.msra.mxu1 %v6472_v34  ;;  %v821_v34 = vshrl.u32 %v820_v30, 7 }
 0x24c   : > { %4744 = vmatmul.mubr.bf16.vlgmr.msra.gmra.mxu0 %v6475_v35  ;;  %v4405_v35 = vpop.f32.mrf.mxu0 }
 0x24d   : > { %4798 = vmatpush1.bf16.msra.mxu0 %v6478_v36  ;;  %5550 = vmatprep.mubr.msk.bf16.mxu0 %vm4019_vm0, %v6517_v37  ;;  %v8411_v36 = vpop.f32.mrf.mxu1  ;;  %v822_v37 = vsub.s32 0, %v821_v34 }
 0x24e   : > { %4787 = vmatmul.mubr.bf16.vlgmr.msra.gmra.mxu1 %v6481_v38  ;;  %4799 = vmatprep.subr.bf16.mxu0 %v6486_v39  ;;  %8433 = vst [vmem:[#allocation2_spill] sm:$0xff] %v8411_v36  ;;  %v818_v38 = vld [vmem:[%s8431_s2] sm:$0x3]  ;;  %v826_v39 = vsub.s32 1, %v821_v34 }
 0x251   : > { %4800 = vmatpush1.bf16.msra.mxu0 %v6484_v40  ;;  %v4407_v40 = vpop.f32.mrf.mxu0 }
 0x252   : > { %4801 = vmatprep.subr.bf16.mxu0 %v6489_v41  ;;  %v4448_v41 = vpop.f32.mrf.mxu1 }
 0x255   : > { %4802 = vmatpush1.bf16.msra.mxu0 %v6487_v42  ;;  %v823_v42 = vrot.slane %v818_v38, %v822_v37 }
 0x256   : > { %4803 = vmatprep.subr.bf16.mxu0 %v6492_v43  ;;  %v4487_v43 = vpop.f32.mrf.mxu0 }
 0x259   : > { %4804 = vmatpush1.bf16.msra.mxu0 %v6490_v44  ;;  %v827_v44 = vrot.slane %v818_v38, %v826_v39 }
 0x25a   : > { %4805 = vmatprep.subr.bf16.mxu0 %v6495_v45  ;;  %v4450_v45 = vpop.f32.mrf.mxu1 }
 0x25d   : > { %4806 = vmatpush1.bf16.msra.mxu0 %v6493_v46  ;;  %v4058_v46 = vadd.f32 %v4057_v62, %v823_v42 }
 0x25e   : > { %4807 = vmatprep.subr.bf16.mxu0 %v6498_v47  ;;  %v4489_v47 = vpop.f32.mrf.mxu0 }
 0x261   : > { %4808 = vmatpush1.bf16.msra.mxu0 %v6496_v48  ;;  %v4530_v48 = vpop.f32.mrf.mxu1 }
 0x262   : > { %4809 = vmatprep.subr.bf16.mxu0 %v6501_v49  ;;  %v4060_v49 = vadd.f32 %v4059_v63, %v827_v44 }
 0x265   : > { %4810 = vmatpush1.bf16.msra.mxu0 %v6499_v50  ;;  %v4101_v50 = vadd.f32 %v4100_v0, %v4058_v46 }
 0x266   : > { %4811 = vmatprep.subr.bf16.mxu0 %v6504_v51  ;;  %v4062_v51 = vadd.f32 %v4061_v1, %v823_v42 }
 0x269   : > { %4812 = vmatpush1.bf16.msra.mxu0 %v6502_v52  ;;  %v4491_v52 = vpop.f32.mrf.mxu0 }
 0x26a   : > { %4821 = vmatprep.subr.bf16.mxu0 %v6507_v53  ;;  %v4532_v53 = vpop.f32.mrf.mxu1 }
 0x26d   : > { %4822 = vmatpush2.bf16.msra.mxu0 %v6505_v54  ;;  %v4103_v54 = vadd.f32 %v4102_v2, %v4060_v49 }
 0x26e   : > { %4823 = vmatprep.subr.bf16.mxu0 %v6510_v55  ;;  %v4064_v55 = vadd.f32 %v4063_v3, %v827_v44 }
 0x271   : > { %4824 = vmatpush2.bf16.msra.mxu0 %v6508_v56  ;;  %v4144_v56 = vadd.f32 %v4143_v5, %v4101_v50 }
 0x272   : > { %4825 = vmatprep.subr.bf16.mxu0 %v6513_v57  ;;  %v4105_v57 = vadd.f32 %v4104_v4, %v4062_v51 }
 0x273   : > { %v4187_v30 = vadd.f32 %v4186_v8, %v4144_v56 }
 0x274   : > { %v4148_v34 = vadd.f32 %v4147_v9, %v4105_v57 }
 0x275   : > { %4826 = vmatpush2.bf16.msra.mxu0 %v6511_v58  ;;  %v4146_v58 = vadd.f32 %v4145_v7, %v4103_v54  ;;  %v4230_v39 = vadd.f32 %v4229_v13, %v4187_v30 }
 0x276   : > { %4827 = vmatprep.subr.bf16.mxu0 %v6516_v59  ;;  %v4493_v59 = vpop.f32.mrf.mxu0  ;;  %v4191_v63 = vadd.f32 %v4190_v12, %v4148_v34 }
 0x277   : > { %v4189_v38 = vadd.f32 %v4188_v10, %v4146_v58  ;;  %v4273_v2 = vadd.f32 %v4272_v16, %v4230_v39 }
 0x278   : > { %v4234_v3 = vadd.f32 %v4233_v17, %v4191_v63 }
 0x279   : > { %4828 = vmatpush2.bf16.msra.mxu0 %v6514_v60  ;;  %v4534_v60 = vpop.f32.mrf.mxu1  ;;  %v4232_v0 = vadd.f32 %v4231_v15, %v4189_v38  ;;  %v4316_v7 = vadd.f32 %v4315_v21, %v4273_v2 }
 0x27b   : > { %v4536_v36 = vpop.f32.mrf.mxu1  ;;  %v4275_v5 = vadd.f32 %v4274_v18, %v4232_v0  ;;  %v4359_v50 = vadd.f32 %v4358_v24, %v4316_v7 }
 0x27c   : > { %4830 = vmatmul.mubr.bf16.vlgmr.msra.gmra.mxu0 %v6519_v61  ;;  %v4107_v61 = vadd.f32 %v4106_v6, %v4064_v55  ;;  %v4277_v6 = vadd.f32 %v4276_v20, %v4234_v3 }
 0x27d   : > { %v4318_v8 = vadd.f32 %v4317_v23, %v4275_v5  ;;  %v4402_v15 = vadd.f32 %v4401_v29, %v4359_v50 }
 0x27e   : > { %v4150_v62 = vadd.f32 %v4149_v11, %v4107_v61  ;;  %v4320_v10 = vadd.f32 %v4319_v25, %v4277_v6 }
 0x27f   : > { %v4361_v51 = vadd.f32 %v4360_v26, %v4318_v8 }
 0x280   : > { %v4193_v46 = vadd.f32 %v4192_v14, %v4150_v62  ;;  %v4363_v14 = vadd.f32 %v8405_v28, %v4320_v10 }
 0x281   : > { %v4404_v16 = vadd.f32 %v4403_v32, %v4361_v51 }
 0x282   : > { %v4236_v4 = vadd.f32 %v4235_v19, %v4193_v46  ;;  %v4445_v19 = vadd.f32 %v8409_v33, %v4402_v15  ;;  %v4406_v21 = vadd.f32 %v4405_v35, %v4363_v14 }
 0x284   : > { %v4279_v9 = vadd.f32 %v4278_v22, %v4236_v4  ;;  %v8434_v22 = vld [vmem:[#allocation2_spill] sm:$0xff]  ;;  %v4488_v55 = vadd.f32 %v4487_v43, %v4445_v19  ;;  %v4449_v56 = vadd.f32 %v4448_v41, %v4406_v21 }
 0x285   : > { %v4447_v24 = vadd.f32 %v8434_v22, %v4404_v16 }
 0x286   : > { %v4322_v12 = vadd.f32 %v4321_v27, %v4279_v9  ;;  %v4531_v58 = vadd.f32 %v4530_v48, %v4488_v55  ;;  %v4492_v28 = vadd.f32 %v4491_v52, %v4449_v56 }
 0x287   : > { %v4490_v26 = vadd.f32 %v4489_v47, %v4447_v24 }
 0x288   : > { %v4365_v18 = vadd.f32 %v8407_v31, %v4322_v12  ;;  %v4535_v33 = vadd.f32 %v4534_v60, %v4492_v28 }
 0x289   : > { %v4533_v32 = vadd.f32 %v4532_v53, %v4490_v26 }
 0x28a   : > { %v4408_v25 = vadd.f32 %v4407_v40, %v4365_v18 }
 0x28c   : > { %v4573_v37 = vpop.f32.mrf.mxu0  ;;  %v4451_v57 = vadd.f32 %v4450_v45, %v4408_v25 }
 0x28d   : > { %v4574_v30 = vadd.f32 %v4573_v37, %v4531_v58 }
 0x28e   : > { %v4575_v1 = vpop.f32.mrf.mxu0  ;;  %v4616_v42 = vpop.f32.mrf.mxu1  ;;  %v4494_v61 = vadd.f32 %v4493_v59, %v4451_v57 }
 0x28f   : > { %v4576_v35 = vadd.f32 %v4575_v1, %v4533_v32  ;;  %v4617_v39 = vadd.f32 %v4616_v42, %v4574_v30 }
 0x290   : > { %v4577_v44 = vpop.f32.mrf.mxu0  ;;  %v4618_v49 = vpop.f32.mrf.mxu1  ;;  %v4537_v62 = vadd.f32 %v4536_v36, %v4494_v61 }
 0x291   : > { %v4578_v63 = vadd.f32 %v4577_v44, %v4535_v33  ;;  %v4619_v43 = vadd.f32 %v4618_v49, %v4576_v35 }
 0x292   : > { %v4579_v11 = vpop.f32.mrf.mxu0  ;;  %v4620_v13 = vpop.f32.mrf.mxu1 }
 0x293   : > { %v4580_v41 = vadd.f32 %v4579_v11, %v4537_v62  ;;  %v4621_v48 = vadd.f32 %v4620_v13, %v4578_v63 }
 0x294   : > { %v4622_v17 = vpop.f32.mrf.mxu1 }
 0x295   : > { %v4623_v53 = vadd.f32 %v4622_v17, %v4580_v41 }
 0x2cc   : > { %v4659_v54 = vpop.f32.mrf.mxu0 }
 0x2cd   : > { %v4660_v47 = vadd.f32 %v4659_v54, %v4617_v39 }
 0x2ce   : > { %v4661_v20 = vpop.f32.mrf.mxu0  ;;  %v4702_v23 = vpop.f32.mrf.mxu1 }
 0x2cf   : > { %v4662_v52 = vadd.f32 %v4661_v20, %v4619_v43  ;;  %v4703_v59 = vadd.f32 %v4702_v23, %v4660_v47 }
 0x2d0   : > { %v4663_v27 = vpop.f32.mrf.mxu0  ;;  %v4704_v29 = vpop.f32.mrf.mxu1 }
 0x2d1   : > { %v4664_v37 = vadd.f32 %v4663_v27, %v4621_v48  ;;  %v4705_v60 = vadd.f32 %v4704_v29, %v4662_v52 }
 0x2d2   : > { %v4665_v31 = vpop.f32.mrf.mxu0  ;;  %v4706_v34 = vpop.f32.mrf.mxu1 }
 0x2d3   : > { %v4666_v1 = vadd.f32 %v4665_v31, %v4623_v53  ;;  %v4707_v36 = vadd.f32 %v4706_v34, %v4664_v37 }
 0x2d4   : > { %v4708_v40 = vpop.f32.mrf.mxu1 }
 0x2d5   : > { %v4709_v7 = vadd.f32 %v4708_v40, %v4666_v1 }
 0x30c   : > { %v4745_v38 = vpop.f32.mrf.mxu0 }
 0x30d   : > { %v4746_v3 = vadd.f32 %v4745_v38, %v4703_v59 }
 0x30e   : > { %v4747_v0 = vpop.f32.mrf.mxu0  ;;  %v4788_v45 = vpop.f32.mrf.mxu1 }
 0x30f   : > { %v4748_v42 = vadd.f32 %v4747_v0, %v4705_v60  ;;  %v4789_v44 = vadd.f32 %v4788_v45, %v4746_v3 }
 0x310   : > { %v4749_v46 = vpop.f32.mrf.mxu0  ;;  %v4790_v2 = vpop.f32.mrf.mxu1 }
 0x311   : > { %v4750_v49 = vadd.f32 %v4749_v46, %v4707_v36  ;;  %v4791_v8 = vadd.f32 %v4790_v2, %v4748_v42 }
 0x312   : > { %v4751_v5 = vpop.f32.mrf.mxu0  ;;  %v4792_v4 = vpop.f32.mrf.mxu1 }
 0x313   : > { %v4752_v9 = vadd.f32 %v4751_v5, %v4709_v7  ;;  %v4793_v13 = vadd.f32 %v4792_v4, %v4750_v49 }
 0x314   : > { %v4794_v10 = vpop.f32.mrf.mxu1 }
 0x315   : > { %v4795_v15 = vadd.f32 %v4794_v10, %v4752_v9 }
 0x33c   : > { %v4831_v6 = vpop.f32.mrf.mxu0 }
 0x33d   : > { %v4832_v50 = vadd.f32 %v4831_v6, %v4789_v44 }
 0x33e   : > { %v4833_v11 = vpop.f32.mrf.mxu0 }
 0x33f   : > { %4840 = vst [vmem:[%s177_s18] sm:$0xff] %v4832_v50  ;;  %v4834_v51 = vadd.f32 %v4833_v11, %v4791_v8 }
 0x340   : > { %v4835_v12 = vpop.f32.mrf.mxu0 }
 0x341   : > { %4841 = vst.msk [vmem:[%s177_s18 + $0x8] sm:$0xff] %vm4019_vm0, %v4834_v51  ;;  %v4836_v54 = vadd.f32 %v4835_v12, %v4793_v13 }
 0x342   : > { %v4837_v14 = vpop.f32.mrf.mxu0 }
 0x343   : > { %4842 = vst [vmem:[%s177_s18 + $0x10] sm:$0xff] %v4836_v54  ;;  %v4838_v16 = vadd.f32 %v4837_v14, %v4795_v15 }
 0x345   : > { %4843 = vst.msk [vmem:[%s177_s18 + $0x18] sm:$0xff] %vm4019_vm0, %v4838_v16 }
 0x346 PF: > { %s13_s12 = sadd.s32 1, %s6526_s12  }
 0x347   : > { %p10_p4 = scmp.ge.s32.totalorder %s13_s12, 4  }
 0x349   :  { %12 = sbr.rel (!%p10_p4) target bundleno = 1 (0x1), region = 62 }

// kernel: hyper_encoder_forward.27
= control target key start
LH: loop header
LB: loop body
LE: loop exit
PB: predicated region body
PF: predicated region fallthrough
CT: control target
= control target key end

     0   :  { %s2564_s12 = smov 0   ;;  %s3257_s0 = inlined_call_operand.vmem [shape: bf16[32,1728], index: 0, kind: input, shape index: {}]   ;;  %s3258_s1 = inlined_call_operand.vmem [shape: bf16[1728,192], index: 1, kind: input, shape index: {}]   ;;  %s3259_s2 = inlined_call_operand.vmem [shape: f32[1,192], index: 2, kind: input, shape index: {}]   ;;  %s3260_s3 = inlined_call_operand.vmem [shape: f32[32,192], index: 3, kind: output, shape index: {}]  }
   0x1 LB: > { %s1938_s13 = sadd.s32 4294967295, %s2542_s12   ;;  %p1942_p0 = scmp.ge.s32.totalorder %s2542_s12, 1  ;;  %s2542_s12 = sphi %s2564_s12, %s13_s12  }
   0x2   : > { %p139_p1 = scmp.lt.s32.totalorder %s2542_s12, 3 }
   0x4   : > { %p140_p2 = pnand %p1942_p0, %p139_p1 }
   0x5   : > { %s1943_s22 = sshll.u32 (!%p140_p2), %s1938_s13, 1 }
   0x6   : > { %143 = sbr.rel (%p140_p2) target bundleno = 454 (0x1c6), region = 32  ;;  %p166_p3 = scmp.lt.s32.totalorder (!%p140_p2), %s1943_s22, 3 }
   0xb   : > { %v2191_v0 = vld [vmem:[%s3258_s1 + $0x74] ss:$8 sps:$4 sm:$0xff]   ;;  %v2193_v1 = vld [vmem:[%s3258_s1 + $0x70] ss:$8 sps:$4 sm:$0xff]   ;;  %v2197_v4 = vld [vmem:[%s3258_s1 + $0x64] ss:$8 sps:$4 sm:$0xff]  }
   0xc   : > { %1575 = vmatprep.subr.bf16.mxu0 %v2191_v0  ;;  %v2194_v2 = vld [vmem:[%s3258_s1 + $0x174] ss:$8 sps:$4 sm:$0xff]   ;;  %v2196_v3 = vld [vmem:[%s3258_s1 + $0x170] ss:$8 sps:$4 sm:$0xff]   ;;  %v2199_v5 = vld [vmem:[%s3258_s1 + $0x60] ss:$8 sps:$4 sm:$0xff]  }
   0xd   : > { %1576 = vmatpush1.bf16.msra.mxu0 %v2193_v1  ;;  %1618 = vmatprep.subr.bf16.mxu1 %v2194_v2  ;;  %v2200_v6 = vld [vmem:[%s3258_s1 + $0x164] ss:$8 sps:$4 sm:$0xff]   ;;  %v2202_v7 = vld [vmem:[%s3258_s1 + $0x160] ss:$8 sps:$4 sm:$0xff]   ;;  %v2203_v8 = vld [vmem:[%s3258_s1 + $0x54] ss:$8 sps:$4 sm:$0xff]  }
   0xe   : > { %1619 = vmatpush1.bf16.msra.mxu1 %v2196_v3  ;;  %1577 = vmatprep.subr.bf16.mxu0 %v2197_v4  ;;  %v2205_v9 = vld [vmem:[%s3258_s1 + $0x50] ss:$8 sps:$4 sm:$0xff]   ;;  %v2206_v10 = vld [vmem:[%s3258_s1 + $0x154] ss:$8 sps:$4 sm:$0xff]   ;;  %v2209_v11 = vld [vmem:[%s3258_s1 + $0x44] ss:$8 sps:$4 sm:$0xff]  }
   0xf   : > { %1620 = vmatprep.subr.bf16.mxu1 %v2200_v6  ;;  %v2208_v12 = vld [vmem:[%s3258_s1 + $0x150] ss:$8 sps:$4 sm:$0xff]   ;;  %v2212_v13 = vld [vmem:[%s3258_s1 + $0x144] ss:$8 sps:$4 sm:$0xff]   ;;  %v2211_v14 = vld [vmem:[%s3258_s1 + $0x40] ss:$8 sps:$4 sm:$0xff]  }
  0x10   : > { %v2215_v15 = vld [vmem:[%s3258_s1 + $0x34] ss:$8 sps:$4 sm:$0xff]   ;;  %v2214_v16 = vld [vmem:[%s3258_s1 + $0x140] ss:$8 sps:$4 sm:$0xff]   ;;  %v2217_v18 = vld [vmem:[%s3258_s1 + $0x30] ss:$8 sps:$4 sm:$0xff]  }
  0x11   : > { %1578 = vmatpush1.bf16.msra.mxu0 %v2199_v5  ;;  %v2218_v17 = vld [vmem:[%s3258_s1 + $0x134] ss:$8 sps:$4 sm:$0xff]   ;;  %v2221_v19 = vld [vmem:[%s3258_s1 + $0x24] ss:$8 sps:$4 sm:$0xff]   ;;  %v2220_v20 = vld [vmem:[%s3258_s1 + $0x130] ss:$8 sps:$4 sm:$0xff]  }
  0x12   : > { %1579 = vmatprep.subr.bf16.mxu0 %v2203_v8  ;;  %1621 = vmatpush1.bf16.msra.mxu1 %v2202_v7  ;;  %v2224_v21 = vld [vmem:[%s3258_s1 + $0x124] ss:$8 sps:$4 sm:$0xff]   ;;  %v2223_v22 = vld [vmem:[%s3258_s1 + $0x20] ss:$8 sps:$4 sm:$0xff]   ;;  %v2227_v23 = vld [vmem:[%s3258_s1 + $0x14] ss:$8 sps:$4 sm:$0xff]  }
  0x13   : > { %1622 = vmatprep.subr.bf16.mxu1 %v2206_v10  ;;  %v2226_v24 = vld [vmem:[%s3258_s1 + $0x120] ss:$8 sps:$4 sm:$0xff]   ;;  %v2230_v25 = vld [vmem:[%s3258_s1 + $0x114] ss:$8 sps:$4 sm:$0xff]   ;;  %v2229_v26 = vld [vmem:[%s3258_s1 + $0x10] ss:$8 sps:$4 sm:$0xff]  }
  0x14   : > { %v2233_v27 = vld [vmem:[%s3258_s1 + $0x4] ss:$8 sps:$4 sm:$0xff]   ;;  %v2232_v28 = vld [vmem:[%s3258_s1 + $0x110] ss:$8 sps:$4 sm:$0xff]   ;;  %v2235_v30 = vld [vmem:[%s3258_s1] ss:$8 sps:$4 sm:$0xff]  }
  0x15   : > { %1580 = vmatpush1.bf16.msra.mxu0 %v2205_v9  ;;  %v2236_v29 = vld [vmem:[%s3258_s1 + $0x104] ss:$8 sps:$4 sm:$0xff]   ;;  %v2239_v31 = vld [vmem:[%s3258_s1 + $0xf4] ss:$8 sps:$4 sm:$0xff]   ;;  %v2238_v32 = vld [vmem:[%s3258_s1 + $0x100] ss:$8 sps:$4 sm:$0xff]  }
  0x16   : > { %1581 = vmatprep.subr.bf16.mxu0 %v2209_v11  ;;  %1623 = vmatpush1.bf16.msra.mxu1 %v2208_v12  ;;  %v2242_v33 = vld [vmem:[%s3258_s1 + $0x1f4] ss:$8 sps:$4 sm:$0xff]   ;;  %v2241_v34 = vld [vmem:[%s3258_s1 + $0xf0] ss:$8 sps:$4 sm:$0xff]   ;;  %v2245_v35 = vld [vmem:[%s3258_s1 + $0xe4] ss:$8 sps:$4 sm:$0xff]  }
  0x17   : > { %1624 = vmatprep.subr.bf16.mxu1 %v2212_v13  ;;  %s3262_s22 = smov (!%p166_p3, %s1943_s22), 3  ;;  %v2244_v36 = vld [vmem:[%s3258_s1 + $0x1f0] ss:$8 sps:$4 sm:$0xff]   ;;  %v2248_v37 = vld [vmem:[%s3258_s1 + $0x1e4] ss:$8 sps:$4 sm:$0xff]   ;;  %vm1571_vm0 = vcmask 523264  }
  0x18   : > { %v2247_v38 = vld [vmem:[%s3258_s1 + $0xe0] ss:$8 sps:$4 sm:$0xff]   ;;  %v2251_v39 = vld [vmem:[%s3258_s1 + $0xd4] ss:$8 sps:$4 sm:$0xff]   ;;  %s2182_s19 = smul.u32 56, %s3262_s22 }
  0x19   : > { %1582 = vmatpush1.bf16.msra.mxu0 %v2211_v14  ;;  %v2250_v40 = vld [vmem:[%s3258_s1 + $0x1e0] ss:$8 sps:$4 sm:$0xff]   ;;  %v2254_v41 = vld [vmem:[%s3258_s1 + $0x1d4] ss:$8 sps:$4 sm:$0xff]   ;;  %v2253_v42 = vld [vmem:[%s3258_s1 + $0xd0] ss:$8 sps:$4 sm:$0xff]  }
  0x1a   : > { %1583 = vmatprep.subr.bf16.mxu0 %v2215_v15  ;;  %1625 = vmatpush1.bf16.msra.mxu1 %v2214_v16  ;;  %v2257_v43 = vld [vmem:[%s3258_s1 + $0xc4] ss:$8 sps:$4 sm:$0xff]   ;;  %s2712_s13 = scalar_lea.vmem %s3257_s0, %s2182_s19  ;;  %v2256_v44 = vld [vmem:[%s3258_s1 + $0x1d0] ss:$8 sps:$4 sm:$0xff]   ;;  %v2259_v46 = vld [vmem:[%s3258_s1 + $0xc0] ss:$8 sps:$4 sm:$0xff]  }
  0x1b   : > { %1626 = vmatprep.subr.bf16.mxu1 %v2218_v17  ;;  %v2260_v45 = vld [vmem:[%s3258_s1 + $0x1c4] ss:$8 sps:$4 sm:$0xff]   ;;  %v2263_v48 = vld [vmem:[%s3258_s1 + $0xb4] ss:$8 sps:$4 sm:$0xff]   ;;  %v2262_v49 = vld [vmem:[%s3258_s1 + $0x1c0] ss:$8 sps:$4 sm:$0xff]  }
  0x1c   : > { %v2288_v47 = vld [vmem:[%s2712_s13 + $0x4] ss:$56 sps:$4 sm:$0xff]   ;;  %v2265_v52 = vld [vmem:[%s3258_s1 + $0xb0] ss:$8 sps:$4 sm:$0xff]   ;;  %v2271_v56 = vld [vmem:[%s3258_s1 + $0xa0] ss:$8 sps:$4 sm:$0xff]  }
  0x1d   : > { %1584 = vmatpush1.bf16.msra.mxu0 %v2217_v18  ;;  %1607 = vmatprep.mubr.bf16.mxu0 %v2288_v47  ;;  %v2266_v50 = vld [vmem:[%s3258_s1 + $0x1b4] ss:$8 sps:$4 sm:$0xff]   ;;  %v2295_v51 = vld [vmem:[%s2712_s13 + $0xc] ss:$56 sps:$4 sm:$0xff]   ;;  %v2268_v54 = vld [vmem:[%s3258_s1 + $0x1b0] ss:$8 sps:$4 sm:$0xff]  }
  0x1e   : > { %1585 = vmatprep.subr.bf16.mxu0 %v2221_v19  ;;  %1627 = vmatpush1.bf16.msra.mxu1 %v2220_v20  ;;  %v2269_v53 = vld [vmem:[%s3258_s1 + $0xa4] ss:$8 sps:$4 sm:$0xff]   ;;  %v2275_v57 = vld [vmem:[%s3258_s1 + $0x94] ss:$8 sps:$4 sm:$0xff]   ;;  %v2274_v58 = vld [vmem:[%s3258_s1 + $0x1a0] ss:$8 sps:$4 sm:$0xff]  }
  0x1f   : > { %1628 = vmatprep.subr.bf16.mxu1 %v2224_v21  ;;  %1650 = vmatprep.mubr.bf16.mxu1 %v2295_v51  ;;  %v2272_v55 = vld [vmem:[%s3258_s1 + $0x1a4] ss:$8 sps:$4 sm:$0xff]   ;;  %v2278_v59 = vld [vmem:[%s3258_s1 + $0x194] ss:$8 sps:$4 sm:$0xff]   ;;  %v2277_v60 = vld [vmem:[%s3258_s1 + $0x90] ss:$8 sps:$4 sm:$0xff]  }
  0x20   : > { %v2281_v61 = vld [vmem:[%s3258_s1 + $0x84] ss:$8 sps:$4 sm:$0xff]   ;;  %v2280_v62 = vld [vmem:[%s3258_s1 + $0x190] ss:$8 sps:$4 sm:$0xff]   ;;  %v2283_v0 = vld [vmem:[%s3258_s1 + $0x80] ss:$8 sps:$4 sm:$0xff]  }
  0x21   : > { %1586 = vmatpush1.bf16.msra.mxu0 %v2223_v22  ;;  %v2284_v63 = vld [vmem:[%s3258_s1 + $0x184] ss:$8 sps:$4 sm:$0xff]   ;;  %v2292_v1 = vld [vmem:[%s3258_s1 + $0x274] ss:$8 sps:$4 sm:$0xff]   ;;  %v2289_v2 = vld [vmem:[%s3258_s1 + $0x180] ss:$8 sps:$4 sm:$0xff]  }
  0x22   : > { %1587 = vmatprep.subr.bf16.mxu0 %v2227_v23  ;;  %1629 = vmatpush1.bf16.msra.mxu1 %v2226_v24  ;;  %v2286_v3 = vld [vmem:[%s2712_s13] ss:$56 sps:$4 sm:$0xff]   ;;  %v2298_v4 = vld [vmem:[%s3258_s1 + $0x374] ss:$8 sps:$4 sm:$0xff]   ;;  %v2301_v7 = vld [vmem:[%s3258_s1 + $0x264] ss:$8 sps:$4 sm:$0xff]  }
  0x23   : > { %1630 = vmatprep.subr.bf16.mxu1 %v2230_v25  ;;  %v2290_v5 = vld [vmem:[%s3258_s1 + $0x270] ss:$8 sps:$4 sm:$0xff]   ;;  %v2293_v6 = vld [vmem:[%s2712_s13 + $0x8] ss:$56 sps:$4 sm:$0xff]   ;;  %v2304_v9 = vld [vmem:[%s3258_s1 + $0x364] ss:$8 sps:$4 sm:$0xff]  }
  0x24   : > { %v2296_v8 = vld [vmem:[%s3258_s1 + $0x370] ss:$8 sps:$4 sm:$0xff]   ;;  %v2299_v10 = vld [vmem:[%s3258_s1 + $0x260] ss:$8 sps:$4 sm:$0xff]   ;;  %v2307_v11 = vld [vmem:[%s3258_s1 + $0x254] ss:$8 sps:$4 sm:$0xff]  }
  0x25   : > { %1588 = vmatpush1.bf16.msra.mxu0 %v2229_v26  ;;  %v2302_v12 = vld [vmem:[%s3258_s1 + $0x360] ss:$8 sps:$4 sm:$0xff]   ;;  %v2310_v13 = vld [vmem:[%s3258_s1 + $0x354] ss:$8 sps:$4 sm:$0xff]   ;;  %v2305_v14 = vld [vmem:[%s3258_s1 + $0x250] ss:$8 sps:$4 sm:$0xff]  }
  0x26   : > { %1589 = vmatprep.subr.bf16.mxu0 %v2233_v27  ;;  %1631 = vmatpush1.bf16.msra.mxu1 %v2232_v28  ;;  %v2313_v15 = vld [vmem:[%s3258_s1 + $0x244] ss:$8 sps:$4 sm:$0xff]   ;;  %v2308_v16 = vld [vmem:[%s3258_s1 + $0x350] ss:$8 sps:$4 sm:$0xff]   ;;  %v2311_v18 = vld [vmem:[%s3258_s1 + $0x240] ss:$8 sps:$4 sm:$0xff]  }
  0x27   : > { %1632 = vmatprep.subr.bf16.mxu1 %v2236_v29  ;;  %v2316_v17 = vld [vmem:[%s3258_s1 + $0x344] ss:$8 sps:$4 sm:$0xff]   ;;  %v2319_v19 = vld [vmem:[%s3258_s1 + $0x234] ss:$8 sps:$4 sm:$0xff]   ;;  %v2314_v20 = vld [vmem:[%s3258_s1 + $0x340] ss:$8 sps:$4 sm:$0xff]  }
  0x28   : > { %v2322_v21 = vld [vmem:[%s3258_s1 + $0x334] ss:$8 sps:$4 sm:$0xff]   ;;  %v2317_v22 = vld [vmem:[%s3258_s1 + $0x230] ss:$8 sps:$4 sm:$0xff]   ;;  %v2325_v23 = vld [vmem:[%s3258_s1 + $0x224] ss:$8 sps:$4 sm:$0xff]  }
  0x29   : > { %1590 = vmatpush1.bf16.msra.mxu0 %v2235_v30  ;;  %v2320_v24 = vld [vmem:[%s3258_s1 + $0x330] ss:$8 sps:$4 sm:$0xff]   ;;  %v2328_v25 = vld [vmem:[%s3258_s1 + $0x324] ss:$8 sps:$4 sm:$0xff]   ;;  %v2323_v26 = vld [vmem:[%s3258_s1 + $0x220] ss:$8 sps:$4 sm:$0xff]  }
  0x2a   : > { %1591 = vmatprep.subr.bf16.mxu0 %v2239_v31  ;;  %1633 = vmatpush1.bf16.msra.mxu1 %v2238_v32  ;;  %v2331_v27 = vld [vmem:[%s3258_s1 + $0x214] ss:$8 sps:$4 sm:$0xff]   ;;  %v2326_v28 = vld [vmem:[%s3258_s1 + $0x320] ss:$8 sps:$4 sm:$0xff]   ;;  %v2329_v30 = vld [vmem:[%s3258_s1 + $0x210] ss:$8 sps:$4 sm:$0xff]  }
  0x2b   : > { %1634 = vmatprep.subr.bf16.mxu1 %v2242_v33  ;;  %v2334_v29 = vld [vmem:[%s3258_s1 + $0x314] ss:$8 sps:$4 sm:$0xff]   ;;  %v2332_v31 = vld [vmem:[%s3258_s1 + $0x310] ss:$8 sps:$4 sm:$0xff]   ;;  %v2337_v32 = vld [vmem:[%s3258_s1 + $0x204] ss:$8 sps:$4 sm:$0xff]  }
  0x2c   : > { %v2391_v33 = vld [vmem:[%s2712_s13 + $0x14] ss:$56 sps:$4 sm:$0xff]  }
  0x2d   : > { %1592 = vmatpush2.bf16.msra.mxu0 %v2241_v34  ;;  %v2340_v34 = vld [vmem:[%s3258_s1 + $0x304] ss:$8 sps:$4 sm:$0xff]   ;;  %v2358_v47 = vld [vmem:[%s3258_s1 + $0x3d4] ss:$8 sps:$4 sm:$0xff]  }
  0x2e   : > { %1593 = vmatprep.subr.bf16.mxu0 %v2245_v35  ;;  %1635 = vmatpush2.bf16.msra.mxu1 %v2244_v36  ;;  %v2335_v35 = vld [vmem:[%s3258_s1 + $0x200] ss:$8 sps:$4 sm:$0xff]   ;;  %v2397_v36 = vld [vmem:[%s2712_s13 + $0x1c] ss:$56 sps:$4 sm:$0xff]   ;;  %v2364_v51 = vld [vmem:[%s3258_s1 + $0x3c4] ss:$8 sps:$4 sm:$0xff]  }
  0x2f   : > { %1636 = vmatprep.subr.bf16.mxu1 %v2248_v37  ;;  %v2343_v37 = vld [vmem:[%s3258_s1 + $0x2f4] ss:$8 sps:$4 sm:$0xff]  }
  0x31   : > { %1594 = vmatpush2.bf16.msra.mxu0 %v2247_v38  ;;  %v2338_v38 = vld [vmem:[%s3258_s1 + $0x300] ss:$8 sps:$4 sm:$0xff]  }
  0x32   : > { %1595 = vmatprep.subr.bf16.mxu0 %v2251_v39  ;;  %1637 = vmatpush2.bf16.msra.mxu1 %v2250_v40  ;;  %v2346_v39 = vld [vmem:[%s3258_s1 + $0x3f4] ss:$8 sps:$4 sm:$0xff]   ;;  %v2341_v40 = vld [vmem:[%s3258_s1 + $0x2f0] ss:$8 sps:$4 sm:$0xff]  }
  0x33   : > { %1638 = vmatprep.subr.bf16.mxu1 %v2254_v41  ;;  %v2349_v41 = vld [vmem:[%s3258_s1 + $0x2e4] ss:$8 sps:$4 sm:$0xff]  }
  0x35   : > { %1596 = vmatpush2.bf16.msra.mxu0 %v2253_v42  ;;  %v2344_v42 = vld [vmem:[%s3258_s1 + $0x3f0] ss:$8 sps:$4 sm:$0xff]  }
  0x36   : > { %1597 = vmatprep.subr.bf16.mxu0 %v2257_v43  ;;  %1639 = vmatpush2.bf16.msra.mxu1 %v2256_v44  ;;  %v2352_v43 = vld [vmem:[%s3258_s1 + $0x3e4] ss:$8 sps:$4 sm:$0xff]   ;;  %v2347_v44 = vld [vmem:[%s3258_s1 + $0x2e0] ss:$8 sps:$4 sm:$0xff]  }
  0x37   : > { %1640 = vmatprep.subr.bf16.mxu1 %v2260_v45  ;;  %v2355_v45 = vld [vmem:[%s3258_s1 + $0x2d4] ss:$8 sps:$4 sm:$0xff]  }
  0x39   : > { %1598 = vmatpush2.bf16.msra.mxu0 %v2259_v46  ;;  %v2350_v46 = vld [vmem:[%s3258_s1 + $0x3e0] ss:$8 sps:$4 sm:$0xff]  }
  0x3a   : > { %1599 = vmatprep.subr.bf16.mxu0 %v2263_v48  ;;  %1641 = vmatpush2.bf16.msra.mxu1 %v2262_v49  ;;  %v2353_v48 = vld [vmem:[%s3258_s1 + $0x2d0] ss:$8 sps:$4 sm:$0xff]   ;;  %v2361_v49 = vld [vmem:[%s3258_s1 + $0x2c4] ss:$8 sps:$4 sm:$0xff]  }
  0x3b   : > { %1642 = vmatprep.subr.bf16.mxu1 %v2266_v50  ;;  %v2356_v50 = vld [vmem:[%s3258_s1 + $0x3d0] ss:$8 sps:$4 sm:$0xff]  }
  0x3d   : > { %1600 = vmatpush2.bf16.msra.mxu0 %v2265_v52  ;;  %v2359_v52 = vld [vmem:[%s3258_s1 + $0x2c0] ss:$8 sps:$4 sm:$0xff]  }
  0x3e   : > { %1601 = vmatprep.subr.bf16.mxu0 %v2269_v53  ;;  %1643 = vmatpush2.bf16.msra.mxu1 %v2268_v54  ;;  %v2367_v53 = vld [vmem:[%s3258_s1 + $0x2b4] ss:$8 sps:$4 sm:$0xff]   ;;  %v2362_v54 = vld [vmem:[%s3258_s1 + $0x3c0] ss:$8 sps:$4 sm:$0xff]  }
  0x3f   : > { %1644 = vmatprep.subr.bf16.mxu1 %v2272_v55  ;;  %v2370_v55 = vld [vmem:[%s3258_s1 + $0x3b4] ss:$8 sps:$4 sm:$0xff]  }
  0x41   : > { %1602 = vmatpush2.bf16.msra.mxu0 %v2271_v56  ;;  %v2365_v56 = vld [vmem:[%s3258_s1 + $0x2b0] ss:$8 sps:$4 sm:$0xff]  }
  0x42   : > { %1603 = vmatprep.subr.bf16.mxu0 %v2275_v57  ;;  %1645 = vmatpush2.bf16.msra.mxu1 %v2274_v58  ;;  %v2373_v57 = vld [vmem:[%s3258_s1 + $0x2a4] ss:$8 sps:$4 sm:$0xff]   ;;  %v2368_v58 = vld [vmem:[%s3258_s1 + $0x3b0] ss:$8 sps:$4 sm:$0xff]  }
  0x43   : > { %1646 = vmatprep.subr.bf16.mxu1 %v2278_v59  ;;  %v2376_v59 = vld [vmem:[%s3258_s1 + $0x3a4] ss:$8 sps:$4 sm:$0xff]  }
  0x45   : > { %1604 = vmatpush2.bf16.msra.mxu0 %v2277_v60  ;;  %v2371_v60 = vld [vmem:[%s3258_s1 + $0x2a0] ss:$8 sps:$4 sm:$0xff]  }
  0x46   : > { %1605 = vmatprep.subr.bf16.mxu0 %v2281_v61  ;;  %1647 = vmatpush2.bf16.msra.mxu1 %v2280_v62  ;;  %v2379_v61 = vld [vmem:[%s3258_s1 + $0x294] ss:$8 sps:$4 sm:$0xff]   ;;  %v2374_v62 = vld [vmem:[%s3258_s1 + $0x3a0] ss:$8 sps:$4 sm:$0xff]  }
  0x47   : > { %1648 = vmatprep.subr.bf16.mxu1 %v2284_v63  ;;  %v2382_v63 = vld [vmem:[%s3258_s1 + $0x394] ss:$8 sps:$4 sm:$0xff]  }
  0x49   : > { %1606 = vmatpush2.bf16.msra.mxu0 %v2283_v0  ;;  %v2377_v0 = vld [vmem:[%s3258_s1 + $0x290] ss:$8 sps:$4 sm:$0xff]  }
  0x4a   : > { %1661 = vmatprep.subr.bf16.mxu0 %v2292_v1  ;;  %1649 = vmatpush2.bf16.msra.mxu1 %v2289_v2  ;;  %v2385_v1 = vld [vmem:[%s3258_s1 + $0x284] ss:$8 sps:$4 sm:$0xff]   ;;  %v2380_v2 = vld [vmem:[%s3258_s1 + $0x390] ss:$8 sps:$4 sm:$0xff]  }
  0x4b   : > { %1704 = vmatprep.subr.bf16.mxu1 %v2298_v4  ;;  %v2383_v4 = vld [vmem:[%s3258_s1 + $0x280] ss:$8 sps:$4 sm:$0xff]  }
  0x4c   : > { %1608 = vmatmul.mubr.bf16.vlgmr.msra.gmra.mxu0 %v2286_v3  ;;  %v2388_v3 = vld [vmem:[%s3258_s1 + $0x384] ss:$8 sps:$4 sm:$0xff]  }
  0x4d   : > { %1662 = vmatpush1.bf16.msra.mxu0 %v2290_v5  ;;  %1651 = vmatmul.mubr.bf16.vlgmr.msra.gmra.mxu1 %v2293_v6  ;;  %v2394_v5 = vld [vmem:[%s3258_s1 + $0x474] ss:$8 sps:$4 sm:$0xff]   ;;  %v2386_v6 = vld [vmem:[%s3258_s1 + $0x380] ss:$8 sps:$4 sm:$0xff]  }
  0x4e   : > { %1663 = vmatprep.subr.bf16.mxu0 %v2301_v7  ;;  %1705 = vmatpush1.bf16.msra.mxu1 %v2296_v8  ;;  %v2389_v7 = vld [vmem:[%s2712_s13 + $0x10] ss:$56 sps:$4 sm:$0xff]   ;;  %v2400_v8 = vld [vmem:[%s3258_s1 + $0x574] ss:$8 sps:$4 sm:$0xff]  }
  0x4f   : > { %1706 = vmatprep.subr.bf16.mxu1 %v2304_v9  ;;  %1693 = vmatprep.mubr.bf16.mxu0 %v2391_v33  ;;  %v2392_v9 = vld [vmem:[%s3258_s1 + $0x470] ss:$8 sps:$4 sm:$0xff]   ;;  %v2433_v33 = vld [vmem:[%s3258_s1 + $0x414] ss:$8 sps:$4 sm:$0xff]  }
  0x50   : > { %1736 = vmatprep.mubr.bf16.mxu1 %v2397_v36  ;;  %v2431_v36 = vld [vmem:[%s3258_s1 + $0x410] ss:$8 sps:$4 sm:$0xff]  }
  0x51   : > { %1664 = vmatpush1.bf16.msra.mxu0 %v2299_v10  ;;  %v2395_v10 = vld [vmem:[%s2712_s13 + $0x18] ss:$56 sps:$4 sm:$0xff]  }
  0x52   : > { %1665 = vmatprep.subr.bf16.mxu0 %v2307_v11  ;;  %1707 = vmatpush1.bf16.msra.mxu1 %v2302_v12  ;;  %v2403_v11 = vld [vmem:[%s3258_s1 + $0x464] ss:$8 sps:$4 sm:$0xff]   ;;  %v2398_v12 = vld [vmem:[%s3258_s1 + $0x570] ss:$8 sps:$4 sm:$0xff]  }
  0x53   : > { %1708 = vmatprep.subr.bf16.mxu1 %v2310_v13  ;;  %v2406_v13 = vld [vmem:[%s3258_s1 + $0x564] ss:$8 sps:$4 sm:$0xff]  }
  0x55   : > { %1666 = vmatpush1.bf16.msra.mxu0 %v2305_v14  ;;  %v2401_v14 = vld [vmem:[%s3258_s1 + $0x460] ss:$8 sps:$4 sm:$0xff]  }
  0x56   : > { %1667 = vmatprep.subr.bf16.mxu0 %v2313_v15  ;;  %1709 = vmatpush1.bf16.msra.mxu1 %v2308_v16  ;;  %v2409_v15 = vld [vmem:[%s3258_s1 + $0x454] ss:$8 sps:$4 sm:$0xff]   ;;  %v2404_v16 = vld [vmem:[%s3258_s1 + $0x560] ss:$8 sps:$4 sm:$0xff]  }
  0x57   : > { %1710 = vmatprep.subr.bf16.mxu1 %v2316_v17  ;;  %v2412_v17 = vld [vmem:[%s3258_s1 + $0x554] ss:$8 sps:$4 sm:$0xff]  }
  0x59   : > { %1668 = vmatpush1.bf16.msra.mxu0 %v2311_v18  ;;  %v2493_v18 = vld [vmem:[%s2712_s13 + $0x24] ss:$56 sps:$4 sm:$0xff]  }
  0x5a   : > { %1669 = vmatprep.subr.bf16.mxu0 %v2319_v19  ;;  %1711 = vmatpush1.bf16.msra.mxu1 %v2314_v20  ;;  %v2407_v19 = vld [vmem:[%s3258_s1 + $0x450] ss:$8 sps:$4 sm:$0xff]  }
  0x5b   : > { %1712 = vmatprep.subr.bf16.mxu1 %v2322_v21  ;;  %v2410_v20 = vld [vmem:[%s3258_s1 + $0x550] ss:$8 sps:$4 sm:$0xff]   ;;  %v2415_v21 = vld [vmem:[%s3258_s1 + $0x444] ss:$8 sps:$4 sm:$0xff]  }
  0x5d   : > { %1670 = vmatpush1.bf16.msra.mxu0 %v2317_v22  ;;  %v2499_v22 = vld [vmem:[%s2712_s13 + $0x2c] ss:$56 sps:$4 sm:$0xff]  }
  0x5e   : > { %1671 = vmatprep.subr.bf16.mxu0 %v2325_v23  ;;  %1713 = vmatpush1.bf16.msra.mxu1 %v2320_v24  ;;  %v2418_v23 = vld [vmem:[%s3258_s1 + $0x544] ss:$8 sps:$4 sm:$0xff]   ;;  %v2413_v24 = vld [vmem:[%s3258_s1 + $0x440] ss:$8 sps:$4 sm:$0xff]  }
  0x5f   : > { %1714 = vmatprep.subr.bf16.mxu1 %v2328_v25  ;;  %v2421_v25 = vld [vmem:[%s3258_s1 + $0x434] ss:$8 sps:$4 sm:$0xff]  }
  0x61   : > { %1672 = vmatpush1.bf16.msra.mxu0 %v2323_v26  ;;  %v2416_v26 = vld [vmem:[%s3258_s1 + $0x540] ss:$8 sps:$4 sm:$0xff]  }
  0x62   : > { %1673 = vmatprep.subr.bf16.mxu0 %v2331_v27  ;;  %1715 = vmatpush1.bf16.msra.mxu1 %v2326_v28  ;;  %v2424_v27 = vld [vmem:[%s3258_s1 + $0x534] ss:$8 sps:$4 sm:$0xff]   ;;  %v2419_v28 = vld [vmem:[%s3258_s1 + $0x430] ss:$8 sps:$4 sm:$0xff]  }
  0x63   : > { %1716 = vmatprep.subr.bf16.mxu1 %v2334_v29  ;;  %v2427_v29 = vld [vmem:[%s3258_s1 + $0x424] ss:$8 sps:$4 sm:$0xff]  }
  0x65   : > { %1674 = vmatpush1.bf16.msra.mxu0 %v2329_v30  ;;  %v2422_v30 = vld [vmem:[%s3258_s1 + $0x530] ss:$8 sps:$4 sm:$0xff]  }
  0x66   : > { %1675 = vmatprep.subr.bf16.mxu0 %v2337_v32  ;;  %1717 = vmatpush1.bf16.msra.mxu1 %v2332_v31  ;;  %v2430_v31 = vld [vmem:[%s3258_s1 + $0x524] ss:$8 sps:$4 sm:$0xff]   ;;  %v2425_v32 = vld [vmem:[%s3258_s1 + $0x420] ss:$8 sps:$4 sm:$0xff]  }
  0x67   : > { %1718 = vmatprep.subr.bf16.mxu1 %v2340_v34  ;;  %v2428_v34 = vld [vmem:[%s3258_s1 + $0x520] ss:$8 sps:$4 sm:$0xff]  }
  0x69   : > { %1676 = vmatpush1.bf16.msra.mxu0 %v2335_v35  ;;  %v2436_v35 = vld [vmem:[%s3258_s1 + $0x514] ss:$8 sps:$4 sm:$0xff]  }
  0x6a   : > { %1677 = vmatprep.subr.bf16.mxu0 %v2343_v37  ;;  %1719 = vmatpush1.bf16.msra.mxu1 %v2338_v38  ;;  %v2439_v37 = vld [vmem:[%s3258_s1 + $0x404] ss:$8 sps:$4 sm:$0xff]   ;;  %v2434_v38 = vld [vmem:[%s3258_s1 + $0x510] ss:$8 sps:$4 sm:$0xff]  }
  0x6b   : > { %1720 = vmatprep.subr.bf16.mxu1 %v2346_v39  ;;  %v2442_v39 = vld [vmem:[%s3258_s1 + $0x504] ss:$8 sps:$4 sm:$0xff]  }
  0x6d   : > { %1678 = vmatpush2.bf16.msra.mxu0 %v2341_v40  ;;  %v2437_v40 = vld [vmem:[%s3258_s1 + $0x400] ss:$8 sps:$4 sm:$0xff]  }
  0x6e   : > { %1679 = vmatprep.subr.bf16.mxu0 %v2349_v41  ;;  %1721 = vmatpush2.bf16.msra.mxu1 %v2344_v42  ;;  %v2445_v41 = vld [vmem:[%s3258_s1 + $0x4f4] ss:$8 sps:$4 sm:$0xff]   ;;  %v2440_v42 = vld [vmem:[%s3258_s1 + $0x500] ss:$8 sps:$4 sm:$0xff]  }
  0x6f   : > { %1722 = vmatprep.subr.bf16.mxu1 %v2352_v43  ;;  %v2448_v43 = vld [vmem:[%s3258_s1 + $0x5f4] ss:$8 sps:$4 sm:$0xff]  }
  0x71   : > { %1680 = vmatpush2.bf16.msra.mxu0 %v2347_v44  ;;  %v2443_v44 = vld [vmem:[%s3258_s1 + $0x4f0] ss:$8 sps:$4 sm:$0xff]  }
  0x72   : > { %1681 = vmatprep.subr.bf16.mxu0 %v2355_v45  ;;  %1723 = vmatpush2.bf16.msra.mxu1 %v2350_v46  ;;  %v2451_v45 = vld [vmem:[%s3258_s1 + $0x4e4] ss:$8 sps:$4 sm:$0xff]   ;;  %v2446_v46 = vld [vmem:[%s3258_s1 + $0x5f0] ss:$8 sps:$4 sm:$0xff]  }
  0x73   : > { %1724 = vmatprep.subr.bf16.mxu1 %v2358_v47  ;;  %v2454_v47 = vld [vmem:[%s3258_s1 + $0x5e4] ss:$8 sps:$4 sm:$0xff]  }
  0x75   : > { %1682 = vmatpush2.bf16.msra.mxu0 %v2353_v48  ;;  %v2449_v48 = vld [vmem:[%s3258_s1 + $0x4e0] ss:$8 sps:$4 sm:$0xff]  }
  0x76   : > { %1683 = vmatprep.subr.bf16.mxu0 %v2361_v49  ;;  %1725 = vmatpush2.bf16.msra.mxu1 %v2356_v50  ;;  %v2457_v49 = vld [vmem:[%s3258_s1 + $0x4d4] ss:$8 sps:$4 sm:$0xff]   ;;  %v2452_v50 = vld [vmem:[%s3258_s1 + $0x5e0] ss:$8 sps:$4 sm:$0xff]  }
  0x77   : > { %1726 = vmatprep.subr.bf16.mxu1 %v2364_v51  ;;  %v2460_v51 = vld [vmem:[%s3258_s1 + $0x5d4] ss:$8 sps:$4 sm:$0xff]  }
  0x79   : > { %1684 = vmatpush2.bf16.msra.mxu0 %v2359_v52  ;;  %v2455_v52 = vld [vmem:[%s3258_s1 + $0x4d0] ss:$8 sps:$4 sm:$0xff]  }
  0x7a   : > { %1685 = vmatprep.subr.bf16.mxu0 %v2367_v53  ;;  %1727 = vmatpush2.bf16.msra.mxu1 %v2362_v54  ;;  %v2463_v53 = vld [vmem:[%s3258_s1 + $0x4c4] ss:$8 sps:$4 sm:$0xff]   ;;  %v2458_v54 = vld [vmem:[%s3258_s1 + $0x5d0] ss:$8 sps:$4 sm:$0xff]  }
  0x7b   : > { %1728 = vmatprep.subr.bf16.mxu1 %v2370_v55  ;;  %v2466_v55 = vld [vmem:[%s3258_s1 + $0x5c4] ss:$8 sps:$4 sm:$0xff]  }
  0x7d   : > { %1686 = vmatpush2.bf16.msra.mxu0 %v2365_v56  ;;  %v2461_v56 = vld [vmem:[%s3258_s1 + $0x4c0] ss:$8 sps:$4 sm:$0xff]  }
  0x7e   : > { %1687 = vmatprep.subr.bf16.mxu0 %v2373_v57  ;;  %1729 = vmatpush2.bf16.msra.mxu1 %v2368_v58  ;;  %v2469_v57 = vld [vmem:[%s3258_s1 + $0x4b4] ss:$8 sps:$4 sm:$0xff]   ;;  %v2464_v58 = vld [vmem:[%s3258_s1 + $0x5c0] ss:$8 sps:$4 sm:$0xff]  }
  0x7f   : > { %1730 = vmatprep.subr.bf16.mxu1 %v2376_v59  ;;  %v2472_v59 = vld [vmem:[%s3258_s1 + $0x5b4] ss:$8 sps:$4 sm:$0xff]  }
  0x81   : > { %1688 = vmatpush2.bf16.msra.mxu0 %v2371_v60  ;;  %v2467_v60 = vld [vmem:[%s3258_s1 + $0x4b0] ss:$8 sps:$4 sm:$0xff]  }
  0x82   : > { %1689 = vmatprep.subr.bf16.mxu0 %v2379_v61  ;;  %1731 = vmatpush2.bf16.msra.mxu1 %v2374_v62  ;;  %v2475_v61 = vld [vmem:[%s3258_s1 + $0x4a4] ss:$8 sps:$4 sm:$0xff]   ;;  %v2470_v62 = vld [vmem:[%s3258_s1 + $0x5b0] ss:$8 sps:$4 sm:$0xff]  }
  0x83   : > { %1732 = vmatprep.subr.bf16.mxu1 %v2382_v63  ;;  %v2478_v63 = vld [vmem:[%s3258_s1 + $0x5a4] ss:$8 sps:$4 sm:$0xff]  }
  0x85   : > { %1690 = vmatpush2.bf16.msra.mxu0 %v2377_v0  ;;  %v2473_v0 = vld [vmem:[%s3258_s1 + $0x4a0] ss:$8 sps:$4 sm:$0xff]  }
  0x86   : > { %1691 = vmatprep.subr.bf16.mxu0 %v2385_v1  ;;  %1733 = vmatpush2.bf16.msra.mxu1 %v2380_v2  ;;  %v2481_v1 = vld [vmem:[%s3258_s1 + $0x494] ss:$8 sps:$4 sm:$0xff]   ;;  %v2476_v2 = vld [vmem:[%s3258_s1 + $0x5a0] ss:$8 sps:$4 sm:$0xff]  }
  0x87   : > { %1734 = vmatprep.subr.bf16.mxu1 %v2388_v3  ;;  %v2484_v3 = vld [vmem:[%s3258_s1 + $0x594] ss:$8 sps:$4 sm:$0xff]  }
  0x89   : > { %1692 = vmatpush2.bf16.msra.mxu0 %v2383_v4  ;;  %v2479_v4 = vld [vmem:[%s3258_s1 + $0x490] ss:$8 sps:$4 sm:$0xff]  }
  0x8a   : > { %1747 = vmatprep.subr.bf16.mxu0 %v2394_v5  ;;  %1735 = vmatpush2.bf16.msra.mxu1 %v2386_v6  ;;  %v2487_v5 = vld [vmem:[%s3258_s1 + $0x484] ss:$8 sps:$4 sm:$0xff]   ;;  %v2482_v6 = vld [vmem:[%s3258_s1 + $0x590] ss:$8 sps:$4 sm:$0xff]  }
  0x8b   : > { %1790 = vmatprep.subr.bf16.mxu1 %v2400_v8  ;;  %v2485_v8 = vld [vmem:[%s3258_s1 + $0x480] ss:$8 sps:$4 sm:$0xff]  }
  0x8c   : > { %1694 = vmatmul.mubr.bf16.vlgmr.msra.gmra.mxu0 %v2389_v7  ;;  %v2490_v7 = vld [vmem:[%s3258_s1 + $0x584] ss:$8 sps:$4 sm:$0xff]  }
  0x8d   : > { %1748 = vmatpush1.bf16.msra.mxu0 %v2392_v9  ;;  %1737 = vmatmul.mubr.bf16.vlgmr.msra.gmra.mxu1 %v2395_v10  ;;  %v2496_v9 = vld [vmem:[%s3258_s1 + $0x674] ss:$8 sps:$4 sm:$0xff]   ;;  %v2488_v10 = vld [vmem:[%s3258_s1 + $0x580] ss:$8 sps:$4 sm:$0xff]  }
  0x8e   : > { %1749 = vmatprep.subr.bf16.mxu0 %v2403_v11  ;;  %1791 = vmatpush1.bf16.msra.mxu1 %v2398_v12  ;;  %v2491_v11 = vld [vmem:[%s2712_s13 + $0x20] ss:$56 sps:$4 sm:$0xff]  }
  0x8f   : > { %1792 = vmatprep.subr.bf16.mxu1 %v2406_v13  ;;  %1779 = vmatprep.mubr.bf16.mxu0 %v2493_v18  ;;  %v2494_v12 = vld [vmem:[%s3258_s1 + $0x670] ss:$8 sps:$4 sm:$0xff]   ;;  %v2533_v13 = vld [vmem:[%s2712_s13 + $0x34] ss:$56 sps:$4 sm:$0xff]  }
  0x90   : > { %1822 = vmatprep.mubr.bf16.mxu1 %v2499_v22  ;;  %v2503_v18 = vld [vmem:[%s3258_s1 + $0x650] ss:$8 sps:$4 sm:$0xff]  }
  0x91   : > { %1750 = vmatpush1.bf16.msra.mxu0 %v2401_v14  ;;  %v2497_v14 = vld [vmem:[%s2712_s13 + $0x28] ss:$56 sps:$4 sm:$0xff]   ;;  %v2509_v22 = vld [vmem:[%s3258_s1 + $0x630] ss:$8 sps:$4 sm:$0xff]  }
  0x92   : > { %1751 = vmatprep.subr.bf16.mxu0 %v2409_v15  ;;  %1793 = vmatpush1.bf16.msra.mxu1 %v2404_v16  ;;  %v2502_v15 = vld [vmem:[%s3258_s1 + $0x664] ss:$8 sps:$4 sm:$0xff]   ;;  %v2500_v16 = vld [vmem:[%s3258_s1 + $0x660] ss:$8 sps:$4 sm:$0xff]  }
  0x93   : > { %1794 = vmatprep.subr.bf16.mxu1 %v2412_v17  ;;  %v2505_v17 = vld [vmem:[%s3258_s1 + $0x654] ss:$8 sps:$4 sm:$0xff]  }
  0x95   : > { %1752 = vmatpush1.bf16.msra.mxu0 %v2407_v19  ;;  %v2508_v19 = vld [vmem:[%s3258_s1 + $0x644] ss:$8 sps:$4 sm:$0xff]  }
  0x96   : > { %1753 = vmatprep.subr.bf16.mxu0 %v2415_v21  ;;  %1795 = vmatpush1.bf16.msra.mxu1 %v2410_v20  ;;  %v2506_v20 = vld [vmem:[%s3258_s1 + $0x640] ss:$8 sps:$4 sm:$0xff]   ;;  %v2511_v21 = vld [vmem:[%s3258_s1 + $0x634] ss:$8 sps:$4 sm:$0xff]  }
  0x97   : > { %1796 = vmatprep.subr.bf16.mxu1 %v2418_v23  ;;  %v2514_v23 = vld [vmem:[%s3258_s1 + $0x624] ss:$8 sps:$4 sm:$0xff]  }
  0x99   : > { %1754 = vmatpush1.bf16.msra.mxu0 %v2413_v24  ;;  %v2512_v24 = vld [vmem:[%s3258_s1 + $0x620] ss:$8 sps:$4 sm:$0xff]  }
  0x9a   : > { %1755 = vmatprep.subr.bf16.mxu0 %v2421_v25  ;;  %1797 = vmatpush1.bf16.msra.mxu1 %v2416_v26  ;;  %v2517_v25 = vld [vmem:[%s3258_s1 + $0x614] ss:$8 sps:$4 sm:$0xff]   ;;  %v2515_v26 = vld [vmem:[%s3258_s1 + $0x610] ss:$8 sps:$4 sm:$0xff]  }
  0x9b   : > { %1798 = vmatprep.subr.bf16.mxu1 %v2424_v27  ;;  %v2520_v27 = vld [vmem:[%s3258_s1 + $0x604] ss:$8 sps:$4 sm:$0xff]  }
  0x9d   : > { %1756 = vmatpush1.bf16.msra.mxu0 %v2419_v28  ;;  %v2518_v28 = vld [vmem:[%s3258_s1 + $0x600] ss:$8 sps:$4 sm:$0xff]  }
  0x9e   : > { %1757 = vmatprep.subr.bf16.mxu0 %v2427_v29  ;;  %1799 = vmatpush1.bf16.msra.mxu1 %v2422_v30  ;;  %v2523_v29 = vld [vmem:[%s3258_s1 + $0x6b4] ss:$8 sps:$4 sm:$0xff]   ;;  %v2521_v30 = vld [vmem:[%s3258_s1 + $0x6b0] ss:$8 sps:$4 sm:$0xff]  }
  0x9f   : > { %1800 = vmatprep.subr.bf16.mxu1 %v2430_v31  ;;  %v2526_v31 = vld [vmem:[%s3258_s1 + $0x6a4] ss:$8 sps:$4 sm:$0xff]  }
  0xa1   : > { %1758 = vmatpush1.bf16.msra.mxu0 %v2425_v32  ;;  %v2524_v32 = vld [vmem:[%s3258_s1 + $0x6a0] ss:$8 sps:$4 sm:$0xff]  }
  0xa2   : > { %1759 = vmatprep.subr.bf16.mxu0 %v2433_v33  ;;  %1801 = vmatpush1.bf16.msra.mxu1 %v2428_v34  ;;  %v2529_v33 = vld [vmem:[%s3258_s1 + $0x694] ss:$8 sps:$4 sm:$0xff]   ;;  %v2527_v34 = vld [vmem:[%s3258_s1 + $0x690] ss:$8 sps:$4 sm:$0xff]  }
  0xa3   : > { %1802 = vmatprep.subr.bf16.mxu1 %v2436_v35  ;;  %v2532_v35 = vld [vmem:[%s3258_s1 + $0x684] ss:$8 sps:$4 sm:$0xff]  }
  0xa5   : > { %1760 = vmatpush1.bf16.msra.mxu0 %v2431_v36  ;;  %v2530_v36 = vld [vmem:[%s3258_s1 + $0x680] ss:$8 sps:$4 sm:$0xff]  }
  0xa6   : > { %1761 = vmatprep.subr.bf16.mxu0 %v2439_v37  ;;  %1803 = vmatpush1.bf16.msra.mxu1 %v2434_v38  ;;  %v2535_v37 = vld [vmem:[%s2712_s13 + $0x30] ss:$56 sps:$4 sm:$0xff]   ;;  %s2181_s13 = sshll.u32 %s3262_s22, 4 }
  0xa7   : > { %1804 = vmatprep.subr.bf16.mxu1 %v2442_v39  ;;  %s177_s18 = scalar_lea.vmem %s3260_s3, %s2181_s13 }
  0xa9   : > { %1762 = vmatpush1.bf16.msra.mxu0 %v2437_v40 }
  0xaa   : > { %1763 = vmatprep.subr.bf16.mxu0 %v2445_v41  ;;  %1805 = vmatpush1.bf16.msra.mxu1 %v2440_v42 }
  0xab   : > { %1806 = vmatprep.subr.bf16.mxu1 %v2448_v43  ;;  %v412_v43 = vlaneseq }
  0xad   : > { %1764 = vmatpush2.bf16.msra.mxu0 %v2443_v44 }
  0xae   : > { %1765 = vmatprep.subr.bf16.mxu0 %v2451_v45  ;;  %1807 = vmatpush2.bf16.msra.mxu1 %v2446_v46  ;;  %v413_v46 = vshrl.u32 %v412_v43, 7 }
  0xaf   : > { %1808 = vmatprep.subr.bf16.mxu1 %v2454_v47 }
  0xb1   : > { %1766 = vmatpush2.bf16.msra.mxu0 %v2449_v48 }
  0xb2   : > { %1767 = vmatprep.subr.bf16.mxu0 %v2457_v49  ;;  %1809 = vmatpush2.bf16.msra.mxu1 %v2452_v50  ;;  %v414_v49 = vsub.s32 0, %v413_v46  ;;  %v410_v50 = vld [vmem:[%s3259_s2] sm:$0x3] }
  0xb3   : > { %1810 = vmatprep.subr.bf16.mxu1 %v2460_v51 }
  0xb5   : > { %1768 = vmatpush2.bf16.msra.mxu0 %v2455_v52 }
  0xb6   : > { %1769 = vmatprep.subr.bf16.mxu0 %v2463_v53  ;;  %1811 = vmatpush2.bf16.msra.mxu1 %v2458_v54  ;;  %v418_v53 = vsub.s32 1, %v413_v46  ;;  %v415_v54 = vrot.slane %v410_v50, %v414_v49 }
  0xb7   : > { %1812 = vmatprep.subr.bf16.mxu1 %v2466_v55 }
  0xb9   : > { %1770 = vmatpush2.bf16.msra.mxu0 %v2461_v56 }
  0xba   : > { %1771 = vmatprep.subr.bf16.mxu0 %v2469_v57  ;;  %1813 = vmatpush2.bf16.msra.mxu1 %v2464_v58  ;;  %v419_v57 = vrot.slane %v410_v50, %v418_v53 }
  0xbb   : > { %1814 = vmatprep.subr.bf16.mxu1 %v2472_v59 }
  0xbd   : > { %1772 = vmatpush2.bf16.msra.mxu0 %v2467_v60 }
  0xbe   : > { %1773 = vmatprep.subr.bf16.mxu0 %v2475_v61  ;;  %1815 = vmatpush2.bf16.msra.mxu1 %v2470_v62 }
  0xbf   : > { %1816 = vmatprep.subr.bf16.mxu1 %v2478_v63 }
  0xc1   : > { %1774 = vmatpush2.bf16.msra.mxu0 %v2473_v0 }
  0xc2   : > { %1775 = vmatprep.subr.bf16.mxu0 %v2481_v1  ;;  %1817 = vmatpush2.bf16.msra.mxu1 %v2476_v2 }
  0xc3   : > { %1818 = vmatprep.subr.bf16.mxu1 %v2484_v3 }
  0xc5   : > { %1776 = vmatpush2.bf16.msra.mxu0 %v2479_v4 }
  0xc6   : > { %1777 = vmatprep.subr.bf16.mxu0 %v2487_v5  ;;  %1819 = vmatpush2.bf16.msra.mxu1 %v2482_v6 }
  0xc7   : > { %1820 = vmatprep.subr.bf16.mxu1 %v2490_v7 }
  0xc9   : > { %1778 = vmatpush2.bf16.msra.mxu0 %v2485_v8 }
  0xca   : > { %1833 = vmatprep.subr.bf16.mxu0 %v2496_v9  ;;  %1821 = vmatpush2.bf16.msra.mxu1 %v2488_v10 }
  0xcc   : > { %1780 = vmatmul.mubr.bf16.vlgmr.msra.gmra.mxu0 %v2491_v11 }
  0xcd   : > { %1834 = vmatpush1.bf16.msra.mxu0 %v2494_v12  ;;  %2178 = vmatprep.mubr.msk.bf16.mxu0 %vm1571_vm0, %v2533_v13 }
  0xce   : > { %1823 = vmatmul.mubr.bf16.vlgmr.msra.gmra.mxu1 %v2497_v14  ;;  %1835 = vmatprep.subr.bf16.mxu0 %v2502_v15 }
  0xd1   : > { %1836 = vmatpush1.bf16.msra.mxu0 %v2500_v16 }
  0xd2   : > { %1837 = vmatprep.subr.bf16.mxu0 %v2505_v17 }
  0xd5   : > { %1838 = vmatpush1.bf16.msra.mxu0 %v2503_v18 }
  0xd6   : > { %1839 = vmatprep.subr.bf16.mxu0 %v2508_v19 }
  0xd9   : > { %1840 = vmatpush1.bf16.msra.mxu0 %v2506_v20 }
  0xda   : > { %1841 = vmatprep.subr.bf16.mxu0 %v2511_v21 }
  0xdd   : > { %1842 = vmatpush1.bf16.msra.mxu0 %v2509_v22 }
  0xde   : > { %1843 = vmatprep.subr.bf16.mxu0 %v2514_v23 }
  0xe1   : > { %1844 = vmatpush1.bf16.msra.mxu0 %v2512_v24 }
  0xe2   : > { %1845 = vmatprep.subr.bf16.mxu0 %v2517_v25 }
  0xe5   : > { %1846 = vmatpush1.bf16.msra.mxu0 %v2515_v26 }
  0xe6   : > { %1847 = vmatprep.subr.bf16.mxu0 %v2520_v27 }
  0xe9   : > { %1848 = vmatpush1.bf16.msra.mxu0 %v2518_v28 }
  0xea   : > { %1857 = vmatprep.subr.bf16.mxu0 %v2523_v29 }
  0xed   : > { %1858 = vmatpush2.bf16.msra.mxu0 %v2521_v30 }
  0xee   : > { %1859 = vmatprep.subr.bf16.mxu0 %v2526_v31 }
  0xf1   : > { %1860 = vmatpush2.bf16.msra.mxu0 %v2524_v32 }
  0xf2   : > { %1861 = vmatprep.subr.bf16.mxu0 %v2529_v33 }
  0xf5   : > { %1862 = vmatpush2.bf16.msra.mxu0 %v2527_v34 }
  0xf6   : > { %1863 = vmatprep.subr.bf16.mxu0 %v2532_v35 }
  0xf9   : > { %1864 = vmatpush2.bf16.msra.mxu0 %v2530_v36 }
  0xfc   : > { %1866 = vmatmul.mubr.bf16.vlgmr.msra.gmra.mxu0 %v2535_v37 }
 0x10c   : > { %v1609_v38 = vpop.f32.mrf.mxu0 }
 0x10d   : > { %v1652_v40 = vpop.f32.mrf.mxu1  ;;  %v1610_v58 = vadd.f32 %v1609_v38, %v415_v54 }
 0x10e   : > { %v1611_v39 = vpop.f32.mrf.mxu0 }
 0x10f   : > { %v1654_v42 = vpop.f32.mrf.mxu1  ;;  %v1612_v61 = vadd.f32 %v1611_v39, %v419_v57  ;;  %v1653_v63 = vadd.f32 %v1652_v40, %v1610_v58 }
 0x110   : > { %v1613_v41 = vpop.f32.mrf.mxu0 }
 0x111   : > { %v1656_v45 = vpop.f32.mrf.mxu1  ;;  %v1614_v0 = vadd.f32 %v1613_v41, %v415_v54  ;;  %v1655_v2 = vadd.f32 %v1654_v42, %v1612_v61 }
 0x112   : > { %v1615_v44 = vpop.f32.mrf.mxu0 }
 0x113   : > { %v1658_v48 = vpop.f32.mrf.mxu1  ;;  %v1616_v3 = vadd.f32 %v1615_v44, %v419_v57  ;;  %v1657_v7 = vadd.f32 %v1656_v45, %v1614_v0 }
 0x115   : > { %v1659_v9 = vadd.f32 %v1658_v48, %v1616_v3 }
 0x14c   : > { %v1695_v47 = vpop.f32.mrf.mxu0 }
 0x14d   : > { %v1738_v52 = vpop.f32.mrf.mxu1  ;;  %v1696_v4 = vadd.f32 %v1695_v47, %v1653_v63 }
 0x14e   : > { %v1697_v51 = vpop.f32.mrf.mxu0 }
 0x14f   : > { %v1740_v56 = vpop.f32.mrf.mxu1  ;;  %v1698_v8 = vadd.f32 %v1697_v51, %v1655_v2  ;;  %v1739_v10 = vadd.f32 %v1738_v52, %v1696_v4 }
 0x150   : > { %v1699_v55 = vpop.f32.mrf.mxu0 }
 0x151   : > { %v1742_v60 = vpop.f32.mrf.mxu1  ;;  %v1700_v11 = vadd.f32 %v1699_v55, %v1657_v7  ;;  %v1741_v14 = vadd.f32 %v1740_v56, %v1698_v8 }
 0x152   : > { %v1701_v59 = vpop.f32.mrf.mxu0 }
 0x153   : > { %v1744_v1 = vpop.f32.mrf.mxu1  ;;  %v1702_v15 = vadd.f32 %v1701_v59, %v1659_v9  ;;  %v1743_v17 = vadd.f32 %v1742_v60, %v1700_v11 }
 0x155   : > { %v1745_v21 = vadd.f32 %v1744_v1, %v1702_v15 }
 0x18c   : > { %v1781_v62 = vpop.f32.mrf.mxu0 }
 0x18d   : > { %v1782_v16 = vadd.f32 %v1781_v62, %v1739_v10 }
 0x18e   : > { %v1783_v5 = vpop.f32.mrf.mxu0  ;;  %v1824_v6 = vpop.f32.mrf.mxu1 }
 0x18f   : > { %v1784_v18 = vadd.f32 %v1783_v5, %v1741_v14  ;;  %v1825_v22 = vadd.f32 %v1824_v6, %v1782_v16 }
 0x190   : > { %v1785_v12 = vpop.f32.mrf.mxu0  ;;  %v1826_v13 = vpop.f32.mrf.mxu1 }
 0x191   : > { %v1786_v23 = vadd.f32 %v1785_v12, %v1743_v17  ;;  %v1827_v25 = vadd.f32 %v1826_v13, %v1784_v18 }
 0x192   : > { %v1787_v19 = vpop.f32.mrf.mxu0  ;;  %v1828_v20 = vpop.f32.mrf.mxu1 }
 0x193   : > { %v1788_v26 = vadd.f32 %v1787_v19, %v1745_v21  ;;  %v1829_v30 = vadd.f32 %v1828_v20, %v1786_v23 }
 0x194   : > { %v1830_v28 = vpop.f32.mrf.mxu1 }
 0x195   : > { %v1831_v33 = vadd.f32 %v1830_v28, %v1788_v26 }
 0x1bc   : > { %v1867_v24 = vpop.f32.mrf.mxu0 }
 0x1bd   : > { %v1868_v27 = vadd.f32 %v1867_v24, %v1825_v22 }
 0x1be   : > { %v1869_v29 = vpop.f32.mrf.mxu0 }
 0x1bf   : > { %1876 = vst [vmem:[%s177_s18] sm:$0xff] %v1868_v27  ;;  %v1870_v31 = vadd.f32 %v1869_v29, %v1827_v25 }
 0x1c0   : > { %v1871_v32 = vpop.f32.mrf.mxu0 }
 0x1c1   : > { %1877 = vst.msk [vmem:[%s177_s18 + $0x8] sm:$0xff] %vm1571_vm0, %v1870_v31  ;;  %v1872_v34 = vadd.f32 %v1871_v32, %v1829_v30 }
 0x1c2   : > { %v1873_v35 = vpop.f32.mrf.mxu0 }
 0x1c3   : > { %1878 = vst [vmem:[%s177_s18 + $0x10] sm:$0xff] %v1872_v34  ;;  %v1874_v36 = vadd.f32 %v1873_v35, %v1831_v33 }
 0x1c5   : > { %1879 = vst.msk [vmem:[%s177_s18 + $0x18] sm:$0xff] %vm1571_vm0, %v1874_v36 }
 0x1c6 PF: > { %s13_s12 = sadd.s32 1, %s2542_s12  }
 0x1c7   : > { %p10_p4 = scmp.ge.s32.totalorder %s13_s12, 4  }
 0x1c9   :  { %12 = sbr.rel (!%p10_p4) target bundleno = 1 (0x1), region = 62 }

// kernel: hyper_encoder_forward.28
= control target key start
LH: loop header
LB: loop body
LE: loop exit
PB: predicated region body
PF: predicated region fallthrough
CT: control target
= control target key end

     0   :  { %v395_v0 = vmov 0.0   ;;  %vm38_vm0 = vcmask 523264   ;;  %vm73_vm1 = vcmask 1041409   ;;  %vm78_vm2 = vcmask 1041408   ;;  %s664_s1 = inlined_call_operand.vmem [shape: f32[192,12], index: 1, kind: input, shape index: {}]   ;;  %s665_s0 = inlined_call_operand.vmem [shape: f32[2,16,192], index: 0, kind: input, shape index: {}]   ;;  %s666_s3 = inlined_call_operand.vmem [shape: f32[12,192], index: 3, kind: input, shape index: {}]   ;;  %s667_s2 = inlined_call_operand.vmem [shape: f32[1,12], index: 2, kind: input, shape index: {}]   ;;  %s668_s4 = inlined_call_operand.vmem [shape: f32[1,192], index: 4, kind: input, shape index: {}]   ;;  %s669_s5 = inlined_call_operand.vmem [shape: f32[2,16,192], index: 5, kind: input, shape index: {}]   ;;  %s670_s6 = inlined_call_operand.vmem [shape: f32[2,16,192], index: 6, kind: output, shape index: {}]  }
   0x1   :  { %115 = vmatprep.subr.mxu0 %v395_v0  ;;  %v96_v1 = vld [vmem:[%s664_s1 + $0x78] sm:$0xff]  ;;  %v95_v2 = vld [vmem:[%s664_s1 + $0x70] sm:$0xff]  ;;  %277 = vmatprep.mubr.f32.mxu1 %v395_v0  ;;  %v94_v3 = vld [vmem:[%s664_s1 + $0x68] sm:$0xff]  ;;  %vm206_vm3 = vcmask 1043456   ;;  %vm202_vm4 = vcmask 97280  }
   0x2   :  { %116 = vmatpush1.msra.mxu0 %v96_v1  ;;  %v93_v4 = vld [vmem:[%s664_s1 + $0x60] sm:$0xff]  ;;  %v92_v5 = vld [vmem:[%s664_s1 + $0x58] sm:$0xff]  ;;  %v91_v6 = vld [vmem:[%s664_s1 + $0x50] sm:$0xff] }
   0x3   :  { %117 = vmatprep.subr.mxu0 %v395_v0  ;;  %v459_v7 = vld [vmem:[%s665_s0 + $0x8] sm:$0xff]  ;;  %v464_v8 = vld [vmem:[%s665_s0 + $0x18] sm:$0xff]  ;;  %v488_v15 = vld [vmem:[%s665_s0] sm:$0xff] }
   0x4   :  { %118 = vmatpush1.msra.mxu0 %v95_v2  ;;  %v469_v9 = vld [vmem:[%s665_s0 + $0x28] sm:$0xff]  ;;  %v477_v11 = vld [vmem:[%s665_s0 + $0x38] sm:$0xff]  ;;  %v39_v12 = vsel %vm38_vm0, %v459_v7, 0.0  ;;  %v40_v13 = vsel %vm38_vm0, %v464_v8, 0.0  ;;  %v496_v18 = vld [vmem:[%s665_s0 + $0x10] sm:$0xff] }
   0x5   :  { %119 = vmatprep.subr.mxu0 %v395_v0  ;;  %v90_v10 = vld [vmem:[%s664_s1 + $0x48] sm:$0xff]  ;;  %v55_v14 = vsel %vm38_vm0, %v469_v9, 0.0  ;;  %v41_v16 = vadd.f32 %v40_v13, %v39_v12  ;;  %v56_v17 = vsel %vm38_vm0, %v477_v11, 0.0  ;;  %v501_v19 = vld [vmem:[%s665_s0 + $0x20] sm:$0xff]  ;;  %v506_v20 = vld [vmem:[%s665_s0 + $0x30] sm:$0xff]  ;;  %v31_v25 = vadd.f32 %v496_v18, %v488_v15 }
   0x6   :  { %120 = vmatpush1.msra.mxu0 %v94_v3  ;;  %v57_v21 = vadd.f32 %v56_v17, %v55_v14  ;;  %v89_v22 = vld [vmem:[%s664_s1 + $0x40] sm:$0xff]  ;;  %v48_v26 = vadd.f32 %v506_v20, %v501_v19  ;;  %v88_v27 = vld [vmem:[%s664_s1 + $0x38] sm:$0xff]  ;;  %v87_v30 = vld [vmem:[%s664_s1 + $0x30] sm:$0xff] }
   0x7   :  { %121 = vmatprep.subr.mxu0 %v395_v0  ;;  %v42_v23 = vrot.slane %v41_v16, 4  ;;  %v32_v33 = vrot.slane %v31_v25, 4  ;;  %v86_v35 = vld [vmem:[%s664_s1 + $0x28] sm:$0xff]  ;;  %v85_v38 = vld [vmem:[%s664_s1 + $0x20] sm:$0xff]  ;;  %v84_v43 = vld [vmem:[%s664_s1 + $0x18] sm:$0xff] }
   0x8   :  { %122 = vmatpush1.msra.mxu0 %v93_v4  ;;  %v58_v24 = vrot.slane %v57_v21, 4  ;;  %v49_v34 = vrot.slane %v48_v26, 4  ;;  %v83_v46 = vld [vmem:[%s664_s1 + $0x10] sm:$0xff]  ;;  %v82_v51 = vld [vmem:[%s664_s1 + $0x8] sm:$0xff]  ;;  %v81_v53 = vld [vmem:[%s664_s1] sm:$0xff] }
   0x9   :  { %123 = vmatprep.subr.mxu0 %v395_v0  ;;  %v43_v28 = vadd.f32 %v42_v23, %v41_v16  ;;  %v33_v41 = vadd.f32 %v32_v33, %v31_v25  ;;  %v104_v57 = vld [vmem:[%s664_s1 + $0xb8] sm:$0xff]  ;;  %v103_v58 = vld [vmem:[%s664_s1 + $0xb0] sm:$0xff]  ;;  %v102_v61 = vld [vmem:[%s664_s1 + $0xa8] sm:$0xff]  ;;  %v192_v25 = vlaneseq }
   0xa   :  { %124 = vmatpush1.msra.mxu0 %v92_v5  ;;  %v59_v29 = vadd.f32 %v58_v24, %v57_v21  ;;  %v50_v42 = vadd.f32 %v49_v34, %v48_v26  ;;  %v101_v62 = vld [vmem:[%s664_s1 + $0xa0] sm:$0xff]  ;;  %v100_v2 = vld [vmem:[%s664_s1 + $0x98] sm:$0xff]  ;;  %v99_v3 = vld [vmem:[%s664_s1 + $0x90] sm:$0xff] }
   0xb   :  { %125 = vmatprep.subr.mxu0 %v395_v0  ;;  %v44_v31 = vrot.slane %v43_v28, 2  ;;  %v34_v49 = vrot.slane %v33_v41, 2  ;;  %v189_v13 = vld [vmem:[%s666_s3 + $0x18] sm:$0xf]  ;;  %v188_v14 = vld [vmem:[%s666_s3 + $0x10] sm:$0xf] }
   0xc   :  { %126 = vmatpush1.msra.mxu0 %v91_v6  ;;  %v60_v32 = vrot.slane %v59_v29, 2  ;;  %v51_v50 = vrot.slane %v50_v42, 2  ;;  %v98_v6 = vld [vmem:[%s664_s1 + $0x88] sm:$0xff]  ;;  %380 = vmatprep.subr.msk.mxu1 %vm206_vm3, %v189_v13  ;;  %v377_v17 = vld [vmem:[%s667_s2] ss:$0 sm:$0xff]  ;;  %v193_v26 = vshrl.u32 %v192_v25, 7 }
   0xd   :  { %127 = vmatprep.subr.mxu0 %v395_v0  ;;  %v45_v36 = vadd.f32 %v44_v31, %v43_v28  ;;  %v35_v55 = vadd.f32 %v34_v49, %v33_v41  ;;  %381 = vmatpush1.msk.msra.mxu1 %vm206_vm3, %v188_v14  ;;  %v187_v16 = vld [vmem:[%s666_s3 + $0x8] sm:$0xff]  ;;  %v190_v28 = vld [vmem:[%s668_s4] sm:$0x3] }
   0xe   :  { %128 = vmatpush1.msra.mxu0 %v90_v10  ;;  %v61_v37 = vadd.f32 %v60_v32, %v59_v29  ;;  %v52_v56 = vadd.f32 %v51_v50, %v50_v42  ;;  %v97_v10 = vld [vmem:[%s664_s1 + $0x80] sm:$0xff]  ;;  %243 = vmatprep.subr.mxu1 %v187_v16  ;;  %v198_v29 = vsub.s32 1, %v193_v26  ;;  %v396_v42 = vmov 1966171168  }
   0xf   :  { %129 = vmatprep.subr.mxu0 %v395_v0  ;;  %v46_v39 = vrot.slane %v45_v36, 1  ;;  %v36_v59 = vrot.slane %v35_v55, 1 }
  0x10   :  { %130 = vmatpush1.msra.mxu0 %v89_v22  ;;  %v62_v40 = vrot.slane %v61_v37, 1  ;;  %v53_v60 = vrot.slane %v52_v56, 1  ;;  %v199_v31 = vrot.slane %v190_v28, %v198_v29 }
  0x11   :  { %131 = vmatprep.subr.mxu0 %v395_v0  ;;  %v47_v44 = vadd.f32 %v46_v39, %v45_v36  ;;  %v37_v63 = vadd.f32 %v36_v59, %v35_v55  ;;  %v349_v55 = vld [vmem:[%s669_s5] sm:$0xff] }
  0x12   :  { %132 = vmatpush1.msra.mxu0 %v88_v27  ;;  %v63_v45 = vadd.f32 %v62_v40, %v61_v37  ;;  %v54_v1 = vadd.f32 %v53_v60, %v52_v56  ;;  %v194_v27 = vsub.s32 0, %v193_v26  ;;  %v350_v56 = vld [vmem:[%s669_s5 + $0x8] sm:$0xff] }
  0x13   :  { %133 = vmatprep.subr.mxu0 %v395_v0  ;;  %v66_v47 = vmul.f32 0.0625, %v47_v44  ;;  %v65_v4 = vmul.f32 0.0625, %v37_v63  ;;  %v353_v63 = vld [vmem:[%s669_s5 + $0x20] sm:$0xff] }
  0x14   :  { %134 = vmatpush1.msra.mxu0 %v87_v30  ;;  %v68_v48 = vmul.f32 0.0625, %v63_v45  ;;  %v67_v5 = vmul.f32 0.0625, %v54_v1  ;;  %v195_v30 = vrot.slane %v190_v28, %v194_v27 }
  0x15   :  { %135 = vmatprep.subr.mxu0 %v395_v0 }
  0x16   :  { %136 = vmatpush1.msra.mxu0 %v86_v35  ;;  %v75_v52 = vsel %vm73_vm1, %v68_v48, %v66_v47  ;;  %v74_v12 = vsel %vm73_vm1, %v67_v5, %v65_v4 }
  0x17   :  { %137 = vmatprep.subr.mxu0 %v395_v0  ;;  %v80_v54 = vsel %vm78_vm2, %v75_v52, 0.0 }
  0x18   :  { %138 = vmatpush1.msra.mxu0 %v85_v38  ;;  %378 = vmatprep.mubr.msk.f32.mxu0 %vm38_vm0, %v80_v54 }
  0x19   :  { %139 = vmatprep.subr.mxu0 %v395_v0 }
  0x1a   :  { %140 = vmatpush1.msra.mxu0 %v84_v43  ;;  %v300_v43 = vunpack.c.l.s4 %v396_v42 }
  0x1b   :  { %141 = vmatprep.subr.mxu0 %v395_v0 }
  0x1c   :  { %142 = vmatpush1.msra.mxu0 %v83_v46  ;;  %v301_v44 = vunpack.c.0.s8 %v300_v43 }
  0x1d   :  { %143 = vmatprep.subr.mxu0 %v395_v0 }
  0x1e   :  { %144 = vmatpush1.msra.mxu0 %v82_v51  ;;  %v304_v46 = vsub.s32 %v301_v44, %v193_v26 }
  0x1f   :  { %145 = vmatprep.subr.mxu0 %v395_v0 }
  0x20   :  { %146 = vmatpush1.msra.mxu0 %v81_v53 }
  0x21   :  { %163 = vmatprep.subr.mxu0 %v395_v0 }
  0x22   :  { %164 = vmatpush2.msra.mxu0 %v104_v57 }
  0x23   :  { %165 = vmatprep.subr.mxu0 %v395_v0 }
  0x24   :  { %166 = vmatpush2.msra.mxu0 %v103_v58 }
  0x25   :  { %167 = vmatprep.subr.mxu0 %v395_v0 }
  0x26   :  { %168 = vmatpush2.msra.mxu0 %v102_v61  ;;  %v351_v61 = vld [vmem:[%s669_s5 + $0x10] sm:$0xff] }
  0x27   :  { %169 = vmatprep.subr.mxu0 %v395_v0 }
  0x28   :  { %170 = vmatpush2.msra.mxu0 %v101_v62  ;;  %v352_v62 = vld [vmem:[%s669_s5 + $0x18] sm:$0xff] }
  0x29   :  { %171 = vmatprep.subr.mxu0 %v395_v0 }
  0x2a   :  { %172 = vmatpush2.msra.mxu0 %v100_v2 }
  0x2b   :  { %173 = vmatprep.subr.mxu0 %v395_v0 }
  0x2c   :  { %174 = vmatpush2.msra.mxu0 %v99_v3  ;;  %v356_v3 = vld [vmem:[%s669_s5 + $0x38] sm:$0xff] }
  0x2d   :  { %175 = vmatprep.subr.mxu0 %v395_v0 }
  0x2e   :  { %176 = vmatpush2.msra.mxu0 %v98_v6 }
  0x2f   :  { %177 = vmatprep.subr.mxu0 %v395_v0  ;;  %v186_v0 = vld [vmem:[%s666_s3] sm:$0xff] }
  0x30   :  { %178 = vmatpush2.msra.mxu0 %v97_v10  ;;  %244 = vmatpush1.msra.mxu1 %v186_v0 }
  0x31   :  { %379 = vmatmul.mubr.msk.f32.vlgmr.msra.gmra.mxu0 %vm78_vm2, %v74_v12 }
  0xf1   :  { %v181_v21 = vpop.f32.mrf.mxu0 }
  0xf2   :  { %v182_v22 = vadd.f32 %v377_v17, %v181_v21 }
  0xf3   :  { %v183_v23 = vpop.f32.mrf.mxu0 }
  0xf4   :  { %v185_v24 = vmax.f32 %v182_v22, 0.0 }
  0xf6   :  { %382 = vmatmul.mubr.msk.f32.vlgmr.msra.gmra.mxu1 %vm202_vm4, %v185_v24 }
 0x1b6   :  { %v279_v32 = vpop.f32.mrf.mxu1 }
 0x1b7   :  { %v280_v33 = vadd.f32 %v279_v32, %v195_v30 }
 0x1b8   :  { %v281_v34 = vpop.f32.mrf.mxu1 }
 0x1b9   :  { %v383_v35 = vmul.f32 -1.442695, %v280_v33  ;;  %v282_v36 = vadd.f32 %v281_v34, %v199_v31 }
 0x1bb   :  { %387 = vpow2.f32 %v383_v35  ;;  %v384_v37 = vmul.f32 -1.442695, %v282_v36 }
 0x1bd   :  { %389 = vpow2.f32 %v384_v37 }
 0x1c8   :  { %v388_v38 = vpop.eup %387 }
 0x1c9   :  { %v290_v39 = vadd.f32 1.0, %v388_v38 }
 0x1ca   :  { %v390_v40 = vpop.eup %389 }
 0x1cb   :  { %v291_v41 = vadd.f32 1.0, %v390_v40  ;;  %391 = vrcp.f32 %v290_v39 }
 0x1cd   :  { %393 = vrcp.f32 %v291_v41 }
 0x1d8   :  { %v392_v45 = vpop.eup %391 }
 0x1da   :  { %v394_v47 = vpop.eup %393 }
 0x1db   :  { %v298_v48 = vcombine.low %v392_v45, %v394_v47 }
 0x1dd   :  { %v305_v49 = vrot.slane %v298_v48, %v304_v46 }
 0x1df   :  { %v306_v50 = vcombine.high %v305_v49, %v305_v49  ;;  %v313_v51 = vrot.slane %v305_v49, %v304_v46 }
 0x1e1   :  { %v320_v52 = vrot.slane %v306_v50, %v304_v46  ;;  %v324_v53 = vrot.slane %v313_v51, %v194_v27  ;;  %v328_v54 = vrot.slane %v313_v51, %v198_v29 }
 0x1e3   :  { %v332_v57 = vrot.slane %v320_v52, %v194_v27  ;;  %v336_v58 = vrot.slane %v320_v52, %v198_v29  ;;  %v341_v59 = vmul.f32 %v324_v53, %v488_v15  ;;  %v342_v60 = vmul.f32 %v328_v54, %v459_v7  ;;  %v354_v7 = vld [vmem:[%s669_s5 + $0x28] sm:$0xff]  ;;  %v355_v15 = vld [vmem:[%s669_s5 + $0x30] sm:$0xff] }
 0x1e4   :  { %v343_v1 = vmul.f32 %v324_v53, %v496_v18  ;;  %v344_v2 = vmul.f32 %v328_v54, %v464_v8 }
 0x1e5   :  { %v345_v4 = vmul.f32 %v332_v57, %v501_v19  ;;  %v346_v5 = vmul.f32 %v336_v58, %v469_v9  ;;  %v347_v18 = vmul.f32 %v332_v57, %v506_v20  ;;  %v348_v8 = vmul.f32 %v336_v58, %v477_v11 }
 0x1e6   :  { %v357_v6 = vadd.f32 %v349_v55, %v341_v59  ;;  %v358_v10 = vadd.f32 %v350_v56, %v342_v60  ;;  %v359_v12 = vadd.f32 %v351_v61, %v343_v1  ;;  %v360_v13 = vadd.f32 %v352_v62, %v344_v2 }
 0x1e7   :  { %v361_v14 = vadd.f32 %v353_v63, %v345_v4  ;;  %v362_v16 = vadd.f32 %v354_v7, %v346_v5  ;;  %v363_v0 = vadd.f32 %v355_v15, %v347_v18  ;;  %v364_v17 = vadd.f32 %v356_v3, %v348_v8 }
 0x1e8   :  { %365 = vst [vmem:[%s670_s6] sm:$0xff] %v357_v6  ;;  %366 = vst.msk [vmem:[%s670_s6 + $0x8] sm:$0xff] %vm38_vm0, %v358_v10 }
 0x1e9   :  { %367 = vst [vmem:[%s670_s6 + $0x10] sm:$0xff] %v359_v12  ;;  %368 = vst.msk [vmem:[%s670_s6 + $0x18] sm:$0xff] %vm38_vm0, %v360_v13 }
 0x1ea   :  { %369 = vst [vmem:[%s670_s6 + $0x20] sm:$0xff] %v361_v14  ;;  %370 = vst.msk [vmem:[%s670_s6 + $0x28] sm:$0xff] %vm38_vm0, %v362_v16 }
 0x1eb   :  { %371 = vst [vmem:[%s670_s6 + $0x30] sm:$0xff] %v363_v0  ;;  %372 = vst.msk [vmem:[%s670_s6 + $0x38] sm:$0xff] %vm38_vm0, %v364_v17 }

// kernel: hyper_encoder_forward.26
= control target key start
LH: loop header
LB: loop body
LE: loop exit
PB: predicated region body
PF: predicated region fallthrough
CT: control target
= control target key end

     0   :  { %s2620_s15 = smov 0   ;;  %s3316_s0 = inlined_call_operand.vmem [shape: bf16[32,1728], index: 0, kind: input, shape index: {}]   ;;  %s3317_s1 = inlined_call_operand.vmem [shape: bf16[1728,192], index: 1, kind: input, shape index: {}]   ;;  %s3318_s2 = inlined_call_operand.vmem [shape: f32[1,192], index: 2, kind: input, shape index: {}]   ;;  %s3319_s3 = inlined_call_operand.vmem [shape: f32[1,192], index: 3, kind: input, shape index: {}]   ;;  %s3320_s4 = inlined_call_operand.vmem [shape: f32[32,192], index: 4, kind: output, shape index: {}]  }
   0x1 LB: > { %s1989_s16 = sadd.s32 4294967295, %s2593_s15   ;;  %p1993_p0 = scmp.ge.s32.totalorder %s2593_s15, 1  ;;  %s2593_s15 = sphi %s2620_s15, %s14_s15  }
   0x2   : > { %p164_p1 = scmp.lt.s32.totalorder %s2593_s15, 3 }
   0x4   : > { %p165_p2 = pnand %p1993_p0, %p164_p1 }
   0x5   : > { %s1994_s27 = sshll.u32 (!%p165_p2), %s1989_s16, 1 }
   0x6   : > { %168 = sbr.rel (%p165_p2) target bundleno = 457 (0x1c9), region = 36  ;;  %p193_p3 = scmp.lt.s32.totalorder (!%p165_p2), %s1994_s27, 3 }
   0xb   : > { %v2242_v0 = vld [vmem:[%s3317_s1 + $0x74] ss:$8 sps:$4 sm:$0xff]   ;;  %v2244_v1 = vld [vmem:[%s3317_s1 + $0x70] ss:$8 sps:$4 sm:$0xff]   ;;  %v2248_v4 = vld [vmem:[%s3317_s1 + $0x64] ss:$8 sps:$4 sm:$0xff]  }
   0xc   : > { %1602 = vmatprep.subr.bf16.mxu0 %v2242_v0  ;;  %v2245_v2 = vld [vmem:[%s3317_s1 + $0x174] ss:$8 sps:$4 sm:$0xff]   ;;  %v2247_v3 = vld [vmem:[%s3317_s1 + $0x170] ss:$8 sps:$4 sm:$0xff]   ;;  %v2250_v5 = vld [vmem:[%s3317_s1 + $0x60] ss:$8 sps:$4 sm:$0xff]  }
   0xd   : > { %1603 = vmatpush1.bf16.msra.mxu0 %v2244_v1  ;;  %1645 = vmatprep.subr.bf16.mxu1 %v2245_v2  ;;  %v2251_v6 = vld [vmem:[%s3317_s1 + $0x164] ss:$8 sps:$4 sm:$0xff]   ;;  %v2253_v7 = vld [vmem:[%s3317_s1 + $0x160] ss:$8 sps:$4 sm:$0xff]   ;;  %v2254_v8 = vld [vmem:[%s3317_s1 + $0x54] ss:$8 sps:$4 sm:$0xff]  }
   0xe   : > { %1646 = vmatpush1.bf16.msra.mxu1 %v2247_v3  ;;  %1604 = vmatprep.subr.bf16.mxu0 %v2248_v4  ;;  %v2256_v9 = vld [vmem:[%s3317_s1 + $0x50] ss:$8 sps:$4 sm:$0xff]   ;;  %v2257_v10 = vld [vmem:[%s3317_s1 + $0x154] ss:$8 sps:$4 sm:$0xff]   ;;  %v2260_v11 = vld [vmem:[%s3317_s1 + $0x44] ss:$8 sps:$4 sm:$0xff]  }
   0xf   : > { %1647 = vmatprep.subr.bf16.mxu1 %v2251_v6  ;;  %v2259_v12 = vld [vmem:[%s3317_s1 + $0x150] ss:$8 sps:$4 sm:$0xff]   ;;  %v2263_v13 = vld [vmem:[%s3317_s1 + $0x144] ss:$8 sps:$4 sm:$0xff]   ;;  %v2262_v14 = vld [vmem:[%s3317_s1 + $0x40] ss:$8 sps:$4 sm:$0xff]  }
  0x10   : > { %v2266_v15 = vld [vmem:[%s3317_s1 + $0x34] ss:$8 sps:$4 sm:$0xff]   ;;  %v2265_v16 = vld [vmem:[%s3317_s1 + $0x140] ss:$8 sps:$4 sm:$0xff]   ;;  %v2268_v18 = vld [vmem:[%s3317_s1 + $0x30] ss:$8 sps:$4 sm:$0xff]  }
  0x11   : > { %1605 = vmatpush1.bf16.msra.mxu0 %v2250_v5  ;;  %v2269_v17 = vld [vmem:[%s3317_s1 + $0x134] ss:$8 sps:$4 sm:$0xff]   ;;  %v2272_v19 = vld [vmem:[%s3317_s1 + $0x24] ss:$8 sps:$4 sm:$0xff]   ;;  %v2271_v20 = vld [vmem:[%s3317_s1 + $0x130] ss:$8 sps:$4 sm:$0xff]  }
  0x12   : > { %1606 = vmatprep.subr.bf16.mxu0 %v2254_v8  ;;  %1648 = vmatpush1.bf16.msra.mxu1 %v2253_v7  ;;  %v2275_v21 = vld [vmem:[%s3317_s1 + $0x124] ss:$8 sps:$4 sm:$0xff]   ;;  %v2274_v22 = vld [vmem:[%s3317_s1 + $0x20] ss:$8 sps:$4 sm:$0xff]   ;;  %v2278_v23 = vld [vmem:[%s3317_s1 + $0x14] ss:$8 sps:$4 sm:$0xff]  }
  0x13   : > { %1649 = vmatprep.subr.bf16.mxu1 %v2257_v10  ;;  %v2277_v24 = vld [vmem:[%s3317_s1 + $0x120] ss:$8 sps:$4 sm:$0xff]   ;;  %v2281_v25 = vld [vmem:[%s3317_s1 + $0x114] ss:$8 sps:$4 sm:$0xff]   ;;  %v2280_v26 = vld [vmem:[%s3317_s1 + $0x10] ss:$8 sps:$4 sm:$0xff]  }
  0x14   : > { %v2284_v27 = vld [vmem:[%s3317_s1 + $0x4] ss:$8 sps:$4 sm:$0xff]   ;;  %v2283_v28 = vld [vmem:[%s3317_s1 + $0x110] ss:$8 sps:$4 sm:$0xff]   ;;  %v2286_v30 = vld [vmem:[%s3317_s1] ss:$8 sps:$4 sm:$0xff]  }
  0x15   : > { %1607 = vmatpush1.bf16.msra.mxu0 %v2256_v9  ;;  %v2287_v29 = vld [vmem:[%s3317_s1 + $0x104] ss:$8 sps:$4 sm:$0xff]   ;;  %v2290_v31 = vld [vmem:[%s3317_s1 + $0xf4] ss:$8 sps:$4 sm:$0xff]   ;;  %v2289_v32 = vld [vmem:[%s3317_s1 + $0x100] ss:$8 sps:$4 sm:$0xff]  }
  0x16   : > { %1608 = vmatprep.subr.bf16.mxu0 %v2260_v11  ;;  %1650 = vmatpush1.bf16.msra.mxu1 %v2259_v12  ;;  %v2293_v33 = vld [vmem:[%s3317_s1 + $0x1f4] ss:$8 sps:$4 sm:$0xff]   ;;  %v2292_v34 = vld [vmem:[%s3317_s1 + $0xf0] ss:$8 sps:$4 sm:$0xff]   ;;  %v2296_v35 = vld [vmem:[%s3317_s1 + $0xe4] ss:$8 sps:$4 sm:$0xff]  }
  0x17   : > { %1651 = vmatprep.subr.bf16.mxu1 %v2263_v13  ;;  %s3322_s27 = smov (!%p193_p3, %s1994_s27), 3  ;;  %v2295_v36 = vld [vmem:[%s3317_s1 + $0x1f0] ss:$8 sps:$4 sm:$0xff]   ;;  %v2299_v37 = vld [vmem:[%s3317_s1 + $0x1e4] ss:$8 sps:$4 sm:$0xff]   ;;  %vm1598_vm0 = vcmask 523264  }
  0x18   : > { %v2298_v38 = vld [vmem:[%s3317_s1 + $0xe0] ss:$8 sps:$4 sm:$0xff]   ;;  %v2302_v39 = vld [vmem:[%s3317_s1 + $0xd4] ss:$8 sps:$4 sm:$0xff]   ;;  %s2233_s25 = smul.u32 56, %s3322_s27  ;;  %s2232_s13 = sshll.u32 %s3322_s27, 4 }
  0x19   : > { %1609 = vmatpush1.bf16.msra.mxu0 %v2262_v14  ;;  %v2301_v40 = vld [vmem:[%s3317_s1 + $0x1e0] ss:$8 sps:$4 sm:$0xff]   ;;  %v2305_v41 = vld [vmem:[%s3317_s1 + $0x1d4] ss:$8 sps:$4 sm:$0xff]   ;;  %v2304_v42 = vld [vmem:[%s3317_s1 + $0xd0] ss:$8 sps:$4 sm:$0xff]   ;;  %s204_s18 = scalar_lea.vmem %s3320_s4, %s2232_s13 }
  0x1a   : > { %1610 = vmatprep.subr.bf16.mxu0 %v2266_v15  ;;  %1652 = vmatpush1.bf16.msra.mxu1 %v2265_v16  ;;  %v2308_v43 = vld [vmem:[%s3317_s1 + $0xc4] ss:$8 sps:$4 sm:$0xff]   ;;  %s2768_s10 = scalar_lea.vmem %s3316_s0, %s2233_s25  ;;  %v2307_v44 = vld [vmem:[%s3317_s1 + $0x1d0] ss:$8 sps:$4 sm:$0xff]   ;;  %v2310_v46 = vld [vmem:[%s3317_s1 + $0xc0] ss:$8 sps:$4 sm:$0xff]  }
  0x1b   : > { %1653 = vmatprep.subr.bf16.mxu1 %v2269_v17  ;;  %v2311_v45 = vld [vmem:[%s3317_s1 + $0x1c4] ss:$8 sps:$4 sm:$0xff]   ;;  %v2314_v48 = vld [vmem:[%s3317_s1 + $0xb4] ss:$8 sps:$4 sm:$0xff]   ;;  %v2313_v49 = vld [vmem:[%s3317_s1 + $0x1c0] ss:$8 sps:$4 sm:$0xff]  }
  0x1c   : > { %v2339_v47 = vld [vmem:[%s2768_s10 + $0x4] ss:$56 sps:$4 sm:$0xff]   ;;  %v2316_v52 = vld [vmem:[%s3317_s1 + $0xb0] ss:$8 sps:$4 sm:$0xff]   ;;  %v2322_v56 = vld [vmem:[%s3317_s1 + $0xa0] ss:$8 sps:$4 sm:$0xff]  }
  0x1d   : > { %1611 = vmatpush1.bf16.msra.mxu0 %v2268_v18  ;;  %1634 = vmatprep.mubr.bf16.mxu0 %v2339_v47  ;;  %v2317_v50 = vld [vmem:[%s3317_s1 + $0x1b4] ss:$8 sps:$4 sm:$0xff]   ;;  %v2346_v51 = vld [vmem:[%s2768_s10 + $0xc] ss:$56 sps:$4 sm:$0xff]   ;;  %v2319_v54 = vld [vmem:[%s3317_s1 + $0x1b0] ss:$8 sps:$4 sm:$0xff]  }
  0x1e   : > { %1612 = vmatprep.subr.bf16.mxu0 %v2272_v19  ;;  %1654 = vmatpush1.bf16.msra.mxu1 %v2271_v20  ;;  %v2320_v53 = vld [vmem:[%s3317_s1 + $0xa4] ss:$8 sps:$4 sm:$0xff]   ;;  %v2326_v57 = vld [vmem:[%s3317_s1 + $0x94] ss:$8 sps:$4 sm:$0xff]   ;;  %v2325_v58 = vld [vmem:[%s3317_s1 + $0x1a0] ss:$8 sps:$4 sm:$0xff]  }
  0x1f   : > { %1655 = vmatprep.subr.bf16.mxu1 %v2275_v21  ;;  %1677 = vmatprep.mubr.bf16.mxu1 %v2346_v51  ;;  %v2323_v55 = vld [vmem:[%s3317_s1 + $0x1a4] ss:$8 sps:$4 sm:$0xff]   ;;  %v2329_v59 = vld [vmem:[%s3317_s1 + $0x194] ss:$8 sps:$4 sm:$0xff]   ;;  %v2328_v60 = vld [vmem:[%s3317_s1 + $0x90] ss:$8 sps:$4 sm:$0xff]  }
  0x20   : > { %v2332_v61 = vld [vmem:[%s3317_s1 + $0x84] ss:$8 sps:$4 sm:$0xff]   ;;  %v2331_v62 = vld [vmem:[%s3317_s1 + $0x190] ss:$8 sps:$4 sm:$0xff]   ;;  %v2334_v0 = vld [vmem:[%s3317_s1 + $0x80] ss:$8 sps:$4 sm:$0xff]  }
  0x21   : > { %1613 = vmatpush1.bf16.msra.mxu0 %v2274_v22  ;;  %v2335_v63 = vld [vmem:[%s3317_s1 + $0x184] ss:$8 sps:$4 sm:$0xff]   ;;  %v2343_v1 = vld [vmem:[%s3317_s1 + $0x274] ss:$8 sps:$4 sm:$0xff]   ;;  %v2340_v2 = vld [vmem:[%s3317_s1 + $0x180] ss:$8 sps:$4 sm:$0xff]  }
  0x22   : > { %1614 = vmatprep.subr.bf16.mxu0 %v2278_v23  ;;  %1656 = vmatpush1.bf16.msra.mxu1 %v2277_v24  ;;  %v2337_v3 = vld [vmem:[%s2768_s10] ss:$56 sps:$4 sm:$0xff]   ;;  %v2349_v4 = vld [vmem:[%s3317_s1 + $0x374] ss:$8 sps:$4 sm:$0xff]   ;;  %v2352_v7 = vld [vmem:[%s3317_s1 + $0x264] ss:$8 sps:$4 sm:$0xff]  }
  0x23   : > { %1657 = vmatprep.subr.bf16.mxu1 %v2281_v25  ;;  %v2341_v5 = vld [vmem:[%s3317_s1 + $0x270] ss:$8 sps:$4 sm:$0xff]   ;;  %v2344_v6 = vld [vmem:[%s2768_s10 + $0x8] ss:$56 sps:$4 sm:$0xff]   ;;  %v2355_v9 = vld [vmem:[%s3317_s1 + $0x364] ss:$8 sps:$4 sm:$0xff]  }
  0x24   : > { %v2347_v8 = vld [vmem:[%s3317_s1 + $0x370] ss:$8 sps:$4 sm:$0xff]   ;;  %v2350_v10 = vld [vmem:[%s3317_s1 + $0x260] ss:$8 sps:$4 sm:$0xff]   ;;  %v2358_v11 = vld [vmem:[%s3317_s1 + $0x254] ss:$8 sps:$4 sm:$0xff]  }
  0x25   : > { %1615 = vmatpush1.bf16.msra.mxu0 %v2280_v26  ;;  %v2353_v12 = vld [vmem:[%s3317_s1 + $0x360] ss:$8 sps:$4 sm:$0xff]   ;;  %v2361_v13 = vld [vmem:[%s3317_s1 + $0x354] ss:$8 sps:$4 sm:$0xff]   ;;  %v2356_v14 = vld [vmem:[%s3317_s1 + $0x250] ss:$8 sps:$4 sm:$0xff]  }
  0x26   : > { %1616 = vmatprep.subr.bf16.mxu0 %v2284_v27  ;;  %1658 = vmatpush1.bf16.msra.mxu1 %v2283_v28  ;;  %v2364_v15 = vld [vmem:[%s3317_s1 + $0x244] ss:$8 sps:$4 sm:$0xff]   ;;  %v2359_v16 = vld [vmem:[%s3317_s1 + $0x350] ss:$8 sps:$4 sm:$0xff]   ;;  %v2362_v18 = vld [vmem:[%s3317_s1 + $0x240] ss:$8 sps:$4 sm:$0xff]  }
  0x27   : > { %1659 = vmatprep.subr.bf16.mxu1 %v2287_v29  ;;  %v2367_v17 = vld [vmem:[%s3317_s1 + $0x344] ss:$8 sps:$4 sm:$0xff]   ;;  %v2370_v19 = vld [vmem:[%s3317_s1 + $0x234] ss:$8 sps:$4 sm:$0xff]   ;;  %v2365_v20 = vld [vmem:[%s3317_s1 + $0x340] ss:$8 sps:$4 sm:$0xff]  }
  0x28   : > { %v2373_v21 = vld [vmem:[%s3317_s1 + $0x334] ss:$8 sps:$4 sm:$0xff]   ;;  %v2368_v22 = vld [vmem:[%s3317_s1 + $0x230] ss:$8 sps:$4 sm:$0xff]   ;;  %v2376_v23 = vld [vmem:[%s3317_s1 + $0x224] ss:$8 sps:$4 sm:$0xff]  }
  0x29   : > { %1617 = vmatpush1.bf16.msra.mxu0 %v2286_v30  ;;  %v2371_v24 = vld [vmem:[%s3317_s1 + $0x330] ss:$8 sps:$4 sm:$0xff]   ;;  %v2379_v25 = vld [vmem:[%s3317_s1 + $0x324] ss:$8 sps:$4 sm:$0xff]   ;;  %v2374_v26 = vld [vmem:[%s3317_s1 + $0x220] ss:$8 sps:$4 sm:$0xff]  }
  0x2a   : > { %1618 = vmatprep.subr.bf16.mxu0 %v2290_v31  ;;  %1660 = vmatpush1.bf16.msra.mxu1 %v2289_v32  ;;  %v2382_v27 = vld [vmem:[%s3317_s1 + $0x214] ss:$8 sps:$4 sm:$0xff]   ;;  %v2377_v28 = vld [vmem:[%s3317_s1 + $0x320] ss:$8 sps:$4 sm:$0xff]   ;;  %v2380_v30 = vld [vmem:[%s3317_s1 + $0x210] ss:$8 sps:$4 sm:$0xff]  }
  0x2b   : > { %1661 = vmatprep.subr.bf16.mxu1 %v2293_v33  ;;  %v2385_v29 = vld [vmem:[%s3317_s1 + $0x314] ss:$8 sps:$4 sm:$0xff]   ;;  %v2383_v31 = vld [vmem:[%s3317_s1 + $0x310] ss:$8 sps:$4 sm:$0xff]   ;;  %v2388_v32 = vld [vmem:[%s3317_s1 + $0x204] ss:$8 sps:$4 sm:$0xff]  }
  0x2c   : > { %v2442_v33 = vld [vmem:[%s2768_s10 + $0x14] ss:$56 sps:$4 sm:$0xff]  }
  0x2d   : > { %1619 = vmatpush2.bf16.msra.mxu0 %v2292_v34  ;;  %v2391_v34 = vld [vmem:[%s3317_s1 + $0x304] ss:$8 sps:$4 sm:$0xff]   ;;  %v2409_v47 = vld [vmem:[%s3317_s1 + $0x3d4] ss:$8 sps:$4 sm:$0xff]  }
  0x2e   : > { %1620 = vmatprep.subr.bf16.mxu0 %v2296_v35  ;;  %1662 = vmatpush2.bf16.msra.mxu1 %v2295_v36  ;;  %v2386_v35 = vld [vmem:[%s3317_s1 + $0x200] ss:$8 sps:$4 sm:$0xff]   ;;  %v2448_v36 = vld [vmem:[%s2768_s10 + $0x1c] ss:$56 sps:$4 sm:$0xff]   ;;  %v2415_v51 = vld [vmem:[%s3317_s1 + $0x3c4] ss:$8 sps:$4 sm:$0xff]  }
  0x2f   : > { %1663 = vmatprep.subr.bf16.mxu1 %v2299_v37  ;;  %v2394_v37 = vld [vmem:[%s3317_s1 + $0x2f4] ss:$8 sps:$4 sm:$0xff]  }
  0x31   : > { %1621 = vmatpush2.bf16.msra.mxu0 %v2298_v38  ;;  %v2389_v38 = vld [vmem:[%s3317_s1 + $0x300] ss:$8 sps:$4 sm:$0xff]  }
  0x32   : > { %1622 = vmatprep.subr.bf16.mxu0 %v2302_v39  ;;  %1664 = vmatpush2.bf16.msra.mxu1 %v2301_v40  ;;  %v2397_v39 = vld [vmem:[%s3317_s1 + $0x3f4] ss:$8 sps:$4 sm:$0xff]   ;;  %v2392_v40 = vld [vmem:[%s3317_s1 + $0x2f0] ss:$8 sps:$4 sm:$0xff]  }
  0x33   : > { %1665 = vmatprep.subr.bf16.mxu1 %v2305_v41  ;;  %v2400_v41 = vld [vmem:[%s3317_s1 + $0x2e4] ss:$8 sps:$4 sm:$0xff]  }
  0x35   : > { %1623 = vmatpush2.bf16.msra.mxu0 %v2304_v42  ;;  %v2395_v42 = vld [vmem:[%s3317_s1 + $0x3f0] ss:$8 sps:$4 sm:$0xff]  }
  0x36   : > { %1624 = vmatprep.subr.bf16.mxu0 %v2308_v43  ;;  %1666 = vmatpush2.bf16.msra.mxu1 %v2307_v44  ;;  %v2403_v43 = vld [vmem:[%s3317_s1 + $0x3e4] ss:$8 sps:$4 sm:$0xff]   ;;  %v2398_v44 = vld [vmem:[%s3317_s1 + $0x2e0] ss:$8 sps:$4 sm:$0xff]  }
  0x37   : > { %1667 = vmatprep.subr.bf16.mxu1 %v2311_v45  ;;  %v2406_v45 = vld [vmem:[%s3317_s1 + $0x2d4] ss:$8 sps:$4 sm:$0xff]  }
  0x39   : > { %1625 = vmatpush2.bf16.msra.mxu0 %v2310_v46  ;;  %v2401_v46 = vld [vmem:[%s3317_s1 + $0x3e0] ss:$8 sps:$4 sm:$0xff]  }
  0x3a   : > { %1626 = vmatprep.subr.bf16.mxu0 %v2314_v48  ;;  %1668 = vmatpush2.bf16.msra.mxu1 %v2313_v49  ;;  %v2404_v48 = vld [vmem:[%s3317_s1 + $0x2d0] ss:$8 sps:$4 sm:$0xff]   ;;  %v2412_v49 = vld [vmem:[%s3317_s1 + $0x2c4] ss:$8 sps:$4 sm:$0xff]  }
  0x3b   : > { %1669 = vmatprep.subr.bf16.mxu1 %v2317_v50  ;;  %v2407_v50 = vld [vmem:[%s3317_s1 + $0x3d0] ss:$8 sps:$4 sm:$0xff]  }
  0x3d   : > { %1627 = vmatpush2.bf16.msra.mxu0 %v2316_v52  ;;  %v2410_v52 = vld [vmem:[%s3317_s1 + $0x2c0] ss:$8 sps:$4 sm:$0xff]  }
  0x3e   : > { %1628 = vmatprep.subr.bf16.mxu0 %v2320_v53  ;;  %1670 = vmatpush2.bf16.msra.mxu1 %v2319_v54  ;;  %v2418_v53 = vld [vmem:[%s3317_s1 + $0x2b4] ss:$8 sps:$4 sm:$0xff]   ;;  %v2413_v54 = vld [vmem:[%s3317_s1 + $0x3c0] ss:$8 sps:$4 sm:$0xff]  }
  0x3f   : > { %1671 = vmatprep.subr.bf16.mxu1 %v2323_v55  ;;  %v2421_v55 = vld [vmem:[%s3317_s1 + $0x3b4] ss:$8 sps:$4 sm:$0xff]  }
  0x41   : > { %1629 = vmatpush2.bf16.msra.mxu0 %v2322_v56  ;;  %v2416_v56 = vld [vmem:[%s3317_s1 + $0x2b0] ss:$8 sps:$4 sm:$0xff]  }
  0x42   : > { %1630 = vmatprep.subr.bf16.mxu0 %v2326_v57  ;;  %1672 = vmatpush2.bf16.msra.mxu1 %v2325_v58  ;;  %v2424_v57 = vld [vmem:[%s3317_s1 + $0x2a4] ss:$8 sps:$4 sm:$0xff]   ;;  %v2419_v58 = vld [vmem:[%s3317_s1 + $0x3b0] ss:$8 sps:$4 sm:$0xff]  }
  0x43   : > { %1673 = vmatprep.subr.bf16.mxu1 %v2329_v59  ;;  %v2427_v59 = vld [vmem:[%s3317_s1 + $0x3a4] ss:$8 sps:$4 sm:$0xff]  }
  0x45   : > { %1631 = vmatpush2.bf16.msra.mxu0 %v2328_v60  ;;  %v2422_v60 = vld [vmem:[%s3317_s1 + $0x2a0] ss:$8 sps:$4 sm:$0xff]  }
  0x46   : > { %1632 = vmatprep.subr.bf16.mxu0 %v2332_v61  ;;  %1674 = vmatpush2.bf16.msra.mxu1 %v2331_v62  ;;  %v2430_v61 = vld [vmem:[%s3317_s1 + $0x294] ss:$8 sps:$4 sm:$0xff]   ;;  %v2425_v62 = vld [vmem:[%s3317_s1 + $0x3a0] ss:$8 sps:$4 sm:$0xff]  }
  0x47   : > { %1675 = vmatprep.subr.bf16.mxu1 %v2335_v63  ;;  %v2433_v63 = vld [vmem:[%s3317_s1 + $0x394] ss:$8 sps:$4 sm:$0xff]  }
  0x49   : > { %1633 = vmatpush2.bf16.msra.mxu0 %v2334_v0  ;;  %v2428_v0 = vld [vmem:[%s3317_s1 + $0x290] ss:$8 sps:$4 sm:$0xff]  }
  0x4a   : > { %1688 = vmatprep.subr.bf16.mxu0 %v2343_v1  ;;  %1676 = vmatpush2.bf16.msra.mxu1 %v2340_v2  ;;  %v2436_v1 = vld [vmem:[%s3317_s1 + $0x284] ss:$8 sps:$4 sm:$0xff]   ;;  %v2431_v2 = vld [vmem:[%s3317_s1 + $0x390] ss:$8 sps:$4 sm:$0xff]  }
  0x4b   : > { %1731 = vmatprep.subr.bf16.mxu1 %v2349_v4  ;;  %v2434_v4 = vld [vmem:[%s3317_s1 + $0x280] ss:$8 sps:$4 sm:$0xff]  }
  0x4c   : > { %1635 = vmatmul.mubr.bf16.vlgmr.msra.gmra.mxu0 %v2337_v3  ;;  %v2439_v3 = vld [vmem:[%s3317_s1 + $0x384] ss:$8 sps:$4 sm:$0xff]  }
  0x4d   : > { %1689 = vmatpush1.bf16.msra.mxu0 %v2341_v5  ;;  %1678 = vmatmul.mubr.bf16.vlgmr.msra.gmra.mxu1 %v2344_v6  ;;  %v2445_v5 = vld [vmem:[%s3317_s1 + $0x474] ss:$8 sps:$4 sm:$0xff]   ;;  %v2437_v6 = vld [vmem:[%s3317_s1 + $0x380] ss:$8 sps:$4 sm:$0xff]  }
  0x4e   : > { %1690 = vmatprep.subr.bf16.mxu0 %v2352_v7  ;;  %1732 = vmatpush1.bf16.msra.mxu1 %v2347_v8  ;;  %v2440_v7 = vld [vmem:[%s2768_s10 + $0x10] ss:$56 sps:$4 sm:$0xff]   ;;  %v2451_v8 = vld [vmem:[%s3317_s1 + $0x574] ss:$8 sps:$4 sm:$0xff]  }
  0x4f   : > { %1733 = vmatprep.subr.bf16.mxu1 %v2355_v9  ;;  %1720 = vmatprep.mubr.bf16.mxu0 %v2442_v33  ;;  %v2443_v9 = vld [vmem:[%s3317_s1 + $0x470] ss:$8 sps:$4 sm:$0xff]   ;;  %v2484_v33 = vld [vmem:[%s3317_s1 + $0x414] ss:$8 sps:$4 sm:$0xff]  }
  0x50   : > { %1763 = vmatprep.mubr.bf16.mxu1 %v2448_v36  ;;  %v2482_v36 = vld [vmem:[%s3317_s1 + $0x410] ss:$8 sps:$4 sm:$0xff]  }
  0x51   : > { %1691 = vmatpush1.bf16.msra.mxu0 %v2350_v10  ;;  %v2446_v10 = vld [vmem:[%s2768_s10 + $0x18] ss:$56 sps:$4 sm:$0xff]  }
  0x52   : > { %1692 = vmatprep.subr.bf16.mxu0 %v2358_v11  ;;  %1734 = vmatpush1.bf16.msra.mxu1 %v2353_v12  ;;  %v2454_v11 = vld [vmem:[%s3317_s1 + $0x464] ss:$8 sps:$4 sm:$0xff]   ;;  %v2449_v12 = vld [vmem:[%s3317_s1 + $0x570] ss:$8 sps:$4 sm:$0xff]  }
  0x53   : > { %1735 = vmatprep.subr.bf16.mxu1 %v2361_v13  ;;  %v2457_v13 = vld [vmem:[%s3317_s1 + $0x564] ss:$8 sps:$4 sm:$0xff]  }
  0x55   : > { %1693 = vmatpush1.bf16.msra.mxu0 %v2356_v14  ;;  %v2452_v14 = vld [vmem:[%s3317_s1 + $0x460] ss:$8 sps:$4 sm:$0xff]  }
  0x56   : > { %1694 = vmatprep.subr.bf16.mxu0 %v2364_v15  ;;  %1736 = vmatpush1.bf16.msra.mxu1 %v2359_v16  ;;  %v2460_v15 = vld [vmem:[%s3317_s1 + $0x454] ss:$8 sps:$4 sm:$0xff]   ;;  %v2455_v16 = vld [vmem:[%s3317_s1 + $0x560] ss:$8 sps:$4 sm:$0xff]  }
  0x57   : > { %1737 = vmatprep.subr.bf16.mxu1 %v2367_v17  ;;  %v2463_v17 = vld [vmem:[%s3317_s1 + $0x554] ss:$8 sps:$4 sm:$0xff]  }
  0x59   : > { %1695 = vmatpush1.bf16.msra.mxu0 %v2362_v18  ;;  %v2544_v18 = vld [vmem:[%s2768_s10 + $0x24] ss:$56 sps:$4 sm:$0xff]  }
  0x5a   : > { %1696 = vmatprep.subr.bf16.mxu0 %v2370_v19  ;;  %1738 = vmatpush1.bf16.msra.mxu1 %v2365_v20  ;;  %v2458_v19 = vld [vmem:[%s3317_s1 + $0x450] ss:$8 sps:$4 sm:$0xff]  }
  0x5b   : > { %1739 = vmatprep.subr.bf16.mxu1 %v2373_v21  ;;  %v2461_v20 = vld [vmem:[%s3317_s1 + $0x550] ss:$8 sps:$4 sm:$0xff]   ;;  %v2466_v21 = vld [vmem:[%s3317_s1 + $0x444] ss:$8 sps:$4 sm:$0xff]  }
  0x5d   : > { %1697 = vmatpush1.bf16.msra.mxu0 %v2368_v22  ;;  %v2550_v22 = vld [vmem:[%s2768_s10 + $0x2c] ss:$56 sps:$4 sm:$0xff]  }
  0x5e   : > { %1698 = vmatprep.subr.bf16.mxu0 %v2376_v23  ;;  %1740 = vmatpush1.bf16.msra.mxu1 %v2371_v24  ;;  %v2469_v23 = vld [vmem:[%s3317_s1 + $0x544] ss:$8 sps:$4 sm:$0xff]   ;;  %v2464_v24 = vld [vmem:[%s3317_s1 + $0x440] ss:$8 sps:$4 sm:$0xff]  }
  0x5f   : > { %1741 = vmatprep.subr.bf16.mxu1 %v2379_v25  ;;  %v2472_v25 = vld [vmem:[%s3317_s1 + $0x434] ss:$8 sps:$4 sm:$0xff]  }
  0x61   : > { %1699 = vmatpush1.bf16.msra.mxu0 %v2374_v26  ;;  %v2467_v26 = vld [vmem:[%s3317_s1 + $0x540] ss:$8 sps:$4 sm:$0xff]  }
  0x62   : > { %1700 = vmatprep.subr.bf16.mxu0 %v2382_v27  ;;  %1742 = vmatpush1.bf16.msra.mxu1 %v2377_v28  ;;  %v2475_v27 = vld [vmem:[%s3317_s1 + $0x534] ss:$8 sps:$4 sm:$0xff]   ;;  %v2470_v28 = vld [vmem:[%s3317_s1 + $0x430] ss:$8 sps:$4 sm:$0xff]  }
  0x63   : > { %1743 = vmatprep.subr.bf16.mxu1 %v2385_v29  ;;  %v2478_v29 = vld [vmem:[%s3317_s1 + $0x424] ss:$8 sps:$4 sm:$0xff]  }
  0x65   : > { %1701 = vmatpush1.bf16.msra.mxu0 %v2380_v30  ;;  %v2473_v30 = vld [vmem:[%s3317_s1 + $0x530] ss:$8 sps:$4 sm:$0xff]  }
  0x66   : > { %1702 = vmatprep.subr.bf16.mxu0 %v2388_v32  ;;  %1744 = vmatpush1.bf16.msra.mxu1 %v2383_v31  ;;  %v2481_v31 = vld [vmem:[%s3317_s1 + $0x524] ss:$8 sps:$4 sm:$0xff]   ;;  %v2476_v32 = vld [vmem:[%s3317_s1 + $0x420] ss:$8 sps:$4 sm:$0xff]  }
  0x67   : > { %1745 = vmatprep.subr.bf16.mxu1 %v2391_v34  ;;  %v2479_v34 = vld [vmem:[%s3317_s1 + $0x520] ss:$8 sps:$4 sm:$0xff]  }
  0x69   : > { %1703 = vmatpush1.bf16.msra.mxu0 %v2386_v35  ;;  %v2487_v35 = vld [vmem:[%s3317_s1 + $0x514] ss:$8 sps:$4 sm:$0xff]  }
  0x6a   : > { %1704 = vmatprep.subr.bf16.mxu0 %v2394_v37  ;;  %1746 = vmatpush1.bf16.msra.mxu1 %v2389_v38  ;;  %v2490_v37 = vld [vmem:[%s3317_s1 + $0x404] ss:$8 sps:$4 sm:$0xff]   ;;  %v2485_v38 = vld [vmem:[%s3317_s1 + $0x510] ss:$8 sps:$4 sm:$0xff]  }
  0x6b   : > { %1747 = vmatprep.subr.bf16.mxu1 %v2397_v39  ;;  %v2493_v39 = vld [vmem:[%s3317_s1 + $0x504] ss:$8 sps:$4 sm:$0xff]  }
  0x6d   : > { %1705 = vmatpush2.bf16.msra.mxu0 %v2392_v40  ;;  %v2488_v40 = vld [vmem:[%s3317_s1 + $0x400] ss:$8 sps:$4 sm:$0xff]  }
  0x6e   : > { %1706 = vmatprep.subr.bf16.mxu0 %v2400_v41  ;;  %1748 = vmatpush2.bf16.msra.mxu1 %v2395_v42  ;;  %v2496_v41 = vld [vmem:[%s3317_s1 + $0x4f4] ss:$8 sps:$4 sm:$0xff]   ;;  %v2491_v42 = vld [vmem:[%s3317_s1 + $0x500] ss:$8 sps:$4 sm:$0xff]  }
  0x6f   : > { %1749 = vmatprep.subr.bf16.mxu1 %v2403_v43  ;;  %v2499_v43 = vld [vmem:[%s3317_s1 + $0x5f4] ss:$8 sps:$4 sm:$0xff]  }
  0x71   : > { %1707 = vmatpush2.bf16.msra.mxu0 %v2398_v44  ;;  %v2494_v44 = vld [vmem:[%s3317_s1 + $0x4f0] ss:$8 sps:$4 sm:$0xff]  }
  0x72   : > { %1708 = vmatprep.subr.bf16.mxu0 %v2406_v45  ;;  %1750 = vmatpush2.bf16.msra.mxu1 %v2401_v46  ;;  %v2502_v45 = vld [vmem:[%s3317_s1 + $0x4e4] ss:$8 sps:$4 sm:$0xff]   ;;  %v2497_v46 = vld [vmem:[%s3317_s1 + $0x5f0] ss:$8 sps:$4 sm:$0xff]  }
  0x73   : > { %1751 = vmatprep.subr.bf16.mxu1 %v2409_v47  ;;  %v2505_v47 = vld [vmem:[%s3317_s1 + $0x5e4] ss:$8 sps:$4 sm:$0xff]  }
  0x75   : > { %1709 = vmatpush2.bf16.msra.mxu0 %v2404_v48  ;;  %v2500_v48 = vld [vmem:[%s3317_s1 + $0x4e0] ss:$8 sps:$4 sm:$0xff]  }
  0x76   : > { %1710 = vmatprep.subr.bf16.mxu0 %v2412_v49  ;;  %1752 = vmatpush2.bf16.msra.mxu1 %v2407_v50  ;;  %v2508_v49 = vld [vmem:[%s3317_s1 + $0x4d4] ss:$8 sps:$4 sm:$0xff]   ;;  %v2503_v50 = vld [vmem:[%s3317_s1 + $0x5e0] ss:$8 sps:$4 sm:$0xff]  }
  0x77   : > { %1753 = vmatprep.subr.bf16.mxu1 %v2415_v51  ;;  %v2511_v51 = vld [vmem:[%s3317_s1 + $0x5d4] ss:$8 sps:$4 sm:$0xff]  }
  0x79   : > { %1711 = vmatpush2.bf16.msra.mxu0 %v2410_v52  ;;  %v2506_v52 = vld [vmem:[%s3317_s1 + $0x4d0] ss:$8 sps:$4 sm:$0xff]  }
  0x7a   : > { %1712 = vmatprep.subr.bf16.mxu0 %v2418_v53  ;;  %1754 = vmatpush2.bf16.msra.mxu1 %v2413_v54  ;;  %v2514_v53 = vld [vmem:[%s3317_s1 + $0x4c4] ss:$8 sps:$4 sm:$0xff]   ;;  %v2509_v54 = vld [vmem:[%s3317_s1 + $0x5d0] ss:$8 sps:$4 sm:$0xff]  }
  0x7b   : > { %1755 = vmatprep.subr.bf16.mxu1 %v2421_v55  ;;  %v2517_v55 = vld [vmem:[%s3317_s1 + $0x5c4] ss:$8 sps:$4 sm:$0xff]  }
  0x7d   : > { %1713 = vmatpush2.bf16.msra.mxu0 %v2416_v56  ;;  %v2512_v56 = vld [vmem:[%s3317_s1 + $0x4c0] ss:$8 sps:$4 sm:$0xff]  }
  0x7e   : > { %1714 = vmatprep.subr.bf16.mxu0 %v2424_v57  ;;  %1756 = vmatpush2.bf16.msra.mxu1 %v2419_v58  ;;  %v2520_v57 = vld [vmem:[%s3317_s1 + $0x4b4] ss:$8 sps:$4 sm:$0xff]   ;;  %v2515_v58 = vld [vmem:[%s3317_s1 + $0x5c0] ss:$8 sps:$4 sm:$0xff]  }
  0x7f   : > { %1757 = vmatprep.subr.bf16.mxu1 %v2427_v59  ;;  %v2523_v59 = vld [vmem:[%s3317_s1 + $0x5b4] ss:$8 sps:$4 sm:$0xff]  }
  0x81   : > { %1715 = vmatpush2.bf16.msra.mxu0 %v2422_v60  ;;  %v2518_v60 = vld [vmem:[%s3317_s1 + $0x4b0] ss:$8 sps:$4 sm:$0xff]  }
  0x82   : > { %1716 = vmatprep.subr.bf16.mxu0 %v2430_v61  ;;  %1758 = vmatpush2.bf16.msra.mxu1 %v2425_v62  ;;  %v2526_v61 = vld [vmem:[%s3317_s1 + $0x4a4] ss:$8 sps:$4 sm:$0xff]   ;;  %v2521_v62 = vld [vmem:[%s3317_s1 + $0x5b0] ss:$8 sps:$4 sm:$0xff]  }
  0x83   : > { %1759 = vmatprep.subr.bf16.mxu1 %v2433_v63  ;;  %v2529_v63 = vld [vmem:[%s3317_s1 + $0x5a4] ss:$8 sps:$4 sm:$0xff]  }
  0x85   : > { %1717 = vmatpush2.bf16.msra.mxu0 %v2428_v0  ;;  %v2524_v0 = vld [vmem:[%s3317_s1 + $0x4a0] ss:$8 sps:$4 sm:$0xff]  }
  0x86   : > { %1718 = vmatprep.subr.bf16.mxu0 %v2436_v1  ;;  %1760 = vmatpush2.bf16.msra.mxu1 %v2431_v2  ;;  %v2532_v1 = vld [vmem:[%s3317_s1 + $0x494] ss:$8 sps:$4 sm:$0xff]   ;;  %v2527_v2 = vld [vmem:[%s3317_s1 + $0x5a0] ss:$8 sps:$4 sm:$0xff]  }
  0x87   : > { %1761 = vmatprep.subr.bf16.mxu1 %v2439_v3  ;;  %v2535_v3 = vld [vmem:[%s3317_s1 + $0x594] ss:$8 sps:$4 sm:$0xff]  }
  0x89   : > { %1719 = vmatpush2.bf16.msra.mxu0 %v2434_v4  ;;  %v2530_v4 = vld [vmem:[%s3317_s1 + $0x490] ss:$8 sps:$4 sm:$0xff]  }
  0x8a   : > { %1774 = vmatprep.subr.bf16.mxu0 %v2445_v5  ;;  %1762 = vmatpush2.bf16.msra.mxu1 %v2437_v6  ;;  %v2538_v5 = vld [vmem:[%s3317_s1 + $0x484] ss:$8 sps:$4 sm:$0xff]   ;;  %v2533_v6 = vld [vmem:[%s3317_s1 + $0x590] ss:$8 sps:$4 sm:$0xff]  }
  0x8b   : > { %1817 = vmatprep.subr.bf16.mxu1 %v2451_v8  ;;  %v2536_v8 = vld [vmem:[%s3317_s1 + $0x480] ss:$8 sps:$4 sm:$0xff]  }
  0x8c   : > { %1721 = vmatmul.mubr.bf16.vlgmr.msra.gmra.mxu0 %v2440_v7  ;;  %v2541_v7 = vld [vmem:[%s3317_s1 + $0x584] ss:$8 sps:$4 sm:$0xff]  }
  0x8d   : > { %1775 = vmatpush1.bf16.msra.mxu0 %v2443_v9  ;;  %1764 = vmatmul.mubr.bf16.vlgmr.msra.gmra.mxu1 %v2446_v10  ;;  %v2547_v9 = vld [vmem:[%s3317_s1 + $0x674] ss:$8 sps:$4 sm:$0xff]   ;;  %v2539_v10 = vld [vmem:[%s3317_s1 + $0x580] ss:$8 sps:$4 sm:$0xff]  }
  0x8e   : > { %1776 = vmatprep.subr.bf16.mxu0 %v2454_v11  ;;  %1818 = vmatpush1.bf16.msra.mxu1 %v2449_v12  ;;  %v2542_v11 = vld [vmem:[%s2768_s10 + $0x20] ss:$56 sps:$4 sm:$0xff]  }
  0x8f   : > { %1819 = vmatprep.subr.bf16.mxu1 %v2457_v13  ;;  %1806 = vmatprep.mubr.bf16.mxu0 %v2544_v18  ;;  %v2545_v12 = vld [vmem:[%s3317_s1 + $0x670] ss:$8 sps:$4 sm:$0xff]   ;;  %v2584_v13 = vld [vmem:[%s2768_s10 + $0x34] ss:$56 sps:$4 sm:$0xff]  }
  0x90   : > { %1849 = vmatprep.mubr.bf16.mxu1 %v2550_v22  ;;  %v2554_v18 = vld [vmem:[%s3317_s1 + $0x650] ss:$8 sps:$4 sm:$0xff]  }
  0x91   : > { %1777 = vmatpush1.bf16.msra.mxu0 %v2452_v14  ;;  %v2548_v14 = vld [vmem:[%s2768_s10 + $0x28] ss:$56 sps:$4 sm:$0xff]   ;;  %v2560_v22 = vld [vmem:[%s3317_s1 + $0x630] ss:$8 sps:$4 sm:$0xff]  }
  0x92   : > { %1778 = vmatprep.subr.bf16.mxu0 %v2460_v15  ;;  %1820 = vmatpush1.bf16.msra.mxu1 %v2455_v16  ;;  %v2553_v15 = vld [vmem:[%s3317_s1 + $0x664] ss:$8 sps:$4 sm:$0xff]   ;;  %v2551_v16 = vld [vmem:[%s3317_s1 + $0x660] ss:$8 sps:$4 sm:$0xff]  }
  0x93   : > { %1821 = vmatprep.subr.bf16.mxu1 %v2463_v17  ;;  %v2556_v17 = vld [vmem:[%s3317_s1 + $0x654] ss:$8 sps:$4 sm:$0xff]  }
  0x95   : > { %1779 = vmatpush1.bf16.msra.mxu0 %v2458_v19  ;;  %v2559_v19 = vld [vmem:[%s3317_s1 + $0x644] ss:$8 sps:$4 sm:$0xff]  }
  0x96   : > { %1780 = vmatprep.subr.bf16.mxu0 %v2466_v21  ;;  %1822 = vmatpush1.bf16.msra.mxu1 %v2461_v20  ;;  %v2557_v20 = vld [vmem:[%s3317_s1 + $0x640] ss:$8 sps:$4 sm:$0xff]   ;;  %v2562_v21 = vld [vmem:[%s3317_s1 + $0x634] ss:$8 sps:$4 sm:$0xff]  }
  0x97   : > { %1823 = vmatprep.subr.bf16.mxu1 %v2469_v23  ;;  %v2565_v23 = vld [vmem:[%s3317_s1 + $0x624] ss:$8 sps:$4 sm:$0xff]  }
  0x99   : > { %1781 = vmatpush1.bf16.msra.mxu0 %v2464_v24  ;;  %v2563_v24 = vld [vmem:[%s3317_s1 + $0x620] ss:$8 sps:$4 sm:$0xff]  }
  0x9a   : > { %1782 = vmatprep.subr.bf16.mxu0 %v2472_v25  ;;  %1824 = vmatpush1.bf16.msra.mxu1 %v2467_v26  ;;  %v2568_v25 = vld [vmem:[%s3317_s1 + $0x614] ss:$8 sps:$4 sm:$0xff]   ;;  %v2566_v26 = vld [vmem:[%s3317_s1 + $0x610] ss:$8 sps:$4 sm:$0xff]  }
  0x9b   : > { %1825 = vmatprep.subr.bf16.mxu1 %v2475_v27  ;;  %v2571_v27 = vld [vmem:[%s3317_s1 + $0x604] ss:$8 sps:$4 sm:$0xff]  }
  0x9d   : > { %1783 = vmatpush1.bf16.msra.mxu0 %v2470_v28  ;;  %v2569_v28 = vld [vmem:[%s3317_s1 + $0x600] ss:$8 sps:$4 sm:$0xff]  }
  0x9e   : > { %1784 = vmatprep.subr.bf16.mxu0 %v2478_v29  ;;  %1826 = vmatpush1.bf16.msra.mxu1 %v2473_v30  ;;  %v2574_v29 = vld [vmem:[%s3317_s1 + $0x6b4] ss:$8 sps:$4 sm:$0xff]   ;;  %v2572_v30 = vld [vmem:[%s3317_s1 + $0x6b0] ss:$8 sps:$4 sm:$0xff]  }
  0x9f   : > { %1827 = vmatprep.subr.bf16.mxu1 %v2481_v31  ;;  %v2577_v31 = vld [vmem:[%s3317_s1 + $0x6a4] ss:$8 sps:$4 sm:$0xff]  }
  0xa1   : > { %1785 = vmatpush1.bf16.msra.mxu0 %v2476_v32  ;;  %v2575_v32 = vld [vmem:[%s3317_s1 + $0x6a0] ss:$8 sps:$4 sm:$0xff]  }
  0xa2   : > { %1786 = vmatprep.subr.bf16.mxu0 %v2484_v33  ;;  %1828 = vmatpush1.bf16.msra.mxu1 %v2479_v34  ;;  %v2580_v33 = vld [vmem:[%s3317_s1 + $0x694] ss:$8 sps:$4 sm:$0xff]   ;;  %v2578_v34 = vld [vmem:[%s3317_s1 + $0x690] ss:$8 sps:$4 sm:$0xff]  }
  0xa3   : > { %1829 = vmatprep.subr.bf16.mxu1 %v2487_v35  ;;  %v2583_v35 = vld [vmem:[%s3317_s1 + $0x684] ss:$8 sps:$4 sm:$0xff]  }
  0xa5   : > { %1787 = vmatpush1.bf16.msra.mxu0 %v2482_v36  ;;  %v2581_v36 = vld [vmem:[%s3317_s1 + $0x680] ss:$8 sps:$4 sm:$0xff]  }
  0xa6   : > { %1788 = vmatprep.subr.bf16.mxu0 %v2490_v37  ;;  %1830 = vmatpush1.bf16.msra.mxu1 %v2485_v38  ;;  %v2586_v37 = vld [vmem:[%s2768_s10 + $0x30] ss:$56 sps:$4 sm:$0xff]  }
  0xa7   : > { %1831 = vmatprep.subr.bf16.mxu1 %v2493_v39 }
  0xa9   : > { %1789 = vmatpush1.bf16.msra.mxu0 %v2488_v40 }
  0xaa   : > { %1790 = vmatprep.subr.bf16.mxu0 %v2496_v41  ;;  %1832 = vmatpush1.bf16.msra.mxu1 %v2491_v42 }
  0xab   : > { %1833 = vmatprep.subr.bf16.mxu1 %v2499_v43  ;;  %v439_v43 = vlaneseq }
  0xad   : > { %1791 = vmatpush2.bf16.msra.mxu0 %v2494_v44 }
  0xae   : > { %1792 = vmatprep.subr.bf16.mxu0 %v2502_v45  ;;  %1834 = vmatpush2.bf16.msra.mxu1 %v2497_v46  ;;  %v440_v46 = vshrl.u32 %v439_v43, 7 }
  0xaf   : > { %1835 = vmatprep.subr.bf16.mxu1 %v2505_v47 }
  0xb1   : > { %1793 = vmatpush2.bf16.msra.mxu0 %v2500_v48 }
  0xb2   : > { %1794 = vmatprep.subr.bf16.mxu0 %v2508_v49  ;;  %1836 = vmatpush2.bf16.msra.mxu1 %v2503_v50  ;;  %v441_v49 = vsub.s32 0, %v440_v46 }
  0xb3   : > { %1837 = vmatprep.subr.bf16.mxu1 %v2511_v51 }
  0xb5   : > { %1795 = vmatpush2.bf16.msra.mxu0 %v2506_v52  ;;  %v437_v52 = vld [vmem:[%s3318_s2] sm:$0x3] }
  0xb6   : > { %1796 = vmatprep.subr.bf16.mxu0 %v2514_v53  ;;  %1838 = vmatpush2.bf16.msra.mxu1 %v2509_v54  ;;  %v445_v53 = vsub.s32 1, %v440_v46  ;;  %v442_v54 = vrot.slane %v437_v52, %v441_v49 }
  0xb7   : > { %1839 = vmatprep.subr.bf16.mxu1 %v2517_v55 }
  0xb9   : > { %1797 = vmatpush2.bf16.msra.mxu0 %v2512_v56 }
  0xba   : > { %1798 = vmatprep.subr.bf16.mxu0 %v2520_v57  ;;  %1840 = vmatpush2.bf16.msra.mxu1 %v2515_v58  ;;  %v446_v57 = vrot.slane %v437_v52, %v445_v53 }
  0xbb   : > { %1841 = vmatprep.subr.bf16.mxu1 %v2523_v59 }
  0xbd   : > { %1799 = vmatpush2.bf16.msra.mxu0 %v2518_v60 }
  0xbe   : > { %1800 = vmatprep.subr.bf16.mxu0 %v2526_v61  ;;  %1842 = vmatpush2.bf16.msra.mxu1 %v2521_v62 }
  0xbf   : > { %1843 = vmatprep.subr.bf16.mxu1 %v2529_v63 }
  0xc1   : > { %1801 = vmatpush2.bf16.msra.mxu0 %v2524_v0 }
  0xc2   : > { %1802 = vmatprep.subr.bf16.mxu0 %v2532_v1  ;;  %1844 = vmatpush2.bf16.msra.mxu1 %v2527_v2 }
  0xc3   : > { %1845 = vmatprep.subr.bf16.mxu1 %v2535_v3 }
  0xc5   : > { %1803 = vmatpush2.bf16.msra.mxu0 %v2530_v4 }
  0xc6   : > { %1804 = vmatprep.subr.bf16.mxu0 %v2538_v5  ;;  %1846 = vmatpush2.bf16.msra.mxu1 %v2533_v6 }
  0xc7   : > { %1847 = vmatprep.subr.bf16.mxu1 %v2541_v7 }
  0xc9   : > { %1805 = vmatpush2.bf16.msra.mxu0 %v2536_v8 }
  0xca   : > { %1860 = vmatprep.subr.bf16.mxu0 %v2547_v9  ;;  %1848 = vmatpush2.bf16.msra.mxu1 %v2539_v10 }
  0xcc   : > { %1807 = vmatmul.mubr.bf16.vlgmr.msra.gmra.mxu0 %v2542_v11 }
  0xcd   : > { %1861 = vmatpush1.bf16.msra.mxu0 %v2545_v12  ;;  %2229 = vmatprep.mubr.msk.bf16.mxu0 %vm1598_vm0, %v2584_v13 }
  0xce   : > { %1850 = vmatmul.mubr.bf16.vlgmr.msra.gmra.mxu1 %v2548_v14  ;;  %1862 = vmatprep.subr.bf16.mxu0 %v2553_v15 }
  0xd1   : > { %1863 = vmatpush1.bf16.msra.mxu0 %v2551_v16 }
  0xd2   : > { %1864 = vmatprep.subr.bf16.mxu0 %v2556_v17  ;;  %v1907_v17 = vld [vmem:[%s3319_s3] sm:$0x3] }
  0xd5   : > { %1865 = vmatpush1.bf16.msra.mxu0 %v2554_v18 }
  0xd6   : > { %1866 = vmatprep.subr.bf16.mxu0 %v2559_v19 }
  0xd9   : > { %1867 = vmatpush1.bf16.msra.mxu0 %v2557_v20 }
  0xda   : > { %1868 = vmatprep.subr.bf16.mxu0 %v2562_v21 }
  0xdd   : > { %1869 = vmatpush1.bf16.msra.mxu0 %v2560_v22 }
  0xde   : > { %1870 = vmatprep.subr.bf16.mxu0 %v2565_v23  ;;  %v1912_v23 = vrot.slane %v1907_v17, %v441_v49 }
  0xe1   : > { %1871 = vmatpush1.bf16.msra.mxu0 %v2563_v24 }
  0xe2   : > { %1872 = vmatprep.subr.bf16.mxu0 %v2568_v25 }
  0xe5   : > { %1873 = vmatpush1.bf16.msra.mxu0 %v2566_v26 }
  0xe6   : > { %1874 = vmatprep.subr.bf16.mxu0 %v2571_v27 }
  0xe9   : > { %1875 = vmatpush1.bf16.msra.mxu0 %v2569_v28  ;;  %v1916_v28 = vrot.slane %v1907_v17, %v445_v53 }
  0xea   : > { %1884 = vmatprep.subr.bf16.mxu0 %v2574_v29 }
  0xed   : > { %1885 = vmatpush2.bf16.msra.mxu0 %v2572_v30 }
  0xee   : > { %1886 = vmatprep.subr.bf16.mxu0 %v2577_v31 }
  0xf1   : > { %1887 = vmatpush2.bf16.msra.mxu0 %v2575_v32 }
  0xf2   : > { %1888 = vmatprep.subr.bf16.mxu0 %v2580_v33 }
  0xf5   : > { %1889 = vmatpush2.bf16.msra.mxu0 %v2578_v34 }
  0xf6   : > { %1890 = vmatprep.subr.bf16.mxu0 %v2583_v35 }
  0xf9   : > { %1891 = vmatpush2.bf16.msra.mxu0 %v2581_v36 }
  0xfc   : > { %1893 = vmatmul.mubr.bf16.vlgmr.msra.gmra.mxu0 %v2586_v37 }
 0x10c   : > { %v1636_v38 = vpop.f32.mrf.mxu0 }
 0x10d   : > { %v1679_v40 = vpop.f32.mrf.mxu1  ;;  %v1637_v58 = vadd.f32 %v1636_v38, %v442_v54 }
 0x10e   : > { %v1638_v39 = vpop.f32.mrf.mxu0 }
 0x10f   : > { %v1681_v42 = vpop.f32.mrf.mxu1  ;;  %v1639_v61 = vadd.f32 %v1638_v39, %v446_v57  ;;  %v1680_v63 = vadd.f32 %v1679_v40, %v1637_v58 }
 0x110   : > { %v1640_v41 = vpop.f32.mrf.mxu0 }
 0x111   : > { %v1683_v45 = vpop.f32.mrf.mxu1  ;;  %v1641_v0 = vadd.f32 %v1640_v41, %v442_v54  ;;  %v1682_v3 = vadd.f32 %v1681_v42, %v1639_v61 }
 0x112   : > { %v1642_v44 = vpop.f32.mrf.mxu0 }
 0x113   : > { %v1685_v48 = vpop.f32.mrf.mxu1  ;;  %v1643_v2 = vadd.f32 %v1642_v44, %v446_v57  ;;  %v1684_v7 = vadd.f32 %v1683_v45, %v1641_v0 }
 0x115   : > { %v1686_v9 = vadd.f32 %v1685_v48, %v1643_v2 }
 0x14c   : > { %v1722_v47 = vpop.f32.mrf.mxu0 }
 0x14d   : > { %v1765_v51 = vpop.f32.mrf.mxu1  ;;  %v1723_v4 = vadd.f32 %v1722_v47, %v1680_v63 }
 0x14e   : > { %v1724_v50 = vpop.f32.mrf.mxu0 }
 0x14f   : > { %v1767_v56 = vpop.f32.mrf.mxu1  ;;  %v1725_v8 = vadd.f32 %v1724_v50, %v1682_v3  ;;  %v1766_v10 = vadd.f32 %v1765_v51, %v1723_v4 }
 0x150   : > { %v1726_v55 = vpop.f32.mrf.mxu0 }
 0x151   : > { %v1769_v60 = vpop.f32.mrf.mxu1  ;;  %v1727_v11 = vadd.f32 %v1726_v55, %v1684_v7  ;;  %v1768_v15 = vadd.f32 %v1767_v56, %v1725_v8 }
 0x152   : > { %v1728_v59 = vpop.f32.mrf.mxu0 }
 0x153   : > { %v1771_v1 = vpop.f32.mrf.mxu1  ;;  %v1729_v14 = vadd.f32 %v1728_v59, %v1686_v9  ;;  %v1770_v18 = vadd.f32 %v1769_v60, %v1727_v11 }
 0x155   : > { %v1772_v22 = vadd.f32 %v1771_v1, %v1729_v14 }
 0x18c   : > { %v1808_v62 = vpop.f32.mrf.mxu0 }
 0x18d   : > { %v1809_v16 = vadd.f32 %v1808_v62, %v1766_v10 }
 0x18e   : > { %v1810_v5 = vpop.f32.mrf.mxu0  ;;  %v1851_v6 = vpop.f32.mrf.mxu1 }
 0x18f   : > { %v1811_v19 = vadd.f32 %v1810_v5, %v1768_v15  ;;  %v1852_v24 = vadd.f32 %v1851_v6, %v1809_v16 }
 0x190   : > { %v1812_v12 = vpop.f32.mrf.mxu0  ;;  %v1853_v13 = vpop.f32.mrf.mxu1 }
 0x191   : > { %v1813_v25 = vadd.f32 %v1812_v12, %v1770_v18  ;;  %v1854_v29 = vadd.f32 %v1853_v13, %v1811_v19 }
 0x192   : > { %v1814_v20 = vpop.f32.mrf.mxu0  ;;  %v1855_v21 = vpop.f32.mrf.mxu1 }
 0x193   : > { %v1815_v26 = vadd.f32 %v1814_v20, %v1772_v22  ;;  %v1856_v33 = vadd.f32 %v1855_v21, %v1813_v25 }
 0x194   : > { %v1857_v30 = vpop.f32.mrf.mxu1 }
 0x195   : > { %v1858_v36 = vadd.f32 %v1857_v30, %v1815_v26 }
 0x1bc   : > { %v1894_v27 = vpop.f32.mrf.mxu0 }
 0x1bd   : > { %v1895_v31 = vadd.f32 %v1894_v27, %v1852_v24 }
 0x1be   : > { %v1896_v32 = vpop.f32.mrf.mxu0 }
 0x1bf   : > { %vm1903_vm1 = vcmp.gt.f32.partialorder %v1895_v31, 0.0  ;;  %v1919_v34 = vmul.f32 %v1912_v23, %v1895_v31  ;;  %v1897_v35 = vadd.f32 %v1896_v32, %v1854_v29 }
 0x1c0   : > { %v1898_v37 = vpop.f32.mrf.mxu0 }
 0x1c1   : > { %v1923_v38 = vsel %vm1903_vm1, %v1895_v31, %v1919_v34  ;;  %vm1904_vm2 = vcmp.gt.f32.partialorder %v1897_v35, 0.0  ;;  %v1920_v39 = vmul.f32 %v1916_v28, %v1897_v35  ;;  %v1899_v40 = vadd.f32 %v1898_v37, %v1856_v33 }
 0x1c2   : > { %1927 = vst [vmem:[%s204_s18] sm:$0xff] %v1923_v38  ;;  %v1900_v41 = vpop.f32.mrf.mxu0 }
 0x1c3   : > { %v1924_v42 = vsel %vm1904_vm2, %v1897_v35, %v1920_v39  ;;  %vm1905_vm3 = vcmp.gt.f32.partialorder %v1899_v40, 0.0  ;;  %v1921_v43 = vmul.f32 %v1912_v23, %v1899_v40  ;;  %v1901_v44 = vadd.f32 %v1900_v41, %v1858_v36 }
 0x1c4   : > { %1928 = vst.msk [vmem:[%s204_s18 + $0x8] sm:$0xff] %vm1598_vm0, %v1924_v42 }
 0x1c5   : > { %v1925_v45 = vsel %vm1905_vm3, %v1899_v40, %v1921_v43  ;;  %vm1906_vm4 = vcmp.gt.f32.partialorder %v1901_v44, 0.0  ;;  %v1922_v46 = vmul.f32 %v1916_v28, %v1901_v44 }
 0x1c6   : > { %1929 = vst [vmem:[%s204_s18 + $0x10] sm:$0xff] %v1925_v45 }
 0x1c7   : > { %v1926_v47 = vsel %vm1906_vm4, %v1901_v44, %v1922_v46 }
 0x1c8   : > { %1930 = vst.msk [vmem:[%s204_s18 + $0x18] sm:$0xff] %vm1598_vm0, %v1926_v47 }
 0x1c9 PF: > { %s14_s15 = sadd.s32 1, %s2593_s15  }
 0x1ca   : > { %p11_p4 = scmp.ge.s32.totalorder %s14_s15, 4  }
 0x1cc   :  { %13 = sbr.rel (!%p11_p4) target bundleno = 1 (0x1), region = 66 }

// kernel: hyper_encoder_forward.38
= control target key start
LH: loop header
LB: loop body
LE: loop exit
PB: predicated region body
PF: predicated region fallthrough
CT: control target
= control target key end

     0   :  { %s524_s15 = smov 0   ;;  %s590_s0 = inlined_call_operand.vmem [shape: bf16[32,192], index: 0, kind: input, shape index: {}]   ;;  %s591_s1 = inlined_call_operand.vmem [shape: bf16[192,96], index: 1, kind: input, shape index: {}]   ;;  %s592_s2 = inlined_call_operand.vmem [shape: f32[1,96], index: 2, kind: input, shape index: {}]   ;;  %s593_s3 = inlined_call_operand.vmem [shape: f32[1,96], index: 3, kind: input, shape index: {}]   ;;  %s594_s4 = inlined_call_operand.vmem [shape: f32[32,96], index: 4, kind: output, shape index: {}]  }
   0x1 LB: > { %s436_s16 = sadd.s32 4294967295, %s496_s15   ;;  %p440_p0 = scmp.ge.s32.totalorder %s496_s15, 1  ;;  %s496_s15 = sphi %s524_s15, %s14_s15  }
   0x2   : > { %p164_p1 = scmp.lt.s32.totalorder %s496_s15, 3 }
   0x4   : > { %p165_p2 = pnand %p440_p0, %p164_p1 }
   0x5   : > { %s441_s19 = sshll.u32 (!%p165_p2), %s436_s16, 1 }
   0x6   : > { %168 = sbr.rel (%p165_p2) target bundleno = 263 (0x107), region = 36  ;;  %p192_p3 = scmp.lt.s32.totalorder (!%p165_p2), %s441_s19, 3 }
   0xb   : > { %v475_v0 = vld [vmem:[%s591_s1 + $0x38] sm:$0xff]   ;;  %v498_v1 = vmov 0   ;;  %v476_v2 = vld [vmem:[%s591_s1 + $0x30] sm:$0xff]   ;;  %s596_s19 = smov (!%p192_p3, %s441_s19), 3  ;;  %v477_v3 = vld [vmem:[%s591_s1 + $0x28] sm:$0xff]   ;;  %vm319_vm0 = vcmask 523264  }
   0xc   : > { %323 = vmatprep.subr.bf16.mxu0 %v498_v1  ;;  %s465_s24 = sshll.u32 %s596_s19, 3  ;;  %v478_v4 = vld [vmem:[%s591_s1 + $0x20] sm:$0xff]   ;;  %v479_v6 = vld [vmem:[%s591_s1 + $0x18] sm:$0xff]   ;;  %v480_v7 = vld [vmem:[%s591_s1 + $0x10] sm:$0xff]   ;;  %vm377_vm2 = vcmask 785408  }
   0xd   : > { %324 = vmatpush1.bf16.msra.mxu0 %v475_v0  ;;  %s196_s29 = scalar_lea.vmem %s590_s0, %s465_s24  ;;  %v481_v8 = vld [vmem:[%s591_s1 + $0x8] sm:$0xff]   ;;  %v482_v9 = vld [vmem:[%s591_s1] sm:$0xff]   ;;  %v483_v10 = vld [vmem:[%s591_s1 + $0x58] sm:$0xff]   ;;  %s202_s30 = scalar_lea.vmem %s594_s4, %s465_s24 }
   0xe   : > { %325 = vmatprep.subr.bf16.mxu0 %v498_v1  ;;  %v489_v5 = vld [vmem:[%s196_s29 + $0x4] ss:$8 sps:$4 sm:$0xff]   ;;  %v484_v11 = vld [vmem:[%s591_s1 + $0x50] sm:$0xff]   ;;  %v487_v14 = vld [vmem:[%s196_s29] ss:$8 sps:$4 sm:$0xff]  }
   0xf   : > { %461 = vmatprep.mubr.msk.bf16.mxu0 %vm319_vm0, %v489_v5  ;;  %v485_v12 = vld [vmem:[%s591_s1 + $0x48] sm:$0xff]   ;;  %v486_v13 = vld [vmem:[%s591_s1 + $0x40] sm:$0xff]  }
  0x10   : > { %v446_v15 = vld [vmem:[%s592_s2] ss:$0 sm:$0xff] }
  0x11   : > { %326 = vmatpush1.bf16.msra.mxu0 %v476_v2  ;;  %v462_v17 = vld [vmem:[%s593_s3] ss:$0 sm:$0xff] }
  0x12   : > { %327 = vmatprep.subr.bf16.mxu0 %v498_v1 }
  0x15   : > { %328 = vmatpush1.bf16.msra.mxu0 %v477_v3 }
  0x16   : > { %329 = vmatprep.subr.bf16.mxu0 %v498_v1 }
  0x19   : > { %330 = vmatpush1.bf16.msra.mxu0 %v478_v4 }
  0x1a   : > { %331 = vmatprep.subr.bf16.mxu0 %v498_v1 }
  0x1d   : > { %332 = vmatpush1.bf16.msra.mxu0 %v479_v6 }
  0x1e   : > { %333 = vmatprep.subr.bf16.mxu0 %v498_v1 }
  0x21   : > { %334 = vmatpush1.bf16.msra.mxu0 %v480_v7 }
  0x22   : > { %335 = vmatprep.subr.bf16.mxu0 %v498_v1 }
  0x25   : > { %336 = vmatpush1.bf16.msra.mxu0 %v481_v8 }
  0x26   : > { %337 = vmatprep.subr.bf16.mxu0 %v498_v1 }
  0x29   : > { %338 = vmatpush1.bf16.msra.mxu0 %v482_v9 }
  0x2a   : > { %347 = vmatprep.subr.bf16.mxu0 %v498_v1 }
  0x2d   : > { %348 = vmatpush2.bf16.msra.mxu0 %v483_v10 }
  0x2e   : > { %349 = vmatprep.subr.bf16.mxu0 %v498_v1 }
  0x31   : > { %350 = vmatpush2.bf16.msra.mxu0 %v484_v11 }
  0x32   : > { %351 = vmatprep.subr.bf16.mxu0 %v498_v1 }
  0x35   : > { %352 = vmatpush2.bf16.msra.mxu0 %v485_v12 }
  0x36   : > { %353 = vmatprep.subr.bf16.mxu0 %v498_v1 }
  0x39   : > { %354 = vmatpush2.bf16.msra.mxu0 %v486_v13 }
  0x3c   : > { %356 = vmatmul.mubr.bf16.vlgmr.msra.gmra.mxu0 %v487_v14 }
  0xfc   : > { %v357_v16 = vpop.f32.mrf.mxu0 }
  0xfd   : > { %v358_v18 = vadd.f32 %v446_v15, %v357_v16 }
  0xfe   : > { %v359_v19 = vpop.f32.mrf.mxu0 }
  0xff   : > { %vm364_vm1 = vcmp.gt.f32.partialorder %v358_v18, 0.0  ;;  %v373_v20 = vmul.f32 %v462_v17, %v358_v18 }
 0x100   : > { %v360_v21 = vpop.f32.mrf.mxu0 }
 0x101   : > { %v375_v22 = vsel %vm364_vm1, %v358_v18, %v373_v20  ;;  %v361_v23 = vadd.f32 %v446_v15, %v360_v21 }
 0x102   : > { %378 = vst.msk [vmem:[%s202_s30] sm:$0xff] %vm377_vm2, %v375_v22  ;;  %v362_v24 = vpop.f32.mrf.mxu0 }
 0x103   : > { %vm365_vm3 = vcmp.gt.f32.partialorder %v361_v23, 0.0  ;;  %v374_v25 = vmul.f32 %v462_v17, %v361_v23 }
 0x105   : > { %v376_v26 = vsel %vm365_vm3, %v361_v23, %v374_v25 }
 0x106   : > { %379 = vst.msk [vmem:[%s202_s30 + $0x8] sm:$0xff] %vm377_vm2, %v376_v26 }
 0x107 PF: > { %s14_s15 = sadd.s32 1, %s496_s15  }
 0x108   : > { %p11_p4 = scmp.ge.s32.totalorder %s14_s15, 4  }
 0x10a   :  { %13 = sbr.rel (!%p11_p4) target bundleno = 1 (0x1), region = 66 }

// kernel: hyper_encoder_forward.39
= control target key start
LH: loop header
LB: loop body
LE: loop exit
PB: predicated region body
PF: predicated region fallthrough
CT: control target
= control target key end

     0   :  { %s1200_s15 = smov 0   ;;  %s1403_s0 = inlined_call_operand.vmem [shape: bf16[32,864], index: 0, kind: input, shape index: {}]   ;;  %s1404_s1 = inlined_call_operand.vmem [shape: bf16[864,96], index: 1, kind: input, shape index: {}]   ;;  %s1405_s2 = inlined_call_operand.vmem [shape: f32[1,96], index: 2, kind: input, shape index: {}]   ;;  %s1406_s3 = inlined_call_operand.vmem [shape: f32[1,96], index: 3, kind: input, shape index: {}]   ;;  %s1407_s4 = inlined_call_operand.vmem [shape: f32[32,96], index: 4, kind: output, shape index: {}]  }
   0x1 LB: > { %s926_s16 = sadd.s32 4294967295, %s1171_s15   ;;  %p930_p0 = scmp.ge.s32.totalorder %s1171_s15, 1  ;;  %s1171_s15 = sphi %s1200_s15, %s14_s15  }
   0x2   : > { %p164_p1 = scmp.lt.s32.totalorder %s1171_s15, 3 }
   0x4   : > { %p165_p2 = pnand %p930_p0, %p164_p1 }
   0x5   : > { %s931_s21 = sshll.u32 (!%p165_p2), %s926_s16, 1 }
   0x6   : > { %168 = sbr.rel (%p165_p2) target bundleno = 285 (0x11d), region = 36  ;;  %p192_p3 = scmp.lt.s32.totalorder (!%p165_p2), %s931_s21, 3 }
   0xb   : > { %v1101_v0 = vld [vmem:[%s1404_s1 + $0x78] sm:$0xff]   ;;  %v1105_v4 = vld [vmem:[%s1404_s1 + $0x70] sm:$0xff]   ;;  %v1109_v8 = vld [vmem:[%s1404_s1 + $0x68] sm:$0xff]   ;;  %s1409_s21 = smov (!%p192_p3, %s931_s21), 3  ;;  %v1173_v38 = vmov 0.0   ;;  %vm1174_vm0 = vmmov 0  }
   0xc   : > { %v1102_v1 = vld [vmem:[%s1404_s1 + $0x38] sm:$0xff]   ;;  %1001 = vmatprep.subr.bf16.mxu0 %v1101_v0  ;;  %v1106_v5 = vld [vmem:[%s1404_s1 + $0x30] sm:$0xff]   ;;  %v1110_v9 = vld [vmem:[%s1404_s1 + $0x28] sm:$0xff]   ;;  %s1090_s19 = smul.u32 28, %s1409_s21  ;;  %vm687_vm1 = vcmask 785408  }
   0xd   : > { %v1103_v2 = vld [vmem:[%s1404_s1 + $0xf8] sm:$0xff]   ;;  %1002 = vmatpush3.bf16.msra.mxu0 %v1102_v1  ;;  %v1107_v6 = vld [vmem:[%s1404_s1 + $0xf0] sm:$0xff]   ;;  %v1111_v10 = vld [vmem:[%s1404_s1 + $0xe8] sm:$0xff]  }
   0xe   : > { %v1104_v3 = vld [vmem:[%s1404_s1 + $0xb8] sm:$0xff]   ;;  %1023 = vmatprep.subr.bf16.mxu1 %v1103_v2  ;;  %1003 = vmatprep.subr.bf16.mxu0 %v1105_v4  ;;  %v1108_v7 = vld [vmem:[%s1404_s1 + $0xb0] sm:$0xff]   ;;  %v1112_v11 = vld [vmem:[%s1404_s1 + $0xa8] sm:$0xff]   ;;  %s1303_s30 = scalar_lea.vmem %s1403_s0, %s1090_s19 }
   0xf   : > { %1024 = vmatpush3.bf16.msra.mxu1 %v1104_v3  ;;  %v1113_v12 = vld [vmem:[%s1404_s1 + $0x60] sm:$0xff]   ;;  %v1117_v16 = vld [vmem:[%s1404_s1 + $0x58] sm:$0xff]   ;;  %v1121_v20 = vld [vmem:[%s1404_s1 + $0x50] sm:$0xff]  }
  0x10   : > { %1025 = vmatprep.subr.bf16.mxu1 %v1107_v6  ;;  %v1114_v13 = vld [vmem:[%s1404_s1 + $0x20] sm:$0xff]   ;;  %v1118_v17 = vld [vmem:[%s1404_s1 + $0x18] sm:$0xff]   ;;  %v1122_v21 = vld [vmem:[%s1404_s1 + $0x10] sm:$0xff]  }
  0x11   : > { %1004 = vmatpush3.bf16.msra.mxu0 %v1106_v5  ;;  %v1115_v14 = vld [vmem:[%s1404_s1 + $0xe0] sm:$0xff]   ;;  %v1119_v18 = vld [vmem:[%s1404_s1 + $0xd8] sm:$0xff]   ;;  %v1123_v22 = vld [vmem:[%s1404_s1 + $0xd0] sm:$0xff]  }
  0x12   : > { %1005 = vmatprep.subr.bf16.mxu0 %v1109_v8  ;;  %v1116_v15 = vld [vmem:[%s1404_s1 + $0xa0] sm:$0xff]   ;;  %v1120_v19 = vld [vmem:[%s1404_s1 + $0x98] sm:$0xff]   ;;  %v1124_v23 = vld [vmem:[%s1404_s1 + $0x90] sm:$0xff]  }
  0x13   : > { %1026 = vmatpush3.bf16.msra.mxu1 %v1108_v7  ;;  %v1125_v24 = vld [vmem:[%s1404_s1 + $0x48] sm:$0xff]   ;;  %v1129_v28 = vld [vmem:[%s1404_s1 + $0x40] sm:$0xff]   ;;  %v1136_v34 = vld [vmem:[%s1404_s1 + $0x178] sm:$0xff]  }
  0x14   : > { %1027 = vmatprep.subr.bf16.mxu1 %v1111_v10  ;;  %v1126_v25 = vld [vmem:[%s1404_s1 + $0x8] sm:$0xff]   ;;  %v1130_v29 = vld [vmem:[%s1404_s1] sm:$0xff]   ;;  %v1140_v37 = vld [vmem:[%s1404_s1 + $0x138] sm:$0xff]  }
  0x15   : > { %1006 = vmatpush3.bf16.msra.mxu0 %v1110_v9  ;;  %v1127_v26 = vld [vmem:[%s1404_s1 + $0xc8] sm:$0xff]   ;;  %v1131_v30 = vld [vmem:[%s1404_s1 + $0xc0] sm:$0xff]   ;;  %v1141_v39 = vld [vmem:[%s1404_s1 + $0x170] sm:$0xff]  }
  0x16   : > { %1007 = vmatprep.subr.bf16.mxu0 %v1113_v12  ;;  %v1128_v27 = vld [vmem:[%s1404_s1 + $0x88] sm:$0xff]   ;;  %v1132_v31 = vld [vmem:[%s1303_s30] ss:$28 sps:$4 sm:$0xff]   ;;  %v1142_v40 = vld [vmem:[%s1404_s1 + $0x130] sm:$0xff]  }
  0x17   : > { %1028 = vmatpush3.bf16.msra.mxu1 %v1112_v11  ;;  %v1134_v32 = vld [vmem:[%s1303_s30 + $0x4] ss:$28 sps:$4 sm:$0xff]   ;;  %v1139_v36 = vld [vmem:[%s1303_s30 + $0xc] ss:$28 sps:$4 sm:$0xff]   ;;  %v1149_v47 = vld [vmem:[%s1404_s1 + $0x158] sm:$0xff]  }
  0x18   : > { %1029 = vmatprep.subr.bf16.mxu1 %v1115_v14  ;;  %v1135_v33 = vld [vmem:[%s1404_s1 + $0x80] sm:$0xff]   ;;  %723 = vmatprep.mubr.bf16.mxu0 %v1134_v32  ;;  %v1143_v41 = vld [vmem:[%s1404_s1 + $0x168] sm:$0xff]   ;;  %v1151_v48 = vld [vmem:[%s1404_s1 + $0x198] sm:$0xff]  }
  0x19   : > { %1008 = vmatpush3.bf16.msra.mxu0 %v1114_v13  ;;  %v1137_v35 = vld [vmem:[%s1303_s30 + $0x8] ss:$28 sps:$4 sm:$0xff]   ;;  %764 = vmatprep.mubr.bf16.mxu1 %v1139_v36  ;;  %v1150_v49 = vld [vmem:[%s1404_s1 + $0x118] sm:$0xff]   ;;  %v1152_v50 = vld [vmem:[%s1404_s1 + $0x150] sm:$0xff]  }
  0x1a   : > { %1009 = vmatprep.subr.bf16.mxu0 %v1117_v16  ;;  %v1145_v42 = vld [vmem:[%s1404_s1 + $0x1a8] sm:$0xff]   ;;  %v1146_v44 = vld [vmem:[%s1404_s1 + $0x160] sm:$0xff]   ;;  %v1154_v51 = vld [vmem:[%s1404_s1 + $0x190] sm:$0xff]  }
  0x1b   : > { %1030 = vmatpush3.bf16.msra.mxu1 %v1116_v15  ;;  %v1144_v43 = vld [vmem:[%s1404_s1 + $0x128] sm:$0xff]   ;;  %v1148_v45 = vld [vmem:[%s1404_s1 + $0x1a0] sm:$0xff]   ;;  %v1153_v52 = vld [vmem:[%s1404_s1 + $0x110] sm:$0xff]  }
  0x1c   : > { %1031 = vmatprep.subr.bf16.mxu1 %v1119_v18  ;;  %v1147_v46 = vld [vmem:[%s1404_s1 + $0x120] sm:$0xff]   ;;  %v1155_v53 = vld [vmem:[%s1404_s1 + $0x148] sm:$0xff]   ;;  %v1163_v55 = vld [vmem:[%s1303_s30 + $0x14] ss:$28 sps:$4 sm:$0xff]  }
  0x1d   : > { %1010 = vmatpush3.bf16.msra.mxu0 %v1118_v17  ;;  %v1157_v54 = vld [vmem:[%s1404_s1 + $0x188] sm:$0xff]   ;;  %v1158_v57 = vld [vmem:[%s1404_s1 + $0x140] sm:$0xff]   ;;  %v1164_v60 = vld [vmem:[%s1303_s30 + $0x18] ss:$28 sps:$4 sm:$0xff]  }
  0x1e   : > { %1011 = vmatprep.subr.bf16.mxu0 %v1121_v20  ;;  %v1156_v56 = vld [vmem:[%s1404_s1 + $0x108] sm:$0xff]   ;;  %v1160_v58 = vld [vmem:[%s1404_s1 + $0x180] sm:$0xff]  }
  0x1f   : > { %1032 = vmatpush3.bf16.msra.mxu1 %v1120_v19  ;;  %v1159_v59 = vld [vmem:[%s1404_s1 + $0x100] sm:$0xff]   ;;  %v1161_v61 = vld [vmem:[%s1303_s30 + $0x10] ss:$28 sps:$4 sm:$0xff]   ;;  %s934_s30 = sshll.u32 %s1409_s21, 3 }
  0x20   : > { %1033 = vmatprep.subr.bf16.mxu1 %v1123_v22  ;;  %v935_v6 = vld [vmem:[%s1405_s2] ss:$0 sm:$0xff]  ;;  %s202_s17 = scalar_lea.vmem %s1407_s4, %s934_s30 }
  0x21   : > { %1012 = vmatpush3.bf16.msra.mxu0 %v1122_v21 }
  0x22   : > { %1013 = vmatprep.subr.bf16.mxu0 %v1125_v24 }
  0x23   : > { %1034 = vmatpush3.bf16.msra.mxu1 %v1124_v23  ;;  %v998_v23 = vld [vmem:[%s1406_s3] ss:$0 sm:$0xff] }
  0x24   : > { %1035 = vmatprep.subr.bf16.mxu1 %v1127_v26 }
  0x25   : > { %1014 = vmatpush3.bf16.msra.mxu0 %v1126_v25 }
  0x26   : > { %1015 = vmatprep.subr.bf16.mxu0 %v1129_v28 }
  0x27   : > { %1036 = vmatpush3.bf16.msra.mxu1 %v1128_v27 }
  0x28   : > { %1037 = vmatprep.subr.bf16.mxu1 %v1131_v30 }
  0x29   : > { %1016 = vmatpush3.bf16.msra.mxu0 %v1130_v29 }
  0x2a   : > { %1045 = vmatprep.subr.bf16.mxu0 %v1136_v34 }
  0x2b   : > { %1038 = vmatpush3.bf16.msra.mxu1 %v1135_v33 }
  0x2c   : > { %724 = vmatmul.mubr.bf16.vlgmr.msra.gmra.mxu0 %v1132_v31  ;;  %1074 = vmatprep.subr.bf16.mxu1 %v1173_v38 }
  0x2d   : > { %1046 = vmatpush3.bf16.msra.mxu0 %v1140_v37  ;;  %805 = vmatprep.mubr.bf16.mxu0 %v1163_v55 }
  0x2e   : > { %765 = vmatmul.mubr.bf16.vlgmr.msra.gmra.mxu1 %v1137_v35  ;;  %1047 = vmatprep.subr.bf16.mxu0 %v1141_v39 }
  0x2f   : > { %1086 = vmatprep.mubr.msk.bf16.mxu1 %vm1174_vm0, %v1173_v38  ;;  %1075 = vmatpush3.bf16.msra.mxu1 %v1145_v42 }
  0x30   : > { %1076 = vmatprep.subr.bf16.mxu1 %v1173_v38 }
  0x31   : > { %1048 = vmatpush3.bf16.msra.mxu0 %v1142_v40 }
  0x32   : > { %1049 = vmatprep.subr.bf16.mxu0 %v1143_v41 }
  0x33   : > { %1077 = vmatpush3.bf16.msra.mxu1 %v1148_v45 }
  0x34   : > { %1078 = vmatprep.subr.bf16.mxu1 %v1173_v38 }
  0x35   : > { %1050 = vmatpush3.bf16.msra.mxu0 %v1144_v43 }
  0x36   : > { %1051 = vmatprep.subr.bf16.mxu0 %v1146_v44 }
  0x37   : > { %1079 = vmatpush3.bf16.msra.mxu1 %v1151_v48 }
  0x38   : > { %1080 = vmatprep.subr.bf16.mxu1 %v1173_v38 }
  0x39   : > { %1052 = vmatpush3.bf16.msra.mxu0 %v1147_v46 }
  0x3a   : > { %1053 = vmatprep.subr.bf16.mxu0 %v1149_v47 }
  0x3b   : > { %1081 = vmatpush3.bf16.msra.mxu1 %v1154_v51 }
  0x3c   : > { %1082 = vmatprep.subr.bf16.mxu1 %v1173_v38 }
  0x3d   : > { %1054 = vmatpush3.bf16.msra.mxu0 %v1150_v49 }
  0x3e   : > { %1055 = vmatprep.subr.bf16.mxu0 %v1152_v50 }
  0x3f   : > { %1083 = vmatpush3.bf16.msra.mxu1 %v1157_v54 }
  0x40   : > { %1084 = vmatprep.subr.bf16.mxu1 %v1173_v38 }
  0x41   : > { %1056 = vmatpush3.bf16.msra.mxu0 %v1153_v52 }
  0x42   : > { %1057 = vmatprep.subr.bf16.mxu0 %v1155_v53 }
  0x43   : > { %1085 = vmatpush3.bf16.msra.mxu1 %v1160_v58 }
  0x45   : > { %1058 = vmatpush3.bf16.msra.mxu0 %v1156_v56 }
  0x46   : > { %1059 = vmatprep.subr.bf16.mxu0 %v1158_v57  ;;  %1087 = vmatmul.mubr.msk.bf16.vlgmr.msra.gmra.mxu1 %vm687_vm1, %v1164_v60 }
  0x49   : > { %1060 = vmatpush3.bf16.msra.mxu0 %v1159_v59 }
  0x4c   : > { %806 = vmatmul.mubr.bf16.vlgmr.msra.gmra.mxu0 %v1161_v61 }
  0xec   : > { %v1017_v63 = vpop.f32.mrf.mxu0 }
  0xee   : > { %v1039_v62 = vpop.f32.mrf.mxu1  ;;  %v1018_v1 = vpop.f32.mrf.mxu0 }
  0xef   : > { %v1019_v4 = vadd.f32 %v1018_v1, %v1017_v63 }
  0xf0   : > { %v1040_v0 = vpop.f32.mrf.mxu1  ;;  %v1020_v3 = vpop.f32.mrf.mxu0 }
  0xf1   : > { %v726_v9 = vadd.f32 %v1019_v4, %v935_v6  ;;  %v1041_v10 = vadd.f32 %v1040_v0, %v1039_v62 }
  0xf2   : > { %v1042_v2 = vpop.f32.mrf.mxu1  ;;  %v1021_v7 = vpop.f32.mrf.mxu0 }
  0xf3   : > { %v1022_v11 = vadd.f32 %v1021_v7, %v1020_v3  ;;  %v767_v16 = vadd.f32 %v1041_v10, %v726_v9 }
  0xf4   : > { %v1043_v5 = vpop.f32.mrf.mxu1 }
  0xf5   : > { %v729_v17 = vadd.f32 %v1022_v11, %v935_v6  ;;  %v1044_v18 = vadd.f32 %v1043_v5, %v1042_v2 }
  0xf7   : > { %v770_v25 = vadd.f32 %v1044_v18, %v729_v17 }
 0x106   : > { %v848_v8 = vpop.f32.mrf.mxu1 }
 0x108   : > { %v1088_v12 = vpop.f32.mrf.mxu1 }
 0x10a   : > { %v851_v14 = vpop.f32.mrf.mxu1 }
 0x10c   : > { %v1061_v13 = vpop.f32.mrf.mxu0  ;;  %v1089_v20 = vpop.f32.mrf.mxu1 }
 0x10e   : > { %v1062_v15 = vpop.f32.mrf.mxu0 }
 0x10f   : > { %v1063_v19 = vadd.f32 %v1062_v15, %v1061_v13 }
 0x110   : > { %v1064_v21 = vpop.f32.mrf.mxu0 }
 0x111   : > { %v808_v22 = vadd.f32 %v1063_v19, %v767_v16 }
 0x112   : > { %v1065_v24 = vpop.f32.mrf.mxu0 }
 0x113   : > { %v849_v26 = vadd.f32 %v848_v8, %v808_v22  ;;  %v1066_v27 = vadd.f32 %v1065_v24, %v1064_v21 }
 0x115   : > { %vm855_vm2 = vcmp.gt.f32.partialorder %v849_v26, 0.0  ;;  %v864_v28 = vmul.f32 %v998_v23, %v849_v26  ;;  %v811_v29 = vadd.f32 %v1066_v27, %v770_v25 }
 0x117   : > { %v866_v30 = vsel %vm855_vm2, %v849_v26, %v864_v28  ;;  %v852_v31 = vadd.f32 %v851_v14, %v811_v29 }
 0x118   : > { %868 = vst.msk [vmem:[%s202_s17] sm:$0xff] %vm687_vm1, %v866_v30 }
 0x119   : > { %vm856_vm3 = vcmp.gt.f32.partialorder %v852_v31, 0.0  ;;  %v865_v32 = vmul.f32 %v998_v23, %v852_v31 }
 0x11b   : > { %v867_v33 = vsel %vm856_vm3, %v852_v31, %v865_v32 }
 0x11c   : > { %869 = vst.msk [vmem:[%s202_s17 + $0x8] sm:$0xff] %vm687_vm1, %v867_v33 }
 0x11d PF: > { %s14_s15 = sadd.s32 1, %s1171_s15  }
 0x11e   : > { %p11_p4 = scmp.ge.s32.totalorder %s14_s15, 4  }
 0x120   :  { %13 = sbr.rel (!%p11_p4) target bundleno = 1 (0x1), region = 66 }

// kernel: hyper_encoder_forward.40
= control target key start
LH: loop header
LB: loop body
LE: loop exit
PB: predicated region body
PF: predicated region fallthrough
CT: control target
= control target key end

     0   :  { %s543_s15 = smov 0   ;;  %s606_s0 = inlined_call_operand.vmem [shape: bf16[32,96], index: 0, kind: input, shape index: {}]   ;;  %s607_s1 = inlined_call_operand.vmem [shape: bf16[96,192], index: 1, kind: input, shape index: {}]   ;;  %s608_s2 = inlined_call_operand.vmem [shape: f32[1,192], index: 2, kind: input, shape index: {}]   ;;  %s609_s3 = inlined_call_operand.vmem [shape: f32[32,192], index: 3, kind: input, shape index: {}]   ;;  %s610_s4 = inlined_call_operand.vmem [shape: f32[32,192], index: 4, kind: output, shape index: {}]  }
   0x1 LB: > { %s450_s16 = sadd.s32 4294967295, %s515_s15   ;;  %p454_p0 = scmp.ge.s32.totalorder %s515_s15, 1  ;;  %s515_s15 = sphi %s543_s15, %s14_s15  }
   0x2   : > { %p175_p1 = scmp.lt.s32.totalorder %s515_s15, 3 }
   0x4   : > { %p176_p2 = pnand %p454_p0, %p175_p1 }
   0x5   : > { %s455_s19 = sshll.u32 (!%p176_p2), %s450_s16, 1 }
   0x6   : > { %179 = sbr.rel (%p176_p2) target bundleno = 240 (0xf0), region = 36  ;;  %p209_p3 = scmp.lt.s32.totalorder (!%p176_p2), %s455_s19, 3 }
   0xb   : > { %v490_v0 = vld [vmem:[%s607_s1 + $0x54] ss:$8 sps:$4 sm:$0xff]   ;;  %v492_v1 = vld [vmem:[%s607_s1 + $0x50] ss:$8 sps:$4 sm:$0xff]   ;;  %v517_v2 = vmov 0   ;;  %s612_s19 = smov (!%p209_p3, %s455_s19), 3  ;;  %v245_v14 = vlaneseq }
   0xc   : > { %356 = vmatprep.mubr.bf16.mxu0 %v517_v2  ;;  %328 = vmatprep.subr.bf16.mxu0 %v490_v0  ;;  %v493_v3 = vld [vmem:[%s607_s1 + $0x44] ss:$8 sps:$4 sm:$0xff]   ;;  %v495_v4 = vld [vmem:[%s607_s1 + $0x40] ss:$8 sps:$4 sm:$0xff]   ;;  %v496_v5 = vld [vmem:[%s607_s1 + $0x34] ss:$8 sps:$4 sm:$0xff]  }
   0xd   : > { %329 = vmatpush1.bf16.msra.mxu0 %v492_v1  ;;  %s456_s28 = sshll.u32 %s612_s19, 2  ;;  %v498_v6 = vld [vmem:[%s607_s1 + $0x30] ss:$8 sps:$4 sm:$0xff]   ;;  %v499_v7 = vld [vmem:[%s607_s1 + $0x24] ss:$8 sps:$4 sm:$0xff]   ;;  %vm320_vm0 = vcmask 785408  }
   0xe   : > { %330 = vmatprep.subr.bf16.mxu0 %v493_v3  ;;  %s212_s7 = scalar_lea.vmem %s606_s0, %s456_s28  ;;  %v501_v8 = vld [vmem:[%s607_s1 + $0x20] ss:$8 sps:$4 sm:$0xff]   ;;  %v502_v9 = vld [vmem:[%s607_s1 + $0x14] ss:$8 sps:$4 sm:$0xff]   ;;  %v504_v10 = vld [vmem:[%s607_s1 + $0x10] ss:$8 sps:$4 sm:$0xff]  }
   0xf   : > { %v505_v11 = vld [vmem:[%s607_s1 + $0x4] ss:$8 sps:$4 sm:$0xff]   ;;  %v507_v12 = vld [vmem:[%s607_s1] ss:$8 sps:$4 sm:$0xff]   ;;  %v246_v15 = vshrl.u32 %v245_v14, 7  ;;  %s479_s22 = sshll.u32 %s612_s19, 4 }
  0x10   : > { %v508_v13 = vld [vmem:[%s212_s7] sm:$0xff]   ;;  %s219_s27 = scalar_lea.vmem %s609_s3, %s479_s22  ;;  %s226_s30 = scalar_lea.vmem %s610_s4, %s479_s22  ;;  %vm376_vm1 = vcmask 523264  }
  0x11   : > { %331 = vmatpush1.bf16.msra.mxu0 %v495_v4  ;;  %v247_v16 = vsub.s32 0, %v246_v15  ;;  %v243_v17 = vld [vmem:[%s608_s2] sm:$0x3]  ;;  %v251_v18 = vsub.s32 1, %v246_v15  ;;  %v368_v25 = vld [vmem:[%s219_s27 + $0x8] sm:$0xff]  ;;  %v369_v29 = vld [vmem:[%s219_s27 + $0x10] sm:$0xff] }
  0x12   : > { %332 = vmatprep.subr.bf16.mxu0 %v496_v5  ;;  %v367_v22 = vld [vmem:[%s219_s27] sm:$0xff]  ;;  %v370_v33 = vld [vmem:[%s219_s27 + $0x18] sm:$0xff] }
  0x13   : > { %v248_v19 = vrot.slane %v243_v17, %v247_v16  ;;  %v252_v20 = vrot.slane %v243_v17, %v251_v18 }
  0x15   : > { %333 = vmatpush1.bf16.msra.mxu0 %v498_v6 }
  0x16   : > { %334 = vmatprep.subr.bf16.mxu0 %v499_v7 }
  0x19   : > { %335 = vmatpush1.bf16.msra.mxu0 %v501_v8 }
  0x1a   : > { %336 = vmatprep.subr.bf16.mxu0 %v502_v9 }
  0x1d   : > { %337 = vmatpush1.bf16.msra.mxu0 %v504_v10 }
  0x1e   : > { %338 = vmatprep.subr.bf16.mxu0 %v505_v11 }
  0x21   : > { %339 = vmatpush1.bf16.msra.mxu0 %v507_v12 }
  0x24   : > { %476 = vmatmul.mubr.msk.bf16.vlgmr.msra.gmra.mxu0 %vm320_vm0, %v508_v13 }
  0xe4   : > { %v358_v21 = vpop.f32.mrf.mxu0 }
  0xe5   : > { %v359_v23 = vadd.f32 %v358_v21, %v248_v19 }
  0xe6   : > { %v360_v24 = vpop.f32.mrf.mxu0 }
  0xe7   : > { %v371_v26 = vadd.f32 %v367_v22, %v359_v23  ;;  %v361_v27 = vadd.f32 %v360_v24, %v252_v20 }
  0xe8   : > { %v362_v28 = vpop.f32.mrf.mxu0 }
  0xe9   : > { %375 = vst [vmem:[%s226_s30] sm:$0xff] %v371_v26  ;;  %v372_v30 = vadd.f32 %v368_v25, %v361_v27  ;;  %v363_v31 = vadd.f32 %v362_v28, %v248_v19 }
  0xea   : > { %v364_v32 = vpop.f32.mrf.mxu0 }
  0xeb   : > { %377 = vst.msk [vmem:[%s226_s30 + $0x8] sm:$0xff] %vm376_vm1, %v372_v30  ;;  %v373_v34 = vadd.f32 %v369_v29, %v363_v31  ;;  %v365_v35 = vadd.f32 %v364_v32, %v252_v20 }
  0xed   : > { %378 = vst [vmem:[%s226_s30 + $0x10] sm:$0xff] %v373_v34  ;;  %v374_v36 = vadd.f32 %v370_v33, %v365_v35 }
  0xef   : > { %379 = vst.msk [vmem:[%s226_s30 + $0x18] sm:$0xff] %vm376_vm1, %v374_v36 }
  0xf0 PF: > { %s14_s15 = sadd.s32 1, %s515_s15  }
  0xf1   : > { %p11_p4 = scmp.ge.s32.totalorder %s14_s15, 4  }
  0xf3   :  { %13 = sbr.rel (!%p11_p4) target bundleno = 1 (0x1), region = 69 }

// kernel: hyper_encoder_forward.47
= control target key start
LH: loop header
LB: loop body
LE: loop exit
PB: predicated region body
PF: predicated region fallthrough
CT: control target
= control target key end

     0   :  { %s779_s18 = smov 0   ;;  %s888_s0 = inlined_call_operand.vmem [shape: bf16[32,192], index: 0, kind: input, shape index: {}]   ;;  %s889_s1 = inlined_call_operand.vmem [shape: bf16[192,192], index: 1, kind: input, shape index: {}]   ;;  %s890_s2 = inlined_call_operand.vmem [shape: f32[1,192], index: 2, kind: input, shape index: {}]   ;;  %s891_s3 = inlined_call_operand.vmem [shape: f32[32,192], index: 3, kind: input, shape index: {}]   ;;  %s892_s4 = inlined_call_operand.vmem [shape: f32[32,192], index: 4, kind: input, shape index: {}]   ;;  %s893_s5 = inlined_call_operand.vmem [shape: f32[32,192], index: 5, kind: output, shape index: {}]  }
   0x1 LB: > { %s624_s19 = sadd.s32 4294967295, %s747_s18   ;;  %p628_p0 = scmp.ge.s32.totalorder %s747_s18, 1  ;;  %s747_s18 = sphi %s779_s18, %s15_s18  }
   0x2   : > { %p213_p1 = scmp.lt.s32.totalorder %s747_s18, 3 }
   0x4   : > { %p214_p2 = pnand %p628_p0, %p213_p1 }
   0x5   : > { %s629_s22 = sshll.u32 (!%p214_p2), %s624_s19, 1 }
   0x6   : > { %217 = sbr.rel (%p214_p2) target bundleno = 298 (0x12a), region = 40  ;;  %p256_p3 = scmp.lt.s32.totalorder (!%p214_p2), %s629_s22, 3 }
   0xb   : > { %v686_v0 = vld [vmem:[%s889_s1 + $0x74] ss:$8 sps:$4 sm:$0xff]   ;;  %v688_v1 = vld [vmem:[%s889_s1 + $0x70] ss:$8 sps:$4 sm:$0xff]   ;;  %v689_v2 = vld [vmem:[%s889_s1 + $0x64] ss:$8 sps:$4 sm:$0xff]   ;;  %v312_v26 = vlaneseq }
   0xc   : > { %455 = vmatprep.subr.bf16.mxu0 %v686_v0  ;;  %v691_v3 = vld [vmem:[%s889_s1 + $0x60] ss:$8 sps:$4 sm:$0xff]   ;;  %v692_v4 = vld [vmem:[%s889_s1 + $0x54] ss:$8 sps:$4 sm:$0xff]   ;;  %v694_v5 = vld [vmem:[%s889_s1 + $0x50] ss:$8 sps:$4 sm:$0xff]  }
   0xd   : > { %456 = vmatpush1.bf16.msra.mxu0 %v688_v1  ;;  %s895_s22 = smov (!%p256_p3, %s629_s22), 3  ;;  %v695_v6 = vld [vmem:[%s889_s1 + $0x44] ss:$8 sps:$4 sm:$0xff]   ;;  %v697_v7 = vld [vmem:[%s889_s1 + $0x40] ss:$8 sps:$4 sm:$0xff]   ;;  %vm451_vm0 = vcmask 523264  }
   0xe   : > { %457 = vmatprep.subr.bf16.mxu0 %v689_v2  ;;  %s674_s12 = sshll.u32 %s895_s22, 3  ;;  %v698_v8 = vld [vmem:[%s889_s1 + $0x34] ss:$8 sps:$4 sm:$0xff]   ;;  %v700_v9 = vld [vmem:[%s889_s1 + $0x30] ss:$8 sps:$4 sm:$0xff]   ;;  %v313_v27 = vshrl.u32 %v312_v26, 7 }
   0xf   : > { %s820_s17 = scalar_lea.vmem %s888_s0, %s674_s12  ;;  %v701_v10 = vld [vmem:[%s889_s1 + $0x24] ss:$8 sps:$4 sm:$0xff]   ;;  %v703_v12 = vld [vmem:[%s889_s1 + $0x20] ss:$8 sps:$4 sm:$0xff]   ;;  %v704_v13 = vld [vmem:[%s889_s1 + $0x14] ss:$8 sps:$4 sm:$0xff]  }
  0x10   : > { %v724_v11 = vld [vmem:[%s820_s17 + $0x4] ss:$8 sps:$4 sm:$0xff]   ;;  %v706_v14 = vld [vmem:[%s889_s1 + $0x10] ss:$8 sps:$4 sm:$0xff]   ;;  %v709_v16 = vld [vmem:[%s889_s1] ss:$8 sps:$4 sm:$0xff]  }
  0x11   : > { %458 = vmatpush1.bf16.msra.mxu0 %v691_v3  ;;  %667 = vmatprep.mubr.msk.bf16.mxu0 %vm451_vm0, %v724_v11  ;;  %v707_v15 = vld [vmem:[%s889_s1 + $0x4] ss:$8 sps:$4 sm:$0xff]   ;;  %v710_v17 = vld [vmem:[%s889_s1 + $0xb4] ss:$8 sps:$4 sm:$0xff]   ;;  %v712_v18 = vld [vmem:[%s889_s1 + $0xb0] ss:$8 sps:$4 sm:$0xff]  }
  0x12   : > { %459 = vmatprep.subr.bf16.mxu0 %v692_v4  ;;  %v713_v19 = vld [vmem:[%s889_s1 + $0xa4] ss:$8 sps:$4 sm:$0xff]   ;;  %v715_v20 = vld [vmem:[%s889_s1 + $0xa0] ss:$8 sps:$4 sm:$0xff]   ;;  %v716_v21 = vld [vmem:[%s889_s1 + $0x94] ss:$8 sps:$4 sm:$0xff]  }
  0x13   : > { %v718_v22 = vld [vmem:[%s889_s1 + $0x90] ss:$8 sps:$4 sm:$0xff]   ;;  %v719_v23 = vld [vmem:[%s889_s1 + $0x84] ss:$8 sps:$4 sm:$0xff]   ;;  %v721_v24 = vld [vmem:[%s889_s1 + $0x80] ss:$8 sps:$4 sm:$0xff]  }
  0x14   : > { %v722_v25 = vld [vmem:[%s820_s17] ss:$8 sps:$4 sm:$0xff]   ;;  %v314_v28 = vsub.s32 0, %v313_v27  ;;  %v318_v30 = vsub.s32 1, %v313_v27  ;;  %s675_s17 = sshll.u32 %s895_s22, 4 }
  0x15   : > { %460 = vmatpush1.bf16.msra.mxu0 %v694_v5  ;;  %v310_v29 = vld [vmem:[%s890_s2] sm:$0x3]  ;;  %s274_s7 = scalar_lea.vmem %s892_s4, %s675_s17  ;;  %s267_s10 = scalar_lea.vmem %s891_s3, %s675_s17 }
  0x16   : > { %461 = vmatprep.subr.bf16.mxu0 %v695_v6  ;;  %v315_v31 = vrot.slane %v310_v29, %v314_v28  ;;  %v319_v32 = vrot.slane %v310_v29, %v318_v30  ;;  %v526_v53 = vld [vmem:[%s274_s7] sm:$0xff]  ;;  %v527_v56 = vld [vmem:[%s274_s7 + $0x8] sm:$0xff]  ;;  %s281_s13 = scalar_lea.vmem %s893_s5, %s675_s17  ;;  %v528_v60 = vld [vmem:[%s274_s7 + $0x10] sm:$0xff] }
  0x17   : > { %v522_v55 = vld [vmem:[%s267_s10] sm:$0xff]  ;;  %v523_v59 = vld [vmem:[%s267_s10 + $0x8] sm:$0xff]  ;;  %v524_v0 = vld [vmem:[%s267_s10 + $0x10] sm:$0xff] }
  0x18   : > { %v529_v1 = vld [vmem:[%s274_s7 + $0x18] sm:$0xff] }
  0x19   : > { %462 = vmatpush1.bf16.msra.mxu0 %v697_v7  ;;  %v525_v5 = vld [vmem:[%s267_s10 + $0x18] sm:$0xff] }
  0x1a   : > { %463 = vmatprep.subr.bf16.mxu0 %v698_v8 }
  0x1d   : > { %464 = vmatpush1.bf16.msra.mxu0 %v700_v9 }
  0x1e   : > { %465 = vmatprep.subr.bf16.mxu0 %v701_v10 }
  0x21   : > { %466 = vmatpush1.bf16.msra.mxu0 %v703_v12 }
  0x22   : > { %467 = vmatprep.subr.bf16.mxu0 %v704_v13 }
  0x25   : > { %468 = vmatpush1.bf16.msra.mxu0 %v706_v14 }
  0x26   : > { %469 = vmatprep.subr.bf16.mxu0 %v707_v15 }
  0x29   : > { %470 = vmatpush1.bf16.msra.mxu0 %v709_v16 }
  0x2a   : > { %479 = vmatprep.subr.bf16.mxu0 %v710_v17 }
  0x2d   : > { %480 = vmatpush2.bf16.msra.mxu0 %v712_v18 }
  0x2e   : > { %481 = vmatprep.subr.bf16.mxu0 %v713_v19 }
  0x31   : > { %482 = vmatpush2.bf16.msra.mxu0 %v715_v20 }
  0x32   : > { %483 = vmatprep.subr.bf16.mxu0 %v716_v21 }
  0x35   : > { %484 = vmatpush2.bf16.msra.mxu0 %v718_v22 }
  0x36   : > { %485 = vmatprep.subr.bf16.mxu0 %v719_v23 }
  0x39   : > { %486 = vmatpush2.bf16.msra.mxu0 %v721_v24 }
  0x3c   : > { %488 = vmatmul.mubr.bf16.vlgmr.msra.gmra.mxu0 %v722_v25 }
  0xfc   : > { %v489_v33 = vpop.f32.mrf.mxu0 }
  0xfd   : > { %v490_v34 = vadd.f32 %v489_v33, %v315_v31 }
  0xfe   : > { %v491_v35 = vpop.f32.mrf.mxu0 }
  0xff   : > { %v668_v36 = vmul.f32 -1.442695, %v490_v34  ;;  %v492_v37 = vadd.f32 %v491_v35, %v319_v32 }
 0x100   : > { %v493_v38 = vpop.f32.mrf.mxu0 }
 0x101   : > { %725 = vpow2.f32 %v668_v36  ;;  %v669_v39 = vmul.f32 -1.442695, %v492_v37  ;;  %v494_v40 = vadd.f32 %v493_v38, %v315_v31 }
 0x102   : > { %v495_v41 = vpop.f32.mrf.mxu0 }
 0x103   : > { %727 = vpow2.f32 %v669_v39  ;;  %v670_v42 = vmul.f32 -1.442695, %v494_v40  ;;  %v496_v43 = vadd.f32 %v495_v41, %v319_v32 }
 0x105   : > { %729 = vpow2.f32 %v670_v42  ;;  %v671_v44 = vmul.f32 -1.442695, %v496_v43 }
 0x107   : > { %731 = vpow2.f32 %v671_v44 }
 0x10e   : > { %v726_v45 = vpop.eup %725 }
 0x10f   : > { %v510_v46 = vadd.f32 1.0, %v726_v45 }
 0x110   : > { %v728_v47 = vpop.eup %727 }
 0x111   : > { %733 = vrcp.f32 %v510_v46  ;;  %v511_v48 = vadd.f32 1.0, %v728_v47 }
 0x112   : > { %v730_v49 = vpop.eup %729 }
 0x113   : > { %735 = vrcp.f32 %v511_v48  ;;  %v512_v50 = vadd.f32 1.0, %v730_v49 }
 0x114   : > { %v732_v51 = vpop.eup %731 }
 0x115   : > { %737 = vrcp.f32 %v512_v50  ;;  %v513_v52 = vadd.f32 1.0, %v732_v51 }
 0x117   : > { %739 = vrcp.f32 %v513_v52 }
 0x11e   : > { %v734_v54 = vpop.eup %733 }
 0x11f   : > { %v530_v57 = vmul.f32 %v734_v54, %v526_v53 }
 0x120   : > { %v736_v58 = vpop.eup %735 }
 0x121   : > { %v534_v61 = vadd.f32 %v530_v57, %v522_v55  ;;  %v531_v62 = vmul.f32 %v736_v58, %v527_v56 }
 0x122   : > { %v738_v63 = vpop.eup %737 }
 0x123   : > { %538 = vst [vmem:[%s281_s13] sm:$0xff] %v534_v61  ;;  %v535_v2 = vadd.f32 %v531_v62, %v523_v59  ;;  %v532_v3 = vmul.f32 %v738_v63, %v528_v60 }
 0x124   : > { %v740_v4 = vpop.eup %739 }
 0x125   : > { %539 = vst.msk [vmem:[%s281_s13 + $0x8] sm:$0xff] %vm451_vm0, %v535_v2  ;;  %v536_v6 = vadd.f32 %v532_v3, %v524_v0  ;;  %v533_v7 = vmul.f32 %v740_v4, %v529_v1 }
 0x127   : > { %540 = vst [vmem:[%s281_s13 + $0x10] sm:$0xff] %v536_v6  ;;  %v537_v8 = vadd.f32 %v533_v7, %v525_v5 }
 0x129   : > { %541 = vst.msk [vmem:[%s281_s13 + $0x18] sm:$0xff] %vm451_vm0, %v537_v8 }
 0x12a PF: > { %s15_s18 = sadd.s32 1, %s747_s18  }
 0x12b   : > { %p12_p4 = scmp.ge.s32.totalorder %s15_s18, 4  }
 0x12d   :  { %14 = sbr.rel (!%p12_p4) target bundleno = 1 (0x1), region = 76 }

</bundles_post_ra>
